<compile_context>
chip_gen: v5e
topology: v5e:2x2
jax: 0.10.0
libtpu: 0.0.40
codegen_flags: <defaults>
</compile_context>

<pallas_src>
import functools

import jax
import jax.numpy as jnp
from jax.experimental import pallas as pl
from jax.experimental.pallas import tpu as pltpu


LIST_FEATS_B0 = [32, 32, 24, 40, 112, 320]   # EfficientEncoder.init_list_channels


# ----------------------------------------------------------------------------
# geometry helpers (all static Python)
# ----------------------------------------------------------------------------
def _round_up(x, m):
    return -(-x // m) * m


def _same_pad(n, k, s):
    """TF-style SAME padding: returns (n_out, pad_lo, pad_hi)."""
    o = -(-n // s)
    p = max((o - 1) * s + k - n, 0)
    return o, p // 2, p - p // 2


def _build_geometry(h, w):
    """Static geometry of the fused encoder for an (h, w) input."""
    _, st_t, st_b = _same_pad(h, 3, 1)
    _, st_l, st_r = _same_pad(w, 3, 1)
    _, s1_t, s1_b = _same_pad(h, 3, 2)
    _, s1_l, s1_r = _same_pad(w, 3, 2)

    stages = []                                   # five stride-2 3x3 stages
    h_cur, w_cur = h, w
    for _ in range(5):
        ho, pt, pb = _same_pad(h_cur, 3, 2)
        wo, pw_l, pw_r = _same_pad(w_cur, 3, 2)
        stages.append(dict(h_in=h_cur, w_in=w_cur, ho=ho, wo=wo,
                           pt=pt, pb=pb, pl=pw_l, pr=pw_r))
        h_cur, w_cur = ho, wo

    # VMEM scratch j holds the zero-padded input of stage j+2 (j = 0..3):
    # width is rounded to a multiple of 8 so row starts are sublane-aligned.
    scr = []
    for j in range(4):
        nxt = stages[j + 1]
        scr.append(dict(hp=nxt["h_in"] + nxt["pt"] + nxt["pb"],
                        wp=_round_up(nxt["w_in"] + nxt["pl"] + nxt["pr"], 8),
                        r0=nxt["pt"], c0=nxt["pl"]))

    return dict(h=h, w=w,
                stem_pad=(st_t, st_b, st_l, st_r),
                s1_pad=(s1_t, s1_b, s1_l, s1_r),
                stages=stages, scr=scr)


def _vmem_capacity_bytes():
    try:
        return int(pltpu.get_tpu_info().vmem_capacity_bytes)
    except Exception:
        return 64 * 1024 * 1024          # v7x per-TensorCore VMEM (worst case)


def _vmem_tile_bytes(rows, cols, dtype):
    itemsize = jnp.dtype(dtype).itemsize
    sub = 8 * (4 // itemsize)            # 8 sublanes for f32, 16 for bf16
    return _round_up(max(rows, 1), sub) * _round_up(cols, 128) * itemsize


# ----------------------------------------------------------------------------
# fused Pallas kernel: stem + 5 deep stages, one grid step per batch element
# ----------------------------------------------------------------------------
def _fused_encoder_kernel(*refs, geom, chans):
    it = iter(refs)
    stem_lhs = next(it)                       # (H*W, 27)        f32
    s1_lhs = next(it)                         # (h1*w1, 27)      bf16
    stem_w, stem_b = next(it), next(it)       # (27, 32) f32, (1, 32) f32
    s1_w, s1_b = next(it), next(it)           # (27, 32) bf16, (1, 32) f32
    deep_w, deep_b = [], []
    for _ in range(4):                        # stages 2..5
        deep_w.append(next(it))               # (9, cin, cout)   bf16
        deep_b.append(next(it))               # (1, cout)        f32
    outs = [next(it) for _ in range(6)]       # flat (rows, C)   f32
    act_scr = [next(it) for _ in range(4)]    # padded activations, f32

    # Borders of the padded intermediate activations must be zero.
    for scr in act_scr:
        scr[...] = jnp.zeros_like(scr)

    # ---- stem: 3x3 stride-1 conv + bias (single folded-K GEMM, K = 27) ----
    # TODO(synk): DynamicConv2d's default norm/activation is not given in the
    # reference snippet; conv + bias only.
    s0 = jnp.dot(stem_lhs[...], stem_w[...], preferred_element_type=jnp.float32)
    outs[0][...] = s0 + stem_b[...]

    # ---- stage 1: 3x3 stride-2 conv + SiLU (single folded-K GEMM, K = 27) ----
    a1 = jnp.dot(s1_lhs[...], s1_w[...], preferred_element_type=jnp.float32)
    a1 = a1 + s1_b[...]
    a1 = a1 * jax.nn.sigmoid(a1)
    outs[1][...] = a1
    st1, sc0 = geom["stages"][0], geom["scr"][0]
    wo1 = st1["wo"]
    for y in range(st1["ho"]):                # seed stage-2's padded input
        act_scr[0][pl.ds((sc0["r0"] + y) * sc0["wp"] + sc0["c0"], wo1), :] = (
            a1[y * wo1:(y + 1) * wo1, :])

    # ---- stages 2..5: 3x3 stride-2 conv + SiLU, chained entirely in VMEM ----
    # TODO(synk): the frozen pretrained StageEfficientNet (MBConv / SE / BN)
    # has no in-script equivalent; each stage is a stride-2 conv + SiLU that
    # reproduces efficientnet-b0's per-stage channels and spatial strides.
    for j in range(4):
        st = geom["stages"][j + 1]
        ho, wo, cout = st["ho"], st["wo"], chans[j + 2]
        sc_in = geom["scr"][j]
        in_ref, wp_in = act_scr[j], sc_in["wp"]
        w_ref, b_ref = deep_w[j], deep_b[j]
        out_ref = outs[j + 2]
        nxt = (act_scr[j + 1], geom["scr"][j + 1]) if j < 3 else None

        for y in range(ho):
            acc = jnp.zeros((wo, cout), jnp.float32)
            for ky in range(3):
                row_base = (2 * y + ky) * wp_in
                for kx in range(3):
                    if wo == 1:
                        lhs = in_ref[pl.ds(row_base + kx, 1), :]
                    else:                     # stride-2 tap read, no im2col
                        lhs = in_ref[pl.ds(row_base + kx, wo, stride=2), :]
                    acc = acc + jnp.dot(lhs.astype(jnp.bfloat16),
                                        w_ref[3 * ky + kx],
                                        preferred_element_type=jnp.float32)
            acc = acc + b_ref[...]
            acc = acc * jax.nn.sigmoid(acc)   # SiLU epilogue in f32
            out_ref[pl.ds(y * wo, wo), :] = acc
            if nxt is not None:               # feed the next stage in VMEM
                nref, sc = nxt
                nref[pl.ds((sc["r0"] + y) * sc["wp"] + sc["c0"], wo), :] = acc


# ----------------------------------------------------------------------------
# parameters: raw OIHW (for the reference) + MXU-ready packed weights (cached)
# ----------------------------------------------------------------------------
def init_params(key):
    def conv_init(k_, cin_, cout_):
        kw, kb = jax.random.split(k_)
        w_ = jax.random.normal(kw, (cout_, cin_, 3, 3), jnp.float32) / jnp.sqrt(9.0 * cin_)
        b_ = 0.01 * jax.random.normal(kb, (cout_,), jnp.float32)
        return {"w": w_, "b": b_}

    keys = jax.random.split(key, len(LIST_FEATS_B0))
    raw = {"stem": conv_init(keys[0], 3, LIST_FEATS_B0[0]), "stages": []}
    cin = 3
    for i, cout_ in enumerate(LIST_FEATS_B0[1:]):
        raw["stages"].append(conv_init(keys[i + 1], cin, cout_))
        cin = cout_

    # Pack weights once (review: no per-forward repacking glue).
    def fold27(w_, dtype):     # (cout, 3, 3, 3) -> (27, cout), (ky, kx, c) major
        return jnp.transpose(w_, (2, 3, 1, 0)).reshape(27, w_.shape[0]).astype(dtype)

    def taps9(w_, dtype):      # (cout, cin, 3, 3) -> (9, cin, cout), tap-major
        cout_, cin_ = w_.shape[0], w_.shape[1]
        return jnp.transpose(w_, (2, 3, 1, 0)).reshape(9, cin_, cout_).astype(dtype)

    packed = {
        "stem_w": fold27(raw["stem"]["w"], jnp.float32),   # stem stays f32
        "stem_b": raw["stem"]["b"].reshape(1, -1).astype(jnp.float32),
        "s1_w": fold27(raw["stages"][0]["w"], jnp.bfloat16),
        "s1_b": raw["stages"][0]["b"].reshape(1, -1).astype(jnp.float32),
        "deep": [{"w": taps9(st["w"], jnp.bfloat16),
                  "b": st["b"].reshape(1, -1).astype(jnp.float32)}
                 for st in raw["stages"][1:]],
    }
    return {"raw": raw, "packed": packed}


# ----------------------------------------------------------------------------
# public forward (NCHW in, list of 6 NCHW features out)
# ----------------------------------------------------------------------------
def color2depth_encoder_forward(params, color_nchw):
    x = jnp.transpose(color_nchw, (0, 2, 3, 1)).astype(jnp.float32)   # NHWC once
    n, h, w, cin = x.shape
    assert cin == 3
    geom = _build_geometry(h, w)
    chans = LIST_FEATS_B0
    h1, w1 = geom["stages"][0]["ho"], geom["stages"][0]["wo"]

    # Folded-K patch tensors for the two 3-channel convs (stem / stage 1).
    # These are KB-scale, input-side only (not the per-stage halo-dup stack):
    # they turn the low-channel convs into single K=27 GEMMs on the MXU.
    st_t, st_b, st_l, st_r = geom["stem_pad"]
    s1_t, s1_b_, s1_l, s1_r = geom["s1_pad"]
    xp1 = jnp.pad(x, ((0, 0), (st_t, st_b), (st_l, st_r), (0, 0)))
    stem_lhs = jnp.concatenate(
        [xp1[:, ky:ky + h, kx:kx + w, :] for ky in range(3) for kx in range(3)],
        axis=-1).reshape(n, h * w, 27)
    xp2 = jnp.pad(x, ((0, 0), (s1_t, s1_b_), (s1_l, s1_r), (0, 0)))
    s1_lhs = jnp.concatenate(
        [xp2[:, ky:ky + 2 * h1 - 1:2, kx:kx + 2 * w1 - 1:2, :]
         for ky in range(3) for kx in range(3)],
        axis=-1).reshape(n, h1 * w1, 27).astype(jnp.bfloat16)

    pk = params["packed"]
    weight_args = [pk["stem_w"], pk["stem_b"], pk["s1_w"], pk["s1_b"]]
    for s in pk["deep"]:
        weight_args += [s["w"], s["b"]]

    sp = [(h, w)] + [(st["ho"], st["wo"]) for st in geom["stages"]]
    out_shape = [jax.ShapeDtypeStruct((n, hh * ww, cc), jnp.float32)
                 for (hh, ww), cc in zip(sp, chans)]
    out_specs = [pl.BlockSpec((None, hh * ww, cc), lambda b: (b, 0, 0))
                 for (hh, ww), cc in zip(sp, chans)]

    in_specs = [pl.BlockSpec((None, h * w, 27), lambda b: (b, 0, 0)),
                pl.BlockSpec((None, h1 * w1, 27), lambda b: (b, 0, 0))]
    for a in weight_args:
        in_specs.append(pl.BlockSpec(a.shape, lambda b, _nd=a.ndim: (0,) * _nd))

    scratch_shapes = [pltpu.VMEM((sc["hp"] * sc["wp"], cc), jnp.float32)
                      for sc, cc in zip(geom["scr"], chans[1:5])]

    # Generation-aware VMEM budgeting (derive the limit from the chip).
    est = 2 * _vmem_tile_bytes(h * w, 27, jnp.float32)
    est += 2 * _vmem_tile_bytes(h1 * w1, 27, jnp.bfloat16)
    for a in weight_args:
        rows = 1
        for d in a.shape[:-1]:
            rows *= d
        est += 2 * _vmem_tile_bytes(rows, a.shape[-1], a.dtype)
    for (hh, ww), cc in zip(sp, chans):
        est += 2 * _vmem_tile_bytes(hh * ww, cc, jnp.float32)
    for sc, cc in zip(geom["scr"], chans[1:5]):
        est += _vmem_tile_bytes(sc["hp"] * sc["wp"], cc, jnp.float32)

    cap = _vmem_capacity_bytes()
    vmem_limit = int(min(0.9 * cap, 100 * 1024 * 1024))
    if int(1.3 * est) > vmem_limit:
        # TODO(synk): large inputs need a per-stage row-tiled (BlockSpec
        # pipelined) fallback; out of scope for the sizes exercised here.
        raise NotImplementedError(
            f"fused encoder working set (~{est >> 20} MiB) does not fit VMEM")

    kernel = functools.partial(_fused_encoder_kernel, geom=geom, chans=chans)
    outs = pl.pallas_call(
        kernel,
        out_shape=out_shape,
        grid_spec=pltpu.PrefetchScalarGridSpec(
            num_scalar_prefetch=0,
            grid=(n,),                              # one step per batch element
            in_specs=in_specs,
            out_specs=out_specs,
            scratch_shapes=scratch_shapes),
        compiler_params=pltpu.CompilerParams(
            dimension_semantics=("parallel",),      # v7x: shard batch over 2 TCs
            vmem_limit_bytes=vmem_limit),
    )(stem_lhs, s1_lhs, *weight_args)

    feats = []
    for o, (hh, ww), cc in zip(outs, sp, chans):
        feats.append(jnp.transpose(o.reshape(n, hh, ww, cc), (0, 3, 1, 2)))
    return feats


# ----------------------------------------------------------------------------
# plain-JAX reference (XLA convs) used to numerically validate the Pallas path
# ----------------------------------------------------------------------------
def _reference_forward(params, color_nchw):
    raw = params["raw"]

    def ref_conv(xin, w_, b_, stride, act):
        out = jax.lax.conv_general_dilated(
            xin, jnp.transpose(w_, (2, 3, 1, 0)),
            window_strides=(stride, stride), padding="SAME",
            dimension_numbers=("NHWC", "HWIO", "NHWC"),
            precision=jax.lax.Precision.HIGHEST)
        out = out + b_.reshape(1, 1, 1, -1)
        if act == "silu":
            out = out * jax.nn.sigmoid(out)
        return out

    x = jnp.transpose(color_nchw, (0, 2, 3, 1)).astype(jnp.float32)
    feats = [ref_conv(x, raw["stem"]["w"], raw["stem"]["b"], 1, None)]
    hfeat = x
    for stage in raw["stages"]:
        hfeat = ref_conv(hfeat, stage["w"], stage["b"], 2, "silu")
        feats.append(hfeat)
    return [jnp.transpose(f, (0, 3, 1, 2)) for f in feats]


if __name__ == "__main__":
    key = jax.random.PRNGKey(0)
    pkey, xkey = jax.random.split(key)
    params = init_params(pkey)

    color = jax.random.normal(xkey, (2, 3, 32, 32), jnp.float32)   # NCHW

    feats = jax.block_until_ready(
        jax.jit(color2depth_encoder_forward)(params, color))

    expected_hw = [32, 16, 8, 4, 2, 1]
    assert len(feats) == 6
    for f, c, s in zip(feats, LIST_FEATS_B0, expected_hw):
        assert f.shape == (2, c, s, s), f.shape
        assert f.dtype == jnp.float32

    # Numerical check vs. the XLA reference (bf16 deep-stage weights -> loose tol).
    refs = jax.block_until_ready(jax.jit(_reference_forward)(params, color))
    for i, (f, r) in enumerate(zip(feats, refs)):
        rel = jnp.linalg.norm(f - r) / (jnp.linalg.norm(r) + 1e-6)
        assert float(rel) < 0.1, (i, float(rel))

    print("KERNEL_OK")
</pallas_src>

<mosaic_0001>
module attributes {stable_mosaic.version = 11 : i64} {
  func.func @_fused_encoder_kernel(%arg0: i32, %arg1: memref<1x1024x27xf32, #tpu.memory_space<vmem>>, %arg2: memref<1x256x27xbf16, #tpu.memory_space<vmem>>, %arg3: memref<27x32xf32, #tpu.memory_space<vmem>>, %arg4: memref<1x32xf32, #tpu.memory_space<vmem>>, %arg5: memref<27x32xbf16, #tpu.memory_space<vmem>>, %arg6: memref<1x32xf32, #tpu.memory_space<vmem>>, %arg7: memref<9x32x24xbf16, #tpu.memory_space<vmem>>, %arg8: memref<1x24xf32, #tpu.memory_space<vmem>>, %arg9: memref<9x24x40xbf16, #tpu.memory_space<vmem>>, %arg10: memref<1x40xf32, #tpu.memory_space<vmem>>, %arg11: memref<9x40x112xbf16, #tpu.memory_space<vmem>>, %arg12: memref<1x112xf32, #tpu.memory_space<vmem>>, %arg13: memref<9x112x320xbf16, #tpu.memory_space<vmem>>, %arg14: memref<1x320xf32, #tpu.memory_space<vmem>>, %arg15: memref<1x1024x32xf32, #tpu.memory_space<vmem>>, %arg16: memref<1x256x32xf32, #tpu.memory_space<vmem>>, %arg17: memref<1x64x24xf32, #tpu.memory_space<vmem>>, %arg18: memref<1x16x40xf32, #tpu.memory_space<vmem>>, %arg19: memref<1x4x112xf32, #tpu.memory_space<vmem>>, %arg20: memref<1x1x320xf32, #tpu.memory_space<vmem>>, %arg21: memref<408x32xf32, #tpu.memory_space<vmem>>, %arg22: memref<144x24xf32, #tpu.memory_space<vmem>>, %arg23: memref<40x40xf32, #tpu.memory_space<vmem>>, %arg24: memref<24x112xf32, #tpu.memory_space<vmem>>) attributes {dimension_semantics = [#tpu.dimension_semantics<parallel>], iteration_bounds = array<i64: 2>, scalar_prefetch = 0 : i64, scratch_operands = 4 : i64, tpu.core_type = #tpu.core_type<tc>, window_params = [{transform_indices = @transform_0, window_bounds = array<i64: 1, 1024, 27>}, {transform_indices = @transform_1, window_bounds = array<i64: 1, 256, 27>}, {pipeline_mode = #tpu.pipeline_mode<synchronous>, transform_indices = @transform_2, window_bounds = array<i64: 27, 32>}, {pipeline_mode = #tpu.pipeline_mode<synchronous>, transform_indices = @transform_3, window_bounds = array<i64: 1, 32>}, {pipeline_mode = #tpu.pipeline_mode<synchronous>, transform_indices = @transform_4, window_bounds = array<i64: 27, 32>}, {pipeline_mode = #tpu.pipeline_mode<synchronous>, transform_indices = @transform_5, window_bounds = array<i64: 1, 32>}, {pipeline_mode = #tpu.pipeline_mode<synchronous>, transform_indices = @transform_6, window_bounds = array<i64: 9, 32, 24>}, {pipeline_mode = #tpu.pipeline_mode<synchronous>, transform_indices = @transform_7, window_bounds = array<i64: 1, 24>}, {pipeline_mode = #tpu.pipeline_mode<synchronous>, transform_indices = @transform_8, window_bounds = array<i64: 9, 24, 40>}, {pipeline_mode = #tpu.pipeline_mode<synchronous>, transform_indices = @transform_9, window_bounds = array<i64: 1, 40>}, {pipeline_mode = #tpu.pipeline_mode<synchronous>, transform_indices = @transform_10, window_bounds = array<i64: 9, 40, 112>}, {pipeline_mode = #tpu.pipeline_mode<synchronous>, transform_indices = @transform_11, window_bounds = array<i64: 1, 112>}, {pipeline_mode = #tpu.pipeline_mode<synchronous>, transform_indices = @transform_12, window_bounds = array<i64: 9, 112, 320>}, {pipeline_mode = #tpu.pipeline_mode<synchronous>, transform_indices = @transform_13, window_bounds = array<i64: 1, 320>}, {transform_indices = @transform_14, window_bounds = array<i64: 1, 1024, 32>}, {transform_indices = @transform_15, window_bounds = array<i64: 1, 256, 32>}, {transform_indices = @transform_16, window_bounds = array<i64: 1, 64, 24>}, {transform_indices = @transform_17, window_bounds = array<i64: 1, 16, 40>}, {transform_indices = @transform_18, window_bounds = array<i64: 1, 4, 112>}, {transform_indices = @transform_19, window_bounds = array<i64: 1, 1, 320>}]} {
    %cst = arith.constant 0.000000e+00 : f32
    %0 = vector.broadcast %cst : f32 to vector<408x32xf32>
    %c0 = arith.constant 0 : index
    %c0_0 = arith.constant 0 : index
    %1 = vector.load %arg21[%c0, %c0_0] : memref<408x32xf32, #tpu.memory_space<vmem>>, vector<408x32xf32>
    tpu.vector_store %arg21[%c0, %c0_0], %0 {strides = array<i32>} : memref<408x32xf32, #tpu.memory_space<vmem>>, vector<408x32xf32>,
    %cst_1 = arith.constant 0.000000e+00 : f32
    %2 = vector.broadcast %cst_1 : f32 to vector<144x24xf32>
    %c0_2 = arith.constant 0 : index
    %c0_3 = arith.constant 0 : index
    %3 = vector.load %arg22[%c0_2, %c0_3] : memref<144x24xf32, #tpu.memory_space<vmem>>, vector<144x24xf32>
    tpu.vector_store %arg22[%c0_2, %c0_3], %2 {strides = array<i32>} : memref<144x24xf32, #tpu.memory_space<vmem>>, vector<144x24xf32>,
    %cst_4 = arith.constant 0.000000e+00 : f32
    %4 = vector.broadcast %cst_4 : f32 to vector<40x40xf32>
    %c0_5 = arith.constant 0 : index
    %c0_6 = arith.constant 0 : index
    %5 = vector.load %arg23[%c0_5, %c0_6] : memref<40x40xf32, #tpu.memory_space<vmem>>, vector<40x40xf32>
    tpu.vector_store %arg23[%c0_5, %c0_6], %4 {strides = array<i32>} : memref<40x40xf32, #tpu.memory_space<vmem>>, vector<40x40xf32>,
    %cst_7 = arith.constant 0.000000e+00 : f32
    %6 = vector.broadcast %cst_7 : f32 to vector<24x112xf32>
    %c0_8 = arith.constant 0 : index
    %c0_9 = arith.constant 0 : index
    %7 = vector.load %arg24[%c0_8, %c0_9] : memref<24x112xf32, #tpu.memory_space<vmem>>, vector<24x112xf32>
    tpu.vector_store %arg24[%c0_8, %c0_9], %6 {strides = array<i32>} : memref<24x112xf32, #tpu.memory_space<vmem>>, vector<24x112xf32>,
    %c0_10 = arith.constant 0 : index
    %c0_11 = arith.constant 0 : index
    %c0_12 = arith.constant 0 : index
    %8 = vector.load %arg1[%c0_10, %c0_11, %c0_12] : memref<1x1024x27xf32, #tpu.memory_space<vmem>>, vector<1x1024x27xf32>
    %9 = vector.shape_cast %8 : vector<1x1024x27xf32> to vector<1024x27xf32>
    %c0_13 = arith.constant 0 : index
    %c0_14 = arith.constant 0 : index
    %10 = vector.load %arg3[%c0_13, %c0_14] : memref<27x32xf32, #tpu.memory_space<vmem>>, vector<27x32xf32>
    %cst_15 = arith.constant dense<0.000000e+00> : vector<1024x32xf32>
    %11 = tpu.matmul %9, %10, %cst_15 {dimension_numbers = #tpu.dot_dimension_numbers<[1], [0], [0], [1], [0, 0, 1, 1], [], []>} : vector<1024x27xf32>, vector<27x32xf32>, vector<1024x32xf32> -> vector<1024x32xf32>
    %c0_16 = arith.constant 0 : index
    %c0_17 = arith.constant 0 : index
    %12 = vector.load %arg4[%c0_16, %c0_17] : memref<1x32xf32, #tpu.memory_space<vmem>>, vector<1x32xf32>
    %13 = vector.broadcast %12 : vector<1x32xf32> to vector<1024x32xf32>
    %14 = arith.addf %11, %13 : vector<1024x32xf32>
    %c0_18 = arith.constant 0 : index
    %c0_19 = arith.constant 0 : index
    %c0_20 = arith.constant 0 : index
    %15 = vector.load %arg15[%c0_18, %c0_19, %c0_20] : memref<1x1024x32xf32, #tpu.memory_space<vmem>>, vector<1x1024x32xf32>
    %16 = vector.shape_cast %15 : vector<1x1024x32xf32> to vector<1024x32xf32>
    %17 = vector.shape_cast %14 : vector<1024x32xf32> to vector<1x1024x32xf32>
    tpu.vector_store %arg15[%c0_18, %c0_19, %c0_20], %17 {strides = array<i32>} : memref<1x1024x32xf32, #tpu.memory_space<vmem>>, vector<1x1024x32xf32>,
    %c0_21 = arith.constant 0 : index
    %c0_22 = arith.constant 0 : index
    %c0_23 = arith.constant 0 : index
    %18 = vector.load %arg2[%c0_21, %c0_22, %c0_23] : memref<1x256x27xbf16, #tpu.memory_space<vmem>>, vector<1x256x27xbf16>
    %19 = vector.shape_cast %18 : vector<1x256x27xbf16> to vector<256x27xbf16>
    %c0_24 = arith.constant 0 : index
    %c0_25 = arith.constant 0 : index
    %20 = vector.load %arg5[%c0_24, %c0_25] : memref<27x32xbf16, #tpu.memory_space<vmem>>, vector<27x32xbf16>
    %cst_26 = arith.constant dense<0.000000e+00> : vector<256x32xf32>
    %21 = tpu.matmul %19, %20, %cst_26 {dimension_numbers = #tpu.dot_dimension_numbers<[1], [0], [0], [1], [0, 0, 1, 1], [], []>} : vector<256x27xbf16>, vector<27x32xbf16>, vector<256x32xf32> -> vector<256x32xf32>
    %c0_27 = arith.constant 0 : index
    %c0_28 = arith.constant 0 : index
    %22 = vector.load %arg6[%c0_27, %c0_28] : memref<1x32xf32, #tpu.memory_space<vmem>>, vector<1x32xf32>
    %23 = vector.broadcast %22 : vector<1x32xf32> to vector<256x32xf32>
    %24 = arith.addf %21, %23 : vector<256x32xf32>
    %25 = arith.negf %24 : vector<256x32xf32>
    %26 = math.exp %25 : vector<256x32xf32>
    %cst_29 = arith.constant 1.000000e+00 : f32
    %27 = vector.broadcast %cst_29 : f32 to vector<256x32xf32>
    %28 = arith.addf %27, %26 : vector<256x32xf32>
    %29 = arith.divf %27, %28 : vector<256x32xf32>
    %30 = arith.mulf %24, %29 : vector<256x32xf32>
    %c0_30 = arith.constant 0 : index
    %c0_31 = arith.constant 0 : index
    %c0_32 = arith.constant 0 : index
    %31 = vector.load %arg16[%c0_30, %c0_31, %c0_32] : memref<1x256x32xf32, #tpu.memory_space<vmem>>, vector<1x256x32xf32>
    %32 = vector.shape_cast %31 : vector<1x256x32xf32> to vector<256x32xf32>
    %33 = vector.shape_cast %30 : vector<256x32xf32> to vector<1x256x32xf32>
    tpu.vector_store %arg16[%c0_30, %c0_31, %c0_32], %33 {strides = array<i32>} : memref<1x256x32xf32, #tpu.memory_space<vmem>>, vector<1x256x32xf32>,
    %34 = vector.extract_strided_slice %30 {offsets = [0, 0], sizes = [16, 32], strides = [1, 1]} : vector<256x32xf32> to vector<16x32xf32>
    %c0_33 = arith.constant 0 : index
    %c0_34 = arith.constant 0 : index
    %35 = vector.load %arg21[%c0_33, %c0_34] : memref<408x32xf32, #tpu.memory_space<vmem>>, vector<16x32xf32>
    tpu.vector_store %arg21[%c0_33, %c0_34], %34 {strides = array<i32>} : memref<408x32xf32, #tpu.memory_space<vmem>>, vector<16x32xf32>,
    %36 = vector.extract_strided_slice %30 {offsets = [16, 0], sizes = [16, 32], strides = [1, 1]} : vector<256x32xf32> to vector<16x32xf32>
    %c24 = arith.constant 24 : index
    %c0_35 = arith.constant 0 : index
    %37 = vector.load %arg21[%c24, %c0_35] : memref<408x32xf32, #tpu.memory_space<vmem>>, vector<16x32xf32>
    tpu.vector_store %arg21[%c24, %c0_35], %36 {strides = array<i32>} : memref<408x32xf32, #tpu.memory_space<vmem>>, vector<16x32xf32>,
    %38 = vector.extract_strided_slice %30 {offsets = [32, 0], sizes = [16, 32], strides = [1, 1]} : vector<256x32xf32> to vector<16x32xf32>
    %c48 = arith.constant 48 : index
    %c0_36 = arith.constant 0 : index
    %39 = vector.load %arg21[%c48, %c0_36] : memref<408x32xf32, #tpu.memory_space<vmem>>, vector<16x32xf32>
    tpu.vector_store %arg21[%c48, %c0_36], %38 {strides = array<i32>} : memref<408x32xf32, #tpu.memory_space<vmem>>, vector<16x32xf32>,
    %40 = vector.extract_strided_slice %30 {offsets = [48, 0], sizes = [16, 32], strides = [1, 1]} : vector<256x32xf32> to vector<16x32xf32>
    %c72 = arith.constant 72 : index
    %c0_37 = arith.constant 0 : index
    %41 = vector.load %arg21[%c72, %c0_37] : memref<408x32xf32, #tpu.memory_space<vmem>>, vector<16x32xf32>
    tpu.vector_store %arg21[%c72, %c0_37], %40 {strides = array<i32>} : memref<408x32xf32, #tpu.memory_space<vmem>>, vector<16x32xf32>,
    %42 = vector.extract_strided_slice %30 {offsets = [64, 0], sizes = [16, 32], strides = [1, 1]} : vector<256x32xf32> to vector<16x32xf32>
    %c96 = arith.constant 96 : index
    %c0_38 = arith.constant 0 : index
    %43 = vector.load %arg21[%c96, %c0_38] : memref<408x32xf32, #tpu.memory_space<vmem>>, vector<16x32xf32>
    tpu.vector_store %arg21[%c96, %c0_38], %42 {strides = array<i32>} : memref<408x32xf32, #tpu.memory_space<vmem>>, vector<16x32xf32>,
    %44 = vector.extract_strided_slice %30 {offsets = [80, 0], sizes = [16, 32], strides = [1, 1]} : vector<256x32xf32> to vector<16x32xf32>
    %c120 = arith.constant 120 : index
    %c0_39 = arith.constant 0 : index
    %45 = vector.load %arg21[%c120, %c0_39] : memref<408x32xf32, #tpu.memory_space<vmem>>, vector<16x32xf32>
    tpu.vector_store %arg21[%c120, %c0_39], %44 {strides = array<i32>} : memref<408x32xf32, #tpu.memory_space<vmem>>, vector<16x32xf32>,
    %46 = vector.extract_strided_slice %30 {offsets = [96, 0], sizes = [16, 32], strides = [1, 1]} : vector<256x32xf32> to vector<16x32xf32>
    %c144 = arith.constant 144 : index
    %c0_40 = arith.constant 0 : index
    %47 = vector.load %arg21[%c144, %c0_40] : memref<408x32xf32, #tpu.memory_space<vmem>>, vector<16x32xf32>
    tpu.vector_store %arg21[%c144, %c0_40], %46 {strides = array<i32>} : memref<408x32xf32, #tpu.memory_space<vmem>>, vector<16x32xf32>,
    %48 = vector.extract_strided_slice %30 {offsets = [112, 0], sizes = [16, 32], strides = [1, 1]} : vector<256x32xf32> to vector<16x32xf32>
    %c168 = arith.constant 168 : index
    %c0_41 = arith.constant 0 : index
    %49 = vector.load %arg21[%c168, %c0_41] : memref<408x32xf32, #tpu.memory_space<vmem>>, vector<16x32xf32>
    tpu.vector_store %arg21[%c168, %c0_41], %48 {strides = array<i32>} : memref<408x32xf32, #tpu.memory_space<vmem>>, vector<16x32xf32>,
    %50 = vector.extract_strided_slice %30 {offsets = [128, 0], sizes = [16, 32], strides = [1, 1]} : vector<256x32xf32> to vector<16x32xf32>
    %c192 = arith.constant 192 : index
    %c0_42 = arith.constant 0 : index
    %51 = vector.load %arg21[%c192, %c0_42] : memref<408x32xf32, #tpu.memory_space<vmem>>, vector<16x32xf32>
    tpu.vector_store %arg21[%c192, %c0_42], %50 {strides = array<i32>} : memref<408x32xf32, #tpu.memory_space<vmem>>, vector<16x32xf32>,
    %52 = vector.extract_strided_slice %30 {offsets = [144, 0], sizes = [16, 32], strides = [1, 1]} : vector<256x32xf32> to vector<16x32xf32>
    %c216 = arith.constant 216 : index
    %c0_43 = arith.constant 0 : index
    %53 = vector.load %arg21[%c216, %c0_43] : memref<408x32xf32, #tpu.memory_space<vmem>>, vector<16x32xf32>
    tpu.vector_store %arg21[%c216, %c0_43], %52 {strides = array<i32>} : memref<408x32xf32, #tpu.memory_space<vmem>>, vector<16x32xf32>,
    %54 = vector.extract_strided_slice %30 {offsets = [160, 0], sizes = [16, 32], strides = [1, 1]} : vector<256x32xf32> to vector<16x32xf32>
    %c240 = arith.constant 240 : index
    %c0_44 = arith.constant 0 : index
    %55 = vector.load %arg21[%c240, %c0_44] : memref<408x32xf32, #tpu.memory_space<vmem>>, vector<16x32xf32>
    tpu.vector_store %arg21[%c240, %c0_44], %54 {strides = array<i32>} : memref<408x32xf32, #tpu.memory_space<vmem>>, vector<16x32xf32>,
    %56 = vector.extract_strided_slice %30 {offsets = [176, 0], sizes = [16, 32], strides = [1, 1]} : vector<256x32xf32> to vector<16x32xf32>
    %c264 = arith.constant 264 : index
    %c0_45 = arith.constant 0 : index
    %57 = vector.load %arg21[%c264, %c0_45] : memref<408x32xf32, #tpu.memory_space<vmem>>, vector<16x32xf32>
    tpu.vector_store %arg21[%c264, %c0_45], %56 {strides = array<i32>} : memref<408x32xf32, #tpu.memory_space<vmem>>, vector<16x32xf32>,
    %58 = vector.extract_strided_slice %30 {offsets = [192, 0], sizes = [16, 32], strides = [1, 1]} : vector<256x32xf32> to vector<16x32xf32>
    %c288 = arith.constant 288 : index
    %c0_46 = arith.constant 0 : index
    %59 = vector.load %arg21[%c288, %c0_46] : memref<408x32xf32, #tpu.memory_space<vmem>>, vector<16x32xf32>
    tpu.vector_store %arg21[%c288, %c0_46], %58 {strides = array<i32>} : memref<408x32xf32, #tpu.memory_space<vmem>>, vector<16x32xf32>,
    %60 = vector.extract_strided_slice %30 {offsets = [208, 0], sizes = [16, 32], strides = [1, 1]} : vector<256x32xf32> to vector<16x32xf32>
    %c312 = arith.constant 312 : index
    %c0_47 = arith.constant 0 : index
    %61 = vector.load %arg21[%c312, %c0_47] : memref<408x32xf32, #tpu.memory_space<vmem>>, vector<16x32xf32>
    tpu.vector_store %arg21[%c312, %c0_47], %60 {strides = array<i32>} : memref<408x32xf32, #tpu.memory_space<vmem>>, vector<16x32xf32>,
    %62 = vector.extract_strided_slice %30 {offsets = [224, 0], sizes = [16, 32], strides = [1, 1]} : vector<256x32xf32> to vector<16x32xf32>
    %c336 = arith.constant 336 : index
    %c0_48 = arith.constant 0 : index
    %63 = vector.load %arg21[%c336, %c0_48] : memref<408x32xf32, #tpu.memory_space<vmem>>, vector<16x32xf32>
    tpu.vector_store %arg21[%c336, %c0_48], %62 {strides = array<i32>} : memref<408x32xf32, #tpu.memory_space<vmem>>, vector<16x32xf32>,
    %64 = vector.extract_strided_slice %30 {offsets = [240, 0], sizes = [16, 32], strides = [1, 1]} : vector<256x32xf32> to vector<16x32xf32>
    %c360 = arith.constant 360 : index
    %c0_49 = arith.constant 0 : index
    %65 = vector.load %arg21[%c360, %c0_49] : memref<408x32xf32, #tpu.memory_space<vmem>>, vector<16x32xf32>
    tpu.vector_store %arg21[%c360, %c0_49], %64 {strides = array<i32>} : memref<408x32xf32, #tpu.memory_space<vmem>>, vector<16x32xf32>,
    %cst_50 = arith.constant 0.000000e+00 : f32
    %66 = vector.broadcast %cst_50 : f32 to vector<8x24xf32>
    %c0_51 = arith.constant 0 : index
    %c0_52 = arith.constant 0 : index
    %67 = tpu.strided_load %arg21[%c0_51, %c0_52] {strides = array<i32: 2, 1>} : memref<408x32xf32, #tpu.memory_space<vmem>>, vector<8x32xf32>
    %68 = arith.truncf %67 : vector<8x32xf32> to vector<8x32xbf16>
    %c0_53 = arith.constant 0 : index
    %c0_54 = arith.constant 0 : index
    %c0_55 = arith.constant 0 : index
    %69 = vector.load %arg7[%c0_53, %c0_54, %c0_55] : memref<9x32x24xbf16, #tpu.memory_space<vmem>>, vector<1x32x24xbf16>
    %70 = vector.shape_cast %69 : vector<1x32x24xbf16> to vector<32x24xbf16>
    %cst_56 = arith.constant dense<0.000000e+00> : vector<8x24xf32>
    %71 = tpu.matmul %68, %70, %cst_56 {dimension_numbers = #tpu.dot_dimension_numbers<[1], [0], [0], [1], [0, 0, 1, 1], [], []>} : vector<8x32xbf16>, vector<32x24xbf16>, vector<8x24xf32> -> vector<8x24xf32>
    %72 = arith.addf %66, %71 : vector<8x24xf32>
    %c1 = arith.constant 1 : index
    %c0_57 = arith.constant 0 : index
    %73 = tpu.strided_load %arg21[%c1, %c0_57] {strides = array<i32: 2, 1>} : memref<408x32xf32, #tpu.memory_space<vmem>>, vector<8x32xf32>
    %74 = arith.truncf %73 : vector<8x32xf32> to vector<8x32xbf16>
    %c1_58 = arith.constant 1 : index
    %c0_59 = arith.constant 0 : index
    %c0_60 = arith.constant 0 : index
    %75 = vector.load %arg7[%c1_58, %c0_59, %c0_60] : memref<9x32x24xbf16, #tpu.memory_space<vmem>>, vector<1x32x24xbf16>
    %76 = vector.shape_cast %75 : vector<1x32x24xbf16> to vector<32x24xbf16>
    %cst_61 = arith.constant dense<0.000000e+00> : vector<8x24xf32>
    %77 = tpu.matmul %74, %76, %cst_61 {dimension_numbers = #tpu.dot_dimension_numbers<[1], [0], [0], [1], [0, 0, 1, 1], [], []>} : vector<8x32xbf16>, vector<32x24xbf16>, vector<8x24xf32> -> vector<8x24xf32>
    %78 = arith.addf %72, %77 : vector<8x24xf32>
    %c2 = arith.constant 2 : index
    %c0_62 = arith.constant 0 : index
    %79 = tpu.strided_load %arg21[%c2, %c0_62] {strides = array<i32: 2, 1>} : memref<408x32xf32, #tpu.memory_space<vmem>>, vector<8x32xf32>
    %80 = arith.truncf %79 : vector<8x32xf32> to vector<8x32xbf16>
    %c2_63 = arith.constant 2 : index
    %c0_64 = arith.constant 0 : index
    %c0_65 = arith.constant 0 : index
    %81 = vector.load %arg7[%c2_63, %c0_64, %c0_65] : memref<9x32x24xbf16, #tpu.memory_space<vmem>>, vector<1x32x24xbf16>
    %82 = vector.shape_cast %81 : vector<1x32x24xbf16> to vector<32x24xbf16>
    %cst_66 = arith.constant dense<0.000000e+00> : vector<8x24xf32>
    %83 = tpu.matmul %80, %82, %cst_66 {dimension_numbers = #tpu.dot_dimension_numbers<[1], [0], [0], [1], [0, 0, 1, 1], [], []>} : vector<8x32xbf16>, vector<32x24xbf16>, vector<8x24xf32> -> vector<8x24xf32>
    %84 = arith.addf %78, %83 : vector<8x24xf32>
    %c24_67 = arith.constant 24 : index
    %c0_68 = arith.constant 0 : index
    %85 = tpu.strided_load %arg21[%c24_67, %c0_68] {strides = array<i32: 2, 1>} : memref<408x32xf32, #tpu.memory_space<vmem>>, vector<8x32xf32>
    %86 = arith.truncf %85 : vector<8x32xf32> to vector<8x32xbf16>
    %c3 = arith.constant 3 : index
    %c0_69 = arith.constant 0 : index
    %c0_70 = arith.constant 0 : index
    %87 = vector.load %arg7[%c3, %c0_69, %c0_70] : memref<9x32x24xbf16, #tpu.memory_space<vmem>>, vector<1x32x24xbf16>
    %88 = vector.shape_cast %87 : vector<1x32x24xbf16> to vector<32x24xbf16>
    %cst_71 = arith.constant dense<0.000000e+00> : vector<8x24xf32>
    %89 = tpu.matmul %86, %88, %cst_71 {dimension_numbers = #tpu.dot_dimension_numbers<[1], [0], [0], [1], [0, 0, 1, 1], [], []>} : vector<8x32xbf16>, vector<32x24xbf16>, vector<8x24xf32> -> vector<8x24xf32>
    %90 = arith.addf %84, %89 : vector<8x24xf32>
    %c25 = arith.constant 25 : index
    %c0_72 = arith.constant 0 : index
    %91 = tpu.strided_load %arg21[%c25, %c0_72] {strides = array<i32: 2, 1>} : memref<408x32xf32, #tpu.memory_space<vmem>>, vector<8x32xf32>
    %92 = arith.truncf %91 : vector<8x32xf32> to vector<8x32xbf16>
    %c4 = arith.constant 4 : index
    %c0_73 = arith.constant 0 : index
    %c0_74 = arith.constant 0 : index
    %93 = vector.load %arg7[%c4, %c0_73, %c0_74] : memref<9x32x24xbf16, #tpu.memory_space<vmem>>, vector<1x32x24xbf16>
    %94 = vector.shape_cast %93 : vector<1x32x24xbf16> to vector<32x24xbf16>
    %cst_75 = arith.constant dense<0.000000e+00> : vector<8x24xf32>
    %95 = tpu.matmul %92, %94, %cst_75 {dimension_numbers = #tpu.dot_dimension_numbers<[1], [0], [0], [1], [0, 0, 1, 1], [], []>} : vector<8x32xbf16>, vector<32x24xbf16>, vector<8x24xf32> -> vector<8x24xf32>
    %96 = arith.addf %90, %95 : vector<8x24xf32>
    %c26 = arith.constant 26 : index
    %c0_76 = arith.constant 0 : index
    %97 = tpu.strided_load %arg21[%c26, %c0_76] {strides = array<i32: 2, 1>} : memref<408x32xf32, #tpu.memory_space<vmem>>, vector<8x32xf32>
    %98 = arith.truncf %97 : vector<8x32xf32> to vector<8x32xbf16>
    %c5 = arith.constant 5 : index
    %c0_77 = arith.constant 0 : index
    %c0_78 = arith.constant 0 : index
    %99 = vector.load %arg7[%c5, %c0_77, %c0_78] : memref<9x32x24xbf16, #tpu.memory_space<vmem>>, vector<1x32x24xbf16>
    %100 = vector.shape_cast %99 : vector<1x32x24xbf16> to vector<32x24xbf16>
    %cst_79 = arith.constant dense<0.000000e+00> : vector<8x24xf32>
    %101 = tpu.matmul %98, %100, %cst_79 {dimension_numbers = #tpu.dot_dimension_numbers<[1], [0], [0], [1], [0, 0, 1, 1], [], []>} : vector<8x32xbf16>, vector<32x24xbf16>, vector<8x24xf32> -> vector<8x24xf32>
    %102 = arith.addf %96, %101 : vector<8x24xf32>
    %c48_80 = arith.constant 48 : index
    %c0_81 = arith.constant 0 : index
    %103 = tpu.strided_load %arg21[%c48_80, %c0_81] {strides = array<i32: 2, 1>} : memref<408x32xf32, #tpu.memory_space<vmem>>, vector<8x32xf32>
    %104 = arith.truncf %103 : vector<8x32xf32> to vector<8x32xbf16>
    %c6 = arith.constant 6 : index
    %c0_82 = arith.constant 0 : index
    %c0_83 = arith.constant 0 : index
    %105 = vector.load %arg7[%c6, %c0_82, %c0_83] : memref<9x32x24xbf16, #tpu.memory_space<vmem>>, vector<1x32x24xbf16>
    %106 = vector.shape_cast %105 : vector<1x32x24xbf16> to vector<32x24xbf16>
    %cst_84 = arith.constant dense<0.000000e+00> : vector<8x24xf32>
    %107 = tpu.matmul %104, %106, %cst_84 {dimension_numbers = #tpu.dot_dimension_numbers<[1], [0], [0], [1], [0, 0, 1, 1], [], []>} : vector<8x32xbf16>, vector<32x24xbf16>, vector<8x24xf32> -> vector<8x24xf32>
    %108 = arith.addf %102, %107 : vector<8x24xf32>
    %c49 = arith.constant 49 : index
    %c0_85 = arith.constant 0 : index
    %109 = tpu.strided_load %arg21[%c49, %c0_85] {strides = array<i32: 2, 1>} : memref<408x32xf32, #tpu.memory_space<vmem>>, vector<8x32xf32>
    %110 = arith.truncf %109 : vector<8x32xf32> to vector<8x32xbf16>
    %c7 = arith.constant 7 : index
    %c0_86 = arith.constant 0 : index
    %c0_87 = arith.constant 0 : index
    %111 = vector.load %arg7[%c7, %c0_86, %c0_87] : memref<9x32x24xbf16, #tpu.memory_space<vmem>>, vector<1x32x24xbf16>
    %112 = vector.shape_cast %111 : vector<1x32x24xbf16> to vector<32x24xbf16>
    %cst_88 = arith.constant dense<0.000000e+00> : vector<8x24xf32>
    %113 = tpu.matmul %110, %112, %cst_88 {dimension_numbers = #tpu.dot_dimension_numbers<[1], [0], [0], [1], [0, 0, 1, 1], [], []>} : vector<8x32xbf16>, vector<32x24xbf16>, vector<8x24xf32> -> vector<8x24xf32>
    %114 = arith.addf %108, %113 : vector<8x24xf32>
    %c50 = arith.constant 50 : index
    %c0_89 = arith.constant 0 : index
    %115 = tpu.strided_load %arg21[%c50, %c0_89] {strides = array<i32: 2, 1>} : memref<408x32xf32, #tpu.memory_space<vmem>>, vector<8x32xf32>
    %116 = arith.truncf %115 : vector<8x32xf32> to vector<8x32xbf16>
    %c8 = arith.constant 8 : index
    %c0_90 = arith.constant 0 : index
    %c0_91 = arith.constant 0 : index
    %117 = vector.load %arg7[%c8, %c0_90, %c0_91] : memref<9x32x24xbf16, #tpu.memory_space<vmem>>, vector<1x32x24xbf16>
    %118 = vector.shape_cast %117 : vector<1x32x24xbf16> to vector<32x24xbf16>
    %cst_92 = arith.constant dense<0.000000e+00> : vector<8x24xf32>
    %119 = tpu.matmul %116, %118, %cst_92 {dimension_numbers = #tpu.dot_dimension_numbers<[1], [0], [0], [1], [0, 0, 1, 1], [], []>} : vector<8x32xbf16>, vector<32x24xbf16>, vector<8x24xf32> -> vector<8x24xf32>
    %120 = arith.addf %114, %119 : vector<8x24xf32>
    %c0_93 = arith.constant 0 : index
    %c0_94 = arith.constant 0 : index
    %121 = vector.load %arg8[%c0_93, %c0_94] : memref<1x24xf32, #tpu.memory_space<vmem>>, vector<1x24xf32>
    %122 = vector.broadcast %121 : vector<1x24xf32> to vector<8x24xf32>
    %123 = arith.addf %120, %122 : vector<8x24xf32>
    %124 = arith.negf %123 : vector<8x24xf32>
    %125 = math.exp %124 : vector<8x24xf32>
    %cst_95 = arith.constant 1.000000e+00 : f32
    %126 = vector.broadcast %cst_95 : f32 to vector<8x24xf32>
    %127 = arith.addf %126, %125 : vector<8x24xf32>
    %128 = arith.divf %126, %127 : vector<8x24xf32>
    %129 = arith.mulf %123, %128 : vector<8x24xf32>
    %c0_96 = arith.constant 0 : index
    %c0_97 = arith.constant 0 : index
    %c0_98 = arith.constant 0 : index
    %130 = vector.load %arg17[%c0_96, %c0_97, %c0_98] : memref<1x64x24xf32, #tpu.memory_space<vmem>>, vector<1x8x24xf32>
    %131 = vector.shape_cast %130 : vector<1x8x24xf32> to vector<8x24xf32>
    %132 = vector.shape_cast %129 : vector<8x24xf32> to vector<1x8x24xf32>
    tpu.vector_store %arg17[%c0_96, %c0_97, %c0_98], %132 {strides = array<i32>} : memref<1x64x24xf32, #tpu.memory_space<vmem>>, vector<1x8x24xf32>,
    %c0_99 = arith.constant 0 : index
    %c0_100 = arith.constant 0 : index
    %133 = vector.load %arg22[%c0_99, %c0_100] : memref<144x24xf32, #tpu.memory_space<vmem>>, vector<8x24xf32>
    tpu.vector_store %arg22[%c0_99, %c0_100], %129 {strides = array<i32>} : memref<144x24xf32, #tpu.memory_space<vmem>>, vector<8x24xf32>,
    %cst_101 = arith.constant 0.000000e+00 : f32
    %134 = vector.broadcast %cst_101 : f32 to vector<8x24xf32>
    %c48_102 = arith.constant 48 : index
    %c0_103 = arith.constant 0 : index
    %135 = tpu.strided_load %arg21[%c48_102, %c0_103] {strides = array<i32: 2, 1>} : memref<408x32xf32, #tpu.memory_space<vmem>>, vector<8x32xf32>
    %136 = arith.truncf %135 : vector<8x32xf32> to vector<8x32xbf16>
    %c0_104 = arith.constant 0 : index
    %c0_105 = arith.constant 0 : index
    %c0_106 = arith.constant 0 : index
    %137 = vector.load %arg7[%c0_104, %c0_105, %c0_106] : memref<9x32x24xbf16, #tpu.memory_space<vmem>>, vector<1x32x24xbf16>
    %138 = vector.shape_cast %137 : vector<1x32x24xbf16> to vector<32x24xbf16>
    %cst_107 = arith.constant dense<0.000000e+00> : vector<8x24xf32>
    %139 = tpu.matmul %136, %138, %cst_107 {dimension_numbers = #tpu.dot_dimension_numbers<[1], [0], [0], [1], [0, 0, 1, 1], [], []>} : vector<8x32xbf16>, vector<32x24xbf16>, vector<8x24xf32> -> vector<8x24xf32>
    %140 = arith.addf %134, %139 : vector<8x24xf32>
    %c49_108 = arith.constant 49 : index
    %c0_109 = arith.constant 0 : index
    %141 = tpu.strided_load %arg21[%c49_108, %c0_109] {strides = array<i32: 2, 1>} : memref<408x32xf32, #tpu.memory_space<vmem>>, vector<8x32xf32>
    %142 = arith.truncf %141 : vector<8x32xf32> to vector<8x32xbf16>
    %c1_110 = arith.constant 1 : index
    %c0_111 = arith.constant 0 : index
    %c0_112 = arith.constant 0 : index
    %143 = vector.load %arg7[%c1_110, %c0_111, %c0_112] : memref<9x32x24xbf16, #tpu.memory_space<vmem>>, vector<1x32x24xbf16>
    %144 = vector.shape_cast %143 : vector<1x32x24xbf16> to vector<32x24xbf16>
    %cst_113 = arith.constant dense<0.000000e+00> : vector<8x24xf32>
    %145 = tpu.matmul %142, %144, %cst_113 {dimension_numbers = #tpu.dot_dimension_numbers<[1], [0], [0], [1], [0, 0, 1, 1], [], []>} : vector<8x32xbf16>, vector<32x24xbf16>, vector<8x24xf32> -> vector<8x24xf32>
    %146 = arith.addf %140, %145 : vector<8x24xf32>
    %c50_114 = arith.constant 50 : index
    %c0_115 = arith.constant 0 : index
    %147 = tpu.strided_load %arg21[%c50_114, %c0_115] {strides = array<i32: 2, 1>} : memref<408x32xf32, #tpu.memory_space<vmem>>, vector<8x32xf32>
    %148 = arith.truncf %147 : vector<8x32xf32> to vector<8x32xbf16>
    %c2_116 = arith.constant 2 : index
    %c0_117 = arith.constant 0 : index
    %c0_118 = arith.constant 0 : index
    %149 = vector.load %arg7[%c2_116, %c0_117, %c0_118] : memref<9x32x24xbf16, #tpu.memory_space<vmem>>, vector<1x32x24xbf16>
    %150 = vector.shape_cast %149 : vector<1x32x24xbf16> to vector<32x24xbf16>
    %cst_119 = arith.constant dense<0.000000e+00> : vector<8x24xf32>
    %151 = tpu.matmul %148, %150, %cst_119 {dimension_numbers = #tpu.dot_dimension_numbers<[1], [0], [0], [1], [0, 0, 1, 1], [], []>} : vector<8x32xbf16>, vector<32x24xbf16>, vector<8x24xf32> -> vector<8x24xf32>
    %152 = arith.addf %146, %151 : vector<8x24xf32>
    %c72_120 = arith.constant 72 : index
    %c0_121 = arith.constant 0 : index
    %153 = tpu.strided_load %arg21[%c72_120, %c0_121] {strides = array<i32: 2, 1>} : memref<408x32xf32, #tpu.memory_space<vmem>>, vector<8x32xf32>
    %154 = arith.truncf %153 : vector<8x32xf32> to vector<8x32xbf16>
    %c3_122 = arith.constant 3 : index
    %c0_123 = arith.constant 0 : index
    %c0_124 = arith.constant 0 : index
    %155 = vector.load %arg7[%c3_122, %c0_123, %c0_124] : memref<9x32x24xbf16, #tpu.memory_space<vmem>>, vector<1x32x24xbf16>
    %156 = vector.shape_cast %155 : vector<1x32x24xbf16> to vector<32x24xbf16>
    %cst_125 = arith.constant dense<0.000000e+00> : vector<8x24xf32>
    %157 = tpu.matmul %154, %156, %cst_125 {dimension_numbers = #tpu.dot_dimension_numbers<[1], [0], [0], [1], [0, 0, 1, 1], [], []>} : vector<8x32xbf16>, vector<32x24xbf16>, vector<8x24xf32> -> vector<8x24xf32>
    %158 = arith.addf %152, %157 : vector<8x24xf32>
    %c73 = arith.constant 73 : index
    %c0_126 = arith.constant 0 : index
    %159 = tpu.strided_load %arg21[%c73, %c0_126] {strides = array<i32: 2, 1>} : memref<408x32xf32, #tpu.memory_space<vmem>>, vector<8x32xf32>
    %160 = arith.truncf %159 : vector<8x32xf32> to vector<8x32xbf16>
    %c4_127 = arith.constant 4 : index
    %c0_128 = arith.constant 0 : index
    %c0_129 = arith.constant 0 : index
    %161 = vector.load %arg7[%c4_127, %c0_128, %c0_129] : memref<9x32x24xbf16, #tpu.memory_space<vmem>>, vector<1x32x24xbf16>
    %162 = vector.shape_cast %161 : vector<1x32x24xbf16> to vector<32x24xbf16>
    %cst_130 = arith.constant dense<0.000000e+00> : vector<8x24xf32>
    %163 = tpu.matmul %160, %162, %cst_130 {dimension_numbers = #tpu.dot_dimension_numbers<[1], [0], [0], [1], [0, 0, 1, 1], [], []>} : vector<8x32xbf16>, vector<32x24xbf16>, vector<8x24xf32> -> vector<8x24xf32>
    %164 = arith.addf %158, %163 : vector<8x24xf32>
    %c74 = arith.constant 74 : index
    %c0_131 = arith.constant 0 : index
    %165 = tpu.strided_load %arg21[%c74, %c0_131] {strides = array<i32: 2, 1>} : memref<408x32xf32, #tpu.memory_space<vmem>>, vector<8x32xf32>
    %166 = arith.truncf %165 : vector<8x32xf32> to vector<8x32xbf16>
    %c5_132 = arith.constant 5 : index
    %c0_133 = arith.constant 0 : index
    %c0_134 = arith.constant 0 : index
    %167 = vector.load %arg7[%c5_132, %c0_133, %c0_134] : memref<9x32x24xbf16, #tpu.memory_space<vmem>>, vector<1x32x24xbf16>
    %168 = vector.shape_cast %167 : vector<1x32x24xbf16> to vector<32x24xbf16>
    %cst_135 = arith.constant dense<0.000000e+00> : vector<8x24xf32>
    %169 = tpu.matmul %166, %168, %cst_135 {dimension_numbers = #tpu.dot_dimension_numbers<[1], [0], [0], [1], [0, 0, 1, 1], [], []>} : vector<8x32xbf16>, vector<32x24xbf16>, vector<8x24xf32> -> vector<8x24xf32>
    %170 = arith.addf %164, %169 : vector<8x24xf32>
    %c96_136 = arith.constant 96 : index
    %c0_137 = arith.constant 0 : index
    %171 = tpu.strided_load %arg21[%c96_136, %c0_137] {strides = array<i32: 2, 1>} : memref<408x32xf32, #tpu.memory_space<vmem>>, vector<8x32xf32>
    %172 = arith.truncf %171 : vector<8x32xf32> to vector<8x32xbf16>
    %c6_138 = arith.constant 6 : index
    %c0_139 = arith.constant 0 : index
    %c0_140 = arith.constant 0 : index
    %173 = vector.load %arg7[%c6_138, %c0_139, %c0_140] : memref<9x32x24xbf16, #tpu.memory_space<vmem>>, vector<1x32x24xbf16>
    %174 = vector.shape_cast %173 : vector<1x32x24xbf16> to vector<32x24xbf16>
    %cst_141 = arith.constant dense<0.000000e+00> : vector<8x24xf32>
    %175 = tpu.matmul %172, %174, %cst_141 {dimension_numbers = #tpu.dot_dimension_numbers<[1], [0], [0], [1], [0, 0, 1, 1], [], []>} : vector<8x32xbf16>, vector<32x24xbf16>, vector<8x24xf32> -> vector<8x24xf32>
    %176 = arith.addf %170, %175 : vector<8x24xf32>
    %c97 = arith.constant 97 : index
    %c0_142 = arith.constant 0 : index
    %177 = tpu.strided_load %arg21[%c97, %c0_142] {strides = array<i32: 2, 1>} : memref<408x32xf32, #tpu.memory_space<vmem>>, vector<8x32xf32>
    %178 = arith.truncf %177 : vector<8x32xf32> to vector<8x32xbf16>
    %c7_143 = arith.constant 7 : index
    %c0_144 = arith.constant 0 : index
    %c0_145 = arith.constant 0 : index
    %179 = vector.load %arg7[%c7_143, %c0_144, %c0_145] : memref<9x32x24xbf16, #tpu.memory_space<vmem>>, vector<1x32x24xbf16>
    %180 = vector.shape_cast %179 : vector<1x32x24xbf16> to vector<32x24xbf16>
    %cst_146 = arith.constant dense<0.000000e+00> : vector<8x24xf32>
    %181 = tpu.matmul %178, %180, %cst_146 {dimension_numbers = #tpu.dot_dimension_numbers<[1], [0], [0], [1], [0, 0, 1, 1], [], []>} : vector<8x32xbf16>, vector<32x24xbf16>, vector<8x24xf32> -> vector<8x24xf32>
    %182 = arith.addf %176, %181 : vector<8x24xf32>
    %c98 = arith.constant 98 : index
    %c0_147 = arith.constant 0 : index
    %183 = tpu.strided_load %arg21[%c98, %c0_147] {strides = array<i32: 2, 1>} : memref<408x32xf32, #tpu.memory_space<vmem>>, vector<8x32xf32>
    %184 = arith.truncf %183 : vector<8x32xf32> to vector<8x32xbf16>
    %c8_148 = arith.constant 8 : index
    %c0_149 = arith.constant 0 : index
    %c0_150 = arith.constant 0 : index
    %185 = vector.load %arg7[%c8_148, %c0_149, %c0_150] : memref<9x32x24xbf16, #tpu.memory_space<vmem>>, vector<1x32x24xbf16>
    %186 = vector.shape_cast %185 : vector<1x32x24xbf16> to vector<32x24xbf16>
    %cst_151 = arith.constant dense<0.000000e+00> : vector<8x24xf32>
    %187 = tpu.matmul %184, %186, %cst_151 {dimension_numbers = #tpu.dot_dimension_numbers<[1], [0], [0], [1], [0, 0, 1, 1], [], []>} : vector<8x32xbf16>, vector<32x24xbf16>, vector<8x24xf32> -> vector<8x24xf32>
    %188 = arith.addf %182, %187 : vector<8x24xf32>
    %c0_152 = arith.constant 0 : index
    %c0_153 = arith.constant 0 : index
    %189 = vector.load %arg8[%c0_152, %c0_153] : memref<1x24xf32, #tpu.memory_space<vmem>>, vector<1x24xf32>
    %190 = vector.broadcast %189 : vector<1x24xf32> to vector<8x24xf32>
    %191 = arith.addf %188, %190 : vector<8x24xf32>
    %192 = arith.negf %191 : vector<8x24xf32>
    %193 = math.exp %192 : vector<8x24xf32>
    %cst_154 = arith.constant 1.000000e+00 : f32
    %194 = vector.broadcast %cst_154 : f32 to vector<8x24xf32>
    %195 = arith.addf %194, %193 : vector<8x24xf32>
    %196 = arith.divf %194, %195 : vector<8x24xf32>
    %197 = arith.mulf %191, %196 : vector<8x24xf32>
    %c0_155 = arith.constant 0 : index
    %c8_156 = arith.constant 8 : index
    %c0_157 = arith.constant 0 : index
    %198 = vector.load %arg17[%c0_155, %c8_156, %c0_157] : memref<1x64x24xf32, #tpu.memory_space<vmem>>, vector<1x8x24xf32>
    %199 = vector.shape_cast %198 : vector<1x8x24xf32> to vector<8x24xf32>
    %200 = vector.shape_cast %197 : vector<8x24xf32> to vector<1x8x24xf32>
    tpu.vector_store %arg17[%c0_155, %c8_156, %c0_157], %200 {strides = array<i32>} : memref<1x64x24xf32, #tpu.memory_space<vmem>>, vector<1x8x24xf32>,
    %c16 = arith.constant 16 : index
    %c0_158 = arith.constant 0 : index
    %201 = vector.load %arg22[%c16, %c0_158] : memref<144x24xf32, #tpu.memory_space<vmem>>, vector<8x24xf32>
    tpu.vector_store %arg22[%c16, %c0_158], %197 {strides = array<i32>} : memref<144x24xf32, #tpu.memory_space<vmem>>, vector<8x24xf32>,
    %cst_159 = arith.constant 0.000000e+00 : f32
    %202 = vector.broadcast %cst_159 : f32 to vector<8x24xf32>
    %c96_160 = arith.constant 96 : index
    %c0_161 = arith.constant 0 : index
    %203 = tpu.strided_load %arg21[%c96_160, %c0_161] {strides = array<i32: 2, 1>} : memref<408x32xf32, #tpu.memory_space<vmem>>, vector<8x32xf32>
    %204 = arith.truncf %203 : vector<8x32xf32> to vector<8x32xbf16>
    %c0_162 = arith.constant 0 : index
    %c0_163 = arith.constant 0 : index
    %c0_164 = arith.constant 0 : index
    %205 = vector.load %arg7[%c0_162, %c0_163, %c0_164] : memref<9x32x24xbf16, #tpu.memory_space<vmem>>, vector<1x32x24xbf16>
    %206 = vector.shape_cast %205 : vector<1x32x24xbf16> to vector<32x24xbf16>
    %cst_165 = arith.constant dense<0.000000e+00> : vector<8x24xf32>
    %207 = tpu.matmul %204, %206, %cst_165 {dimension_numbers = #tpu.dot_dimension_numbers<[1], [0], [0], [1], [0, 0, 1, 1], [], []>} : vector<8x32xbf16>, vector<32x24xbf16>, vector<8x24xf32> -> vector<8x24xf32>
    %208 = arith.addf %202, %207 : vector<8x24xf32>
    %c97_166 = arith.constant 97 : index
    %c0_167 = arith.constant 0 : index
    %209 = tpu.strided_load %arg21[%c97_166, %c0_167] {strides = array<i32: 2, 1>} : memref<408x32xf32, #tpu.memory_space<vmem>>, vector<8x32xf32>
    %210 = arith.truncf %209 : vector<8x32xf32> to vector<8x32xbf16>
    %c1_168 = arith.constant 1 : index
    %c0_169 = arith.constant 0 : index
    %c0_170 = arith.constant 0 : index
    %211 = vector.load %arg7[%c1_168, %c0_169, %c0_170] : memref<9x32x24xbf16, #tpu.memory_space<vmem>>, vector<1x32x24xbf16>
    %212 = vector.shape_cast %211 : vector<1x32x24xbf16> to vector<32x24xbf16>
    %cst_171 = arith.constant dense<0.000000e+00> : vector<8x24xf32>
    %213 = tpu.matmul %210, %212, %cst_171 {dimension_numbers = #tpu.dot_dimension_numbers<[1], [0], [0], [1], [0, 0, 1, 1], [], []>} : vector<8x32xbf16>, vector<32x24xbf16>, vector<8x24xf32> -> vector<8x24xf32>
    %214 = arith.addf %208, %213 : vector<8x24xf32>
    %c98_172 = arith.constant 98 : index
    %c0_173 = arith.constant 0 : index
    %215 = tpu.strided_load %arg21[%c98_172, %c0_173] {strides = array<i32: 2, 1>} : memref<408x32xf32, #tpu.memory_space<vmem>>, vector<8x32xf32>
    %216 = arith.truncf %215 : vector<8x32xf32> to vector<8x32xbf16>
    %c2_174 = arith.constant 2 : index
    %c0_175 = arith.constant 0 : index
    %c0_176 = arith.constant 0 : index
    %217 = vector.load %arg7[%c2_174, %c0_175, %c0_176] : memref<9x32x24xbf16, #tpu.memory_space<vmem>>, vector<1x32x24xbf16>
    %218 = vector.shape_cast %217 : vector<1x32x24xbf16> to vector<32x24xbf16>
    %cst_177 = arith.constant dense<0.000000e+00> : vector<8x24xf32>
    %219 = tpu.matmul %216, %218, %cst_177 {dimension_numbers = #tpu.dot_dimension_numbers<[1], [0], [0], [1], [0, 0, 1, 1], [], []>} : vector<8x32xbf16>, vector<32x24xbf16>, vector<8x24xf32> -> vector<8x24xf32>
    %220 = arith.addf %214, %219 : vector<8x24xf32>
    %c120_178 = arith.constant 120 : index
    %c0_179 = arith.constant 0 : index
    %221 = tpu.strided_load %arg21[%c120_178, %c0_179] {strides = array<i32: 2, 1>} : memref<408x32xf32, #tpu.memory_space<vmem>>, vector<8x32xf32>
    %222 = arith.truncf %221 : vector<8x32xf32> to vector<8x32xbf16>
    %c3_180 = arith.constant 3 : index
    %c0_181 = arith.constant 0 : index
    %c0_182 = arith.constant 0 : index
    %223 = vector.load %arg7[%c3_180, %c0_181, %c0_182] : memref<9x32x24xbf16, #tpu.memory_space<vmem>>, vector<1x32x24xbf16>
    %224 = vector.shape_cast %223 : vector<1x32x24xbf16> to vector<32x24xbf16>
    %cst_183 = arith.constant dense<0.000000e+00> : vector<8x24xf32>
    %225 = tpu.matmul %222, %224, %cst_183 {dimension_numbers = #tpu.dot_dimension_numbers<[1], [0], [0], [1], [0, 0, 1, 1], [], []>} : vector<8x32xbf16>, vector<32x24xbf16>, vector<8x24xf32> -> vector<8x24xf32>
    %226 = arith.addf %220, %225 : vector<8x24xf32>
    %c121 = arith.constant 121 : index
    %c0_184 = arith.constant 0 : index
    %227 = tpu.strided_load %arg21[%c121, %c0_184] {strides = array<i32: 2, 1>} : memref<408x32xf32, #tpu.memory_space<vmem>>, vector<8x32xf32>
    %228 = arith.truncf %227 : vector<8x32xf32> to vector<8x32xbf16>
    %c4_185 = arith.constant 4 : index
    %c0_186 = arith.constant 0 : index
    %c0_187 = arith.constant 0 : index
    %229 = vector.load %arg7[%c4_185, %c0_186, %c0_187] : memref<9x32x24xbf16, #tpu.memory_space<vmem>>, vector<1x32x24xbf16>
    %230 = vector.shape_cast %229 : vector<1x32x24xbf16> to vector<32x24xbf16>
    %cst_188 = arith.constant dense<0.000000e+00> : vector<8x24xf32>
    %231 = tpu.matmul %228, %230, %cst_188 {dimension_numbers = #tpu.dot_dimension_numbers<[1], [0], [0], [1], [0, 0, 1, 1], [], []>} : vector<8x32xbf16>, vector<32x24xbf16>, vector<8x24xf32> -> vector<8x24xf32>
    %232 = arith.addf %226, %231 : vector<8x24xf32>
    %c122 = arith.constant 122 : index
    %c0_189 = arith.constant 0 : index
    %233 = tpu.strided_load %arg21[%c122, %c0_189] {strides = array<i32: 2, 1>} : memref<408x32xf32, #tpu.memory_space<vmem>>, vector<8x32xf32>
    %234 = arith.truncf %233 : vector<8x32xf32> to vector<8x32xbf16>
    %c5_190 = arith.constant 5 : index
    %c0_191 = arith.constant 0 : index
    %c0_192 = arith.constant 0 : index
    %235 = vector.load %arg7[%c5_190, %c0_191, %c0_192] : memref<9x32x24xbf16, #tpu.memory_space<vmem>>, vector<1x32x24xbf16>
    %236 = vector.shape_cast %235 : vector<1x32x24xbf16> to vector<32x24xbf16>
    %cst_193 = arith.constant dense<0.000000e+00> : vector<8x24xf32>
    %237 = tpu.matmul %234, %236, %cst_193 {dimension_numbers = #tpu.dot_dimension_numbers<[1], [0], [0], [1], [0, 0, 1, 1], [], []>} : vector<8x32xbf16>, vector<32x24xbf16>, vector<8x24xf32> -> vector<8x24xf32>
    %238 = arith.addf %232, %237 : vector<8x24xf32>
    %c144_194 = arith.constant 144 : index
    %c0_195 = arith.constant 0 : index
    %239 = tpu.strided_load %arg21[%c144_194, %c0_195] {strides = array<i32: 2, 1>} : memref<408x32xf32, #tpu.memory_space<vmem>>, vector<8x32xf32>
    %240 = arith.truncf %239 : vector<8x32xf32> to vector<8x32xbf16>
    %c6_196 = arith.constant 6 : index
    %c0_197 = arith.constant 0 : index
    %c0_198 = arith.constant 0 : index
    %241 = vector.load %arg7[%c6_196, %c0_197, %c0_198] : memref<9x32x24xbf16, #tpu.memory_space<vmem>>, vector<1x32x24xbf16>
    %242 = vector.shape_cast %241 : vector<1x32x24xbf16> to vector<32x24xbf16>
    %cst_199 = arith.constant dense<0.000000e+00> : vector<8x24xf32>
    %243 = tpu.matmul %240, %242, %cst_199 {dimension_numbers = #tpu.dot_dimension_numbers<[1], [0], [0], [1], [0, 0, 1, 1], [], []>} : vector<8x32xbf16>, vector<32x24xbf16>, vector<8x24xf32> -> vector<8x24xf32>
    %244 = arith.addf %238, %243 : vector<8x24xf32>
    %c145 = arith.constant 145 : index
    %c0_200 = arith.constant 0 : index
    %245 = tpu.strided_load %arg21[%c145, %c0_200] {strides = array<i32: 2, 1>} : memref<408x32xf32, #tpu.memory_space<vmem>>, vector<8x32xf32>
    %246 = arith.truncf %245 : vector<8x32xf32> to vector<8x32xbf16>
    %c7_201 = arith.constant 7 : index
    %c0_202 = arith.constant 0 : index
    %c0_203 = arith.constant 0 : index
    %247 = vector.load %arg7[%c7_201, %c0_202, %c0_203] : memref<9x32x24xbf16, #tpu.memory_space<vmem>>, vector<1x32x24xbf16>
    %248 = vector.shape_cast %247 : vector<1x32x24xbf16> to vector<32x24xbf16>
    %cst_204 = arith.constant dense<0.000000e+00> : vector<8x24xf32>
    %249 = tpu.matmul %246, %248, %cst_204 {dimension_numbers = #tpu.dot_dimension_numbers<[1], [0], [0], [1], [0, 0, 1, 1], [], []>} : vector<8x32xbf16>, vector<32x24xbf16>, vector<8x24xf32> -> vector<8x24xf32>
    %250 = arith.addf %244, %249 : vector<8x24xf32>
    %c146 = arith.constant 146 : index
    %c0_205 = arith.constant 0 : index
    %251 = tpu.strided_load %arg21[%c146, %c0_205] {strides = array<i32: 2, 1>} : memref<408x32xf32, #tpu.memory_space<vmem>>, vector<8x32xf32>
    %252 = arith.truncf %251 : vector<8x32xf32> to vector<8x32xbf16>
    %c8_206 = arith.constant 8 : index
    %c0_207 = arith.constant 0 : index
    %c0_208 = arith.constant 0 : index
    %253 = vector.load %arg7[%c8_206, %c0_207, %c0_208] : memref<9x32x24xbf16, #tpu.memory_space<vmem>>, vector<1x32x24xbf16>
    %254 = vector.shape_cast %253 : vector<1x32x24xbf16> to vector<32x24xbf16>
    %cst_209 = arith.constant dense<0.000000e+00> : vector<8x24xf32>
    %255 = tpu.matmul %252, %254, %cst_209 {dimension_numbers = #tpu.dot_dimension_numbers<[1], [0], [0], [1], [0, 0, 1, 1], [], []>} : vector<8x32xbf16>, vector<32x24xbf16>, vector<8x24xf32> -> vector<8x24xf32>
    %256 = arith.addf %250, %255 : vector<8x24xf32>
    %c0_210 = arith.constant 0 : index
    %c0_211 = arith.constant 0 : index
    %257 = vector.load %arg8[%c0_210, %c0_211] : memref<1x24xf32, #tpu.memory_space<vmem>>, vector<1x24xf32>
    %258 = vector.broadcast %257 : vector<1x24xf32> to vector<8x24xf32>
    %259 = arith.addf %256, %258 : vector<8x24xf32>
    %260 = arith.negf %259 : vector<8x24xf32>
    %261 = math.exp %260 : vector<8x24xf32>
    %cst_212 = arith.constant 1.000000e+00 : f32
    %262 = vector.broadcast %cst_212 : f32 to vector<8x24xf32>
    %263 = arith.addf %262, %261 : vector<8x24xf32>
    %264 = arith.divf %262, %263 : vector<8x24xf32>
    %265 = arith.mulf %259, %264 : vector<8x24xf32>
    %c0_213 = arith.constant 0 : index
    %c16_214 = arith.constant 16 : index
    %c0_215 = arith.constant 0 : index
    %266 = vector.load %arg17[%c0_213, %c16_214, %c0_215] : memref<1x64x24xf32, #tpu.memory_space<vmem>>, vector<1x8x24xf32>
    %267 = vector.shape_cast %266 : vector<1x8x24xf32> to vector<8x24xf32>
    %268 = vector.shape_cast %265 : vector<8x24xf32> to vector<1x8x24xf32>
    tpu.vector_store %arg17[%c0_213, %c16_214, %c0_215], %268 {strides = array<i32>} : memref<1x64x24xf32, #tpu.memory_space<vmem>>, vector<1x8x24xf32>,
    %c32 = arith.constant 32 : index
    %c0_216 = arith.constant 0 : index
    %269 = vector.load %arg22[%c32, %c0_216] : memref<144x24xf32, #tpu.memory_space<vmem>>, vector<8x24xf32>
    tpu.vector_store %arg22[%c32, %c0_216], %265 {strides = array<i32>} : memref<144x24xf32, #tpu.memory_space<vmem>>, vector<8x24xf32>,
    %cst_217 = arith.constant 0.000000e+00 : f32
    %270 = vector.broadcast %cst_217 : f32 to vector<8x24xf32>
    %c144_218 = arith.constant 144 : index
    %c0_219 = arith.constant 0 : index
    %271 = tpu.strided_load %arg21[%c144_218, %c0_219] {strides = array<i32: 2, 1>} : memref<408x32xf32, #tpu.memory_space<vmem>>, vector<8x32xf32>
    %272 = arith.truncf %271 : vector<8x32xf32> to vector<8x32xbf16>
    %c0_220 = arith.constant 0 : index
    %c0_221 = arith.constant 0 : index
    %c0_222 = arith.constant 0 : index
    %273 = vector.load %arg7[%c0_220, %c0_221, %c0_222] : memref<9x32x24xbf16, #tpu.memory_space<vmem>>, vector<1x32x24xbf16>
    %274 = vector.shape_cast %273 : vector<1x32x24xbf16> to vector<32x24xbf16>
    %cst_223 = arith.constant dense<0.000000e+00> : vector<8x24xf32>
    %275 = tpu.matmul %272, %274, %cst_223 {dimension_numbers = #tpu.dot_dimension_numbers<[1], [0], [0], [1], [0, 0, 1, 1], [], []>} : vector<8x32xbf16>, vector<32x24xbf16>, vector<8x24xf32> -> vector<8x24xf32>
    %276 = arith.addf %270, %275 : vector<8x24xf32>
    %c145_224 = arith.constant 145 : index
    %c0_225 = arith.constant 0 : index
    %277 = tpu.strided_load %arg21[%c145_224, %c0_225] {strides = array<i32: 2, 1>} : memref<408x32xf32, #tpu.memory_space<vmem>>, vector<8x32xf32>
    %278 = arith.truncf %277 : vector<8x32xf32> to vector<8x32xbf16>
    %c1_226 = arith.constant 1 : index
    %c0_227 = arith.constant 0 : index
    %c0_228 = arith.constant 0 : index
    %279 = vector.load %arg7[%c1_226, %c0_227, %c0_228] : memref<9x32x24xbf16, #tpu.memory_space<vmem>>, vector<1x32x24xbf16>
    %280 = vector.shape_cast %279 : vector<1x32x24xbf16> to vector<32x24xbf16>
    %cst_229 = arith.constant dense<0.000000e+00> : vector<8x24xf32>
    %281 = tpu.matmul %278, %280, %cst_229 {dimension_numbers = #tpu.dot_dimension_numbers<[1], [0], [0], [1], [0, 0, 1, 1], [], []>} : vector<8x32xbf16>, vector<32x24xbf16>, vector<8x24xf32> -> vector<8x24xf32>
    %282 = arith.addf %276, %281 : vector<8x24xf32>
    %c146_230 = arith.constant 146 : index
    %c0_231 = arith.constant 0 : index
    %283 = tpu.strided_load %arg21[%c146_230, %c0_231] {strides = array<i32: 2, 1>} : memref<408x32xf32, #tpu.memory_space<vmem>>, vector<8x32xf32>
    %284 = arith.truncf %283 : vector<8x32xf32> to vector<8x32xbf16>
    %c2_232 = arith.constant 2 : index
    %c0_233 = arith.constant 0 : index
    %c0_234 = arith.constant 0 : index
    %285 = vector.load %arg7[%c2_232, %c0_233, %c0_234] : memref<9x32x24xbf16, #tpu.memory_space<vmem>>, vector<1x32x24xbf16>
    %286 = vector.shape_cast %285 : vector<1x32x24xbf16> to vector<32x24xbf16>
    %cst_235 = arith.constant dense<0.000000e+00> : vector<8x24xf32>
    %287 = tpu.matmul %284, %286, %cst_235 {dimension_numbers = #tpu.dot_dimension_numbers<[1], [0], [0], [1], [0, 0, 1, 1], [], []>} : vector<8x32xbf16>, vector<32x24xbf16>, vector<8x24xf32> -> vector<8x24xf32>
    %288 = arith.addf %282, %287 : vector<8x24xf32>
    %c168_236 = arith.constant 168 : index
    %c0_237 = arith.constant 0 : index
    %289 = tpu.strided_load %arg21[%c168_236, %c0_237] {strides = array<i32: 2, 1>} : memref<408x32xf32, #tpu.memory_space<vmem>>, vector<8x32xf32>
    %290 = arith.truncf %289 : vector<8x32xf32> to vector<8x32xbf16>
    %c3_238 = arith.constant 3 : index
    %c0_239 = arith.constant 0 : index
    %c0_240 = arith.constant 0 : index
    %291 = vector.load %arg7[%c3_238, %c0_239, %c0_240] : memref<9x32x24xbf16, #tpu.memory_space<vmem>>, vector<1x32x24xbf16>
    %292 = vector.shape_cast %291 : vector<1x32x24xbf16> to vector<32x24xbf16>
    %cst_241 = arith.constant dense<0.000000e+00> : vector<8x24xf32>
    %293 = tpu.matmul %290, %292, %cst_241 {dimension_numbers = #tpu.dot_dimension_numbers<[1], [0], [0], [1], [0, 0, 1, 1], [], []>} : vector<8x32xbf16>, vector<32x24xbf16>, vector<8x24xf32> -> vector<8x24xf32>
    %294 = arith.addf %288, %293 : vector<8x24xf32>
    %c169 = arith.constant 169 : index
    %c0_242 = arith.constant 0 : index
    %295 = tpu.strided_load %arg21[%c169, %c0_242] {strides = array<i32: 2, 1>} : memref<408x32xf32, #tpu.memory_space<vmem>>, vector<8x32xf32>
    %296 = arith.truncf %295 : vector<8x32xf32> to vector<8x32xbf16>
    %c4_243 = arith.constant 4 : index
    %c0_244 = arith.constant 0 : index
    %c0_245 = arith.constant 0 : index
    %297 = vector.load %arg7[%c4_243, %c0_244, %c0_245] : memref<9x32x24xbf16, #tpu.memory_space<vmem>>, vector<1x32x24xbf16>
    %298 = vector.shape_cast %297 : vector<1x32x24xbf16> to vector<32x24xbf16>
    %cst_246 = arith.constant dense<0.000000e+00> : vector<8x24xf32>
    %299 = tpu.matmul %296, %298, %cst_246 {dimension_numbers = #tpu.dot_dimension_numbers<[1], [0], [0], [1], [0, 0, 1, 1], [], []>} : vector<8x32xbf16>, vector<32x24xbf16>, vector<8x24xf32> -> vector<8x24xf32>
    %300 = arith.addf %294, %299 : vector<8x24xf32>
    %c170 = arith.constant 170 : index
    %c0_247 = arith.constant 0 : index
    %301 = tpu.strided_load %arg21[%c170, %c0_247] {strides = array<i32: 2, 1>} : memref<408x32xf32, #tpu.memory_space<vmem>>, vector<8x32xf32>
    %302 = arith.truncf %301 : vector<8x32xf32> to vector<8x32xbf16>
    %c5_248 = arith.constant 5 : index
    %c0_249 = arith.constant 0 : index
    %c0_250 = arith.constant 0 : index
    %303 = vector.load %arg7[%c5_248, %c0_249, %c0_250] : memref<9x32x24xbf16, #tpu.memory_space<vmem>>, vector<1x32x24xbf16>
    %304 = vector.shape_cast %303 : vector<1x32x24xbf16> to vector<32x24xbf16>
    %cst_251 = arith.constant dense<0.000000e+00> : vector<8x24xf32>
    %305 = tpu.matmul %302, %304, %cst_251 {dimension_numbers = #tpu.dot_dimension_numbers<[1], [0], [0], [1], [0, 0, 1, 1], [], []>} : vector<8x32xbf16>, vector<32x24xbf16>, vector<8x24xf32> -> vector<8x24xf32>
    %306 = arith.addf %300, %305 : vector<8x24xf32>
    %c192_252 = arith.constant 192 : index
    %c0_253 = arith.constant 0 : index
    %307 = tpu.strided_load %arg21[%c192_252, %c0_253] {strides = array<i32: 2, 1>} : memref<408x32xf32, #tpu.memory_space<vmem>>, vector<8x32xf32>
    %308 = arith.truncf %307 : vector<8x32xf32> to vector<8x32xbf16>
    %c6_254 = arith.constant 6 : index
    %c0_255 = arith.constant 0 : index
    %c0_256 = arith.constant 0 : index
    %309 = vector.load %arg7[%c6_254, %c0_255, %c0_256] : memref<9x32x24xbf16, #tpu.memory_space<vmem>>, vector<1x32x24xbf16>
    %310 = vector.shape_cast %309 : vector<1x32x24xbf16> to vector<32x24xbf16>
    %cst_257 = arith.constant dense<0.000000e+00> : vector<8x24xf32>
    %311 = tpu.matmul %308, %310, %cst_257 {dimension_numbers = #tpu.dot_dimension_numbers<[1], [0], [0], [1], [0, 0, 1, 1], [], []>} : vector<8x32xbf16>, vector<32x24xbf16>, vector<8x24xf32> -> vector<8x24xf32>
    %312 = arith.addf %306, %311 : vector<8x24xf32>
    %c193 = arith.constant 193 : index
    %c0_258 = arith.constant 0 : index
    %313 = tpu.strided_load %arg21[%c193, %c0_258] {strides = array<i32: 2, 1>} : memref<408x32xf32, #tpu.memory_space<vmem>>, vector<8x32xf32>
    %314 = arith.truncf %313 : vector<8x32xf32> to vector<8x32xbf16>
    %c7_259 = arith.constant 7 : index
    %c0_260 = arith.constant 0 : index
    %c0_261 = arith.constant 0 : index
    %315 = vector.load %arg7[%c7_259, %c0_260, %c0_261] : memref<9x32x24xbf16, #tpu.memory_space<vmem>>, vector<1x32x24xbf16>
    %316 = vector.shape_cast %315 : vector<1x32x24xbf16> to vector<32x24xbf16>
    %cst_262 = arith.constant dense<0.000000e+00> : vector<8x24xf32>
    %317 = tpu.matmul %314, %316, %cst_262 {dimension_numbers = #tpu.dot_dimension_numbers<[1], [0], [0], [1], [0, 0, 1, 1], [], []>} : vector<8x32xbf16>, vector<32x24xbf16>, vector<8x24xf32> -> vector<8x24xf32>
    %318 = arith.addf %312, %317 : vector<8x24xf32>
    %c194 = arith.constant 194 : index
    %c0_263 = arith.constant 0 : index
    %319 = tpu.strided_load %arg21[%c194, %c0_263] {strides = array<i32: 2, 1>} : memref<408x32xf32, #tpu.memory_space<vmem>>, vector<8x32xf32>
    %320 = arith.truncf %319 : vector<8x32xf32> to vector<8x32xbf16>
    %c8_264 = arith.constant 8 : index
    %c0_265 = arith.constant 0 : index
    %c0_266 = arith.constant 0 : index
    %321 = vector.load %arg7[%c8_264, %c0_265, %c0_266] : memref<9x32x24xbf16, #tpu.memory_space<vmem>>, vector<1x32x24xbf16>
    %322 = vector.shape_cast %321 : vector<1x32x24xbf16> to vector<32x24xbf16>
    %cst_267 = arith.constant dense<0.000000e+00> : vector<8x24xf32>
    %323 = tpu.matmul %320, %322, %cst_267 {dimension_numbers = #tpu.dot_dimension_numbers<[1], [0], [0], [1], [0, 0, 1, 1], [], []>} : vector<8x32xbf16>, vector<32x24xbf16>, vector<8x24xf32> -> vector<8x24xf32>
    %324 = arith.addf %318, %323 : vector<8x24xf32>
    %c0_268 = arith.constant 0 : index
    %c0_269 = arith.constant 0 : index
    %325 = vector.load %arg8[%c0_268, %c0_269] : memref<1x24xf32, #tpu.memory_space<vmem>>, vector<1x24xf32>
    %326 = vector.broadcast %325 : vector<1x24xf32> to vector<8x24xf32>
    %327 = arith.addf %324, %326 : vector<8x24xf32>
    %328 = arith.negf %327 : vector<8x24xf32>
    %329 = math.exp %328 : vector<8x24xf32>
    %cst_270 = arith.constant 1.000000e+00 : f32
    %330 = vector.broadcast %cst_270 : f32 to vector<8x24xf32>
    %331 = arith.addf %330, %329 : vector<8x24xf32>
    %332 = arith.divf %330, %331 : vector<8x24xf32>
    %333 = arith.mulf %327, %332 : vector<8x24xf32>
    %c0_271 = arith.constant 0 : index
    %c24_272 = arith.constant 24 : index
    %c0_273 = arith.constant 0 : index
    %334 = vector.load %arg17[%c0_271, %c24_272, %c0_273] : memref<1x64x24xf32, #tpu.memory_space<vmem>>, vector<1x8x24xf32>
    %335 = vector.shape_cast %334 : vector<1x8x24xf32> to vector<8x24xf32>
    %336 = vector.shape_cast %333 : vector<8x24xf32> to vector<1x8x24xf32>
    tpu.vector_store %arg17[%c0_271, %c24_272, %c0_273], %336 {strides = array<i32>} : memref<1x64x24xf32, #tpu.memory_space<vmem>>, vector<1x8x24xf32>,
    %c48_274 = arith.constant 48 : index
    %c0_275 = arith.constant 0 : index
    %337 = vector.load %arg22[%c48_274, %c0_275] : memref<144x24xf32, #tpu.memory_space<vmem>>, vector<8x24xf32>
    tpu.vector_store %arg22[%c48_274, %c0_275], %333 {strides = array<i32>} : memref<144x24xf32, #tpu.memory_space<vmem>>, vector<8x24xf32>,
    %cst_276 = arith.constant 0.000000e+00 : f32
    %338 = vector.broadcast %cst_276 : f32 to vector<8x24xf32>
    %c192_277 = arith.constant 192 : index
    %c0_278 = arith.constant 0 : index
    %339 = tpu.strided_load %arg21[%c192_277, %c0_278] {strides = array<i32: 2, 1>} : memref<408x32xf32, #tpu.memory_space<vmem>>, vector<8x32xf32>
    %340 = arith.truncf %339 : vector<8x32xf32> to vector<8x32xbf16>
    %c0_279 = arith.constant 0 : index
    %c0_280 = arith.constant 0 : index
    %c0_281 = arith.constant 0 : index
    %341 = vector.load %arg7[%c0_279, %c0_280, %c0_281] : memref<9x32x24xbf16, #tpu.memory_space<vmem>>, vector<1x32x24xbf16>
    %342 = vector.shape_cast %341 : vector<1x32x24xbf16> to vector<32x24xbf16>
    %cst_282 = arith.constant dense<0.000000e+00> : vector<8x24xf32>
    %343 = tpu.matmul %340, %342, %cst_282 {dimension_numbers = #tpu.dot_dimension_numbers<[1], [0], [0], [1], [0, 0, 1, 1], [], []>} : vector<8x32xbf16>, vector<32x24xbf16>, vector<8x24xf32> -> vector<8x24xf32>
    %344 = arith.addf %338, %343 : vector<8x24xf32>
    %c193_283 = arith.constant 193 : index
    %c0_284 = arith.constant 0 : index
    %345 = tpu.strided_load %arg21[%c193_283, %c0_284] {strides = array<i32: 2, 1>} : memref<408x32xf32, #tpu.memory_space<vmem>>, vector<8x32xf32>
    %346 = arith.truncf %345 : vector<8x32xf32> to vector<8x32xbf16>
    %c1_285 = arith.constant 1 : index
    %c0_286 = arith.constant 0 : index
    %c0_287 = arith.constant 0 : index
    %347 = vector.load %arg7[%c1_285, %c0_286, %c0_287] : memref<9x32x24xbf16, #tpu.memory_space<vmem>>, vector<1x32x24xbf16>
    %348 = vector.shape_cast %347 : vector<1x32x24xbf16> to vector<32x24xbf16>
    %cst_288 = arith.constant dense<0.000000e+00> : vector<8x24xf32>
    %349 = tpu.matmul %346, %348, %cst_288 {dimension_numbers = #tpu.dot_dimension_numbers<[1], [0], [0], [1], [0, 0, 1, 1], [], []>} : vector<8x32xbf16>, vector<32x24xbf16>, vector<8x24xf32> -> vector<8x24xf32>
    %350 = arith.addf %344, %349 : vector<8x24xf32>
    %c194_289 = arith.constant 194 : index
    %c0_290 = arith.constant 0 : index
    %351 = tpu.strided_load %arg21[%c194_289, %c0_290] {strides = array<i32: 2, 1>} : memref<408x32xf32, #tpu.memory_space<vmem>>, vector<8x32xf32>
    %352 = arith.truncf %351 : vector<8x32xf32> to vector<8x32xbf16>
    %c2_291 = arith.constant 2 : index
    %c0_292 = arith.constant 0 : index
    %c0_293 = arith.constant 0 : index
    %353 = vector.load %arg7[%c2_291, %c0_292, %c0_293] : memref<9x32x24xbf16, #tpu.memory_space<vmem>>, vector<1x32x24xbf16>
    %354 = vector.shape_cast %353 : vector<1x32x24xbf16> to vector<32x24xbf16>
    %cst_294 = arith.constant dense<0.000000e+00> : vector<8x24xf32>
    %355 = tpu.matmul %352, %354, %cst_294 {dimension_numbers = #tpu.dot_dimension_numbers<[1], [0], [0], [1], [0, 0, 1, 1], [], []>} : vector<8x32xbf16>, vector<32x24xbf16>, vector<8x24xf32> -> vector<8x24xf32>
    %356 = arith.addf %350, %355 : vector<8x24xf32>
    %c216_295 = arith.constant 216 : index
    %c0_296 = arith.constant 0 : index
    %357 = tpu.strided_load %arg21[%c216_295, %c0_296] {strides = array<i32: 2, 1>} : memref<408x32xf32, #tpu.memory_space<vmem>>, vector<8x32xf32>
    %358 = arith.truncf %357 : vector<8x32xf32> to vector<8x32xbf16>
    %c3_297 = arith.constant 3 : index
    %c0_298 = arith.constant 0 : index
    %c0_299 = arith.constant 0 : index
    %359 = vector.load %arg7[%c3_297, %c0_298, %c0_299] : memref<9x32x24xbf16, #tpu.memory_space<vmem>>, vector<1x32x24xbf16>
    %360 = vector.shape_cast %359 : vector<1x32x24xbf16> to vector<32x24xbf16>
    %cst_300 = arith.constant dense<0.000000e+00> : vector<8x24xf32>
    %361 = tpu.matmul %358, %360, %cst_300 {dimension_numbers = #tpu.dot_dimension_numbers<[1], [0], [0], [1], [0, 0, 1, 1], [], []>} : vector<8x32xbf16>, vector<32x24xbf16>, vector<8x24xf32> -> vector<8x24xf32>
    %362 = arith.addf %356, %361 : vector<8x24xf32>
    %c217 = arith.constant 217 : index
    %c0_301 = arith.constant 0 : index
    %363 = tpu.strided_load %arg21[%c217, %c0_301] {strides = array<i32: 2, 1>} : memref<408x32xf32, #tpu.memory_space<vmem>>, vector<8x32xf32>
    %364 = arith.truncf %363 : vector<8x32xf32> to vector<8x32xbf16>
    %c4_302 = arith.constant 4 : index
    %c0_303 = arith.constant 0 : index
    %c0_304 = arith.constant 0 : index
    %365 = vector.load %arg7[%c4_302, %c0_303, %c0_304] : memref<9x32x24xbf16, #tpu.memory_space<vmem>>, vector<1x32x24xbf16>
    %366 = vector.shape_cast %365 : vector<1x32x24xbf16> to vector<32x24xbf16>
    %cst_305 = arith.constant dense<0.000000e+00> : vector<8x24xf32>
    %367 = tpu.matmul %364, %366, %cst_305 {dimension_numbers = #tpu.dot_dimension_numbers<[1], [0], [0], [1], [0, 0, 1, 1], [], []>} : vector<8x32xbf16>, vector<32x24xbf16>, vector<8x24xf32> -> vector<8x24xf32>
    %368 = arith.addf %362, %367 : vector<8x24xf32>
    %c218 = arith.constant 218 : index
    %c0_306 = arith.constant 0 : index
    %369 = tpu.strided_load %arg21[%c218, %c0_306] {strides = array<i32: 2, 1>} : memref<408x32xf32, #tpu.memory_space<vmem>>, vector<8x32xf32>
    %370 = arith.truncf %369 : vector<8x32xf32> to vector<8x32xbf16>
    %c5_307 = arith.constant 5 : index
    %c0_308 = arith.constant 0 : index
    %c0_309 = arith.constant 0 : index
    %371 = vector.load %arg7[%c5_307, %c0_308, %c0_309] : memref<9x32x24xbf16, #tpu.memory_space<vmem>>, vector<1x32x24xbf16>
    %372 = vector.shape_cast %371 : vector<1x32x24xbf16> to vector<32x24xbf16>
    %cst_310 = arith.constant dense<0.000000e+00> : vector<8x24xf32>
    %373 = tpu.matmul %370, %372, %cst_310 {dimension_numbers = #tpu.dot_dimension_numbers<[1], [0], [0], [1], [0, 0, 1, 1], [], []>} : vector<8x32xbf16>, vector<32x24xbf16>, vector<8x24xf32> -> vector<8x24xf32>
    %374 = arith.addf %368, %373 : vector<8x24xf32>
    %c240_311 = arith.constant 240 : index
    %c0_312 = arith.constant 0 : index
    %375 = tpu.strided_load %arg21[%c240_311, %c0_312] {strides = array<i32: 2, 1>} : memref<408x32xf32, #tpu.memory_space<vmem>>, vector<8x32xf32>
    %376 = arith.truncf %375 : vector<8x32xf32> to vector<8x32xbf16>
    %c6_313 = arith.constant 6 : index
    %c0_314 = arith.constant 0 : index
    %c0_315 = arith.constant 0 : index
    %377 = vector.load %arg7[%c6_313, %c0_314, %c0_315] : memref<9x32x24xbf16, #tpu.memory_space<vmem>>, vector<1x32x24xbf16>
    %378 = vector.shape_cast %377 : vector<1x32x24xbf16> to vector<32x24xbf16>
    %cst_316 = arith.constant dense<0.000000e+00> : vector<8x24xf32>
    %379 = tpu.matmul %376, %378, %cst_316 {dimension_numbers = #tpu.dot_dimension_numbers<[1], [0], [0], [1], [0, 0, 1, 1], [], []>} : vector<8x32xbf16>, vector<32x24xbf16>, vector<8x24xf32> -> vector<8x24xf32>
    %380 = arith.addf %374, %379 : vector<8x24xf32>
    %c241 = arith.constant 241 : index
    %c0_317 = arith.constant 0 : index
    %381 = tpu.strided_load %arg21[%c241, %c0_317] {strides = array<i32: 2, 1>} : memref<408x32xf32, #tpu.memory_space<vmem>>, vector<8x32xf32>
    %382 = arith.truncf %381 : vector<8x32xf32> to vector<8x32xbf16>
    %c7_318 = arith.constant 7 : index
    %c0_319 = arith.constant 0 : index
    %c0_320 = arith.constant 0 : index
    %383 = vector.load %arg7[%c7_318, %c0_319, %c0_320] : memref<9x32x24xbf16, #tpu.memory_space<vmem>>, vector<1x32x24xbf16>
    %384 = vector.shape_cast %383 : vector<1x32x24xbf16> to vector<32x24xbf16>
    %cst_321 = arith.constant dense<0.000000e+00> : vector<8x24xf32>
    %385 = tpu.matmul %382, %384, %cst_321 {dimension_numbers = #tpu.dot_dimension_numbers<[1], [0], [0], [1], [0, 0, 1, 1], [], []>} : vector<8x32xbf16>, vector<32x24xbf16>, vector<8x24xf32> -> vector<8x24xf32>
    %386 = arith.addf %380, %385 : vector<8x24xf32>
    %c242 = arith.constant 242 : index
    %c0_322 = arith.constant 0 : index
    %387 = tpu.strided_load %arg21[%c242, %c0_322] {strides = array<i32: 2, 1>} : memref<408x32xf32, #tpu.memory_space<vmem>>, vector<8x32xf32>
    %388 = arith.truncf %387 : vector<8x32xf32> to vector<8x32xbf16>
    %c8_323 = arith.constant 8 : index
    %c0_324 = arith.constant 0 : index
    %c0_325 = arith.constant 0 : index
    %389 = vector.load %arg7[%c8_323, %c0_324, %c0_325] : memref<9x32x24xbf16, #tpu.memory_space<vmem>>, vector<1x32x24xbf16>
    %390 = vector.shape_cast %389 : vector<1x32x24xbf16> to vector<32x24xbf16>
    %cst_326 = arith.constant dense<0.000000e+00> : vector<8x24xf32>
    %391 = tpu.matmul %388, %390, %cst_326 {dimension_numbers = #tpu.dot_dimension_numbers<[1], [0], [0], [1], [0, 0, 1, 1], [], []>} : vector<8x32xbf16>, vector<32x24xbf16>, vector<8x24xf32> -> vector<8x24xf32>
    %392 = arith.addf %386, %391 : vector<8x24xf32>
    %c0_327 = arith.constant 0 : index
    %c0_328 = arith.constant 0 : index
    %393 = vector.load %arg8[%c0_327, %c0_328] : memref<1x24xf32, #tpu.memory_space<vmem>>, vector<1x24xf32>
    %394 = vector.broadcast %393 : vector<1x24xf32> to vector<8x24xf32>
    %395 = arith.addf %392, %394 : vector<8x24xf32>
    %396 = arith.negf %395 : vector<8x24xf32>
    %397 = math.exp %396 : vector<8x24xf32>
    %cst_329 = arith.constant 1.000000e+00 : f32
    %398 = vector.broadcast %cst_329 : f32 to vector<8x24xf32>
    %399 = arith.addf %398, %397 : vector<8x24xf32>
    %400 = arith.divf %398, %399 : vector<8x24xf32>
    %401 = arith.mulf %395, %400 : vector<8x24xf32>
    %c0_330 = arith.constant 0 : index
    %c32_331 = arith.constant 32 : index
    %c0_332 = arith.constant 0 : index
    %402 = vector.load %arg17[%c0_330, %c32_331, %c0_332] : memref<1x64x24xf32, #tpu.memory_space<vmem>>, vector<1x8x24xf32>
    %403 = vector.shape_cast %402 : vector<1x8x24xf32> to vector<8x24xf32>
    %404 = vector.shape_cast %401 : vector<8x24xf32> to vector<1x8x24xf32>
    tpu.vector_store %arg17[%c0_330, %c32_331, %c0_332], %404 {strides = array<i32>} : memref<1x64x24xf32, #tpu.memory_space<vmem>>, vector<1x8x24xf32>,
    %c64 = arith.constant 64 : index
    %c0_333 = arith.constant 0 : index
    %405 = vector.load %arg22[%c64, %c0_333] : memref<144x24xf32, #tpu.memory_space<vmem>>, vector<8x24xf32>
    tpu.vector_store %arg22[%c64, %c0_333], %401 {strides = array<i32>} : memref<144x24xf32, #tpu.memory_space<vmem>>, vector<8x24xf32>,
    %cst_334 = arith.constant 0.000000e+00 : f32
    %406 = vector.broadcast %cst_334 : f32 to vector<8x24xf32>
    %c240_335 = arith.constant 240 : index
    %c0_336 = arith.constant 0 : index
    %407 = tpu.strided_load %arg21[%c240_335, %c0_336] {strides = array<i32: 2, 1>} : memref<408x32xf32, #tpu.memory_space<vmem>>, vector<8x32xf32>
    %408 = arith.truncf %407 : vector<8x32xf32> to vector<8x32xbf16>
    %c0_337 = arith.constant 0 : index
    %c0_338 = arith.constant 0 : index
    %c0_339 = arith.constant 0 : index
    %409 = vector.load %arg7[%c0_337, %c0_338, %c0_339] : memref<9x32x24xbf16, #tpu.memory_space<vmem>>, vector<1x32x24xbf16>
    %410 = vector.shape_cast %409 : vector<1x32x24xbf16> to vector<32x24xbf16>
    %cst_340 = arith.constant dense<0.000000e+00> : vector<8x24xf32>
    %411 = tpu.matmul %408, %410, %cst_340 {dimension_numbers = #tpu.dot_dimension_numbers<[1], [0], [0], [1], [0, 0, 1, 1], [], []>} : vector<8x32xbf16>, vector<32x24xbf16>, vector<8x24xf32> -> vector<8x24xf32>
    %412 = arith.addf %406, %411 : vector<8x24xf32>
    %c241_341 = arith.constant 241 : index
    %c0_342 = arith.constant 0 : index
    %413 = tpu.strided_load %arg21[%c241_341, %c0_342] {strides = array<i32: 2, 1>} : memref<408x32xf32, #tpu.memory_space<vmem>>, vector<8x32xf32>
    %414 = arith.truncf %413 : vector<8x32xf32> to vector<8x32xbf16>
    %c1_343 = arith.constant 1 : index
    %c0_344 = arith.constant 0 : index
    %c0_345 = arith.constant 0 : index
    %415 = vector.load %arg7[%c1_343, %c0_344, %c0_345] : memref<9x32x24xbf16, #tpu.memory_space<vmem>>, vector<1x32x24xbf16>
    %416 = vector.shape_cast %415 : vector<1x32x24xbf16> to vector<32x24xbf16>
    %cst_346 = arith.constant dense<0.000000e+00> : vector<8x24xf32>
    %417 = tpu.matmul %414, %416, %cst_346 {dimension_numbers = #tpu.dot_dimension_numbers<[1], [0], [0], [1], [0, 0, 1, 1], [], []>} : vector<8x32xbf16>, vector<32x24xbf16>, vector<8x24xf32> -> vector<8x24xf32>
    %418 = arith.addf %412, %417 : vector<8x24xf32>
    %c242_347 = arith.constant 242 : index
    %c0_348 = arith.constant 0 : index
    %419 = tpu.strided_load %arg21[%c242_347, %c0_348] {strides = array<i32: 2, 1>} : memref<408x32xf32, #tpu.memory_space<vmem>>, vector<8x32xf32>
    %420 = arith.truncf %419 : vector<8x32xf32> to vector<8x32xbf16>
    %c2_349 = arith.constant 2 : index
    %c0_350 = arith.constant 0 : index
    %c0_351 = arith.constant 0 : index
    %421 = vector.load %arg7[%c2_349, %c0_350, %c0_351] : memref<9x32x24xbf16, #tpu.memory_space<vmem>>, vector<1x32x24xbf16>
    %422 = vector.shape_cast %421 : vector<1x32x24xbf16> to vector<32x24xbf16>
    %cst_352 = arith.constant dense<0.000000e+00> : vector<8x24xf32>
    %423 = tpu.matmul %420, %422, %cst_352 {dimension_numbers = #tpu.dot_dimension_numbers<[1], [0], [0], [1], [0, 0, 1, 1], [], []>} : vector<8x32xbf16>, vector<32x24xbf16>, vector<8x24xf32> -> vector<8x24xf32>
    %424 = arith.addf %418, %423 : vector<8x24xf32>
    %c264_353 = arith.constant 264 : index
    %c0_354 = arith.constant 0 : index
    %425 = tpu.strided_load %arg21[%c264_353, %c0_354] {strides = array<i32: 2, 1>} : memref<408x32xf32, #tpu.memory_space<vmem>>, vector<8x32xf32>
    %426 = arith.truncf %425 : vector<8x32xf32> to vector<8x32xbf16>
    %c3_355 = arith.constant 3 : index
    %c0_356 = arith.constant 0 : index
    %c0_357 = arith.constant 0 : index
    %427 = vector.load %arg7[%c3_355, %c0_356, %c0_357] : memref<9x32x24xbf16, #tpu.memory_space<vmem>>, vector<1x32x24xbf16>
    %428 = vector.shape_cast %427 : vector<1x32x24xbf16> to vector<32x24xbf16>
    %cst_358 = arith.constant dense<0.000000e+00> : vector<8x24xf32>
    %429 = tpu.matmul %426, %428, %cst_358 {dimension_numbers = #tpu.dot_dimension_numbers<[1], [0], [0], [1], [0, 0, 1, 1], [], []>} : vector<8x32xbf16>, vector<32x24xbf16>, vector<8x24xf32> -> vector<8x24xf32>
    %430 = arith.addf %424, %429 : vector<8x24xf32>
    %c265 = arith.constant 265 : index
    %c0_359 = arith.constant 0 : index
    %431 = tpu.strided_load %arg21[%c265, %c0_359] {strides = array<i32: 2, 1>} : memref<408x32xf32, #tpu.memory_space<vmem>>, vector<8x32xf32>
    %432 = arith.truncf %431 : vector<8x32xf32> to vector<8x32xbf16>
    %c4_360 = arith.constant 4 : index
    %c0_361 = arith.constant 0 : index
    %c0_362 = arith.constant 0 : index
    %433 = vector.load %arg7[%c4_360, %c0_361, %c0_362] : memref<9x32x24xbf16, #tpu.memory_space<vmem>>, vector<1x32x24xbf16>
    %434 = vector.shape_cast %433 : vector<1x32x24xbf16> to vector<32x24xbf16>
    %cst_363 = arith.constant dense<0.000000e+00> : vector<8x24xf32>
    %435 = tpu.matmul %432, %434, %cst_363 {dimension_numbers = #tpu.dot_dimension_numbers<[1], [0], [0], [1], [0, 0, 1, 1], [], []>} : vector<8x32xbf16>, vector<32x24xbf16>, vector<8x24xf32> -> vector<8x24xf32>
    %436 = arith.addf %430, %435 : vector<8x24xf32>
    %c266 = arith.constant 266 : index
    %c0_364 = arith.constant 0 : index
    %437 = tpu.strided_load %arg21[%c266, %c0_364] {strides = array<i32: 2, 1>} : memref<408x32xf32, #tpu.memory_space<vmem>>, vector<8x32xf32>
    %438 = arith.truncf %437 : vector<8x32xf32> to vector<8x32xbf16>
    %c5_365 = arith.constant 5 : index
    %c0_366 = arith.constant 0 : index
    %c0_367 = arith.constant 0 : index
    %439 = vector.load %arg7[%c5_365, %c0_366, %c0_367] : memref<9x32x24xbf16, #tpu.memory_space<vmem>>, vector<1x32x24xbf16>
    %440 = vector.shape_cast %439 : vector<1x32x24xbf16> to vector<32x24xbf16>
    %cst_368 = arith.constant dense<0.000000e+00> : vector<8x24xf32>
    %441 = tpu.matmul %438, %440, %cst_368 {dimension_numbers = #tpu.dot_dimension_numbers<[1], [0], [0], [1], [0, 0, 1, 1], [], []>} : vector<8x32xbf16>, vector<32x24xbf16>, vector<8x24xf32> -> vector<8x24xf32>
    %442 = arith.addf %436, %441 : vector<8x24xf32>
    %c288_369 = arith.constant 288 : index
    %c0_370 = arith.constant 0 : index
    %443 = tpu.strided_load %arg21[%c288_369, %c0_370] {strides = array<i32: 2, 1>} : memref<408x32xf32, #tpu.memory_space<vmem>>, vector<8x32xf32>
    %444 = arith.truncf %443 : vector<8x32xf32> to vector<8x32xbf16>
    %c6_371 = arith.constant 6 : index
    %c0_372 = arith.constant 0 : index
    %c0_373 = arith.constant 0 : index
    %445 = vector.load %arg7[%c6_371, %c0_372, %c0_373] : memref<9x32x24xbf16, #tpu.memory_space<vmem>>, vector<1x32x24xbf16>
    %446 = vector.shape_cast %445 : vector<1x32x24xbf16> to vector<32x24xbf16>
    %cst_374 = arith.constant dense<0.000000e+00> : vector<8x24xf32>
    %447 = tpu.matmul %444, %446, %cst_374 {dimension_numbers = #tpu.dot_dimension_numbers<[1], [0], [0], [1], [0, 0, 1, 1], [], []>} : vector<8x32xbf16>, vector<32x24xbf16>, vector<8x24xf32> -> vector<8x24xf32>
    %448 = arith.addf %442, %447 : vector<8x24xf32>
    %c289 = arith.constant 289 : index
    %c0_375 = arith.constant 0 : index
    %449 = tpu.strided_load %arg21[%c289, %c0_375] {strides = array<i32: 2, 1>} : memref<408x32xf32, #tpu.memory_space<vmem>>, vector<8x32xf32>
    %450 = arith.truncf %449 : vector<8x32xf32> to vector<8x32xbf16>
    %c7_376 = arith.constant 7 : index
    %c0_377 = arith.constant 0 : index
    %c0_378 = arith.constant 0 : index
    %451 = vector.load %arg7[%c7_376, %c0_377, %c0_378] : memref<9x32x24xbf16, #tpu.memory_space<vmem>>, vector<1x32x24xbf16>
    %452 = vector.shape_cast %451 : vector<1x32x24xbf16> to vector<32x24xbf16>
    %cst_379 = arith.constant dense<0.000000e+00> : vector<8x24xf32>
    %453 = tpu.matmul %450, %452, %cst_379 {dimension_numbers = #tpu.dot_dimension_numbers<[1], [0], [0], [1], [0, 0, 1, 1], [], []>} : vector<8x32xbf16>, vector<32x24xbf16>, vector<8x24xf32> -> vector<8x24xf32>
    %454 = arith.addf %448, %453 : vector<8x24xf32>
    %c290 = arith.constant 290 : index
    %c0_380 = arith.constant 0 : index
    %455 = tpu.strided_load %arg21[%c290, %c0_380] {strides = array<i32: 2, 1>} : memref<408x32xf32, #tpu.memory_space<vmem>>, vector<8x32xf32>
    %456 = arith.truncf %455 : vector<8x32xf32> to vector<8x32xbf16>
    %c8_381 = arith.constant 8 : index
    %c0_382 = arith.constant 0 : index
    %c0_383 = arith.constant 0 : index
    %457 = vector.load %arg7[%c8_381, %c0_382, %c0_383] : memref<9x32x24xbf16, #tpu.memory_space<vmem>>, vector<1x32x24xbf16>
    %458 = vector.shape_cast %457 : vector<1x32x24xbf16> to vector<32x24xbf16>
    %cst_384 = arith.constant dense<0.000000e+00> : vector<8x24xf32>
    %459 = tpu.matmul %456, %458, %cst_384 {dimension_numbers = #tpu.dot_dimension_numbers<[1], [0], [0], [1], [0, 0, 1, 1], [], []>} : vector<8x32xbf16>, vector<32x24xbf16>, vector<8x24xf32> -> vector<8x24xf32>
    %460 = arith.addf %454, %459 : vector<8x24xf32>
    %c0_385 = arith.constant 0 : index
    %c0_386 = arith.constant 0 : index
    %461 = vector.load %arg8[%c0_385, %c0_386] : memref<1x24xf32, #tpu.memory_space<vmem>>, vector<1x24xf32>
    %462 = vector.broadcast %461 : vector<1x24xf32> to vector<8x24xf32>
    %463 = arith.addf %460, %462 : vector<8x24xf32>
    %464 = arith.negf %463 : vector<8x24xf32>
    %465 = math.exp %464 : vector<8x24xf32>
    %cst_387 = arith.constant 1.000000e+00 : f32
    %466 = vector.broadcast %cst_387 : f32 to vector<8x24xf32>
    %467 = arith.addf %466, %465 : vector<8x24xf32>
    %468 = arith.divf %466, %467 : vector<8x24xf32>
    %469 = arith.mulf %463, %468 : vector<8x24xf32>
    %c0_388 = arith.constant 0 : index
    %c40 = arith.constant 40 : index
    %c0_389 = arith.constant 0 : index
    %470 = vector.load %arg17[%c0_388, %c40, %c0_389] : memref<1x64x24xf32, #tpu.memory_space<vmem>>, vector<1x8x24xf32>
    %471 = vector.shape_cast %470 : vector<1x8x24xf32> to vector<8x24xf32>
    %472 = vector.shape_cast %469 : vector<8x24xf32> to vector<1x8x24xf32>
    tpu.vector_store %arg17[%c0_388, %c40, %c0_389], %472 {strides = array<i32>} : memref<1x64x24xf32, #tpu.memory_space<vmem>>, vector<1x8x24xf32>,
    %c80 = arith.constant 80 : index
    %c0_390 = arith.constant 0 : index
    %473 = vector.load %arg22[%c80, %c0_390] : memref<144x24xf32, #tpu.memory_space<vmem>>, vector<8x24xf32>
    tpu.vector_store %arg22[%c80, %c0_390], %469 {strides = array<i32>} : memref<144x24xf32, #tpu.memory_space<vmem>>, vector<8x24xf32>,
    %cst_391 = arith.constant 0.000000e+00 : f32
    %474 = vector.broadcast %cst_391 : f32 to vector<8x24xf32>
    %c288_392 = arith.constant 288 : index
    %c0_393 = arith.constant 0 : index
    %475 = tpu.strided_load %arg21[%c288_392, %c0_393] {strides = array<i32: 2, 1>} : memref<408x32xf32, #tpu.memory_space<vmem>>, vector<8x32xf32>
    %476 = arith.truncf %475 : vector<8x32xf32> to vector<8x32xbf16>
    %c0_394 = arith.constant 0 : index
    %c0_395 = arith.constant 0 : index
    %c0_396 = arith.constant 0 : index
    %477 = vector.load %arg7[%c0_394, %c0_395, %c0_396] : memref<9x32x24xbf16, #tpu.memory_space<vmem>>, vector<1x32x24xbf16>
    %478 = vector.shape_cast %477 : vector<1x32x24xbf16> to vector<32x24xbf16>
    %cst_397 = arith.constant dense<0.000000e+00> : vector<8x24xf32>
    %479 = tpu.matmul %476, %478, %cst_397 {dimension_numbers = #tpu.dot_dimension_numbers<[1], [0], [0], [1], [0, 0, 1, 1], [], []>} : vector<8x32xbf16>, vector<32x24xbf16>, vector<8x24xf32> -> vector<8x24xf32>
    %480 = arith.addf %474, %479 : vector<8x24xf32>
    %c289_398 = arith.constant 289 : index
    %c0_399 = arith.constant 0 : index
    %481 = tpu.strided_load %arg21[%c289_398, %c0_399] {strides = array<i32: 2, 1>} : memref<408x32xf32, #tpu.memory_space<vmem>>, vector<8x32xf32>
    %482 = arith.truncf %481 : vector<8x32xf32> to vector<8x32xbf16>
    %c1_400 = arith.constant 1 : index
    %c0_401 = arith.constant 0 : index
    %c0_402 = arith.constant 0 : index
    %483 = vector.load %arg7[%c1_400, %c0_401, %c0_402] : memref<9x32x24xbf16, #tpu.memory_space<vmem>>, vector<1x32x24xbf16>
    %484 = vector.shape_cast %483 : vector<1x32x24xbf16> to vector<32x24xbf16>
    %cst_403 = arith.constant dense<0.000000e+00> : vector<8x24xf32>
    %485 = tpu.matmul %482, %484, %cst_403 {dimension_numbers = #tpu.dot_dimension_numbers<[1], [0], [0], [1], [0, 0, 1, 1], [], []>} : vector<8x32xbf16>, vector<32x24xbf16>, vector<8x24xf32> -> vector<8x24xf32>
    %486 = arith.addf %480, %485 : vector<8x24xf32>
    %c290_404 = arith.constant 290 : index
    %c0_405 = arith.constant 0 : index
    %487 = tpu.strided_load %arg21[%c290_404, %c0_405] {strides = array<i32: 2, 1>} : memref<408x32xf32, #tpu.memory_space<vmem>>, vector<8x32xf32>
    %488 = arith.truncf %487 : vector<8x32xf32> to vector<8x32xbf16>
    %c2_406 = arith.constant 2 : index
    %c0_407 = arith.constant 0 : index
    %c0_408 = arith.constant 0 : index
    %489 = vector.load %arg7[%c2_406, %c0_407, %c0_408] : memref<9x32x24xbf16, #tpu.memory_space<vmem>>, vector<1x32x24xbf16>
    %490 = vector.shape_cast %489 : vector<1x32x24xbf16> to vector<32x24xbf16>
    %cst_409 = arith.constant dense<0.000000e+00> : vector<8x24xf32>
    %491 = tpu.matmul %488, %490, %cst_409 {dimension_numbers = #tpu.dot_dimension_numbers<[1], [0], [0], [1], [0, 0, 1, 1], [], []>} : vector<8x32xbf16>, vector<32x24xbf16>, vector<8x24xf32> -> vector<8x24xf32>
    %492 = arith.addf %486, %491 : vector<8x24xf32>
    %c312_410 = arith.constant 312 : index
    %c0_411 = arith.constant 0 : index
    %493 = tpu.strided_load %arg21[%c312_410, %c0_411] {strides = array<i32: 2, 1>} : memref<408x32xf32, #tpu.memory_space<vmem>>, vector<8x32xf32>
    %494 = arith.truncf %493 : vector<8x32xf32> to vector<8x32xbf16>
    %c3_412 = arith.constant 3 : index
    %c0_413 = arith.constant 0 : index
    %c0_414 = arith.constant 0 : index
    %495 = vector.load %arg7[%c3_412, %c0_413, %c0_414] : memref<9x32x24xbf16, #tpu.memory_space<vmem>>, vector<1x32x24xbf16>
    %496 = vector.shape_cast %495 : vector<1x32x24xbf16> to vector<32x24xbf16>
    %cst_415 = arith.constant dense<0.000000e+00> : vector<8x24xf32>
    %497 = tpu.matmul %494, %496, %cst_415 {dimension_numbers = #tpu.dot_dimension_numbers<[1], [0], [0], [1], [0, 0, 1, 1], [], []>} : vector<8x32xbf16>, vector<32x24xbf16>, vector<8x24xf32> -> vector<8x24xf32>
    %498 = arith.addf %492, %497 : vector<8x24xf32>
    %c313 = arith.constant 313 : index
    %c0_416 = arith.constant 0 : index
    %499 = tpu.strided_load %arg21[%c313, %c0_416] {strides = array<i32: 2, 1>} : memref<408x32xf32, #tpu.memory_space<vmem>>, vector<8x32xf32>
    %500 = arith.truncf %499 : vector<8x32xf32> to vector<8x32xbf16>
    %c4_417 = arith.constant 4 : index
    %c0_418 = arith.constant 0 : index
    %c0_419 = arith.constant 0 : index
    %501 = vector.load %arg7[%c4_417, %c0_418, %c0_419] : memref<9x32x24xbf16, #tpu.memory_space<vmem>>, vector<1x32x24xbf16>
    %502 = vector.shape_cast %501 : vector<1x32x24xbf16> to vector<32x24xbf16>
    %cst_420 = arith.constant dense<0.000000e+00> : vector<8x24xf32>
    %503 = tpu.matmul %500, %502, %cst_420 {dimension_numbers = #tpu.dot_dimension_numbers<[1], [0], [0], [1], [0, 0, 1, 1], [], []>} : vector<8x32xbf16>, vector<32x24xbf16>, vector<8x24xf32> -> vector<8x24xf32>
    %504 = arith.addf %498, %503 : vector<8x24xf32>
    %c314 = arith.constant 314 : index
    %c0_421 = arith.constant 0 : index
    %505 = tpu.strided_load %arg21[%c314, %c0_421] {strides = array<i32: 2, 1>} : memref<408x32xf32, #tpu.memory_space<vmem>>, vector<8x32xf32>
    %506 = arith.truncf %505 : vector<8x32xf32> to vector<8x32xbf16>
    %c5_422 = arith.constant 5 : index
    %c0_423 = arith.constant 0 : index
    %c0_424 = arith.constant 0 : index
    %507 = vector.load %arg7[%c5_422, %c0_423, %c0_424] : memref<9x32x24xbf16, #tpu.memory_space<vmem>>, vector<1x32x24xbf16>
    %508 = vector.shape_cast %507 : vector<1x32x24xbf16> to vector<32x24xbf16>
    %cst_425 = arith.constant dense<0.000000e+00> : vector<8x24xf32>
    %509 = tpu.matmul %506, %508, %cst_425 {dimension_numbers = #tpu.dot_dimension_numbers<[1], [0], [0], [1], [0, 0, 1, 1], [], []>} : vector<8x32xbf16>, vector<32x24xbf16>, vector<8x24xf32> -> vector<8x24xf32>
    %510 = arith.addf %504, %509 : vector<8x24xf32>
    %c336_426 = arith.constant 336 : index
    %c0_427 = arith.constant 0 : index
    %511 = tpu.strided_load %arg21[%c336_426, %c0_427] {strides = array<i32: 2, 1>} : memref<408x32xf32, #tpu.memory_space<vmem>>, vector<8x32xf32>
    %512 = arith.truncf %511 : vector<8x32xf32> to vector<8x32xbf16>
    %c6_428 = arith.constant 6 : index
    %c0_429 = arith.constant 0 : index
    %c0_430 = arith.constant 0 : index
    %513 = vector.load %arg7[%c6_428, %c0_429, %c0_430] : memref<9x32x24xbf16, #tpu.memory_space<vmem>>, vector<1x32x24xbf16>
    %514 = vector.shape_cast %513 : vector<1x32x24xbf16> to vector<32x24xbf16>
    %cst_431 = arith.constant dense<0.000000e+00> : vector<8x24xf32>
    %515 = tpu.matmul %512, %514, %cst_431 {dimension_numbers = #tpu.dot_dimension_numbers<[1], [0], [0], [1], [0, 0, 1, 1], [], []>} : vector<8x32xbf16>, vector<32x24xbf16>, vector<8x24xf32> -> vector<8x24xf32>
    %516 = arith.addf %510, %515 : vector<8x24xf32>
    %c337 = arith.constant 337 : index
    %c0_432 = arith.constant 0 : index
    %517 = tpu.strided_load %arg21[%c337, %c0_432] {strides = array<i32: 2, 1>} : memref<408x32xf32, #tpu.memory_space<vmem>>, vector<8x32xf32>
    %518 = arith.truncf %517 : vector<8x32xf32> to vector<8x32xbf16>
    %c7_433 = arith.constant 7 : index
    %c0_434 = arith.constant 0 : index
    %c0_435 = arith.constant 0 : index
    %519 = vector.load %arg7[%c7_433, %c0_434, %c0_435] : memref<9x32x24xbf16, #tpu.memory_space<vmem>>, vector<1x32x24xbf16>
    %520 = vector.shape_cast %519 : vector<1x32x24xbf16> to vector<32x24xbf16>
    %cst_436 = arith.constant dense<0.000000e+00> : vector<8x24xf32>
    %521 = tpu.matmul %518, %520, %cst_436 {dimension_numbers = #tpu.dot_dimension_numbers<[1], [0], [0], [1], [0, 0, 1, 1], [], []>} : vector<8x32xbf16>, vector<32x24xbf16>, vector<8x24xf32> -> vector<8x24xf32>
    %522 = arith.addf %516, %521 : vector<8x24xf32>
    %c338 = arith.constant 338 : index
    %c0_437 = arith.constant 0 : index
    %523 = tpu.strided_load %arg21[%c338, %c0_437] {strides = array<i32: 2, 1>} : memref<408x32xf32, #tpu.memory_space<vmem>>, vector<8x32xf32>
    %524 = arith.truncf %523 : vector<8x32xf32> to vector<8x32xbf16>
    %c8_438 = arith.constant 8 : index
    %c0_439 = arith.constant 0 : index
    %c0_440 = arith.constant 0 : index
    %525 = vector.load %arg7[%c8_438, %c0_439, %c0_440] : memref<9x32x24xbf16, #tpu.memory_space<vmem>>, vector<1x32x24xbf16>
    %526 = vector.shape_cast %525 : vector<1x32x24xbf16> to vector<32x24xbf16>
    %cst_441 = arith.constant dense<0.000000e+00> : vector<8x24xf32>
    %527 = tpu.matmul %524, %526, %cst_441 {dimension_numbers = #tpu.dot_dimension_numbers<[1], [0], [0], [1], [0, 0, 1, 1], [], []>} : vector<8x32xbf16>, vector<32x24xbf16>, vector<8x24xf32> -> vector<8x24xf32>
    %528 = arith.addf %522, %527 : vector<8x24xf32>
    %c0_442 = arith.constant 0 : index
    %c0_443 = arith.constant 0 : index
    %529 = vector.load %arg8[%c0_442, %c0_443] : memref<1x24xf32, #tpu.memory_space<vmem>>, vector<1x24xf32>
    %530 = vector.broadcast %529 : vector<1x24xf32> to vector<8x24xf32>
    %531 = arith.addf %528, %530 : vector<8x24xf32>
    %532 = arith.negf %531 : vector<8x24xf32>
    %533 = math.exp %532 : vector<8x24xf32>
    %cst_444 = arith.constant 1.000000e+00 : f32
    %534 = vector.broadcast %cst_444 : f32 to vector<8x24xf32>
    %535 = arith.addf %534, %533 : vector<8x24xf32>
    %536 = arith.divf %534, %535 : vector<8x24xf32>
    %537 = arith.mulf %531, %536 : vector<8x24xf32>
    %c0_445 = arith.constant 0 : index
    %c48_446 = arith.constant 48 : index
    %c0_447 = arith.constant 0 : index
    %538 = vector.load %arg17[%c0_445, %c48_446, %c0_447] : memref<1x64x24xf32, #tpu.memory_space<vmem>>, vector<1x8x24xf32>
    %539 = vector.shape_cast %538 : vector<1x8x24xf32> to vector<8x24xf32>
    %540 = vector.shape_cast %537 : vector<8x24xf32> to vector<1x8x24xf32>
    tpu.vector_store %arg17[%c0_445, %c48_446, %c0_447], %540 {strides = array<i32>} : memref<1x64x24xf32, #tpu.memory_space<vmem>>, vector<1x8x24xf32>,
    %c96_448 = arith.constant 96 : index
    %c0_449 = arith.constant 0 : index
    %541 = vector.load %arg22[%c96_448, %c0_449] : memref<144x24xf32, #tpu.memory_space<vmem>>, vector<8x24xf32>
    tpu.vector_store %arg22[%c96_448, %c0_449], %537 {strides = array<i32>} : memref<144x24xf32, #tpu.memory_space<vmem>>, vector<8x24xf32>,
    %cst_450 = arith.constant 0.000000e+00 : f32
    %542 = vector.broadcast %cst_450 : f32 to vector<8x24xf32>
    %c336_451 = arith.constant 336 : index
    %c0_452 = arith.constant 0 : index
    %543 = tpu.strided_load %arg21[%c336_451, %c0_452] {strides = array<i32: 2, 1>} : memref<408x32xf32, #tpu.memory_space<vmem>>, vector<8x32xf32>
    %544 = arith.truncf %543 : vector<8x32xf32> to vector<8x32xbf16>
    %c0_453 = arith.constant 0 : index
    %c0_454 = arith.constant 0 : index
    %c0_455 = arith.constant 0 : index
    %545 = vector.load %arg7[%c0_453, %c0_454, %c0_455] : memref<9x32x24xbf16, #tpu.memory_space<vmem>>, vector<1x32x24xbf16>
    %546 = vector.shape_cast %545 : vector<1x32x24xbf16> to vector<32x24xbf16>
    %cst_456 = arith.constant dense<0.000000e+00> : vector<8x24xf32>
    %547 = tpu.matmul %544, %546, %cst_456 {dimension_numbers = #tpu.dot_dimension_numbers<[1], [0], [0], [1], [0, 0, 1, 1], [], []>} : vector<8x32xbf16>, vector<32x24xbf16>, vector<8x24xf32> -> vector<8x24xf32>
    %548 = arith.addf %542, %547 : vector<8x24xf32>
    %c337_457 = arith.constant 337 : index
    %c0_458 = arith.constant 0 : index
    %549 = tpu.strided_load %arg21[%c337_457, %c0_458] {strides = array<i32: 2, 1>} : memref<408x32xf32, #tpu.memory_space<vmem>>, vector<8x32xf32>
    %550 = arith.truncf %549 : vector<8x32xf32> to vector<8x32xbf16>
    %c1_459 = arith.constant 1 : index
    %c0_460 = arith.constant 0 : index
    %c0_461 = arith.constant 0 : index
    %551 = vector.load %arg7[%c1_459, %c0_460, %c0_461] : memref<9x32x24xbf16, #tpu.memory_space<vmem>>, vector<1x32x24xbf16>
    %552 = vector.shape_cast %551 : vector<1x32x24xbf16> to vector<32x24xbf16>
    %cst_462 = arith.constant dense<0.000000e+00> : vector<8x24xf32>
    %553 = tpu.matmul %550, %552, %cst_462 {dimension_numbers = #tpu.dot_dimension_numbers<[1], [0], [0], [1], [0, 0, 1, 1], [], []>} : vector<8x32xbf16>, vector<32x24xbf16>, vector<8x24xf32> -> vector<8x24xf32>
    %554 = arith.addf %548, %553 : vector<8x24xf32>
    %c338_463 = arith.constant 338 : index
    %c0_464 = arith.constant 0 : index
    %555 = tpu.strided_load %arg21[%c338_463, %c0_464] {strides = array<i32: 2, 1>} : memref<408x32xf32, #tpu.memory_space<vmem>>, vector<8x32xf32>
    %556 = arith.truncf %555 : vector<8x32xf32> to vector<8x32xbf16>
    %c2_465 = arith.constant 2 : index
    %c0_466 = arith.constant 0 : index
    %c0_467 = arith.constant 0 : index
    %557 = vector.load %arg7[%c2_465, %c0_466, %c0_467] : memref<9x32x24xbf16, #tpu.memory_space<vmem>>, vector<1x32x24xbf16>
    %558 = vector.shape_cast %557 : vector<1x32x24xbf16> to vector<32x24xbf16>
    %cst_468 = arith.constant dense<0.000000e+00> : vector<8x24xf32>
    %559 = tpu.matmul %556, %558, %cst_468 {dimension_numbers = #tpu.dot_dimension_numbers<[1], [0], [0], [1], [0, 0, 1, 1], [], []>} : vector<8x32xbf16>, vector<32x24xbf16>, vector<8x24xf32> -> vector<8x24xf32>
    %560 = arith.addf %554, %559 : vector<8x24xf32>
    %c360_469 = arith.constant 360 : index
    %c0_470 = arith.constant 0 : index
    %561 = tpu.strided_load %arg21[%c360_469, %c0_470] {strides = array<i32: 2, 1>} : memref<408x32xf32, #tpu.memory_space<vmem>>, vector<8x32xf32>
    %562 = arith.truncf %561 : vector<8x32xf32> to vector<8x32xbf16>
    %c3_471 = arith.constant 3 : index
    %c0_472 = arith.constant 0 : index
    %c0_473 = arith.constant 0 : index
    %563 = vector.load %arg7[%c3_471, %c0_472, %c0_473] : memref<9x32x24xbf16, #tpu.memory_space<vmem>>, vector<1x32x24xbf16>
    %564 = vector.shape_cast %563 : vector<1x32x24xbf16> to vector<32x24xbf16>
    %cst_474 = arith.constant dense<0.000000e+00> : vector<8x24xf32>
    %565 = tpu.matmul %562, %564, %cst_474 {dimension_numbers = #tpu.dot_dimension_numbers<[1], [0], [0], [1], [0, 0, 1, 1], [], []>} : vector<8x32xbf16>, vector<32x24xbf16>, vector<8x24xf32> -> vector<8x24xf32>
    %566 = arith.addf %560, %565 : vector<8x24xf32>
    %c361 = arith.constant 361 : index
    %c0_475 = arith.constant 0 : index
    %567 = tpu.strided_load %arg21[%c361, %c0_475] {strides = array<i32: 2, 1>} : memref<408x32xf32, #tpu.memory_space<vmem>>, vector<8x32xf32>
    %568 = arith.truncf %567 : vector<8x32xf32> to vector<8x32xbf16>
    %c4_476 = arith.constant 4 : index
    %c0_477 = arith.constant 0 : index
    %c0_478 = arith.constant 0 : index
    %569 = vector.load %arg7[%c4_476, %c0_477, %c0_478] : memref<9x32x24xbf16, #tpu.memory_space<vmem>>, vector<1x32x24xbf16>
    %570 = vector.shape_cast %569 : vector<1x32x24xbf16> to vector<32x24xbf16>
    %cst_479 = arith.constant dense<0.000000e+00> : vector<8x24xf32>
    %571 = tpu.matmul %568, %570, %cst_479 {dimension_numbers = #tpu.dot_dimension_numbers<[1], [0], [0], [1], [0, 0, 1, 1], [], []>} : vector<8x32xbf16>, vector<32x24xbf16>, vector<8x24xf32> -> vector<8x24xf32>
    %572 = arith.addf %566, %571 : vector<8x24xf32>
    %c362 = arith.constant 362 : index
    %c0_480 = arith.constant 0 : index
    %573 = tpu.strided_load %arg21[%c362, %c0_480] {strides = array<i32: 2, 1>} : memref<408x32xf32, #tpu.memory_space<vmem>>, vector<8x32xf32>
    %574 = arith.truncf %573 : vector<8x32xf32> to vector<8x32xbf16>
    %c5_481 = arith.constant 5 : index
    %c0_482 = arith.constant 0 : index
    %c0_483 = arith.constant 0 : index
    %575 = vector.load %arg7[%c5_481, %c0_482, %c0_483] : memref<9x32x24xbf16, #tpu.memory_space<vmem>>, vector<1x32x24xbf16>
    %576 = vector.shape_cast %575 : vector<1x32x24xbf16> to vector<32x24xbf16>
    %cst_484 = arith.constant dense<0.000000e+00> : vector<8x24xf32>
    %577 = tpu.matmul %574, %576, %cst_484 {dimension_numbers = #tpu.dot_dimension_numbers<[1], [0], [0], [1], [0, 0, 1, 1], [], []>} : vector<8x32xbf16>, vector<32x24xbf16>, vector<8x24xf32> -> vector<8x24xf32>
    %578 = arith.addf %572, %577 : vector<8x24xf32>
    %c384 = arith.constant 384 : index
    %c0_485 = arith.constant 0 : index
    %579 = tpu.strided_load %arg21[%c384, %c0_485] {strides = array<i32: 2, 1>} : memref<408x32xf32, #tpu.memory_space<vmem>>, vector<8x32xf32>
    %580 = arith.truncf %579 : vector<8x32xf32> to vector<8x32xbf16>
    %c6_486 = arith.constant 6 : index
    %c0_487 = arith.constant 0 : index
    %c0_488 = arith.constant 0 : index
    %581 = vector.load %arg7[%c6_486, %c0_487, %c0_488] : memref<9x32x24xbf16, #tpu.memory_space<vmem>>, vector<1x32x24xbf16>
    %582 = vector.shape_cast %581 : vector<1x32x24xbf16> to vector<32x24xbf16>
    %cst_489 = arith.constant dense<0.000000e+00> : vector<8x24xf32>
    %583 = tpu.matmul %580, %582, %cst_489 {dimension_numbers = #tpu.dot_dimension_numbers<[1], [0], [0], [1], [0, 0, 1, 1], [], []>} : vector<8x32xbf16>, vector<32x24xbf16>, vector<8x24xf32> -> vector<8x24xf32>
    %584 = arith.addf %578, %583 : vector<8x24xf32>
    %c385 = arith.constant 385 : index
    %c0_490 = arith.constant 0 : index
    %585 = tpu.strided_load %arg21[%c385, %c0_490] {strides = array<i32: 2, 1>} : memref<408x32xf32, #tpu.memory_space<vmem>>, vector<8x32xf32>
    %586 = arith.truncf %585 : vector<8x32xf32> to vector<8x32xbf16>
    %c7_491 = arith.constant 7 : index
    %c0_492 = arith.constant 0 : index
    %c0_493 = arith.constant 0 : index
    %587 = vector.load %arg7[%c7_491, %c0_492, %c0_493] : memref<9x32x24xbf16, #tpu.memory_space<vmem>>, vector<1x32x24xbf16>
    %588 = vector.shape_cast %587 : vector<1x32x24xbf16> to vector<32x24xbf16>
    %cst_494 = arith.constant dense<0.000000e+00> : vector<8x24xf32>
    %589 = tpu.matmul %586, %588, %cst_494 {dimension_numbers = #tpu.dot_dimension_numbers<[1], [0], [0], [1], [0, 0, 1, 1], [], []>} : vector<8x32xbf16>, vector<32x24xbf16>, vector<8x24xf32> -> vector<8x24xf32>
    %590 = arith.addf %584, %589 : vector<8x24xf32>
    %c386 = arith.constant 386 : index
    %c0_495 = arith.constant 0 : index
    %591 = tpu.strided_load %arg21[%c386, %c0_495] {strides = array<i32: 2, 1>} : memref<408x32xf32, #tpu.memory_space<vmem>>, vector<8x32xf32>
    %592 = arith.truncf %591 : vector<8x32xf32> to vector<8x32xbf16>
    %c8_496 = arith.constant 8 : index
    %c0_497 = arith.constant 0 : index
    %c0_498 = arith.constant 0 : index
    %593 = vector.load %arg7[%c8_496, %c0_497, %c0_498] : memref<9x32x24xbf16, #tpu.memory_space<vmem>>, vector<1x32x24xbf16>
    %594 = vector.shape_cast %593 : vector<1x32x24xbf16> to vector<32x24xbf16>
    %cst_499 = arith.constant dense<0.000000e+00> : vector<8x24xf32>
    %595 = tpu.matmul %592, %594, %cst_499 {dimension_numbers = #tpu.dot_dimension_numbers<[1], [0], [0], [1], [0, 0, 1, 1], [], []>} : vector<8x32xbf16>, vector<32x24xbf16>, vector<8x24xf32> -> vector<8x24xf32>
    %596 = arith.addf %590, %595 : vector<8x24xf32>
    %c0_500 = arith.constant 0 : index
    %c0_501 = arith.constant 0 : index
    %597 = vector.load %arg8[%c0_500, %c0_501] : memref<1x24xf32, #tpu.memory_space<vmem>>, vector<1x24xf32>
    %598 = vector.broadcast %597 : vector<1x24xf32> to vector<8x24xf32>
    %599 = arith.addf %596, %598 : vector<8x24xf32>
    %600 = arith.negf %599 : vector<8x24xf32>
    %601 = math.exp %600 : vector<8x24xf32>
    %cst_502 = arith.constant 1.000000e+00 : f32
    %602 = vector.broadcast %cst_502 : f32 to vector<8x24xf32>
    %603 = arith.addf %602, %601 : vector<8x24xf32>
    %604 = arith.divf %602, %603 : vector<8x24xf32>
    %605 = arith.mulf %599, %604 : vector<8x24xf32>
    %c0_503 = arith.constant 0 : index
    %c56 = arith.constant 56 : index
    %c0_504 = arith.constant 0 : index
    %606 = vector.load %arg17[%c0_503, %c56, %c0_504] : memref<1x64x24xf32, #tpu.memory_space<vmem>>, vector<1x8x24xf32>
    %607 = vector.shape_cast %606 : vector<1x8x24xf32> to vector<8x24xf32>
    %608 = vector.shape_cast %605 : vector<8x24xf32> to vector<1x8x24xf32>
    tpu.vector_store %arg17[%c0_503, %c56, %c0_504], %608 {strides = array<i32>} : memref<1x64x24xf32, #tpu.memory_space<vmem>>, vector<1x8x24xf32>,
    %c112 = arith.constant 112 : index
    %c0_505 = arith.constant 0 : index
    %609 = vector.load %arg22[%c112, %c0_505] : memref<144x24xf32, #tpu.memory_space<vmem>>, vector<8x24xf32>
    tpu.vector_store %arg22[%c112, %c0_505], %605 {strides = array<i32>} : memref<144x24xf32, #tpu.memory_space<vmem>>, vector<8x24xf32>,
    %cst_506 = arith.constant 0.000000e+00 : f32
    %610 = vector.broadcast %cst_506 : f32 to vector<4x40xf32>
    %c0_507 = arith.constant 0 : index
    %c0_508 = arith.constant 0 : index
    %611 = tpu.strided_load %arg22[%c0_507, %c0_508] {strides = array<i32: 2, 1>} : memref<144x24xf32, #tpu.memory_space<vmem>>, vector<4x24xf32>
    %612 = arith.truncf %611 : vector<4x24xf32> to vector<4x24xbf16>
    %c0_509 = arith.constant 0 : index
    %c0_510 = arith.constant 0 : index
    %c0_511 = arith.constant 0 : index
    %613 = vector.load %arg9[%c0_509, %c0_510, %c0_511] : memref<9x24x40xbf16, #tpu.memory_space<vmem>>, vector<1x24x40xbf16>
    %614 = vector.shape_cast %613 : vector<1x24x40xbf16> to vector<24x40xbf16>
    %cst_512 = arith.constant dense<0.000000e+00> : vector<4x40xf32>
    %615 = tpu.matmul %612, %614, %cst_512 {dimension_numbers = #tpu.dot_dimension_numbers<[1], [0], [0], [1], [0, 0, 1, 1], [], []>} : vector<4x24xbf16>, vector<24x40xbf16>, vector<4x40xf32> -> vector<4x40xf32>
    %616 = arith.addf %610, %615 : vector<4x40xf32>
    %c1_513 = arith.constant 1 : index
    %c0_514 = arith.constant 0 : index
    %617 = tpu.strided_load %arg22[%c1_513, %c0_514] {strides = array<i32: 2, 1>} : memref<144x24xf32, #tpu.memory_space<vmem>>, vector<4x24xf32>
    %618 = arith.truncf %617 : vector<4x24xf32> to vector<4x24xbf16>
    %c1_515 = arith.constant 1 : index
    %c0_516 = arith.constant 0 : index
    %c0_517 = arith.constant 0 : index
    %619 = vector.load %arg9[%c1_515, %c0_516, %c0_517] : memref<9x24x40xbf16, #tpu.memory_space<vmem>>, vector<1x24x40xbf16>
    %620 = vector.shape_cast %619 : vector<1x24x40xbf16> to vector<24x40xbf16>
    %cst_518 = arith.constant dense<0.000000e+00> : vector<4x40xf32>
    %621 = tpu.matmul %618, %620, %cst_518 {dimension_numbers = #tpu.dot_dimension_numbers<[1], [0], [0], [1], [0, 0, 1, 1], [], []>} : vector<4x24xbf16>, vector<24x40xbf16>, vector<4x40xf32> -> vector<4x40xf32>
    %622 = arith.addf %616, %621 : vector<4x40xf32>
    %c2_519 = arith.constant 2 : index
    %c0_520 = arith.constant 0 : index
    %623 = tpu.strided_load %arg22[%c2_519, %c0_520] {strides = array<i32: 2, 1>} : memref<144x24xf32, #tpu.memory_space<vmem>>, vector<4x24xf32>
    %624 = arith.truncf %623 : vector<4x24xf32> to vector<4x24xbf16>
    %c2_521 = arith.constant 2 : index
    %c0_522 = arith.constant 0 : index
    %c0_523 = arith.constant 0 : index
    %625 = vector.load %arg9[%c2_521, %c0_522, %c0_523] : memref<9x24x40xbf16, #tpu.memory_space<vmem>>, vector<1x24x40xbf16>
    %626 = vector.shape_cast %625 : vector<1x24x40xbf16> to vector<24x40xbf16>
    %cst_524 = arith.constant dense<0.000000e+00> : vector<4x40xf32>
    %627 = tpu.matmul %624, %626, %cst_524 {dimension_numbers = #tpu.dot_dimension_numbers<[1], [0], [0], [1], [0, 0, 1, 1], [], []>} : vector<4x24xbf16>, vector<24x40xbf16>, vector<4x40xf32> -> vector<4x40xf32>
    %628 = arith.addf %622, %627 : vector<4x40xf32>
    %c16_525 = arith.constant 16 : index
    %c0_526 = arith.constant 0 : index
    %629 = tpu.strided_load %arg22[%c16_525, %c0_526] {strides = array<i32: 2, 1>} : memref<144x24xf32, #tpu.memory_space<vmem>>, vector<4x24xf32>
    %630 = arith.truncf %629 : vector<4x24xf32> to vector<4x24xbf16>
    %c3_527 = arith.constant 3 : index
    %c0_528 = arith.constant 0 : index
    %c0_529 = arith.constant 0 : index
    %631 = vector.load %arg9[%c3_527, %c0_528, %c0_529] : memref<9x24x40xbf16, #tpu.memory_space<vmem>>, vector<1x24x40xbf16>
    %632 = vector.shape_cast %631 : vector<1x24x40xbf16> to vector<24x40xbf16>
    %cst_530 = arith.constant dense<0.000000e+00> : vector<4x40xf32>
    %633 = tpu.matmul %630, %632, %cst_530 {dimension_numbers = #tpu.dot_dimension_numbers<[1], [0], [0], [1], [0, 0, 1, 1], [], []>} : vector<4x24xbf16>, vector<24x40xbf16>, vector<4x40xf32> -> vector<4x40xf32>
    %634 = arith.addf %628, %633 : vector<4x40xf32>
    %c17 = arith.constant 17 : index
    %c0_531 = arith.constant 0 : index
    %635 = tpu.strided_load %arg22[%c17, %c0_531] {strides = array<i32: 2, 1>} : memref<144x24xf32, #tpu.memory_space<vmem>>, vector<4x24xf32>
    %636 = arith.truncf %635 : vector<4x24xf32> to vector<4x24xbf16>
    %c4_532 = arith.constant 4 : index
    %c0_533 = arith.constant 0 : index
    %c0_534 = arith.constant 0 : index
    %637 = vector.load %arg9[%c4_532, %c0_533, %c0_534] : memref<9x24x40xbf16, #tpu.memory_space<vmem>>, vector<1x24x40xbf16>
    %638 = vector.shape_cast %637 : vector<1x24x40xbf16> to vector<24x40xbf16>
    %cst_535 = arith.constant dense<0.000000e+00> : vector<4x40xf32>
    %639 = tpu.matmul %636, %638, %cst_535 {dimension_numbers = #tpu.dot_dimension_numbers<[1], [0], [0], [1], [0, 0, 1, 1], [], []>} : vector<4x24xbf16>, vector<24x40xbf16>, vector<4x40xf32> -> vector<4x40xf32>
    %640 = arith.addf %634, %639 : vector<4x40xf32>
    %c18 = arith.constant 18 : index
    %c0_536 = arith.constant 0 : index
    %641 = tpu.strided_load %arg22[%c18, %c0_536] {strides = array<i32: 2, 1>} : memref<144x24xf32, #tpu.memory_space<vmem>>, vector<4x24xf32>
    %642 = arith.truncf %641 : vector<4x24xf32> to vector<4x24xbf16>
    %c5_537 = arith.constant 5 : index
    %c0_538 = arith.constant 0 : index
    %c0_539 = arith.constant 0 : index
    %643 = vector.load %arg9[%c5_537, %c0_538, %c0_539] : memref<9x24x40xbf16, #tpu.memory_space<vmem>>, vector<1x24x40xbf16>
    %644 = vector.shape_cast %643 : vector<1x24x40xbf16> to vector<24x40xbf16>
    %cst_540 = arith.constant dense<0.000000e+00> : vector<4x40xf32>
    %645 = tpu.matmul %642, %644, %cst_540 {dimension_numbers = #tpu.dot_dimension_numbers<[1], [0], [0], [1], [0, 0, 1, 1], [], []>} : vector<4x24xbf16>, vector<24x40xbf16>, vector<4x40xf32> -> vector<4x40xf32>
    %646 = arith.addf %640, %645 : vector<4x40xf32>
    %c32_541 = arith.constant 32 : index
    %c0_542 = arith.constant 0 : index
    %647 = tpu.strided_load %arg22[%c32_541, %c0_542] {strides = array<i32: 2, 1>} : memref<144x24xf32, #tpu.memory_space<vmem>>, vector<4x24xf32>
    %648 = arith.truncf %647 : vector<4x24xf32> to vector<4x24xbf16>
    %c6_543 = arith.constant 6 : index
    %c0_544 = arith.constant 0 : index
    %c0_545 = arith.constant 0 : index
    %649 = vector.load %arg9[%c6_543, %c0_544, %c0_545] : memref<9x24x40xbf16, #tpu.memory_space<vmem>>, vector<1x24x40xbf16>
    %650 = vector.shape_cast %649 : vector<1x24x40xbf16> to vector<24x40xbf16>
    %cst_546 = arith.constant dense<0.000000e+00> : vector<4x40xf32>
    %651 = tpu.matmul %648, %650, %cst_546 {dimension_numbers = #tpu.dot_dimension_numbers<[1], [0], [0], [1], [0, 0, 1, 1], [], []>} : vector<4x24xbf16>, vector<24x40xbf16>, vector<4x40xf32> -> vector<4x40xf32>
    %652 = arith.addf %646, %651 : vector<4x40xf32>
    %c33 = arith.constant 33 : index
    %c0_547 = arith.constant 0 : index
    %653 = tpu.strided_load %arg22[%c33, %c0_547] {strides = array<i32: 2, 1>} : memref<144x24xf32, #tpu.memory_space<vmem>>, vector<4x24xf32>
    %654 = arith.truncf %653 : vector<4x24xf32> to vector<4x24xbf16>
    %c7_548 = arith.constant 7 : index
    %c0_549 = arith.constant 0 : index
    %c0_550 = arith.constant 0 : index
    %655 = vector.load %arg9[%c7_548, %c0_549, %c0_550] : memref<9x24x40xbf16, #tpu.memory_space<vmem>>, vector<1x24x40xbf16>
    %656 = vector.shape_cast %655 : vector<1x24x40xbf16> to vector<24x40xbf16>
    %cst_551 = arith.constant dense<0.000000e+00> : vector<4x40xf32>
    %657 = tpu.matmul %654, %656, %cst_551 {dimension_numbers = #tpu.dot_dimension_numbers<[1], [0], [0], [1], [0, 0, 1, 1], [], []>} : vector<4x24xbf16>, vector<24x40xbf16>, vector<4x40xf32> -> vector<4x40xf32>
    %658 = arith.addf %652, %657 : vector<4x40xf32>
    %c34 = arith.constant 34 : index
    %c0_552 = arith.constant 0 : index
    %659 = tpu.strided_load %arg22[%c34, %c0_552] {strides = array<i32: 2, 1>} : memref<144x24xf32, #tpu.memory_space<vmem>>, vector<4x24xf32>
    %660 = arith.truncf %659 : vector<4x24xf32> to vector<4x24xbf16>
    %c8_553 = arith.constant 8 : index
    %c0_554 = arith.constant 0 : index
    %c0_555 = arith.constant 0 : index
    %661 = vector.load %arg9[%c8_553, %c0_554, %c0_555] : memref<9x24x40xbf16, #tpu.memory_space<vmem>>, vector<1x24x40xbf16>
    %662 = vector.shape_cast %661 : vector<1x24x40xbf16> to vector<24x40xbf16>
    %cst_556 = arith.constant dense<0.000000e+00> : vector<4x40xf32>
    %663 = tpu.matmul %660, %662, %cst_556 {dimension_numbers = #tpu.dot_dimension_numbers<[1], [0], [0], [1], [0, 0, 1, 1], [], []>} : vector<4x24xbf16>, vector<24x40xbf16>, vector<4x40xf32> -> vector<4x40xf32>
    %664 = arith.addf %658, %663 : vector<4x40xf32>
    %c0_557 = arith.constant 0 : index
    %c0_558 = arith.constant 0 : index
    %665 = vector.load %arg10[%c0_557, %c0_558] : memref<1x40xf32, #tpu.memory_space<vmem>>, vector<1x40xf32>
    %666 = vector.broadcast %665 : vector<1x40xf32> to vector<4x40xf32>
    %667 = arith.addf %664, %666 : vector<4x40xf32>
    %668 = arith.negf %667 : vector<4x40xf32>
    %669 = math.exp %668 : vector<4x40xf32>
    %cst_559 = arith.constant 1.000000e+00 : f32
    %670 = vector.broadcast %cst_559 : f32 to vector<4x40xf32>
    %671 = arith.addf %670, %669 : vector<4x40xf32>
    %672 = arith.divf %670, %671 : vector<4x40xf32>
    %673 = arith.mulf %667, %672 : vector<4x40xf32>
    %c0_560 = arith.constant 0 : index
    %c0_561 = arith.constant 0 : index
    %c0_562 = arith.constant 0 : index
    %674 = vector.load %arg18[%c0_560, %c0_561, %c0_562] : memref<1x16x40xf32, #tpu.memory_space<vmem>>, vector<1x4x40xf32>
    %675 = vector.shape_cast %674 : vector<1x4x40xf32> to vector<4x40xf32>
    %676 = vector.shape_cast %673 : vector<4x40xf32> to vector<1x4x40xf32>
    tpu.vector_store %arg18[%c0_560, %c0_561, %c0_562], %676 {strides = array<i32>} : memref<1x16x40xf32, #tpu.memory_space<vmem>>, vector<1x4x40xf32>,
    %c0_563 = arith.constant 0 : index
    %c0_564 = arith.constant 0 : index
    %677 = vector.load %arg23[%c0_563, %c0_564] : memref<40x40xf32, #tpu.memory_space<vmem>>, vector<4x40xf32>
    tpu.vector_store %arg23[%c0_563, %c0_564], %673 {strides = array<i32>} : memref<40x40xf32, #tpu.memory_space<vmem>>, vector<4x40xf32>,
    %cst_565 = arith.constant 0.000000e+00 : f32
    %678 = vector.broadcast %cst_565 : f32 to vector<4x40xf32>
    %c32_566 = arith.constant 32 : index
    %c0_567 = arith.constant 0 : index
    %679 = tpu.strided_load %arg22[%c32_566, %c0_567] {strides = array<i32: 2, 1>} : memref<144x24xf32, #tpu.memory_space<vmem>>, vector<4x24xf32>
    %680 = arith.truncf %679 : vector<4x24xf32> to vector<4x24xbf16>
    %c0_568 = arith.constant 0 : index
    %c0_569 = arith.constant 0 : index
    %c0_570 = arith.constant 0 : index
    %681 = vector.load %arg9[%c0_568, %c0_569, %c0_570] : memref<9x24x40xbf16, #tpu.memory_space<vmem>>, vector<1x24x40xbf16>
    %682 = vector.shape_cast %681 : vector<1x24x40xbf16> to vector<24x40xbf16>
    %cst_571 = arith.constant dense<0.000000e+00> : vector<4x40xf32>
    %683 = tpu.matmul %680, %682, %cst_571 {dimension_numbers = #tpu.dot_dimension_numbers<[1], [0], [0], [1], [0, 0, 1, 1], [], []>} : vector<4x24xbf16>, vector<24x40xbf16>, vector<4x40xf32> -> vector<4x40xf32>
    %684 = arith.addf %678, %683 : vector<4x40xf32>
    %c33_572 = arith.constant 33 : index
    %c0_573 = arith.constant 0 : index
    %685 = tpu.strided_load %arg22[%c33_572, %c0_573] {strides = array<i32: 2, 1>} : memref<144x24xf32, #tpu.memory_space<vmem>>, vector<4x24xf32>
    %686 = arith.truncf %685 : vector<4x24xf32> to vector<4x24xbf16>
    %c1_574 = arith.constant 1 : index
    %c0_575 = arith.constant 0 : index
    %c0_576 = arith.constant 0 : index
    %687 = vector.load %arg9[%c1_574, %c0_575, %c0_576] : memref<9x24x40xbf16, #tpu.memory_space<vmem>>, vector<1x24x40xbf16>
    %688 = vector.shape_cast %687 : vector<1x24x40xbf16> to vector<24x40xbf16>
    %cst_577 = arith.constant dense<0.000000e+00> : vector<4x40xf32>
    %689 = tpu.matmul %686, %688, %cst_577 {dimension_numbers = #tpu.dot_dimension_numbers<[1], [0], [0], [1], [0, 0, 1, 1], [], []>} : vector<4x24xbf16>, vector<24x40xbf16>, vector<4x40xf32> -> vector<4x40xf32>
    %690 = arith.addf %684, %689 : vector<4x40xf32>
    %c34_578 = arith.constant 34 : index
    %c0_579 = arith.constant 0 : index
    %691 = tpu.strided_load %arg22[%c34_578, %c0_579] {strides = array<i32: 2, 1>} : memref<144x24xf32, #tpu.memory_space<vmem>>, vector<4x24xf32>
    %692 = arith.truncf %691 : vector<4x24xf32> to vector<4x24xbf16>
    %c2_580 = arith.constant 2 : index
    %c0_581 = arith.constant 0 : index
    %c0_582 = arith.constant 0 : index
    %693 = vector.load %arg9[%c2_580, %c0_581, %c0_582] : memref<9x24x40xbf16, #tpu.memory_space<vmem>>, vector<1x24x40xbf16>
    %694 = vector.shape_cast %693 : vector<1x24x40xbf16> to vector<24x40xbf16>
    %cst_583 = arith.constant dense<0.000000e+00> : vector<4x40xf32>
    %695 = tpu.matmul %692, %694, %cst_583 {dimension_numbers = #tpu.dot_dimension_numbers<[1], [0], [0], [1], [0, 0, 1, 1], [], []>} : vector<4x24xbf16>, vector<24x40xbf16>, vector<4x40xf32> -> vector<4x40xf32>
    %696 = arith.addf %690, %695 : vector<4x40xf32>
    %c48_584 = arith.constant 48 : index
    %c0_585 = arith.constant 0 : index
    %697 = tpu.strided_load %arg22[%c48_584, %c0_585] {strides = array<i32: 2, 1>} : memref<144x24xf32, #tpu.memory_space<vmem>>, vector<4x24xf32>
    %698 = arith.truncf %697 : vector<4x24xf32> to vector<4x24xbf16>
    %c3_586 = arith.constant 3 : index
    %c0_587 = arith.constant 0 : index
    %c0_588 = arith.constant 0 : index
    %699 = vector.load %arg9[%c3_586, %c0_587, %c0_588] : memref<9x24x40xbf16, #tpu.memory_space<vmem>>, vector<1x24x40xbf16>
    %700 = vector.shape_cast %699 : vector<1x24x40xbf16> to vector<24x40xbf16>
    %cst_589 = arith.constant dense<0.000000e+00> : vector<4x40xf32>
    %701 = tpu.matmul %698, %700, %cst_589 {dimension_numbers = #tpu.dot_dimension_numbers<[1], [0], [0], [1], [0, 0, 1, 1], [], []>} : vector<4x24xbf16>, vector<24x40xbf16>, vector<4x40xf32> -> vector<4x40xf32>
    %702 = arith.addf %696, %701 : vector<4x40xf32>
    %c49_590 = arith.constant 49 : index
    %c0_591 = arith.constant 0 : index
    %703 = tpu.strided_load %arg22[%c49_590, %c0_591] {strides = array<i32: 2, 1>} : memref<144x24xf32, #tpu.memory_space<vmem>>, vector<4x24xf32>
    %704 = arith.truncf %703 : vector<4x24xf32> to vector<4x24xbf16>
    %c4_592 = arith.constant 4 : index
    %c0_593 = arith.constant 0 : index
    %c0_594 = arith.constant 0 : index
    %705 = vector.load %arg9[%c4_592, %c0_593, %c0_594] : memref<9x24x40xbf16, #tpu.memory_space<vmem>>, vector<1x24x40xbf16>
    %706 = vector.shape_cast %705 : vector<1x24x40xbf16> to vector<24x40xbf16>
    %cst_595 = arith.constant dense<0.000000e+00> : vector<4x40xf32>
    %707 = tpu.matmul %704, %706, %cst_595 {dimension_numbers = #tpu.dot_dimension_numbers<[1], [0], [0], [1], [0, 0, 1, 1], [], []>} : vector<4x24xbf16>, vector<24x40xbf16>, vector<4x40xf32> -> vector<4x40xf32>
    %708 = arith.addf %702, %707 : vector<4x40xf32>
    %c50_596 = arith.constant 50 : index
    %c0_597 = arith.constant 0 : index
    %709 = tpu.strided_load %arg22[%c50_596, %c0_597] {strides = array<i32: 2, 1>} : memref<144x24xf32, #tpu.memory_space<vmem>>, vector<4x24xf32>
    %710 = arith.truncf %709 : vector<4x24xf32> to vector<4x24xbf16>
    %c5_598 = arith.constant 5 : index
    %c0_599 = arith.constant 0 : index
    %c0_600 = arith.constant 0 : index
    %711 = vector.load %arg9[%c5_598, %c0_599, %c0_600] : memref<9x24x40xbf16, #tpu.memory_space<vmem>>, vector<1x24x40xbf16>
    %712 = vector.shape_cast %711 : vector<1x24x40xbf16> to vector<24x40xbf16>
    %cst_601 = arith.constant dense<0.000000e+00> : vector<4x40xf32>
    %713 = tpu.matmul %710, %712, %cst_601 {dimension_numbers = #tpu.dot_dimension_numbers<[1], [0], [0], [1], [0, 0, 1, 1], [], []>} : vector<4x24xbf16>, vector<24x40xbf16>, vector<4x40xf32> -> vector<4x40xf32>
    %714 = arith.addf %708, %713 : vector<4x40xf32>
    %c64_602 = arith.constant 64 : index
    %c0_603 = arith.constant 0 : index
    %715 = tpu.strided_load %arg22[%c64_602, %c0_603] {strides = array<i32: 2, 1>} : memref<144x24xf32, #tpu.memory_space<vmem>>, vector<4x24xf32>
    %716 = arith.truncf %715 : vector<4x24xf32> to vector<4x24xbf16>
    %c6_604 = arith.constant 6 : index
    %c0_605 = arith.constant 0 : index
    %c0_606 = arith.constant 0 : index
    %717 = vector.load %arg9[%c6_604, %c0_605, %c0_606] : memref<9x24x40xbf16, #tpu.memory_space<vmem>>, vector<1x24x40xbf16>
    %718 = vector.shape_cast %717 : vector<1x24x40xbf16> to vector<24x40xbf16>
    %cst_607 = arith.constant dense<0.000000e+00> : vector<4x40xf32>
    %719 = tpu.matmul %716, %718, %cst_607 {dimension_numbers = #tpu.dot_dimension_numbers<[1], [0], [0], [1], [0, 0, 1, 1], [], []>} : vector<4x24xbf16>, vector<24x40xbf16>, vector<4x40xf32> -> vector<4x40xf32>
    %720 = arith.addf %714, %719 : vector<4x40xf32>
    %c65 = arith.constant 65 : index
    %c0_608 = arith.constant 0 : index
    %721 = tpu.strided_load %arg22[%c65, %c0_608] {strides = array<i32: 2, 1>} : memref<144x24xf32, #tpu.memory_space<vmem>>, vector<4x24xf32>
    %722 = arith.truncf %721 : vector<4x24xf32> to vector<4x24xbf16>
    %c7_609 = arith.constant 7 : index
    %c0_610 = arith.constant 0 : index
    %c0_611 = arith.constant 0 : index
    %723 = vector.load %arg9[%c7_609, %c0_610, %c0_611] : memref<9x24x40xbf16, #tpu.memory_space<vmem>>, vector<1x24x40xbf16>
    %724 = vector.shape_cast %723 : vector<1x24x40xbf16> to vector<24x40xbf16>
    %cst_612 = arith.constant dense<0.000000e+00> : vector<4x40xf32>
    %725 = tpu.matmul %722, %724, %cst_612 {dimension_numbers = #tpu.dot_dimension_numbers<[1], [0], [0], [1], [0, 0, 1, 1], [], []>} : vector<4x24xbf16>, vector<24x40xbf16>, vector<4x40xf32> -> vector<4x40xf32>
    %726 = arith.addf %720, %725 : vector<4x40xf32>
    %c66 = arith.constant 66 : index
    %c0_613 = arith.constant 0 : index
    %727 = tpu.strided_load %arg22[%c66, %c0_613] {strides = array<i32: 2, 1>} : memref<144x24xf32, #tpu.memory_space<vmem>>, vector<4x24xf32>
    %728 = arith.truncf %727 : vector<4x24xf32> to vector<4x24xbf16>
    %c8_614 = arith.constant 8 : index
    %c0_615 = arith.constant 0 : index
    %c0_616 = arith.constant 0 : index
    %729 = vector.load %arg9[%c8_614, %c0_615, %c0_616] : memref<9x24x40xbf16, #tpu.memory_space<vmem>>, vector<1x24x40xbf16>
    %730 = vector.shape_cast %729 : vector<1x24x40xbf16> to vector<24x40xbf16>
    %cst_617 = arith.constant dense<0.000000e+00> : vector<4x40xf32>
    %731 = tpu.matmul %728, %730, %cst_617 {dimension_numbers = #tpu.dot_dimension_numbers<[1], [0], [0], [1], [0, 0, 1, 1], [], []>} : vector<4x24xbf16>, vector<24x40xbf16>, vector<4x40xf32> -> vector<4x40xf32>
    %732 = arith.addf %726, %731 : vector<4x40xf32>
    %c0_618 = arith.constant 0 : index
    %c0_619 = arith.constant 0 : index
    %733 = vector.load %arg10[%c0_618, %c0_619] : memref<1x40xf32, #tpu.memory_space<vmem>>, vector<1x40xf32>
    %734 = vector.broadcast %733 : vector<1x40xf32> to vector<4x40xf32>
    %735 = arith.addf %732, %734 : vector<4x40xf32>
    %736 = arith.negf %735 : vector<4x40xf32>
    %737 = math.exp %736 : vector<4x40xf32>
    %cst_620 = arith.constant 1.000000e+00 : f32
    %738 = vector.broadcast %cst_620 : f32 to vector<4x40xf32>
    %739 = arith.addf %738, %737 : vector<4x40xf32>
    %740 = arith.divf %738, %739 : vector<4x40xf32>
    %741 = arith.mulf %735, %740 : vector<4x40xf32>
    %c0_621 = arith.constant 0 : index
    %c4_622 = arith.constant 4 : index
    %c0_623 = arith.constant 0 : index
    %742 = vector.load %arg18[%c0_621, %c4_622, %c0_623] : memref<1x16x40xf32, #tpu.memory_space<vmem>>, vector<1x4x40xf32>
    %743 = vector.shape_cast %742 : vector<1x4x40xf32> to vector<4x40xf32>
    %744 = vector.shape_cast %741 : vector<4x40xf32> to vector<1x4x40xf32>
    tpu.vector_store %arg18[%c0_621, %c4_622, %c0_623], %744 {strides = array<i32>} : memref<1x16x40xf32, #tpu.memory_space<vmem>>, vector<1x4x40xf32>,
    %c8_624 = arith.constant 8 : index
    %c0_625 = arith.constant 0 : index
    %745 = vector.load %arg23[%c8_624, %c0_625] : memref<40x40xf32, #tpu.memory_space<vmem>>, vector<4x40xf32>
    tpu.vector_store %arg23[%c8_624, %c0_625], %741 {strides = array<i32>} : memref<40x40xf32, #tpu.memory_space<vmem>>, vector<4x40xf32>,
    %cst_626 = arith.constant 0.000000e+00 : f32
    %746 = vector.broadcast %cst_626 : f32 to vector<4x40xf32>
    %c64_627 = arith.constant 64 : index
    %c0_628 = arith.constant 0 : index
    %747 = tpu.strided_load %arg22[%c64_627, %c0_628] {strides = array<i32: 2, 1>} : memref<144x24xf32, #tpu.memory_space<vmem>>, vector<4x24xf32>
    %748 = arith.truncf %747 : vector<4x24xf32> to vector<4x24xbf16>
    %c0_629 = arith.constant 0 : index
    %c0_630 = arith.constant 0 : index
    %c0_631 = arith.constant 0 : index
    %749 = vector.load %arg9[%c0_629, %c0_630, %c0_631] : memref<9x24x40xbf16, #tpu.memory_space<vmem>>, vector<1x24x40xbf16>
    %750 = vector.shape_cast %749 : vector<1x24x40xbf16> to vector<24x40xbf16>
    %cst_632 = arith.constant dense<0.000000e+00> : vector<4x40xf32>
    %751 = tpu.matmul %748, %750, %cst_632 {dimension_numbers = #tpu.dot_dimension_numbers<[1], [0], [0], [1], [0, 0, 1, 1], [], []>} : vector<4x24xbf16>, vector<24x40xbf16>, vector<4x40xf32> -> vector<4x40xf32>
    %752 = arith.addf %746, %751 : vector<4x40xf32>
    %c65_633 = arith.constant 65 : index
    %c0_634 = arith.constant 0 : index
    %753 = tpu.strided_load %arg22[%c65_633, %c0_634] {strides = array<i32: 2, 1>} : memref<144x24xf32, #tpu.memory_space<vmem>>, vector<4x24xf32>
    %754 = arith.truncf %753 : vector<4x24xf32> to vector<4x24xbf16>
    %c1_635 = arith.constant 1 : index
    %c0_636 = arith.constant 0 : index
    %c0_637 = arith.constant 0 : index
    %755 = vector.load %arg9[%c1_635, %c0_636, %c0_637] : memref<9x24x40xbf16, #tpu.memory_space<vmem>>, vector<1x24x40xbf16>
    %756 = vector.shape_cast %755 : vector<1x24x40xbf16> to vector<24x40xbf16>
    %cst_638 = arith.constant dense<0.000000e+00> : vector<4x40xf32>
    %757 = tpu.matmul %754, %756, %cst_638 {dimension_numbers = #tpu.dot_dimension_numbers<[1], [0], [0], [1], [0, 0, 1, 1], [], []>} : vector<4x24xbf16>, vector<24x40xbf16>, vector<4x40xf32> -> vector<4x40xf32>
    %758 = arith.addf %752, %757 : vector<4x40xf32>
    %c66_639 = arith.constant 66 : index
    %c0_640 = arith.constant 0 : index
    %759 = tpu.strided_load %arg22[%c66_639, %c0_640] {strides = array<i32: 2, 1>} : memref<144x24xf32, #tpu.memory_space<vmem>>, vector<4x24xf32>
    %760 = arith.truncf %759 : vector<4x24xf32> to vector<4x24xbf16>
    %c2_641 = arith.constant 2 : index
    %c0_642 = arith.constant 0 : index
    %c0_643 = arith.constant 0 : index
    %761 = vector.load %arg9[%c2_641, %c0_642, %c0_643] : memref<9x24x40xbf16, #tpu.memory_space<vmem>>, vector<1x24x40xbf16>
    %762 = vector.shape_cast %761 : vector<1x24x40xbf16> to vector<24x40xbf16>
    %cst_644 = arith.constant dense<0.000000e+00> : vector<4x40xf32>
    %763 = tpu.matmul %760, %762, %cst_644 {dimension_numbers = #tpu.dot_dimension_numbers<[1], [0], [0], [1], [0, 0, 1, 1], [], []>} : vector<4x24xbf16>, vector<24x40xbf16>, vector<4x40xf32> -> vector<4x40xf32>
    %764 = arith.addf %758, %763 : vector<4x40xf32>
    %c80_645 = arith.constant 80 : index
    %c0_646 = arith.constant 0 : index
    %765 = tpu.strided_load %arg22[%c80_645, %c0_646] {strides = array<i32: 2, 1>} : memref<144x24xf32, #tpu.memory_space<vmem>>, vector<4x24xf32>
    %766 = arith.truncf %765 : vector<4x24xf32> to vector<4x24xbf16>
    %c3_647 = arith.constant 3 : index
    %c0_648 = arith.constant 0 : index
    %c0_649 = arith.constant 0 : index
    %767 = vector.load %arg9[%c3_647, %c0_648, %c0_649] : memref<9x24x40xbf16, #tpu.memory_space<vmem>>, vector<1x24x40xbf16>
    %768 = vector.shape_cast %767 : vector<1x24x40xbf16> to vector<24x40xbf16>
    %cst_650 = arith.constant dense<0.000000e+00> : vector<4x40xf32>
    %769 = tpu.matmul %766, %768, %cst_650 {dimension_numbers = #tpu.dot_dimension_numbers<[1], [0], [0], [1], [0, 0, 1, 1], [], []>} : vector<4x24xbf16>, vector<24x40xbf16>, vector<4x40xf32> -> vector<4x40xf32>
    %770 = arith.addf %764, %769 : vector<4x40xf32>
    %c81 = arith.constant 81 : index
    %c0_651 = arith.constant 0 : index
    %771 = tpu.strided_load %arg22[%c81, %c0_651] {strides = array<i32: 2, 1>} : memref<144x24xf32, #tpu.memory_space<vmem>>, vector<4x24xf32>
    %772 = arith.truncf %771 : vector<4x24xf32> to vector<4x24xbf16>
    %c4_652 = arith.constant 4 : index
    %c0_653 = arith.constant 0 : index
    %c0_654 = arith.constant 0 : index
    %773 = vector.load %arg9[%c4_652, %c0_653, %c0_654] : memref<9x24x40xbf16, #tpu.memory_space<vmem>>, vector<1x24x40xbf16>
    %774 = vector.shape_cast %773 : vector<1x24x40xbf16> to vector<24x40xbf16>
    %cst_655 = arith.constant dense<0.000000e+00> : vector<4x40xf32>
    %775 = tpu.matmul %772, %774, %cst_655 {dimension_numbers = #tpu.dot_dimension_numbers<[1], [0], [0], [1], [0, 0, 1, 1], [], []>} : vector<4x24xbf16>, vector<24x40xbf16>, vector<4x40xf32> -> vector<4x40xf32>
    %776 = arith.addf %770, %775 : vector<4x40xf32>
    %c82 = arith.constant 82 : index
    %c0_656 = arith.constant 0 : index
    %777 = tpu.strided_load %arg22[%c82, %c0_656] {strides = array<i32: 2, 1>} : memref<144x24xf32, #tpu.memory_space<vmem>>, vector<4x24xf32>
    %778 = arith.truncf %777 : vector<4x24xf32> to vector<4x24xbf16>
    %c5_657 = arith.constant 5 : index
    %c0_658 = arith.constant 0 : index
    %c0_659 = arith.constant 0 : index
    %779 = vector.load %arg9[%c5_657, %c0_658, %c0_659] : memref<9x24x40xbf16, #tpu.memory_space<vmem>>, vector<1x24x40xbf16>
    %780 = vector.shape_cast %779 : vector<1x24x40xbf16> to vector<24x40xbf16>
    %cst_660 = arith.constant dense<0.000000e+00> : vector<4x40xf32>
    %781 = tpu.matmul %778, %780, %cst_660 {dimension_numbers = #tpu.dot_dimension_numbers<[1], [0], [0], [1], [0, 0, 1, 1], [], []>} : vector<4x24xbf16>, vector<24x40xbf16>, vector<4x40xf32> -> vector<4x40xf32>
    %782 = arith.addf %776, %781 : vector<4x40xf32>
    %c96_661 = arith.constant 96 : index
    %c0_662 = arith.constant 0 : index
    %783 = tpu.strided_load %arg22[%c96_661, %c0_662] {strides = array<i32: 2, 1>} : memref<144x24xf32, #tpu.memory_space<vmem>>, vector<4x24xf32>
    %784 = arith.truncf %783 : vector<4x24xf32> to vector<4x24xbf16>
    %c6_663 = arith.constant 6 : index
    %c0_664 = arith.constant 0 : index
    %c0_665 = arith.constant 0 : index
    %785 = vector.load %arg9[%c6_663, %c0_664, %c0_665] : memref<9x24x40xbf16, #tpu.memory_space<vmem>>, vector<1x24x40xbf16>
    %786 = vector.shape_cast %785 : vector<1x24x40xbf16> to vector<24x40xbf16>
    %cst_666 = arith.constant dense<0.000000e+00> : vector<4x40xf32>
    %787 = tpu.matmul %784, %786, %cst_666 {dimension_numbers = #tpu.dot_dimension_numbers<[1], [0], [0], [1], [0, 0, 1, 1], [], []>} : vector<4x24xbf16>, vector<24x40xbf16>, vector<4x40xf32> -> vector<4x40xf32>
    %788 = arith.addf %782, %787 : vector<4x40xf32>
    %c97_667 = arith.constant 97 : index
    %c0_668 = arith.constant 0 : index
    %789 = tpu.strided_load %arg22[%c97_667, %c0_668] {strides = array<i32: 2, 1>} : memref<144x24xf32, #tpu.memory_space<vmem>>, vector<4x24xf32>
    %790 = arith.truncf %789 : vector<4x24xf32> to vector<4x24xbf16>
    %c7_669 = arith.constant 7 : index
    %c0_670 = arith.constant 0 : index
    %c0_671 = arith.constant 0 : index
    %791 = vector.load %arg9[%c7_669, %c0_670, %c0_671] : memref<9x24x40xbf16, #tpu.memory_space<vmem>>, vector<1x24x40xbf16>
    %792 = vector.shape_cast %791 : vector<1x24x40xbf16> to vector<24x40xbf16>
    %cst_672 = arith.constant dense<0.000000e+00> : vector<4x40xf32>
    %793 = tpu.matmul %790, %792, %cst_672 {dimension_numbers = #tpu.dot_dimension_numbers<[1], [0], [0], [1], [0, 0, 1, 1], [], []>} : vector<4x24xbf16>, vector<24x40xbf16>, vector<4x40xf32> -> vector<4x40xf32>
    %794 = arith.addf %788, %793 : vector<4x40xf32>
    %c98_673 = arith.constant 98 : index
    %c0_674 = arith.constant 0 : index
    %795 = tpu.strided_load %arg22[%c98_673, %c0_674] {strides = array<i32: 2, 1>} : memref<144x24xf32, #tpu.memory_space<vmem>>, vector<4x24xf32>
    %796 = arith.truncf %795 : vector<4x24xf32> to vector<4x24xbf16>
    %c8_675 = arith.constant 8 : index
    %c0_676 = arith.constant 0 : index
    %c0_677 = arith.constant 0 : index
    %797 = vector.load %arg9[%c8_675, %c0_676, %c0_677] : memref<9x24x40xbf16, #tpu.memory_space<vmem>>, vector<1x24x40xbf16>
    %798 = vector.shape_cast %797 : vector<1x24x40xbf16> to vector<24x40xbf16>
    %cst_678 = arith.constant dense<0.000000e+00> : vector<4x40xf32>
    %799 = tpu.matmul %796, %798, %cst_678 {dimension_numbers = #tpu.dot_dimension_numbers<[1], [0], [0], [1], [0, 0, 1, 1], [], []>} : vector<4x24xbf16>, vector<24x40xbf16>, vector<4x40xf32> -> vector<4x40xf32>
    %800 = arith.addf %794, %799 : vector<4x40xf32>
    %c0_679 = arith.constant 0 : index
    %c0_680 = arith.constant 0 : index
    %801 = vector.load %arg10[%c0_679, %c0_680] : memref<1x40xf32, #tpu.memory_space<vmem>>, vector<1x40xf32>
    %802 = vector.broadcast %801 : vector<1x40xf32> to vector<4x40xf32>
    %803 = arith.addf %800, %802 : vector<4x40xf32>
    %804 = arith.negf %803 : vector<4x40xf32>
    %805 = math.exp %804 : vector<4x40xf32>
    %cst_681 = arith.constant 1.000000e+00 : f32
    %806 = vector.broadcast %cst_681 : f32 to vector<4x40xf32>
    %807 = arith.addf %806, %805 : vector<4x40xf32>
    %808 = arith.divf %806, %807 : vector<4x40xf32>
    %809 = arith.mulf %803, %808 : vector<4x40xf32>
    %c0_682 = arith.constant 0 : index
    %c8_683 = arith.constant 8 : index
    %c0_684 = arith.constant 0 : index
    %810 = vector.load %arg18[%c0_682, %c8_683, %c0_684] : memref<1x16x40xf32, #tpu.memory_space<vmem>>, vector<1x4x40xf32>
    %811 = vector.shape_cast %810 : vector<1x4x40xf32> to vector<4x40xf32>
    %812 = vector.shape_cast %809 : vector<4x40xf32> to vector<1x4x40xf32>
    tpu.vector_store %arg18[%c0_682, %c8_683, %c0_684], %812 {strides = array<i32>} : memref<1x16x40xf32, #tpu.memory_space<vmem>>, vector<1x4x40xf32>,
    %c16_685 = arith.constant 16 : index
    %c0_686 = arith.constant 0 : index
    %813 = vector.load %arg23[%c16_685, %c0_686] : memref<40x40xf32, #tpu.memory_space<vmem>>, vector<4x40xf32>
    tpu.vector_store %arg23[%c16_685, %c0_686], %809 {strides = array<i32>} : memref<40x40xf32, #tpu.memory_space<vmem>>, vector<4x40xf32>,
    %cst_687 = arith.constant 0.000000e+00 : f32
    %814 = vector.broadcast %cst_687 : f32 to vector<4x40xf32>
    %c96_688 = arith.constant 96 : index
    %c0_689 = arith.constant 0 : index
    %815 = tpu.strided_load %arg22[%c96_688, %c0_689] {strides = array<i32: 2, 1>} : memref<144x24xf32, #tpu.memory_space<vmem>>, vector<4x24xf32>
    %816 = arith.truncf %815 : vector<4x24xf32> to vector<4x24xbf16>
    %c0_690 = arith.constant 0 : index
    %c0_691 = arith.constant 0 : index
    %c0_692 = arith.constant 0 : index
    %817 = vector.load %arg9[%c0_690, %c0_691, %c0_692] : memref<9x24x40xbf16, #tpu.memory_space<vmem>>, vector<1x24x40xbf16>
    %818 = vector.shape_cast %817 : vector<1x24x40xbf16> to vector<24x40xbf16>
    %cst_693 = arith.constant dense<0.000000e+00> : vector<4x40xf32>
    %819 = tpu.matmul %816, %818, %cst_693 {dimension_numbers = #tpu.dot_dimension_numbers<[1], [0], [0], [1], [0, 0, 1, 1], [], []>} : vector<4x24xbf16>, vector<24x40xbf16>, vector<4x40xf32> -> vector<4x40xf32>
    %820 = arith.addf %814, %819 : vector<4x40xf32>
    %c97_694 = arith.constant 97 : index
    %c0_695 = arith.constant 0 : index
    %821 = tpu.strided_load %arg22[%c97_694, %c0_695] {strides = array<i32: 2, 1>} : memref<144x24xf32, #tpu.memory_space<vmem>>, vector<4x24xf32>
    %822 = arith.truncf %821 : vector<4x24xf32> to vector<4x24xbf16>
    %c1_696 = arith.constant 1 : index
    %c0_697 = arith.constant 0 : index
    %c0_698 = arith.constant 0 : index
    %823 = vector.load %arg9[%c1_696, %c0_697, %c0_698] : memref<9x24x40xbf16, #tpu.memory_space<vmem>>, vector<1x24x40xbf16>
    %824 = vector.shape_cast %823 : vector<1x24x40xbf16> to vector<24x40xbf16>
    %cst_699 = arith.constant dense<0.000000e+00> : vector<4x40xf32>
    %825 = tpu.matmul %822, %824, %cst_699 {dimension_numbers = #tpu.dot_dimension_numbers<[1], [0], [0], [1], [0, 0, 1, 1], [], []>} : vector<4x24xbf16>, vector<24x40xbf16>, vector<4x40xf32> -> vector<4x40xf32>
    %826 = arith.addf %820, %825 : vector<4x40xf32>
    %c98_700 = arith.constant 98 : index
    %c0_701 = arith.constant 0 : index
    %827 = tpu.strided_load %arg22[%c98_700, %c0_701] {strides = array<i32: 2, 1>} : memref<144x24xf32, #tpu.memory_space<vmem>>, vector<4x24xf32>
    %828 = arith.truncf %827 : vector<4x24xf32> to vector<4x24xbf16>
    %c2_702 = arith.constant 2 : index
    %c0_703 = arith.constant 0 : index
    %c0_704 = arith.constant 0 : index
    %829 = vector.load %arg9[%c2_702, %c0_703, %c0_704] : memref<9x24x40xbf16, #tpu.memory_space<vmem>>, vector<1x24x40xbf16>
    %830 = vector.shape_cast %829 : vector<1x24x40xbf16> to vector<24x40xbf16>
    %cst_705 = arith.constant dense<0.000000e+00> : vector<4x40xf32>
    %831 = tpu.matmul %828, %830, %cst_705 {dimension_numbers = #tpu.dot_dimension_numbers<[1], [0], [0], [1], [0, 0, 1, 1], [], []>} : vector<4x24xbf16>, vector<24x40xbf16>, vector<4x40xf32> -> vector<4x40xf32>
    %832 = arith.addf %826, %831 : vector<4x40xf32>
    %c112_706 = arith.constant 112 : index
    %c0_707 = arith.constant 0 : index
    %833 = tpu.strided_load %arg22[%c112_706, %c0_707] {strides = array<i32: 2, 1>} : memref<144x24xf32, #tpu.memory_space<vmem>>, vector<4x24xf32>
    %834 = arith.truncf %833 : vector<4x24xf32> to vector<4x24xbf16>
    %c3_708 = arith.constant 3 : index
    %c0_709 = arith.constant 0 : index
    %c0_710 = arith.constant 0 : index
    %835 = vector.load %arg9[%c3_708, %c0_709, %c0_710] : memref<9x24x40xbf16, #tpu.memory_space<vmem>>, vector<1x24x40xbf16>
    %836 = vector.shape_cast %835 : vector<1x24x40xbf16> to vector<24x40xbf16>
    %cst_711 = arith.constant dense<0.000000e+00> : vector<4x40xf32>
    %837 = tpu.matmul %834, %836, %cst_711 {dimension_numbers = #tpu.dot_dimension_numbers<[1], [0], [0], [1], [0, 0, 1, 1], [], []>} : vector<4x24xbf16>, vector<24x40xbf16>, vector<4x40xf32> -> vector<4x40xf32>
    %838 = arith.addf %832, %837 : vector<4x40xf32>
    %c113 = arith.constant 113 : index
    %c0_712 = arith.constant 0 : index
    %839 = tpu.strided_load %arg22[%c113, %c0_712] {strides = array<i32: 2, 1>} : memref<144x24xf32, #tpu.memory_space<vmem>>, vector<4x24xf32>
    %840 = arith.truncf %839 : vector<4x24xf32> to vector<4x24xbf16>
    %c4_713 = arith.constant 4 : index
    %c0_714 = arith.constant 0 : index
    %c0_715 = arith.constant 0 : index
    %841 = vector.load %arg9[%c4_713, %c0_714, %c0_715] : memref<9x24x40xbf16, #tpu.memory_space<vmem>>, vector<1x24x40xbf16>
    %842 = vector.shape_cast %841 : vector<1x24x40xbf16> to vector<24x40xbf16>
    %cst_716 = arith.constant dense<0.000000e+00> : vector<4x40xf32>
    %843 = tpu.matmul %840, %842, %cst_716 {dimension_numbers = #tpu.dot_dimension_numbers<[1], [0], [0], [1], [0, 0, 1, 1], [], []>} : vector<4x24xbf16>, vector<24x40xbf16>, vector<4x40xf32> -> vector<4x40xf32>
    %844 = arith.addf %838, %843 : vector<4x40xf32>
    %c114 = arith.constant 114 : index
    %c0_717 = arith.constant 0 : index
    %845 = tpu.strided_load %arg22[%c114, %c0_717] {strides = array<i32: 2, 1>} : memref<144x24xf32, #tpu.memory_space<vmem>>, vector<4x24xf32>
    %846 = arith.truncf %845 : vector<4x24xf32> to vector<4x24xbf16>
    %c5_718 = arith.constant 5 : index
    %c0_719 = arith.constant 0 : index
    %c0_720 = arith.constant 0 : index
    %847 = vector.load %arg9[%c5_718, %c0_719, %c0_720] : memref<9x24x40xbf16, #tpu.memory_space<vmem>>, vector<1x24x40xbf16>
    %848 = vector.shape_cast %847 : vector<1x24x40xbf16> to vector<24x40xbf16>
    %cst_721 = arith.constant dense<0.000000e+00> : vector<4x40xf32>
    %849 = tpu.matmul %846, %848, %cst_721 {dimension_numbers = #tpu.dot_dimension_numbers<[1], [0], [0], [1], [0, 0, 1, 1], [], []>} : vector<4x24xbf16>, vector<24x40xbf16>, vector<4x40xf32> -> vector<4x40xf32>
    %850 = arith.addf %844, %849 : vector<4x40xf32>
    %c128 = arith.constant 128 : index
    %c0_722 = arith.constant 0 : index
    %851 = tpu.strided_load %arg22[%c128, %c0_722] {strides = array<i32: 2, 1>} : memref<144x24xf32, #tpu.memory_space<vmem>>, vector<4x24xf32>
    %852 = arith.truncf %851 : vector<4x24xf32> to vector<4x24xbf16>
    %c6_723 = arith.constant 6 : index
    %c0_724 = arith.constant 0 : index
    %c0_725 = arith.constant 0 : index
    %853 = vector.load %arg9[%c6_723, %c0_724, %c0_725] : memref<9x24x40xbf16, #tpu.memory_space<vmem>>, vector<1x24x40xbf16>
    %854 = vector.shape_cast %853 : vector<1x24x40xbf16> to vector<24x40xbf16>
    %cst_726 = arith.constant dense<0.000000e+00> : vector<4x40xf32>
    %855 = tpu.matmul %852, %854, %cst_726 {dimension_numbers = #tpu.dot_dimension_numbers<[1], [0], [0], [1], [0, 0, 1, 1], [], []>} : vector<4x24xbf16>, vector<24x40xbf16>, vector<4x40xf32> -> vector<4x40xf32>
    %856 = arith.addf %850, %855 : vector<4x40xf32>
    %c129 = arith.constant 129 : index
    %c0_727 = arith.constant 0 : index
    %857 = tpu.strided_load %arg22[%c129, %c0_727] {strides = array<i32: 2, 1>} : memref<144x24xf32, #tpu.memory_space<vmem>>, vector<4x24xf32>
    %858 = arith.truncf %857 : vector<4x24xf32> to vector<4x24xbf16>
    %c7_728 = arith.constant 7 : index
    %c0_729 = arith.constant 0 : index
    %c0_730 = arith.constant 0 : index
    %859 = vector.load %arg9[%c7_728, %c0_729, %c0_730] : memref<9x24x40xbf16, #tpu.memory_space<vmem>>, vector<1x24x40xbf16>
    %860 = vector.shape_cast %859 : vector<1x24x40xbf16> to vector<24x40xbf16>
    %cst_731 = arith.constant dense<0.000000e+00> : vector<4x40xf32>
    %861 = tpu.matmul %858, %860, %cst_731 {dimension_numbers = #tpu.dot_dimension_numbers<[1], [0], [0], [1], [0, 0, 1, 1], [], []>} : vector<4x24xbf16>, vector<24x40xbf16>, vector<4x40xf32> -> vector<4x40xf32>
    %862 = arith.addf %856, %861 : vector<4x40xf32>
    %c130 = arith.constant 130 : index
    %c0_732 = arith.constant 0 : index
    %863 = tpu.strided_load %arg22[%c130, %c0_732] {strides = array<i32: 2, 1>} : memref<144x24xf32, #tpu.memory_space<vmem>>, vector<4x24xf32>
    %864 = arith.truncf %863 : vector<4x24xf32> to vector<4x24xbf16>
    %c8_733 = arith.constant 8 : index
    %c0_734 = arith.constant 0 : index
    %c0_735 = arith.constant 0 : index
    %865 = vector.load %arg9[%c8_733, %c0_734, %c0_735] : memref<9x24x40xbf16, #tpu.memory_space<vmem>>, vector<1x24x40xbf16>
    %866 = vector.shape_cast %865 : vector<1x24x40xbf16> to vector<24x40xbf16>
    %cst_736 = arith.constant dense<0.000000e+00> : vector<4x40xf32>
    %867 = tpu.matmul %864, %866, %cst_736 {dimension_numbers = #tpu.dot_dimension_numbers<[1], [0], [0], [1], [0, 0, 1, 1], [], []>} : vector<4x24xbf16>, vector<24x40xbf16>, vector<4x40xf32> -> vector<4x40xf32>
    %868 = arith.addf %862, %867 : vector<4x40xf32>
    %c0_737 = arith.constant 0 : index
    %c0_738 = arith.constant 0 : index
    %869 = vector.load %arg10[%c0_737, %c0_738] : memref<1x40xf32, #tpu.memory_space<vmem>>, vector<1x40xf32>
    %870 = vector.broadcast %869 : vector<1x40xf32> to vector<4x40xf32>
    %871 = arith.addf %868, %870 : vector<4x40xf32>
    %872 = arith.negf %871 : vector<4x40xf32>
    %873 = math.exp %872 : vector<4x40xf32>
    %cst_739 = arith.constant 1.000000e+00 : f32
    %874 = vector.broadcast %cst_739 : f32 to vector<4x40xf32>
    %875 = arith.addf %874, %873 : vector<4x40xf32>
    %876 = arith.divf %874, %875 : vector<4x40xf32>
    %877 = arith.mulf %871, %876 : vector<4x40xf32>
    %c0_740 = arith.constant 0 : index
    %c12 = arith.constant 12 : index
    %c0_741 = arith.constant 0 : index
    %878 = vector.load %arg18[%c0_740, %c12, %c0_741] : memref<1x16x40xf32, #tpu.memory_space<vmem>>, vector<1x4x40xf32>
    %879 = vector.shape_cast %878 : vector<1x4x40xf32> to vector<4x40xf32>
    %880 = vector.shape_cast %877 : vector<4x40xf32> to vector<1x4x40xf32>
    tpu.vector_store %arg18[%c0_740, %c12, %c0_741], %880 {strides = array<i32>} : memref<1x16x40xf32, #tpu.memory_space<vmem>>, vector<1x4x40xf32>,
    %c24_742 = arith.constant 24 : index
    %c0_743 = arith.constant 0 : index
    %881 = vector.load %arg23[%c24_742, %c0_743] : memref<40x40xf32, #tpu.memory_space<vmem>>, vector<4x40xf32>
    tpu.vector_store %arg23[%c24_742, %c0_743], %877 {strides = array<i32>} : memref<40x40xf32, #tpu.memory_space<vmem>>, vector<4x40xf32>,
    %cst_744 = arith.constant 0.000000e+00 : f32
    %882 = vector.broadcast %cst_744 : f32 to vector<2x112xf32>
    %c0_745 = arith.constant 0 : index
    %c0_746 = arith.constant 0 : index
    %883 = tpu.strided_load %arg23[%c0_745, %c0_746] {strides = array<i32: 2, 1>} : memref<40x40xf32, #tpu.memory_space<vmem>>, vector<2x40xf32>
    %884 = arith.truncf %883 : vector<2x40xf32> to vector<2x40xbf16>
    %c0_747 = arith.constant 0 : index
    %c0_748 = arith.constant 0 : index
    %c0_749 = arith.constant 0 : index
    %885 = vector.load %arg11[%c0_747, %c0_748, %c0_749] : memref<9x40x112xbf16, #tpu.memory_space<vmem>>, vector<1x40x112xbf16>
    %886 = vector.shape_cast %885 : vector<1x40x112xbf16> to vector<40x112xbf16>
    %cst_750 = arith.constant dense<0.000000e+00> : vector<2x112xf32>
    %887 = tpu.matmul %884, %886, %cst_750 {dimension_numbers = #tpu.dot_dimension_numbers<[1], [0], [0], [1], [0, 0, 1, 1], [], []>} : vector<2x40xbf16>, vector<40x112xbf16>, vector<2x112xf32> -> vector<2x112xf32>
    %888 = arith.addf %882, %887 : vector<2x112xf32>
    %c1_751 = arith.constant 1 : index
    %c0_752 = arith.constant 0 : index
    %889 = tpu.strided_load %arg23[%c1_751, %c0_752] {strides = array<i32: 2, 1>} : memref<40x40xf32, #tpu.memory_space<vmem>>, vector<2x40xf32>
    %890 = arith.truncf %889 : vector<2x40xf32> to vector<2x40xbf16>
    %c1_753 = arith.constant 1 : index
    %c0_754 = arith.constant 0 : index
    %c0_755 = arith.constant 0 : index
    %891 = vector.load %arg11[%c1_753, %c0_754, %c0_755] : memref<9x40x112xbf16, #tpu.memory_space<vmem>>, vector<1x40x112xbf16>
    %892 = vector.shape_cast %891 : vector<1x40x112xbf16> to vector<40x112xbf16>
    %cst_756 = arith.constant dense<0.000000e+00> : vector<2x112xf32>
    %893 = tpu.matmul %890, %892, %cst_756 {dimension_numbers = #tpu.dot_dimension_numbers<[1], [0], [0], [1], [0, 0, 1, 1], [], []>} : vector<2x40xbf16>, vector<40x112xbf16>, vector<2x112xf32> -> vector<2x112xf32>
    %894 = arith.addf %888, %893 : vector<2x112xf32>
    %c2_757 = arith.constant 2 : index
    %c0_758 = arith.constant 0 : index
    %895 = tpu.strided_load %arg23[%c2_757, %c0_758] {strides = array<i32: 2, 1>} : memref<40x40xf32, #tpu.memory_space<vmem>>, vector<2x40xf32>
    %896 = arith.truncf %895 : vector<2x40xf32> to vector<2x40xbf16>
    %c2_759 = arith.constant 2 : index
    %c0_760 = arith.constant 0 : index
    %c0_761 = arith.constant 0 : index
    %897 = vector.load %arg11[%c2_759, %c0_760, %c0_761] : memref<9x40x112xbf16, #tpu.memory_space<vmem>>, vector<1x40x112xbf16>
    %898 = vector.shape_cast %897 : vector<1x40x112xbf16> to vector<40x112xbf16>
    %cst_762 = arith.constant dense<0.000000e+00> : vector<2x112xf32>
    %899 = tpu.matmul %896, %898, %cst_762 {dimension_numbers = #tpu.dot_dimension_numbers<[1], [0], [0], [1], [0, 0, 1, 1], [], []>} : vector<2x40xbf16>, vector<40x112xbf16>, vector<2x112xf32> -> vector<2x112xf32>
    %900 = arith.addf %894, %899 : vector<2x112xf32>
    %c8_763 = arith.constant 8 : index
    %c0_764 = arith.constant 0 : index
    %901 = tpu.strided_load %arg23[%c8_763, %c0_764] {strides = array<i32: 2, 1>} : memref<40x40xf32, #tpu.memory_space<vmem>>, vector<2x40xf32>
    %902 = arith.truncf %901 : vector<2x40xf32> to vector<2x40xbf16>
    %c3_765 = arith.constant 3 : index
    %c0_766 = arith.constant 0 : index
    %c0_767 = arith.constant 0 : index
    %903 = vector.load %arg11[%c3_765, %c0_766, %c0_767] : memref<9x40x112xbf16, #tpu.memory_space<vmem>>, vector<1x40x112xbf16>
    %904 = vector.shape_cast %903 : vector<1x40x112xbf16> to vector<40x112xbf16>
    %cst_768 = arith.constant dense<0.000000e+00> : vector<2x112xf32>
    %905 = tpu.matmul %902, %904, %cst_768 {dimension_numbers = #tpu.dot_dimension_numbers<[1], [0], [0], [1], [0, 0, 1, 1], [], []>} : vector<2x40xbf16>, vector<40x112xbf16>, vector<2x112xf32> -> vector<2x112xf32>
    %906 = arith.addf %900, %905 : vector<2x112xf32>
    %c9 = arith.constant 9 : index
    %c0_769 = arith.constant 0 : index
    %907 = tpu.strided_load %arg23[%c9, %c0_769] {strides = array<i32: 2, 1>} : memref<40x40xf32, #tpu.memory_space<vmem>>, vector<2x40xf32>
    %908 = arith.truncf %907 : vector<2x40xf32> to vector<2x40xbf16>
    %c4_770 = arith.constant 4 : index
    %c0_771 = arith.constant 0 : index
    %c0_772 = arith.constant 0 : index
    %909 = vector.load %arg11[%c4_770, %c0_771, %c0_772] : memref<9x40x112xbf16, #tpu.memory_space<vmem>>, vector<1x40x112xbf16>
    %910 = vector.shape_cast %909 : vector<1x40x112xbf16> to vector<40x112xbf16>
    %cst_773 = arith.constant dense<0.000000e+00> : vector<2x112xf32>
    %911 = tpu.matmul %908, %910, %cst_773 {dimension_numbers = #tpu.dot_dimension_numbers<[1], [0], [0], [1], [0, 0, 1, 1], [], []>} : vector<2x40xbf16>, vector<40x112xbf16>, vector<2x112xf32> -> vector<2x112xf32>
    %912 = arith.addf %906, %911 : vector<2x112xf32>
    %c10 = arith.constant 10 : index
    %c0_774 = arith.constant 0 : index
    %913 = tpu.strided_load %arg23[%c10, %c0_774] {strides = array<i32: 2, 1>} : memref<40x40xf32, #tpu.memory_space<vmem>>, vector<2x40xf32>
    %914 = arith.truncf %913 : vector<2x40xf32> to vector<2x40xbf16>
    %c5_775 = arith.constant 5 : index
    %c0_776 = arith.constant 0 : index
    %c0_777 = arith.constant 0 : index
    %915 = vector.load %arg11[%c5_775, %c0_776, %c0_777] : memref<9x40x112xbf16, #tpu.memory_space<vmem>>, vector<1x40x112xbf16>
    %916 = vector.shape_cast %915 : vector<1x40x112xbf16> to vector<40x112xbf16>
    %cst_778 = arith.constant dense<0.000000e+00> : vector<2x112xf32>
    %917 = tpu.matmul %914, %916, %cst_778 {dimension_numbers = #tpu.dot_dimension_numbers<[1], [0], [0], [1], [0, 0, 1, 1], [], []>} : vector<2x40xbf16>, vector<40x112xbf16>, vector<2x112xf32> -> vector<2x112xf32>
    %918 = arith.addf %912, %917 : vector<2x112xf32>
    %c16_779 = arith.constant 16 : index
    %c0_780 = arith.constant 0 : index
    %919 = tpu.strided_load %arg23[%c16_779, %c0_780] {strides = array<i32: 2, 1>} : memref<40x40xf32, #tpu.memory_space<vmem>>, vector<2x40xf32>
    %920 = arith.truncf %919 : vector<2x40xf32> to vector<2x40xbf16>
    %c6_781 = arith.constant 6 : index
    %c0_782 = arith.constant 0 : index
    %c0_783 = arith.constant 0 : index
    %921 = vector.load %arg11[%c6_781, %c0_782, %c0_783] : memref<9x40x112xbf16, #tpu.memory_space<vmem>>, vector<1x40x112xbf16>
    %922 = vector.shape_cast %921 : vector<1x40x112xbf16> to vector<40x112xbf16>
    %cst_784 = arith.constant dense<0.000000e+00> : vector<2x112xf32>
    %923 = tpu.matmul %920, %922, %cst_784 {dimension_numbers = #tpu.dot_dimension_numbers<[1], [0], [0], [1], [0, 0, 1, 1], [], []>} : vector<2x40xbf16>, vector<40x112xbf16>, vector<2x112xf32> -> vector<2x112xf32>
    %924 = arith.addf %918, %923 : vector<2x112xf32>
    %c17_785 = arith.constant 17 : index
    %c0_786 = arith.constant 0 : index
    %925 = tpu.strided_load %arg23[%c17_785, %c0_786] {strides = array<i32: 2, 1>} : memref<40x40xf32, #tpu.memory_space<vmem>>, vector<2x40xf32>
    %926 = arith.truncf %925 : vector<2x40xf32> to vector<2x40xbf16>
    %c7_787 = arith.constant 7 : index
    %c0_788 = arith.constant 0 : index
    %c0_789 = arith.constant 0 : index
    %927 = vector.load %arg11[%c7_787, %c0_788, %c0_789] : memref<9x40x112xbf16, #tpu.memory_space<vmem>>, vector<1x40x112xbf16>
    %928 = vector.shape_cast %927 : vector<1x40x112xbf16> to vector<40x112xbf16>
    %cst_790 = arith.constant dense<0.000000e+00> : vector<2x112xf32>
    %929 = tpu.matmul %926, %928, %cst_790 {dimension_numbers = #tpu.dot_dimension_numbers<[1], [0], [0], [1], [0, 0, 1, 1], [], []>} : vector<2x40xbf16>, vector<40x112xbf16>, vector<2x112xf32> -> vector<2x112xf32>
    %930 = arith.addf %924, %929 : vector<2x112xf32>
    %c18_791 = arith.constant 18 : index
    %c0_792 = arith.constant 0 : index
    %931 = tpu.strided_load %arg23[%c18_791, %c0_792] {strides = array<i32: 2, 1>} : memref<40x40xf32, #tpu.memory_space<vmem>>, vector<2x40xf32>
    %932 = arith.truncf %931 : vector<2x40xf32> to vector<2x40xbf16>
    %c8_793 = arith.constant 8 : index
    %c0_794 = arith.constant 0 : index
    %c0_795 = arith.constant 0 : index
    %933 = vector.load %arg11[%c8_793, %c0_794, %c0_795] : memref<9x40x112xbf16, #tpu.memory_space<vmem>>, vector<1x40x112xbf16>
    %934 = vector.shape_cast %933 : vector<1x40x112xbf16> to vector<40x112xbf16>
    %cst_796 = arith.constant dense<0.000000e+00> : vector<2x112xf32>
    %935 = tpu.matmul %932, %934, %cst_796 {dimension_numbers = #tpu.dot_dimension_numbers<[1], [0], [0], [1], [0, 0, 1, 1], [], []>} : vector<2x40xbf16>, vector<40x112xbf16>, vector<2x112xf32> -> vector<2x112xf32>
    %936 = arith.addf %930, %935 : vector<2x112xf32>
    %c0_797 = arith.constant 0 : index
    %c0_798 = arith.constant 0 : index
    %937 = vector.load %arg12[%c0_797, %c0_798] : memref<1x112xf32, #tpu.memory_space<vmem>>, vector<1x112xf32>
    %938 = vector.broadcast %937 : vector<1x112xf32> to vector<2x112xf32>
    %939 = arith.addf %936, %938 : vector<2x112xf32>
    %940 = arith.negf %939 : vector<2x112xf32>
    %941 = math.exp %940 : vector<2x112xf32>
    %cst_799 = arith.constant 1.000000e+00 : f32
    %942 = vector.broadcast %cst_799 : f32 to vector<2x112xf32>
    %943 = arith.addf %942, %941 : vector<2x112xf32>
    %944 = arith.divf %942, %943 : vector<2x112xf32>
    %945 = arith.mulf %939, %944 : vector<2x112xf32>
    %c0_800 = arith.constant 0 : index
    %c0_801 = arith.constant 0 : index
    %c0_802 = arith.constant 0 : index
    %946 = vector.load %arg19[%c0_800, %c0_801, %c0_802] : memref<1x4x112xf32, #tpu.memory_space<vmem>>, vector<1x2x112xf32>
    %947 = vector.shape_cast %946 : vector<1x2x112xf32> to vector<2x112xf32>
    %948 = vector.shape_cast %945 : vector<2x112xf32> to vector<1x2x112xf32>
    tpu.vector_store %arg19[%c0_800, %c0_801, %c0_802], %948 {strides = array<i32>} : memref<1x4x112xf32, #tpu.memory_space<vmem>>, vector<1x2x112xf32>,
    %c0_803 = arith.constant 0 : index
    %c0_804 = arith.constant 0 : index
    %949 = vector.load %arg24[%c0_803, %c0_804] : memref<24x112xf32, #tpu.memory_space<vmem>>, vector<2x112xf32>
    tpu.vector_store %arg24[%c0_803, %c0_804], %945 {strides = array<i32>} : memref<24x112xf32, #tpu.memory_space<vmem>>, vector<2x112xf32>,
    %cst_805 = arith.constant 0.000000e+00 : f32
    %950 = vector.broadcast %cst_805 : f32 to vector<2x112xf32>
    %c16_806 = arith.constant 16 : index
    %c0_807 = arith.constant 0 : index
    %951 = tpu.strided_load %arg23[%c16_806, %c0_807] {strides = array<i32: 2, 1>} : memref<40x40xf32, #tpu.memory_space<vmem>>, vector<2x40xf32>
    %952 = arith.truncf %951 : vector<2x40xf32> to vector<2x40xbf16>
    %c0_808 = arith.constant 0 : index
    %c0_809 = arith.constant 0 : index
    %c0_810 = arith.constant 0 : index
    %953 = vector.load %arg11[%c0_808, %c0_809, %c0_810] : memref<9x40x112xbf16, #tpu.memory_space<vmem>>, vector<1x40x112xbf16>
    %954 = vector.shape_cast %953 : vector<1x40x112xbf16> to vector<40x112xbf16>
    %cst_811 = arith.constant dense<0.000000e+00> : vector<2x112xf32>
    %955 = tpu.matmul %952, %954, %cst_811 {dimension_numbers = #tpu.dot_dimension_numbers<[1], [0], [0], [1], [0, 0, 1, 1], [], []>} : vector<2x40xbf16>, vector<40x112xbf16>, vector<2x112xf32> -> vector<2x112xf32>
    %956 = arith.addf %950, %955 : vector<2x112xf32>
    %c17_812 = arith.constant 17 : index
    %c0_813 = arith.constant 0 : index
    %957 = tpu.strided_load %arg23[%c17_812, %c0_813] {strides = array<i32: 2, 1>} : memref<40x40xf32, #tpu.memory_space<vmem>>, vector<2x40xf32>
    %958 = arith.truncf %957 : vector<2x40xf32> to vector<2x40xbf16>
    %c1_814 = arith.constant 1 : index
    %c0_815 = arith.constant 0 : index
    %c0_816 = arith.constant 0 : index
    %959 = vector.load %arg11[%c1_814, %c0_815, %c0_816] : memref<9x40x112xbf16, #tpu.memory_space<vmem>>, vector<1x40x112xbf16>
    %960 = vector.shape_cast %959 : vector<1x40x112xbf16> to vector<40x112xbf16>
    %cst_817 = arith.constant dense<0.000000e+00> : vector<2x112xf32>
    %961 = tpu.matmul %958, %960, %cst_817 {dimension_numbers = #tpu.dot_dimension_numbers<[1], [0], [0], [1], [0, 0, 1, 1], [], []>} : vector<2x40xbf16>, vector<40x112xbf16>, vector<2x112xf32> -> vector<2x112xf32>
    %962 = arith.addf %956, %961 : vector<2x112xf32>
    %c18_818 = arith.constant 18 : index
    %c0_819 = arith.constant 0 : index
    %963 = tpu.strided_load %arg23[%c18_818, %c0_819] {strides = array<i32: 2, 1>} : memref<40x40xf32, #tpu.memory_space<vmem>>, vector<2x40xf32>
    %964 = arith.truncf %963 : vector<2x40xf32> to vector<2x40xbf16>
    %c2_820 = arith.constant 2 : index
    %c0_821 = arith.constant 0 : index
    %c0_822 = arith.constant 0 : index
    %965 = vector.load %arg11[%c2_820, %c0_821, %c0_822] : memref<9x40x112xbf16, #tpu.memory_space<vmem>>, vector<1x40x112xbf16>
    %966 = vector.shape_cast %965 : vector<1x40x112xbf16> to vector<40x112xbf16>
    %cst_823 = arith.constant dense<0.000000e+00> : vector<2x112xf32>
    %967 = tpu.matmul %964, %966, %cst_823 {dimension_numbers = #tpu.dot_dimension_numbers<[1], [0], [0], [1], [0, 0, 1, 1], [], []>} : vector<2x40xbf16>, vector<40x112xbf16>, vector<2x112xf32> -> vector<2x112xf32>
    %968 = arith.addf %962, %967 : vector<2x112xf32>
    %c24_824 = arith.constant 24 : index
    %c0_825 = arith.constant 0 : index
    %969 = tpu.strided_load %arg23[%c24_824, %c0_825] {strides = array<i32: 2, 1>} : memref<40x40xf32, #tpu.memory_space<vmem>>, vector<2x40xf32>
    %970 = arith.truncf %969 : vector<2x40xf32> to vector<2x40xbf16>
    %c3_826 = arith.constant 3 : index
    %c0_827 = arith.constant 0 : index
    %c0_828 = arith.constant 0 : index
    %971 = vector.load %arg11[%c3_826, %c0_827, %c0_828] : memref<9x40x112xbf16, #tpu.memory_space<vmem>>, vector<1x40x112xbf16>
    %972 = vector.shape_cast %971 : vector<1x40x112xbf16> to vector<40x112xbf16>
    %cst_829 = arith.constant dense<0.000000e+00> : vector<2x112xf32>
    %973 = tpu.matmul %970, %972, %cst_829 {dimension_numbers = #tpu.dot_dimension_numbers<[1], [0], [0], [1], [0, 0, 1, 1], [], []>} : vector<2x40xbf16>, vector<40x112xbf16>, vector<2x112xf32> -> vector<2x112xf32>
    %974 = arith.addf %968, %973 : vector<2x112xf32>
    %c25_830 = arith.constant 25 : index
    %c0_831 = arith.constant 0 : index
    %975 = tpu.strided_load %arg23[%c25_830, %c0_831] {strides = array<i32: 2, 1>} : memref<40x40xf32, #tpu.memory_space<vmem>>, vector<2x40xf32>
    %976 = arith.truncf %975 : vector<2x40xf32> to vector<2x40xbf16>
    %c4_832 = arith.constant 4 : index
    %c0_833 = arith.constant 0 : index
    %c0_834 = arith.constant 0 : index
    %977 = vector.load %arg11[%c4_832, %c0_833, %c0_834] : memref<9x40x112xbf16, #tpu.memory_space<vmem>>, vector<1x40x112xbf16>
    %978 = vector.shape_cast %977 : vector<1x40x112xbf16> to vector<40x112xbf16>
    %cst_835 = arith.constant dense<0.000000e+00> : vector<2x112xf32>
    %979 = tpu.matmul %976, %978, %cst_835 {dimension_numbers = #tpu.dot_dimension_numbers<[1], [0], [0], [1], [0, 0, 1, 1], [], []>} : vector<2x40xbf16>, vector<40x112xbf16>, vector<2x112xf32> -> vector<2x112xf32>
    %980 = arith.addf %974, %979 : vector<2x112xf32>
    %c26_836 = arith.constant 26 : index
    %c0_837 = arith.constant 0 : index
    %981 = tpu.strided_load %arg23[%c26_836, %c0_837] {strides = array<i32: 2, 1>} : memref<40x40xf32, #tpu.memory_space<vmem>>, vector<2x40xf32>
    %982 = arith.truncf %981 : vector<2x40xf32> to vector<2x40xbf16>
    %c5_838 = arith.constant 5 : index
    %c0_839 = arith.constant 0 : index
    %c0_840 = arith.constant 0 : index
    %983 = vector.load %arg11[%c5_838, %c0_839, %c0_840] : memref<9x40x112xbf16, #tpu.memory_space<vmem>>, vector<1x40x112xbf16>
    %984 = vector.shape_cast %983 : vector<1x40x112xbf16> to vector<40x112xbf16>
    %cst_841 = arith.constant dense<0.000000e+00> : vector<2x112xf32>
    %985 = tpu.matmul %982, %984, %cst_841 {dimension_numbers = #tpu.dot_dimension_numbers<[1], [0], [0], [1], [0, 0, 1, 1], [], []>} : vector<2x40xbf16>, vector<40x112xbf16>, vector<2x112xf32> -> vector<2x112xf32>
    %986 = arith.addf %980, %985 : vector<2x112xf32>
    %c32_842 = arith.constant 32 : index
    %c0_843 = arith.constant 0 : index
    %987 = tpu.strided_load %arg23[%c32_842, %c0_843] {strides = array<i32: 2, 1>} : memref<40x40xf32, #tpu.memory_space<vmem>>, vector<2x40xf32>
    %988 = arith.truncf %987 : vector<2x40xf32> to vector<2x40xbf16>
    %c6_844 = arith.constant 6 : index
    %c0_845 = arith.constant 0 : index
    %c0_846 = arith.constant 0 : index
    %989 = vector.load %arg11[%c6_844, %c0_845, %c0_846] : memref<9x40x112xbf16, #tpu.memory_space<vmem>>, vector<1x40x112xbf16>
    %990 = vector.shape_cast %989 : vector<1x40x112xbf16> to vector<40x112xbf16>
    %cst_847 = arith.constant dense<0.000000e+00> : vector<2x112xf32>
    %991 = tpu.matmul %988, %990, %cst_847 {dimension_numbers = #tpu.dot_dimension_numbers<[1], [0], [0], [1], [0, 0, 1, 1], [], []>} : vector<2x40xbf16>, vector<40x112xbf16>, vector<2x112xf32> -> vector<2x112xf32>
    %992 = arith.addf %986, %991 : vector<2x112xf32>
    %c33_848 = arith.constant 33 : index
    %c0_849 = arith.constant 0 : index
    %993 = tpu.strided_load %arg23[%c33_848, %c0_849] {strides = array<i32: 2, 1>} : memref<40x40xf32, #tpu.memory_space<vmem>>, vector<2x40xf32>
    %994 = arith.truncf %993 : vector<2x40xf32> to vector<2x40xbf16>
    %c7_850 = arith.constant 7 : index
    %c0_851 = arith.constant 0 : index
    %c0_852 = arith.constant 0 : index
    %995 = vector.load %arg11[%c7_850, %c0_851, %c0_852] : memref<9x40x112xbf16, #tpu.memory_space<vmem>>, vector<1x40x112xbf16>
    %996 = vector.shape_cast %995 : vector<1x40x112xbf16> to vector<40x112xbf16>
    %cst_853 = arith.constant dense<0.000000e+00> : vector<2x112xf32>
    %997 = tpu.matmul %994, %996, %cst_853 {dimension_numbers = #tpu.dot_dimension_numbers<[1], [0], [0], [1], [0, 0, 1, 1], [], []>} : vector<2x40xbf16>, vector<40x112xbf16>, vector<2x112xf32> -> vector<2x112xf32>
    %998 = arith.addf %992, %997 : vector<2x112xf32>
    %c34_854 = arith.constant 34 : index
    %c0_855 = arith.constant 0 : index
    %999 = tpu.strided_load %arg23[%c34_854, %c0_855] {strides = array<i32: 2, 1>} : memref<40x40xf32, #tpu.memory_space<vmem>>, vector<2x40xf32>
    %1000 = arith.truncf %999 : vector<2x40xf32> to vector<2x40xbf16>
    %c8_856 = arith.constant 8 : index
    %c0_857 = arith.constant 0 : index
    %c0_858 = arith.constant 0 : index
    %1001 = vector.load %arg11[%c8_856, %c0_857, %c0_858] : memref<9x40x112xbf16, #tpu.memory_space<vmem>>, vector<1x40x112xbf16>
    %1002 = vector.shape_cast %1001 : vector<1x40x112xbf16> to vector<40x112xbf16>
    %cst_859 = arith.constant dense<0.000000e+00> : vector<2x112xf32>
    %1003 = tpu.matmul %1000, %1002, %cst_859 {dimension_numbers = #tpu.dot_dimension_numbers<[1], [0], [0], [1], [0, 0, 1, 1], [], []>} : vector<2x40xbf16>, vector<40x112xbf16>, vector<2x112xf32> -> vector<2x112xf32>
    %1004 = arith.addf %998, %1003 : vector<2x112xf32>
    %c0_860 = arith.constant 0 : index
    %c0_861 = arith.constant 0 : index
    %1005 = vector.load %arg12[%c0_860, %c0_861] : memref<1x112xf32, #tpu.memory_space<vmem>>, vector<1x112xf32>
    %1006 = vector.broadcast %1005 : vector<1x112xf32> to vector<2x112xf32>
    %1007 = arith.addf %1004, %1006 : vector<2x112xf32>
    %1008 = arith.negf %1007 : vector<2x112xf32>
    %1009 = math.exp %1008 : vector<2x112xf32>
    %cst_862 = arith.constant 1.000000e+00 : f32
    %1010 = vector.broadcast %cst_862 : f32 to vector<2x112xf32>
    %1011 = arith.addf %1010, %1009 : vector<2x112xf32>
    %1012 = arith.divf %1010, %1011 : vector<2x112xf32>
    %1013 = arith.mulf %1007, %1012 : vector<2x112xf32>
    %c0_863 = arith.constant 0 : index
    %c2_864 = arith.constant 2 : index
    %c0_865 = arith.constant 0 : index
    %1014 = vector.load %arg19[%c0_863, %c2_864, %c0_865] : memref<1x4x112xf32, #tpu.memory_space<vmem>>, vector<1x2x112xf32>
    %1015 = vector.shape_cast %1014 : vector<1x2x112xf32> to vector<2x112xf32>
    %1016 = vector.shape_cast %1013 : vector<2x112xf32> to vector<1x2x112xf32>
    tpu.vector_store %arg19[%c0_863, %c2_864, %c0_865], %1016 {strides = array<i32>} : memref<1x4x112xf32, #tpu.memory_space<vmem>>, vector<1x2x112xf32>,
    %c8_866 = arith.constant 8 : index
    %c0_867 = arith.constant 0 : index
    %1017 = vector.load %arg24[%c8_866, %c0_867] : memref<24x112xf32, #tpu.memory_space<vmem>>, vector<2x112xf32>
    tpu.vector_store %arg24[%c8_866, %c0_867], %1013 {strides = array<i32>} : memref<24x112xf32, #tpu.memory_space<vmem>>, vector<2x112xf32>,
    %cst_868 = arith.constant 0.000000e+00 : f32
    %1018 = vector.broadcast %cst_868 : f32 to vector<1x320xf32>
    %c0_869 = arith.constant 0 : index
    %c0_870 = arith.constant 0 : index
    %1019 = vector.load %arg24[%c0_869, %c0_870] : memref<24x112xf32, #tpu.memory_space<vmem>>, vector<1x112xf32>
    %1020 = arith.truncf %1019 : vector<1x112xf32> to vector<1x112xbf16>
    %c0_871 = arith.constant 0 : index
    %c0_872 = arith.constant 0 : index
    %c0_873 = arith.constant 0 : index
    %1021 = vector.load %arg13[%c0_871, %c0_872, %c0_873] : memref<9x112x320xbf16, #tpu.memory_space<vmem>>, vector<1x112x320xbf16>
    %1022 = vector.shape_cast %1021 : vector<1x112x320xbf16> to vector<112x320xbf16>
    %cst_874 = arith.constant dense<0.000000e+00> : vector<1x320xf32>
    %1023 = tpu.matmul %1020, %1022, %cst_874 {dimension_numbers = #tpu.dot_dimension_numbers<[1], [0], [0], [1], [0, 0, 1, 1], [], []>} : vector<1x112xbf16>, vector<112x320xbf16>, vector<1x320xf32> -> vector<1x320xf32>
    %1024 = arith.addf %1018, %1023 : vector<1x320xf32>
    %c1_875 = arith.constant 1 : index
    %c0_876 = arith.constant 0 : index
    %1025 = vector.load %arg24[%c1_875, %c0_876] : memref<24x112xf32, #tpu.memory_space<vmem>>, vector<1x112xf32>
    %1026 = arith.truncf %1025 : vector<1x112xf32> to vector<1x112xbf16>
    %c1_877 = arith.constant 1 : index
    %c0_878 = arith.constant 0 : index
    %c0_879 = arith.constant 0 : index
    %1027 = vector.load %arg13[%c1_877, %c0_878, %c0_879] : memref<9x112x320xbf16, #tpu.memory_space<vmem>>, vector<1x112x320xbf16>
    %1028 = vector.shape_cast %1027 : vector<1x112x320xbf16> to vector<112x320xbf16>
    %cst_880 = arith.constant dense<0.000000e+00> : vector<1x320xf32>
    %1029 = tpu.matmul %1026, %1028, %cst_880 {dimension_numbers = #tpu.dot_dimension_numbers<[1], [0], [0], [1], [0, 0, 1, 1], [], []>} : vector<1x112xbf16>, vector<112x320xbf16>, vector<1x320xf32> -> vector<1x320xf32>
    %1030 = arith.addf %1024, %1029 : vector<1x320xf32>
    %c2_881 = arith.constant 2 : index
    %c0_882 = arith.constant 0 : index
    %1031 = vector.load %arg24[%c2_881, %c0_882] : memref<24x112xf32, #tpu.memory_space<vmem>>, vector<1x112xf32>
    %1032 = arith.truncf %1031 : vector<1x112xf32> to vector<1x112xbf16>
    %c2_883 = arith.constant 2 : index
    %c0_884 = arith.constant 0 : index
    %c0_885 = arith.constant 0 : index
    %1033 = vector.load %arg13[%c2_883, %c0_884, %c0_885] : memref<9x112x320xbf16, #tpu.memory_space<vmem>>, vector<1x112x320xbf16>
    %1034 = vector.shape_cast %1033 : vector<1x112x320xbf16> to vector<112x320xbf16>
    %cst_886 = arith.constant dense<0.000000e+00> : vector<1x320xf32>
    %1035 = tpu.matmul %1032, %1034, %cst_886 {dimension_numbers = #tpu.dot_dimension_numbers<[1], [0], [0], [1], [0, 0, 1, 1], [], []>} : vector<1x112xbf16>, vector<112x320xbf16>, vector<1x320xf32> -> vector<1x320xf32>
    %1036 = arith.addf %1030, %1035 : vector<1x320xf32>
    %c8_887 = arith.constant 8 : index
    %c0_888 = arith.constant 0 : index
    %1037 = vector.load %arg24[%c8_887, %c0_888] : memref<24x112xf32, #tpu.memory_space<vmem>>, vector<1x112xf32>
    %1038 = arith.truncf %1037 : vector<1x112xf32> to vector<1x112xbf16>
    %c3_889 = arith.constant 3 : index
    %c0_890 = arith.constant 0 : index
    %c0_891 = arith.constant 0 : index
    %1039 = vector.load %arg13[%c3_889, %c0_890, %c0_891] : memref<9x112x320xbf16, #tpu.memory_space<vmem>>, vector<1x112x320xbf16>
    %1040 = vector.shape_cast %1039 : vector<1x112x320xbf16> to vector<112x320xbf16>
    %cst_892 = arith.constant dense<0.000000e+00> : vector<1x320xf32>
    %1041 = tpu.matmul %1038, %1040, %cst_892 {dimension_numbers = #tpu.dot_dimension_numbers<[1], [0], [0], [1], [0, 0, 1, 1], [], []>} : vector<1x112xbf16>, vector<112x320xbf16>, vector<1x320xf32> -> vector<1x320xf32>
    %1042 = arith.addf %1036, %1041 : vector<1x320xf32>
    %c9_893 = arith.constant 9 : index
    %c0_894 = arith.constant 0 : index
    %1043 = vector.load %arg24[%c9_893, %c0_894] : memref<24x112xf32, #tpu.memory_space<vmem>>, vector<1x112xf32>
    %1044 = arith.truncf %1043 : vector<1x112xf32> to vector<1x112xbf16>
    %c4_895 = arith.constant 4 : index
    %c0_896 = arith.constant 0 : index
    %c0_897 = arith.constant 0 : index
    %1045 = vector.load %arg13[%c4_895, %c0_896, %c0_897] : memref<9x112x320xbf16, #tpu.memory_space<vmem>>, vector<1x112x320xbf16>
    %1046 = vector.shape_cast %1045 : vector<1x112x320xbf16> to vector<112x320xbf16>
    %cst_898 = arith.constant dense<0.000000e+00> : vector<1x320xf32>
    %1047 = tpu.matmul %1044, %1046, %cst_898 {dimension_numbers = #tpu.dot_dimension_numbers<[1], [0], [0], [1], [0, 0, 1, 1], [], []>} : vector<1x112xbf16>, vector<112x320xbf16>, vector<1x320xf32> -> vector<1x320xf32>
    %1048 = arith.addf %1042, %1047 : vector<1x320xf32>
    %c10_899 = arith.constant 10 : index
    %c0_900 = arith.constant 0 : index
    %1049 = vector.load %arg24[%c10_899, %c0_900] : memref<24x112xf32, #tpu.memory_space<vmem>>, vector<1x112xf32>
    %1050 = arith.truncf %1049 : vector<1x112xf32> to vector<1x112xbf16>
    %c5_901 = arith.constant 5 : index
    %c0_902 = arith.constant 0 : index
    %c0_903 = arith.constant 0 : index
    %1051 = vector.load %arg13[%c5_901, %c0_902, %c0_903] : memref<9x112x320xbf16, #tpu.memory_space<vmem>>, vector<1x112x320xbf16>
    %1052 = vector.shape_cast %1051 : vector<1x112x320xbf16> to vector<112x320xbf16>
    %cst_904 = arith.constant dense<0.000000e+00> : vector<1x320xf32>
    %1053 = tpu.matmul %1050, %1052, %cst_904 {dimension_numbers = #tpu.dot_dimension_numbers<[1], [0], [0], [1], [0, 0, 1, 1], [], []>} : vector<1x112xbf16>, vector<112x320xbf16>, vector<1x320xf32> -> vector<1x320xf32>
    %1054 = arith.addf %1048, %1053 : vector<1x320xf32>
    %c16_905 = arith.constant 16 : index
    %c0_906 = arith.constant 0 : index
    %1055 = vector.load %arg24[%c16_905, %c0_906] : memref<24x112xf32, #tpu.memory_space<vmem>>, vector<1x112xf32>
    %1056 = arith.truncf %1055 : vector<1x112xf32> to vector<1x112xbf16>
    %c6_907 = arith.constant 6 : index
    %c0_908 = arith.constant 0 : index
    %c0_909 = arith.constant 0 : index
    %1057 = vector.load %arg13[%c6_907, %c0_908, %c0_909] : memref<9x112x320xbf16, #tpu.memory_space<vmem>>, vector<1x112x320xbf16>
    %1058 = vector.shape_cast %1057 : vector<1x112x320xbf16> to vector<112x320xbf16>
    %cst_910 = arith.constant dense<0.000000e+00> : vector<1x320xf32>
    %1059 = tpu.matmul %1056, %1058, %cst_910 {dimension_numbers = #tpu.dot_dimension_numbers<[1], [0], [0], [1], [0, 0, 1, 1], [], []>} : vector<1x112xbf16>, vector<112x320xbf16>, vector<1x320xf32> -> vector<1x320xf32>
    %1060 = arith.addf %1054, %1059 : vector<1x320xf32>
    %c17_911 = arith.constant 17 : index
    %c0_912 = arith.constant 0 : index
    %1061 = vector.load %arg24[%c17_911, %c0_912] : memref<24x112xf32, #tpu.memory_space<vmem>>, vector<1x112xf32>
    %1062 = arith.truncf %1061 : vector<1x112xf32> to vector<1x112xbf16>
    %c7_913 = arith.constant 7 : index
    %c0_914 = arith.constant 0 : index
    %c0_915 = arith.constant 0 : index
    %1063 = vector.load %arg13[%c7_913, %c0_914, %c0_915] : memref<9x112x320xbf16, #tpu.memory_space<vmem>>, vector<1x112x320xbf16>
    %1064 = vector.shape_cast %1063 : vector<1x112x320xbf16> to vector<112x320xbf16>
    %cst_916 = arith.constant dense<0.000000e+00> : vector<1x320xf32>
    %1065 = tpu.matmul %1062, %1064, %cst_916 {dimension_numbers = #tpu.dot_dimension_numbers<[1], [0], [0], [1], [0, 0, 1, 1], [], []>} : vector<1x112xbf16>, vector<112x320xbf16>, vector<1x320xf32> -> vector<1x320xf32>
    %1066 = arith.addf %1060, %1065 : vector<1x320xf32>
    %c18_917 = arith.constant 18 : index
    %c0_918 = arith.constant 0 : index
    %1067 = vector.load %arg24[%c18_917, %c0_918] : memref<24x112xf32, #tpu.memory_space<vmem>>, vector<1x112xf32>
    %1068 = arith.truncf %1067 : vector<1x112xf32> to vector<1x112xbf16>
    %c8_919 = arith.constant 8 : index
    %c0_920 = arith.constant 0 : index
    %c0_921 = arith.constant 0 : index
    %1069 = vector.load %arg13[%c8_919, %c0_920, %c0_921] : memref<9x112x320xbf16, #tpu.memory_space<vmem>>, vector<1x112x320xbf16>
    %1070 = vector.shape_cast %1069 : vector<1x112x320xbf16> to vector<112x320xbf16>
    %cst_922 = arith.constant dense<0.000000e+00> : vector<1x320xf32>
    %1071 = tpu.matmul %1068, %1070, %cst_922 {dimension_numbers = #tpu.dot_dimension_numbers<[1], [0], [0], [1], [0, 0, 1, 1], [], []>} : vector<1x112xbf16>, vector<112x320xbf16>, vector<1x320xf32> -> vector<1x320xf32>
    %1072 = arith.addf %1066, %1071 : vector<1x320xf32>
    %c0_923 = arith.constant 0 : index
    %c0_924 = arith.constant 0 : index
    %1073 = vector.load %arg14[%c0_923, %c0_924] : memref<1x320xf32, #tpu.memory_space<vmem>>, vector<1x320xf32>
    %1074 = arith.addf %1072, %1073 : vector<1x320xf32>
    %1075 = arith.negf %1074 : vector<1x320xf32>
    %1076 = math.exp %1075 : vector<1x320xf32>
    %cst_925 = arith.constant 1.000000e+00 : f32
    %1077 = vector.broadcast %cst_925 : f32 to vector<1x320xf32>
    %1078 = arith.addf %1077, %1076 : vector<1x320xf32>
    %1079 = arith.divf %1077, %1078 : vector<1x320xf32>
    %1080 = arith.mulf %1074, %1079 : vector<1x320xf32>
    %c0_926 = arith.constant 0 : index
    %c0_927 = arith.constant 0 : index
    %c0_928 = arith.constant 0 : index
    %1081 = vector.load %arg20[%c0_926, %c0_927, %c0_928] : memref<1x1x320xf32, #tpu.memory_space<vmem>>, vector<1x1x320xf32>
    %1082 = vector.shape_cast %1081 : vector<1x1x320xf32> to vector<1x320xf32>
    %1083 = vector.shape_cast %1080 : vector<1x320xf32> to vector<1x1x320xf32>
    tpu.vector_store %arg20[%c0_926, %c0_927, %c0_928], %1083 {strides = array<i32>} : memref<1x1x320xf32, #tpu.memory_space<vmem>>, vector<1x1x320xf32>,
    return
  }
  func.func @transform_0(%arg0: i32) -> (i32, i32, i32) {
    %c0_i32 = arith.constant 0 : i32
    %c0_i32_0 = arith.constant 0 : i32
    %c0_i32_1 = arith.constant 0 : i32
    return %arg0, %c0_i32, %c0_i32_0 : i32, i32, i32
  }
  func.func @transform_1(%arg0: i32) -> (i32, i32, i32) {
    %c0_i32 = arith.constant 0 : i32
    %c0_i32_0 = arith.constant 0 : i32
    %c0_i32_1 = arith.constant 0 : i32
    return %arg0, %c0_i32, %c0_i32_0 : i32, i32, i32
  }
  func.func @transform_2(%arg0: i32) -> (i32, i32) {
    %c0_i32 = arith.constant 0 : i32
    %c0_i32_0 = arith.constant 0 : i32
    %c0_i32_1 = arith.constant 0 : i32
    return %c0_i32, %c0_i32_0 : i32, i32
  }
  func.func @transform_3(%arg0: i32) -> (i32, i32) {
    %c0_i32 = arith.constant 0 : i32
    %c0_i32_0 = arith.constant 0 : i32
    %c0_i32_1 = arith.constant 0 : i32
    return %c0_i32, %c0_i32_0 : i32, i32
  }
  func.func @transform_4(%arg0: i32) -> (i32, i32) {
    %c0_i32 = arith.constant 0 : i32
    %c0_i32_0 = arith.constant 0 : i32
    %c0_i32_1 = arith.constant 0 : i32
    return %c0_i32, %c0_i32_0 : i32, i32
  }
  func.func @transform_5(%arg0: i32) -> (i32, i32) {
    %c0_i32 = arith.constant 0 : i32
    %c0_i32_0 = arith.constant 0 : i32
    %c0_i32_1 = arith.constant 0 : i32
    return %c0_i32, %c0_i32_0 : i32, i32
  }
  func.func @transform_6(%arg0: i32) -> (i32, i32, i32) {
    %c0_i32 = arith.constant 0 : i32
    %c0_i32_0 = arith.constant 0 : i32
    %c0_i32_1 = arith.constant 0 : i32
    %c0_i32_2 = arith.constant 0 : i32
    return %c0_i32, %c0_i32_0, %c0_i32_1 : i32, i32, i32
  }
  func.func @transform_7(%arg0: i32) -> (i32, i32) {
    %c0_i32 = arith.constant 0 : i32
    %c0_i32_0 = arith.constant 0 : i32
    %c0_i32_1 = arith.constant 0 : i32
    return %c0_i32, %c0_i32_0 : i32, i32
  }
  func.func @transform_8(%arg0: i32) -> (i32, i32, i32) {
    %c0_i32 = arith.constant 0 : i32
    %c0_i32_0 = arith.constant 0 : i32
    %c0_i32_1 = arith.constant 0 : i32
    %c0_i32_2 = arith.constant 0 : i32
    return %c0_i32, %c0_i32_0, %c0_i32_1 : i32, i32, i32
  }
  func.func @transform_9(%arg0: i32) -> (i32, i32) {
    %c0_i32 = arith.constant 0 : i32
    %c0_i32_0 = arith.constant 0 : i32
    %c0_i32_1 = arith.constant 0 : i32
    return %c0_i32, %c0_i32_0 : i32, i32
  }
  func.func @transform_10(%arg0: i32) -> (i32, i32, i32) {
    %c0_i32 = arith.constant 0 : i32
    %c0_i32_0 = arith.constant 0 : i32
    %c0_i32_1 = arith.constant 0 : i32
    %c0_i32_2 = arith.constant 0 : i32
    return %c0_i32, %c0_i32_0, %c0_i32_1 : i32, i32, i32
  }
  func.func @transform_11(%arg0: i32) -> (i32, i32) {
    %c0_i32 = arith.constant 0 : i32
    %c0_i32_0 = arith.constant 0 : i32
    %c0_i32_1 = arith.constant 0 : i32
    return %c0_i32, %c0_i32_0 : i32, i32
  }
  func.func @transform_12(%arg0: i32) -> (i32, i32, i32) {
    %c0_i32 = arith.constant 0 : i32
    %c0_i32_0 = arith.constant 0 : i32
    %c0_i32_1 = arith.constant 0 : i32
    %c0_i32_2 = arith.constant 0 : i32
    return %c0_i32, %c0_i32_0, %c0_i32_1 : i32, i32, i32
  }
  func.func @transform_13(%arg0: i32) -> (i32, i32) {
    %c0_i32 = arith.constant 0 : i32
    %c0_i32_0 = arith.constant 0 : i32
    %c0_i32_1 = arith.constant 0 : i32
    return %c0_i32, %c0_i32_0 : i32, i32
  }
  func.func @transform_14(%arg0: i32) -> (i32, i32, i32) {
    %c0_i32 = arith.constant 0 : i32
    %c0_i32_0 = arith.constant 0 : i32
    %c0_i32_1 = arith.constant 0 : i32
    return %arg0, %c0_i32, %c0_i32_0 : i32, i32, i32
  }
  func.func @transform_15(%arg0: i32) -> (i32, i32, i32) {
    %c0_i32 = arith.constant 0 : i32
    %c0_i32_0 = arith.constant 0 : i32
    %c0_i32_1 = arith.constant 0 : i32
    return %arg0, %c0_i32, %c0_i32_0 : i32, i32, i32
  }
  func.func @transform_16(%arg0: i32) -> (i32, i32, i32) {
    %c0_i32 = arith.constant 0 : i32
    %c0_i32_0 = arith.constant 0 : i32
    %c0_i32_1 = arith.constant 0 : i32
    return %arg0, %c0_i32, %c0_i32_0 : i32, i32, i32
  }
  func.func @transform_17(%arg0: i32) -> (i32, i32, i32) {
    %c0_i32 = arith.constant 0 : i32
    %c0_i32_0 = arith.constant 0 : i32
    %c0_i32_1 = arith.constant 0 : i32
    return %arg0, %c0_i32, %c0_i32_0 : i32, i32, i32
  }
  func.func @transform_18(%arg0: i32) -> (i32, i32, i32) {
    %c0_i32 = arith.constant 0 : i32
    %c0_i32_0 = arith.constant 0 : i32
    %c0_i32_1 = arith.constant 0 : i32
    return %arg0, %c0_i32, %c0_i32_0 : i32, i32, i32
  }
  func.func @transform_19(%arg0: i32) -> (i32, i32, i32) {
    %c0_i32 = arith.constant 0 : i32
    %c0_i32_0 = arith.constant 0 : i32
    %c0_i32_1 = arith.constant 0 : i32
    return %arg0, %c0_i32, %c0_i32_0 : i32, i32, i32
  }
}

</mosaic_0001>

<bundles_post_ra>
// kernel: color2depth_encoder_forward.1
= control target key start
LH: loop header
LB: loop body
LE: loop exit
PB: predicated region body
PF: predicated region fallthrough
CT: control target
= control target key end

     0   :  { %s17822_s0 = inlined_call_operand.vmem [shape: f32[2,1024,27], index: 0, kind: input, shape index: {}]   ;;  %s17823_s1 = inlined_call_operand.vmem [shape: bf16[2,256,27], index: 1, kind: input, shape index: {}]   ;;  %s17824_s2 = inlined_call_operand.vmem [shape: f32[27,32], index: 2, kind: input, shape index: {}]   ;;  %s17825_s3 = inlined_call_operand.vmem [shape: f32[1,32], index: 3, kind: input, shape index: {}]   ;;  %s17826_s4 = inlined_call_operand.vmem [shape: bf16[27,32], index: 4, kind: input, shape index: {}]   ;;  %s17827_s5 = inlined_call_operand.vmem [shape: f32[1,32], index: 5, kind: input, shape index: {}]   ;;  %s17828_s6 = inlined_call_operand.vmem [shape: bf16[9,32,24], index: 6, kind: input, shape index: {}]   ;;  %s17829_s7 = inlined_call_operand.vmem [shape: f32[1,24], index: 7, kind: input, shape index: {}]   ;;  %s17830_s8 = inlined_call_operand.vmem [shape: bf16[9,24,40], index: 8, kind: input, shape index: {}]   ;;  %s17831_s9 = inlined_call_operand.vmem [shape: f32[1,40], index: 9, kind: input, shape index: {}]   ;;  %s17832_s10 = inlined_call_operand.vmem [shape: bf16[9,40,112], index: 10, kind: input, shape index: {}]   ;;  %s17833_s11 = inlined_call_operand.vmem [shape: f32[1,112], index: 11, kind: input, shape index: {}]   ;;  %s17834_s12 = inlined_call_operand.vmem [shape: bf16[9,112,320], index: 12, kind: input, shape index: {}]   ;;  %s17835_s13 = inlined_call_operand.vmem [shape: f32[1,320], index: 13, kind: input, shape index: {}]   ;;  %s17836_s14 = inlined_call_operand.vmem [shape: f32[2,1024,32], index: 14, kind: output, shape index: {0}]   ;;  %s17837_s15 = inlined_call_operand.hbm [shape: f32[2,256,32], index: 15, kind: output, shape index: {1}]   ;;  %s17838_s16 = inlined_call_operand.hbm [shape: f32[2,64,24], index: 16, kind: output, shape index: {2}]   ;;  %s17839_s17 = inlined_call_operand.hbm [shape: f32[2,16,40], index: 17, kind: output, shape index: {3}]   ;;  %s17840_s18 = inlined_call_operand.hbm [shape: f32[2,4,112], index: 18, kind: output, shape index: {4}]   ;;  %s17841_s19 = inlined_call_operand.hbm [shape: f32[2,1,320], index: 19, kind: output, shape index: {5}]  }
   0x1   :  { %17855 = sst [smem:[#allocation22_spill]] %s17822_s0 }
   0x2   :  { %17856 = sst [smem:[#allocation23_spill]] %s17823_s1 }
   0x3   :  { %17857 = sst [smem:[#allocation24_spill]] %s17824_s2 }
   0x4   :  { %17858 = sst [smem:[#allocation25_spill]] %s17825_s3 }
   0x5   :  { %17859 = sst [smem:[#allocation26_spill]] %s17826_s4 }
   0x6   :  { %17860 = sst [smem:[#allocation27_spill]] %s17827_s5 }
   0x7   :  { %17861 = sst [smem:[#allocation28_spill]] %s17828_s6 }
   0x8   :  { %17862 = sst [smem:[#allocation29_spill]] %s17829_s7 }
   0x9   :  { %17863 = sst [smem:[#allocation30_spill]] %s17830_s8 }
   0xa   :  { %17864 = sst [smem:[#allocation31_spill]] %s17831_s9 }
   0xb   :  { %17865 = sst [smem:[#allocation32_spill]] %s17832_s10 }
   0xc   :  { %17866 = sst [smem:[#allocation33_spill]] %s17833_s11 }
   0xd   :  { %17867 = sst [smem:[#allocation34_spill]] %s17836_s14 }
   0xe   :  { %25 = vsyncpa [#allocation7], 0 }
   0xf   :  { %27 = vsyncpa [#allocation7 + $0x1], 0 }
  0x10   :  { %28 = vsyncpa [#allocation9], 0 }
  0x11   :  { %30 = vsyncpa [#allocation9 + $0x1], 0 }
  0x12   :  { %31 = vsyncpa [#allocation12], 0 }
  0x13   :  { %33 = vsyncpa [#allocation12 + $0x1], 0  ;;  %s13579_s0 = smov 0   ;;  %s13581_s30 = smov 0  }
  0x14   :  { %s13583_s20 = smov 0   ;;  %s13585_s21 = smov 0  }
  0x15 LB: > { %17868 = sst [smem:[#allocation17_spill]] %s13461_s0  ;;  %s13600_s1 = sadd.s32 4294967295, %s13473_s21   ;;  %s13473_s21 = sphi %s13585_s21, %s17945_s21   ;;  %s13469_s20 = sphi %s13583_s20, %s17947_s20   ;;  %s13465_s30 = sphi %s13581_s30, %s17949_s30   ;;  %s13461_s0 = sphi %s13579_s0, %s17948_s0  }
  0x16   : > { %17869 = sst [smem:[#allocation18_spill]] %s13469_s20  ;;  %s17844_s22 = sadd.s32 4294967294, %s13473_s21  }
  0x17   : > { %s13604_s2 = sadd.s32 1, %s13473_s21   ;;  %s376_s23 = sadd.s32 1, %s13469_s20 }
  0x18   : > { %17870 = sst [smem:[#allocation19_spill]] %s13604_s2  ;;  %s373_s24 = ssub.s32 %s13473_s21, %s13604_s2 }
  0x19   : > { %p386_p0 = scmp.ne.s32.totalorder %s13469_s20, %s13465_s30  ;;  %p374_p1 = scmp.eq.s32.totalorder %s373_s24, 0 }
  0x1a   : > { %p387_p2 = scmp.eq.s32.totalorder %s13600_s1, 1  ;;  %p392_p3 = scmp.ne.s32.totalorder %s13465_s30, %s13461_s0 }
  0x1b   : > { %p393_p4 = scmp.eq.s32.totalorder %s17844_s22, 1  ;;  %p9855_p7 = scmp.ge.s32.totalorder %s13473_s21, 1 }
  0x1c   : > { %s13617_s25 = scalar_select %p374_p1, %s13469_s20, %s376_s23  }
  0x1d   : > { %p13619_p5 = por %p387_p2, %p386_p0  ;;  %p13623_p6 = por %p393_p4, %p392_p3 }
  0x1e   : > { %17871 = sst [smem:[#allocation20_spill]] %s13617_s25  ;;  %p567_p8 = scmp.lt.s32.totalorder %s13473_s21, 3 }
  0x1f   : > { %s17873_s26 = scalar_select %p13623_p6, 1, 0 }
  0x20   : > { %p568_p9 = pnand %p9855_p7, %p567_p8 }
  0x21   : > { %17874 = sst [smem:[#allocation21_spill]] %s17873_s26  ;;  %p653_p10 = scmp.lt.s32.totalorder (!%p568_p9), %s13600_s1, 1 }
  0x22   : > { %571 = sbr.rel (%p568_p9) target bundleno = 1555 (0x613), region = 76  ;;  %s17875_s4 = sld [smem:[#allocation26_spill]] (!%p568_p9) }
  0x23   : > { %s17876_s23 = sld [smem:[#allocation23_spill]] (!%p568_p9)  ;;  %s13822_s27 = sand.u32 (!%p568_p9), 1, %s13465_s30  }
  0x24   : > { %s17877_s5 = sld [smem:[#allocation27_spill]] (!%p568_p9)  ;;  %s9856_s0 = sshll.u32 (!%p568_p9), %s13822_s27, 8 }
  0x25   : > { %s17878_s29 = sld [smem:[#allocation24_spill]] (!%p568_p9)  ;;  %s13843_s25 = scalar_lea.vmem (!%p568_p9), [#allocation6], %s9856_s0 }
  0x26   : > { %s17880_s6 = sld [smem:[#allocation28_spill]] (!%p568_p9)  ;;  %s9858_s26 = sshll.u32 (!%p568_p9), %s13822_s27, 4 }
  0x27   : > { %vm1983_vm0 = vcmask 1044480   ;;  %vm1984_vm1 = vcmask 1045504   ;;  %v13475_v3 = vmov 65535   ;;  %s13637_s24 = scalar_select %p653_p10, %s13600_s1, 1  ;;  %vm886_vm2 = vcmask 220160  }
  0x28   : > { %v10065_v0 = vld [vmem:[%s17875_s4 + $0x8] sm:$0xf]  ;;  %v12594_v1 = vld [vmem:[%s17875_s4 + $0x8] sm:$0x30]  ;;  %v1985_v4 = vsel %vm1983_vm0, 4294967295, %v13475_v3  ;;  %v12593_v7 = vld [vmem:[%s17875_s4] sm:$0xff] }
  0x29   : > { %v10066_v2 = vor.u32 %v12594_v1, %v10065_v0  ;;  %v1986_v5 = vsel %vm1984_vm1, %v1985_v4, 0  ;;  %s12575_s28 = sshll.u32 %s13637_s24, 7  ;;  %vm669_vm3 = vcmask 261120   ;;  %v13476_v14 = vmov 0.0   ;;  %s17879_s4 = sld [smem:[#allocation22_spill]] }
  0x2a   : > { %s13646_s20 = scalar_lea.vmem %s17876_s23, %s12575_s28  ;;  %670 = vst.msk [vmem:[#allocation2] sm:$0xff] %vm669_vm3, %v13476_v14  ;;  %v13749_v17 = vld [vmem:[%s17877_s5] ss:$0 sm:$0xff]  ;;  %vm1271_vm4 = vcmask 1042432   ;;  %s17850_s23 = sshll.u32 %s13637_s24, 10 }
  0x2b   : > { %v1988_v6 = vand.u32 %v10066_v2, %v1986_v5  ;;  %v12577_v8 = vld [vmem:[%s13646_s20] sm:$0xff]  ;;  %v12578_v9 = vld [vmem:[%s13646_s20 + $0x8] sm:$0xff]  ;;  %v12579_v10 = vld [vmem:[%s13646_s20 + $0x10] sm:$0xff]  ;;  %671 = vst.msk [vmem:[#allocation2 + $0x8] sm:$0xff] %vm669_vm3, %v13476_v14  ;;  %s17893_s0 = sld [smem:[#allocation25_spill]] }
  0x2c   : > { %v12580_v11 = vld [vmem:[%s13646_s20 + $0x18] sm:$0xff]  ;;  %v12581_v12 = vld [vmem:[%s13646_s20 + $0x20] sm:$0xff]  ;;  %v12582_v13 = vld [vmem:[%s13646_s20 + $0x28] sm:$0xff]  ;;  %672 = vst.msk [vmem:[#allocation2 + $0x10] sm:$0xff] %vm669_vm3, %v13476_v14  ;;  %s17896_s14 = sld [smem:[#allocation34_spill]] }
  0x2d   : > { %1996 = vmatpush.bf16.msra.mxu1 %v1988_v6  ;;  %673 = vst.msk [vmem:[#allocation2 + $0x18] sm:$0xff] %vm669_vm3, %v13476_v14  ;;  %v12583_v15 = vld [vmem:[%s13646_s20 + $0x30] sm:$0xff]  ;;  %v12584_v16 = vld [vmem:[%s13646_s20 + $0x38] sm:$0xff]  ;;  %v12585_v18 = vld [vmem:[%s13646_s20 + $0x40] sm:$0xff]  ;;  %s17913_s7 = sld [smem:[#allocation29_spill]] }
  0x2e   : > { %674 = vst.msk [vmem:[#allocation2 + $0x20] sm:$0xff] %vm669_vm3, %v13476_v14  ;;  %v881_v22 = vld [vmem:[%s17878_s29 + $0x18] sm:$0x7]  ;;  %v880_v23 = vld [vmem:[%s17878_s29 + $0x10] sm:$0xff]  ;;  %v879_v25 = vld [vmem:[%s17878_s29 + $0x8] sm:$0xff]  ;;  %s17934_s8 = sld [smem:[#allocation30_spill]] }
  0x2f   : > { %675 = vst.msk [vmem:[#allocation2 + $0x28] sm:$0xff] %vm669_vm3, %v13476_v14  ;;  %13003 = vmatpush.msk.msra.mxu2 %vm1271_vm4, %v881_v22  ;;  %9866 = vmatpush.msk.msra.mxu0 %vm1271_vm4, %v881_v22  ;;  %s13789_s2 = scalar_lea.vmem %s17879_s4, %s17850_s23  ;;  %v878_v27 = vld [vmem:[%s17878_s29] sm:$0xff]  ;;  %v12598_v31 = vld [vmem:[%s17880_s6 + $0x18] sm:$0xff]  ;;  %v12596_v32 = vld [vmem:[%s17880_s6 + $0x8] sm:$0xff]  ;;  %s17935_s9 = sld [smem:[#allocation31_spill]] }
  0x30   : > { %676 = vst.msk [vmem:[#allocation2 + $0x30] sm:$0xff] %vm669_vm3, %v13476_v14  ;;  %v877_v30 = vld [vmem:[%s13789_s2 + $0x3f8] sm:$0xff]  ;;  %2846 = vmatpush.bf16.msra.mxu3 %v12596_v32  ;;  %v12586_v34 = vld [vmem:[%s13646_s20 + $0x48] sm:$0xff]  ;;  %v12597_v35 = vld [vmem:[%s17880_s6 + $0x10] sm:$0xff]  ;;  %s17936_s10 = sld [smem:[#allocation32_spill]]  ;;  %s13001_s29 = sshll.u32 %s13600_s1, 6 }
  0x31   : > { %1997 = vmatpush.bf16.msra.mxu1 %v12593_v7  ;;  %677 = vst.msk [vmem:[#allocation2 + $0x38] sm:$0xff] %vm669_vm3, %v13476_v14  ;;  %13004 = vmatpush.msra.mxu2 %v880_v23  ;;  %v12595_v36 = vld [vmem:[%s17880_s6] sm:$0xff]  ;;  %v12600_v53 = vld [vmem:[%s17880_s6 + $0x28] sm:$0xff]  ;;  %v12602_v54 = vld [vmem:[%s17880_s6 + $0x38] sm:$0xff]  ;;  %s17894_s4 = smov %s17893_s0  ;;  %s17937_s11 = sld [smem:[#allocation33_spill]] }
  0x32   : > { %678 = vst.msk [vmem:[#allocation2 + $0x40] sm:$0xff] %vm669_vm3, %v13476_v14  ;;  %1288 = vmatpush.msra.mxu0 %v880_v23  ;;  %v12587_v63 = vld [vmem:[%s13646_s20 + $0x50] sm:$0xff]  ;;  %v12599_v0 = vld [vmem:[%s17880_s6 + $0x20] sm:$0xff] }
  0x33   : > { %679 = vst.msk [vmem:[#allocation2 + $0x48] sm:$0xff] %vm669_vm3, %v13476_v14  ;;  %13005 = vmatpush.msra.mxu2 %v879_v25  ;;  %v12601_v1 = vld [vmem:[%s17880_s6 + $0x30] sm:$0xff] }
  0x34   : > { %10067 = vmatmul.msk.bf16.vlgmr.msra.gmra.mxu1 %vm886_vm2, %v12577_v8  ;;  %680 = vst.msk [vmem:[#allocation2 + $0x50] sm:$0xff] %vm669_vm3, %v13476_v14  ;;  %1289 = vmatpush.msra.mxu0 %v879_v25 }
  0x35   : > { %681 = vst.msk [vmem:[#allocation2 + $0x58] sm:$0xff] %vm669_vm3, %v13476_v14  ;;  %13006 = vmatpush.msra.mxu2 %v878_v27  ;;  %2847 = vmatpush.bf16.msra.mxu3 %v12595_v36 }
  0x36   : > { %682 = vst.msk [vmem:[#allocation2 + $0x60] sm:$0xff] %vm669_vm3, %v13476_v14  ;;  %1290 = vmatpush.msra.mxu0 %v878_v27  ;;  %9994 = vmatmul.msk.f32.vlgmr.msra.gmra.mxu2 %vm886_vm2, %v877_v30 }
  0x37   : > { %683 = vst.msk [vmem:[#allocation2 + $0x68] sm:$0xff] %vm669_vm3, %v13476_v14  ;;  %2818 = vmatpush.bf16.msrb.mxu2 %v12598_v31 }
  0x38   : > { %684 = vst.msk [vmem:[#allocation2 + $0x70] sm:$0xff] %vm669_vm3, %v13476_v14 }
  0x39   : > { %685 = vst.msk [vmem:[#allocation2 + $0x78] sm:$0xff] %vm669_vm3, %v13476_v14  ;;  %2919 = vmatpush.bf16.msrb.mxu3 %v12602_v54 }
  0x3a   : > { %686 = vst.msk [vmem:[#allocation2 + $0x80] sm:$0xff] %vm669_vm3, %v13476_v14 }
  0x3b   : > { %687 = vst.msk [vmem:[#allocation2 + $0x88] sm:$0xff] %vm669_vm3, %v13476_v14  ;;  %2819 = vmatpush.bf16.msrb.mxu2 %v12597_v35 }
  0x3c   : > { %688 = vst.msk [vmem:[#allocation2 + $0x90] sm:$0xff] %vm669_vm3, %v13476_v14 }
  0x3d   : > { %689 = vst.msk [vmem:[#allocation2 + $0x98] sm:$0xff] %vm669_vm3, %v13476_v14  ;;  %2920 = vmatpush.bf16.msrb.mxu3 %v12601_v1 }
  0x3e   : > { %690 = vst.msk [vmem:[#allocation2 + $0xa0] sm:$0xff] %vm669_vm3, %v13476_v14 }
  0x3f   : > { %691 = vst.msk [vmem:[#allocation2 + $0xa8] sm:$0xff] %vm669_vm3, %v13476_v14  ;;  %2882 = vmatpush.bf16.msra.mxu2 %v12600_v53 }
  0x40   : > { %692 = vst.msk [vmem:[#allocation2 + $0xb0] sm:$0xff] %vm669_vm3, %v13476_v14 }
  0x41   : > { %693 = vst.msk [vmem:[#allocation2 + $0xb8] sm:$0xff] %vm669_vm3, %v13476_v14 }
  0x42   : > { %694 = vst.msk [vmem:[#allocation2 + $0xc0] sm:$0xff] %vm669_vm3, %v13476_v14 }
  0x43   : > { %695 = vst.msk [vmem:[#allocation2 + $0xc8] sm:$0xff] %vm669_vm3, %v13476_v14  ;;  %2883 = vmatpush.bf16.msra.mxu2 %v12599_v0 }
  0x44   : > { %10068 = vmatmul.msk.bf16.gmra.mxu1 %vm886_vm2, %v12578_v9  ;;  %696 = vst.msk [vmem:[#allocation2 + $0xd0] sm:$0xff] %vm669_vm3, %v13476_v14 }
  0x45   : > { %697 = vst.msk [vmem:[#allocation2 + $0xd8] sm:$0xff] %vm669_vm3, %v13476_v14 }
  0x46   : > { %698 = vst.msk [vmem:[#allocation2 + $0xe0] sm:$0xff] %vm669_vm3, %v13476_v14 }
  0x47   : > { %699 = vst.msk [vmem:[#allocation2 + $0xe8] sm:$0xff] %vm669_vm3, %v13476_v14 }
  0x48   : > { %700 = vst.msk [vmem:[#allocation2 + $0xf0] sm:$0xff] %vm669_vm3, %v13476_v14 }
  0x49   : > { %701 = vst.msk [vmem:[#allocation2 + $0xf8] sm:$0xff] %vm669_vm3, %v13476_v14 }
  0x4a   : > { %702 = vst.msk [vmem:[#allocation2 + $0x100] sm:$0xff] %vm669_vm3, %v13476_v14 }
  0x4b   : > { %703 = vst.msk [vmem:[#allocation2 + $0x108] sm:$0xff] %vm669_vm3, %v13476_v14 }
  0x4c   : > { %704 = vst.msk [vmem:[#allocation2 + $0x110] sm:$0xff] %vm669_vm3, %v13476_v14 }
  0x4d   : > { %705 = vst.msk [vmem:[#allocation2 + $0x118] sm:$0xff] %vm669_vm3, %v13476_v14 }
  0x4e   : > { %706 = vst.msk [vmem:[#allocation2 + $0x120] sm:$0xff] %vm669_vm3, %v13476_v14 }
  0x4f   : > { %707 = vst.msk [vmem:[#allocation2 + $0x128] sm:$0xff] %vm669_vm3, %v13476_v14 }
  0x50   : > { %708 = vst.msk [vmem:[#allocation2 + $0x130] sm:$0xff] %vm669_vm3, %v13476_v14 }
  0x51   : > { %709 = vst.msk [vmem:[#allocation2 + $0x138] sm:$0xff] %vm669_vm3, %v13476_v14 }
  0x52   : > { %710 = vst.msk [vmem:[#allocation2 + $0x140] sm:$0xff] %vm669_vm3, %v13476_v14 }
  0x53   : > { %711 = vst.msk [vmem:[#allocation2 + $0x148] sm:$0xff] %vm669_vm3, %v13476_v14 }
  0x54   : > { %10069 = vmatmul.msk.bf16.gmra.mxu1 %vm886_vm2, %v12579_v10  ;;  %712 = vst.msk [vmem:[#allocation2 + $0x150] sm:$0xff] %vm669_vm3, %v13476_v14 }
  0x55   : > { %713 = vst.msk [vmem:[#allocation2 + $0x158] sm:$0xff] %vm669_vm3, %v13476_v14 }
  0x56   : > { %714 = vst.msk [vmem:[#allocation2 + $0x160] sm:$0xff] %vm669_vm3, %v13476_v14 }
  0x57   : > { %715 = vst.msk [vmem:[#allocation2 + $0x168] sm:$0xff] %vm669_vm3, %v13476_v14 }
  0x58   : > { %716 = vst.msk [vmem:[#allocation2 + $0x170] sm:$0xff] %vm669_vm3, %v13476_v14 }
  0x59   : > { %717 = vst.msk [vmem:[#allocation2 + $0x178] sm:$0xff] %vm669_vm3, %v13476_v14 }
  0x5a   : > { %718 = vst.msk [vmem:[#allocation2 + $0x180] sm:$0xff] %vm669_vm3, %v13476_v14 }
  0x5b   : > { %719 = vst.msk [vmem:[#allocation2 + $0x188] sm:$0xff] %vm669_vm3, %v13476_v14 }
  0x5c   : > { %720 = vst.msk [vmem:[#allocation2 + $0x190] sm:$0xff] %vm669_vm3, %v13476_v14 }
  0x64   : > { %10070 = vmatmul.msk.bf16.gmra.mxu1 %vm886_vm2, %v12580_v11 }
  0x74   : > { %10071 = vmatmul.msk.bf16.gmra.mxu1 %vm886_vm2, %v12581_v12 }
  0x84   : > { %10072 = vmatmul.msk.bf16.gmra.mxu1 %vm886_vm2, %v12582_v13 }
  0x94   : > { %10073 = vmatmul.msk.bf16.gmra.mxu1 %vm886_vm2, %v12583_v15 }
  0xa4   : > { %10074 = vmatmul.msk.bf16.gmra.mxu1 %vm886_vm2, %v12584_v16 }
  0xb1   : > { %v1999_v19 = vpop.f32.mrf.mxu1 }
  0xb2   : > { %v13761_v20 = vadd.f32 %v13749_v17, %v1999_v19 }
  0xb4   : > { %v10083_v21 = vmul.f32 -1.442695, %v13761_v20  ;;  %10075 = vmatmul.msk.bf16.gmra.mxu1 %vm886_vm2, %v12585_v18 }
  0xb6   : > { %13088 = vpow2.f32 %v10083_v21 }
  0xb9   : > { %v2001_v24 = vpop.f32.mrf.mxu1 }
  0xba   : > { %v13795_v26 = vadd.f32 %v13749_v17, %v2001_v24 }
  0xbc   : > { %v13089_v28 = vpop.eup %13088  ;;  %v10084_v29 = vmul.f32 -1.442695, %v13795_v26 }
  0xbd   : > { %v2175_v33 = vadd.f32 1.0, %v13089_v28 }
  0xbe   : > { %13090 = vpow2.f32 %v10084_v29 }
  0xbf   : > { %13092 = vrcp.f32 %v2175_v33  ;;  %v2218_v45 = vand.u32 2147483648, %v2175_v33  ;;  %v2216_v48 = vand.u32 2147483647, %v2175_v33  ;;  %vm2212_vm6 = vweird.f32 %v2175_v33 }
  0xc1   : > { %v2004_v37 = vpop.f32.mrf.mxu1  ;;  %v2219_v56 = vor.u32 1.1754944e-38, %v2218_v45  ;;  %vm2217_vm8 = vcmp.eq.f32.partialorder %v2216_v48, 8.507059e+37 }
  0xc2   : > { %v13817_v38 = vadd.f32 %v13749_v17, %v2004_v37 }
  0xc4   : > { %v13091_v39 = vpop.eup %13090  ;;  %v10085_v40 = vmul.f32 -1.442695, %v13817_v38  ;;  %10076 = vmatmul.msk.bf16.gmra.mxu1 %vm886_vm2, %v12586_v34 }
  0xc5   : > { %v13093_v41 = vpop.eup %13092  ;;  %v2176_v42 = vadd.f32 1.0, %v13091_v39 }
  0xc6   : > { %v2208_v43 = vmul.f32 %v13093_v41, %v2175_v33  ;;  %13094 = vpow2.f32 %v10085_v40  ;;  %vm2213_vm5 = vweird.f32 %v13093_v41  ;;  %v12604_v40 = vld [vmem:[%s17880_s6 + $0x48] sm:$0xff] }
  0xc7   : > { %13096 = vrcp.f32 %v2176_v42  ;;  %vm2214_vm7 = vmor %vm2212_vm6, %vm2213_vm5  ;;  %v2233_v2 = vand.u32 2147483648, %v2176_v42  ;;  %v2231_v5 = vand.u32 2147483647, %v2176_v42  ;;  %vm2227_vm10 = vweird.f32 %v2176_v42 }
  0xc8   : > { %v2209_v44 = vsub.f32 1.0, %v2208_v43 }
  0xc9   : > { %v2006_v46 = vpop.f32.mrf.mxu1  ;;  %v2234_v11 = vor.u32 1.1754944e-38, %v2233_v2  ;;  %vm2232_vm12 = vcmp.eq.f32.partialorder %v2231_v5, 8.507059e+37 }
  0xca   : > { %v2210_v47 = vmul.f32 %v13093_v41, %v2209_v44  ;;  %v13825_v49 = vadd.f32 %v13749_v17, %v2006_v46 }
  0xcc   : > { %v13095_v50 = vpop.eup %13094  ;;  %v2211_v51 = vadd.f32 %v13093_v41, %v2210_v47  ;;  %v10086_v52 = vmul.f32 -1.442695, %v13825_v49 }
  0xcd   : > { %v13097_v55 = vpop.eup %13096  ;;  %v2177_v57 = vadd.f32 1.0, %v13095_v50 }
  0xce   : > { %v2215_v58 = vsel %vm2214_vm7, %v13093_v41, %v2211_v51  ;;  %v2223_v59 = vmul.f32 %v13097_v55, %v2176_v42  ;;  %13098 = vpow2.f32 %v10086_v52  ;;  %vm2228_vm9 = vweird.f32 %v13097_v55  ;;  %v12588_v51 = vld [vmem:[%s13646_s20 + $0x58] sm:$0xff] }
  0xcf   : > { %v2220_v60 = vsel %vm2217_vm8, %v2219_v56, %v2215_v58  ;;  %13100 = vrcp.f32 %v2177_v57  ;;  %vm2229_vm11 = vmor %vm2227_vm10, %vm2228_vm9  ;;  %v2246_v23 = vand.u32 2147483647, %v2177_v57  ;;  %vm2242_vm14 = vweird.f32 %v2177_v57  ;;  %v12605_v58 = vld [vmem:[%s17880_s6 + $0x50] sm:$0xff] }
  0xd0   : > { %v2687_v61 = vmul.f32 %v2220_v60, %v13761_v20  ;;  %v2224_v62 = vsub.f32 1.0, %v2223_v59  ;;  %v2248_v20 = vand.u32 2147483648, %v2177_v57 }
  0xd1   : > { %v2009_v3 = vpop.f32.mrf.mxu1  ;;  %vm2247_vm0 = vcmp.eq.f32.partialorder %v2246_v23, 8.507059e+37  ;;  %v12610_v23 = vld [vmem:[%s17880_s6 + $0x78] sm:$0xff] }
  0xd2   : > { %2719 = vst.msk [vmem:[%s13843_s25] sm:$0xff] %vm669_vm3, %v2687_v61  ;;  %v2225_v4 = vmul.f32 %v13097_v55, %v2224_v62  ;;  %v13848_v6 = vadd.f32 %v13749_v17, %v2009_v3 }
  0xd3   : > { %2751 = vst.msk [vmem:[#allocation2] sm:$0xff] %vm669_vm3, %v2687_v61 }
  0xd4   : > { %v13099_v7 = vpop.eup %13098  ;;  %v2226_v8 = vadd.f32 %v13097_v55, %v2225_v4  ;;  %v10087_v9 = vmul.f32 -1.442695, %v13848_v6  ;;  %10077 = vmatmul.msk.bf16.gmra.mxu1 %vm886_vm2, %v12587_v63 }
  0xd5   : > { %v13101_v10 = vpop.eup %13100  ;;  %v2178_v12 = vadd.f32 1.0, %v13099_v7 }
  0xd6   : > { %v2230_v13 = vsel %vm2229_vm11, %v13097_v55, %v2226_v8  ;;  %v2238_v15 = vmul.f32 %v13101_v10, %v2177_v57  ;;  %13102 = vpow2.f32 %v10087_v9  ;;  %vm2243_vm13 = vweird.f32 %v13101_v10  ;;  %v12603_v57 = vld [vmem:[%s17880_s6 + $0x40] sm:$0xff] }
  0xd7   : > { %v2235_v16 = vsel %vm2232_vm12, %v2234_v11, %v2230_v13  ;;  %13104 = vrcp.f32 %v2178_v12  ;;  %vm2244_vm15 = vmor %vm2242_vm14, %vm2243_vm13  ;;  %v2261_v36 = vand.u32 2147483647, %v2178_v12  ;;  %v2263_v37 = vand.u32 2147483648, %v2178_v12 }
  0xd8   : > { %v2688_v18 = vmul.f32 %v2235_v16, %v13795_v26  ;;  %v2239_v19 = vsub.f32 1.0, %v2238_v15  ;;  %v2249_v26 = vor.u32 1.1754944e-38, %v2248_v20  ;;  %vm2257_vm4 = vweird.f32 %v2178_v12 }
  0xd9   : > { %v2011_v21 = vpop.f32.mrf.mxu1  ;;  %v2264_v53 = vor.u32 1.1754944e-38, %v2263_v37  ;;  %vm2262_vm6 = vcmp.eq.f32.partialorder %v2261_v36, 8.507059e+37  ;;  %v12607_v36 = vld [vmem:[%s17880_s6 + $0x60] sm:$0xff]  ;;  %v12609_v37 = vld [vmem:[%s17880_s6 + $0x70] sm:$0xff] }
  0xda   : > { %2720 = vst.msk [vmem:[%s13843_s25 + $0x8] sm:$0xff] %vm669_vm3, %v2688_v18  ;;  %v2240_v22 = vmul.f32 %v13101_v10, %v2239_v19  ;;  %v13857_v24 = vadd.f32 %v13749_v17, %v2011_v21 }
  0xdb   : > { %2752 = vst.msk [vmem:[#allocation2 + $0x8] sm:$0xff] %vm669_vm3, %v2688_v18 }
  0xdc   : > { %v13103_v25 = vpop.eup %13102  ;;  %v2241_v27 = vadd.f32 %v13101_v10, %v2240_v22  ;;  %v10088_v28 = vmul.f32 -1.442695, %v13857_v24 }
  0xdd   : > { %v13105_v29 = vpop.eup %13104  ;;  %v2179_v30 = vadd.f32 1.0, %v13103_v25 }
  0xde   : > { %v2245_v31 = vsel %vm2244_vm15, %v13101_v10, %v2241_v27  ;;  %v2253_v32 = vmul.f32 %v13105_v29, %v2178_v12  ;;  %13106 = vpow2.f32 %v10088_v28  ;;  %vm2258_vm1 = vweird.f32 %v13105_v29 }
  0xdf   : > { %v2250_v33 = vsel %vm2247_vm0, %v2249_v26, %v2245_v31  ;;  %13108 = vrcp.f32 %v2179_v30  ;;  %vm2259_vm5 = vmor %vm2257_vm4, %vm2258_vm1  ;;  %vm2272_vm7 = vweird.f32 %v2179_v30  ;;  %v2278_v60 = vand.u32 2147483648, %v2179_v30 }
  0xe0   : > { %v2689_v34 = vmul.f32 %v2250_v33, %v13817_v38  ;;  %v2254_v35 = vsub.f32 1.0, %v2253_v32  ;;  %v12606_v38 = vld [vmem:[%s17880_s6 + $0x58] sm:$0xff]  ;;  %v2276_v63 = vand.u32 2147483647, %v2179_v30 }
  0xe1   : > { %v2014_v39 = vpop.f32.mrf.mxu1  ;;  %v2279_v3 = vor.u32 1.1754944e-38, %v2278_v60 }
  0xe2   : > { %2721 = vst.msk [vmem:[%s13843_s25 + $0x10] sm:$0xff] %vm669_vm3, %v2689_v34  ;;  %v2255_v41 = vmul.f32 %v13105_v29, %v2254_v35  ;;  %v13868_v42 = vadd.f32 %v13749_v17, %v2014_v39  ;;  %v2790_v43 = vld [vmem:[#allocation2 + $0x1] ss:$2 sm:$0xff]  ;;  %v2783_v44 = vld [vmem:[#allocation2] ss:$2 sm:$0xff]  ;;  %vm2277_vm10 = vcmp.eq.f32.partialorder %v2276_v63, 8.507059e+37 }
  0xe3   : > { %2753 = vst.msk [vmem:[#allocation2 + $0x18] sm:$0xff] %vm669_vm3, %v2689_v34  ;;  %v2791_v45 = vpack.c.bf16 %v2790_v43, %v2790_v43  ;;  %v2784_v46 = vpack.c.bf16 %v2783_v44, %v2783_v44  ;;  %v2854_v15 = vld [vmem:[#allocation2 + $0x2] ss:$2 sm:$0xff] }
  0xe4   : > { %v13107_v47 = vpop.eup %13106  ;;  %v2256_v48 = vadd.f32 %v13105_v29, %v2255_v41  ;;  %v10089_v50 = vmul.f32 -1.442695, %v13868_v42  ;;  %10078 = vmatmul.msk.bf16.gmra.mxu1 %vm886_vm2, %v12588_v51  ;;  %v2855_v25 = vpack.c.bf16 %v2854_v15, %v2854_v15 }
  0xe5   : > { %v13109_v52 = vpop.eup %13108  ;;  %v13876_v54 = vadd.f32 1.0, %v13107_v47  ;;  %10127 = vmatmul.msk.bf16.vlgmr.msrb.gmra.mxu2 %vm669_vm3, %v2791_v45  ;;  %10136 = vmatmul.msk.bf16.vlgmr.msra.gmra.mxu3 %vm669_vm3, %v2784_v46 }
  0xe6   : > { %v2260_v55 = vsel %vm2259_vm5, %v13105_v29, %v2256_v48  ;;  %v2268_v56 = vmul.f32 %v13109_v52, %v2179_v30  ;;  %13110 = vpow2.f32 %v10089_v50  ;;  %2956 = vmatpush.bf16.msrb.mxu2 %v12604_v40  ;;  %2993 = vmatpush.bf16.msra.mxu3 %v12606_v38  ;;  %vm2273_vm8 = vweird.f32 %v13109_v52  ;;  %v12589_v30 = vld [vmem:[%s13646_s20 + $0x60] sm:$0xff] }
  0xe7   : > { %v2265_v59 = vsel %vm2262_vm6, %v2264_v53, %v2260_v55  ;;  %13112 = vrcp.f32 %v13876_v54  ;;  %vm2274_vm9 = vmor %vm2272_vm7, %vm2273_vm8  ;;  %v2291_v16 = vand.u32 2147483647, %v13876_v54  ;;  %v2293_v18 = vand.u32 2147483648, %v13876_v54 }
  0xe8   : > { %v2690_v61 = vmul.f32 %v2265_v59, %v13825_v49  ;;  %v2269_v62 = vsub.f32 1.0, %v2268_v56  ;;  %vm2287_vm11 = vweird.f32 %v13876_v54 }
  0xe9   : > { %v2016_v0 = vpop.f32.mrf.mxu1  ;;  %v2294_v32 = vor.u32 1.1754944e-38, %v2293_v18  ;;  %vm2292_vm14 = vcmp.eq.f32.partialorder %v2291_v16, 8.507059e+37  ;;  %v12611_v18 = vld [vmem:[%s17880_s6 + $0x80] sm:$0xff] }
  0xea   : > { %2722 = vst.msk [vmem:[%s13843_s25 + $0x18] sm:$0xff] %vm669_vm3, %v2690_v61  ;;  %v2270_v1 = vmul.f32 %v13109_v52, %v2269_v62  ;;  %v13892_v2 = vadd.f32 %v13749_v17, %v2016_v0  ;;  %2957 = vmatpush.bf16.msrb.mxu2 %v12603_v57  ;;  %2994 = vmatpush.bf16.msra.mxu3 %v12605_v58 }
  0xeb   : > { %2754 = vst.msk [vmem:[#allocation2 + $0x20] sm:$0xff] %vm669_vm3, %v2690_v61 }
  0xec   : > { %v13111_v4 = vpop.eup %13110  ;;  %v2271_v5 = vadd.f32 %v13109_v52, %v2270_v1  ;;  %v10090_v49 = vmul.f32 -1.442695, %v13892_v2 }
  0xed   : > { %v13113_v7 = vpop.eup %13112  ;;  %v2181_v8 = vadd.f32 1.0, %v13111_v4 }
  0xee   : > { %v2275_v9 = vsel %vm2274_vm9, %v13109_v52, %v2271_v5  ;;  %v2283_v10 = vmul.f32 %v13113_v7, %v13876_v54  ;;  %13114 = vpow2.f32 %v10090_v49  ;;  %vm2288_vm12 = vweird.f32 %v13113_v7 }
  0xef   : > { %v2280_v11 = vsel %vm2277_vm10, %v2279_v3, %v2275_v9  ;;  %13116 = vrcp.f32 %v2181_v8  ;;  %vm2289_vm13 = vmor %vm2287_vm11, %vm2288_vm12  ;;  %vm2302_vm15 = vweird.f32 %v2181_v8  ;;  %v2308_v40 = vand.u32 2147483648, %v2181_v8  ;;  %v12612_v3 = vld [vmem:[%s17880_s6 + $0x88] sm:$0xff] }
  0xf0   : > { %v2691_v12 = vmul.f32 %v2280_v11, %v13848_v6  ;;  %v2284_v13 = vsub.f32 1.0, %v2283_v10  ;;  %v12608_v6 = vld [vmem:[%s17880_s6 + $0x68] sm:$0xff]  ;;  %v2306_v44 = vand.u32 2147483647, %v2181_v8 }
  0xf1   : > { %v2019_v19 = vpop.f32.mrf.mxu1  ;;  %v2309_v47 = vor.u32 1.1754944e-38, %v2308_v40  ;;  %v12590_v11 = vld [vmem:[%s13646_s20 + $0x68] sm:$0xff] }
  0xf2   : > { %2723 = vst.msk [vmem:[%s13843_s25 + $0x20] sm:$0xff] %vm669_vm3, %v2691_v12  ;;  %v2285_v20 = vmul.f32 %v13113_v7, %v2284_v13  ;;  %v13905_v21 = vadd.f32 %v13749_v17, %v2019_v19  ;;  %v2891_v22 = vld [vmem:[#allocation2 + $0x18] ss:$2 sm:$0xff]  ;;  %vm2307_vm4 = vcmp.eq.f32.partialorder %v2306_v44, 8.507059e+37  ;;  %v2928_v58 = vld [vmem:[#allocation2 + $0x19] ss:$2 sm:$0xff] }
  0xf3   : > { %2755 = vst.msk [vmem:[#allocation2 + $0x30] sm:$0xff] %vm669_vm3, %v2691_v12  ;;  %v2892_v27 = vpack.c.bf16 %v2891_v22, %v2891_v22  ;;  %v2965_v62 = vld [vmem:[#allocation2 + $0x1a] ss:$2 sm:$0xff]  ;;  %v2929_v49 = vpack.c.bf16 %v2928_v58, %v2928_v58  ;;  %v12615_v19 = vld [vmem:[%s17880_s6 + $0x10] sm:$0xff] }
  0xf4   : > { %v13115_v28 = vpop.eup %13114  ;;  %v2286_v29 = vadd.f32 %v13113_v7, %v2285_v20  ;;  %v10091_v26 = vmul.f32 -1.442695, %v13905_v21  ;;  %10079 = vmatmul.msk.bf16.gmra.mxu1 %vm886_vm2, %v12589_v30 }
  0xf5   : > { %v13117_v31 = vpop.eup %13116  ;;  %v13916_v33 = vadd.f32 1.0, %v13115_v28  ;;  %10149 = vmatmul.msk.bf16.vlgmr.msra.gmra.mxu2 %vm669_vm3, %v2855_v25  ;;  %10162 = vmatmul.msk.bf16.vlgmr.msrb.gmra.mxu3 %vm669_vm3, %v2892_v27 }
  0xf6   : > { %v2290_v34 = vsel %vm2289_vm13, %v13113_v7, %v2286_v29  ;;  %v2298_v35 = vmul.f32 %v13117_v31, %v2181_v8  ;;  %13118 = vpow2.f32 %v10091_v26  ;;  %3030 = vmatpush.bf16.msra.mxu2 %v12608_v6  ;;  %3067 = vmatpush.bf16.msrb.mxu3 %v12610_v23  ;;  %vm2303_vm0 = vweird.f32 %v13117_v31 }
  0xf7   : > { %v2295_v39 = vsel %vm2292_vm14, %v2294_v32, %v2290_v34  ;;  %13120 = vrcp.f32 %v13916_v33  ;;  %vm2304_vm1 = vmor %vm2302_vm15, %vm2303_vm0  ;;  %vm2317_vm5 = vweird.f32 %v13916_v33  ;;  %v2323_v57 = vand.u32 2147483648, %v13916_v33 }
  0xf8   : > { %v2692_v41 = vmul.f32 %v2295_v39, %v13857_v24  ;;  %v2299_v43 = vsub.f32 1.0, %v2298_v35  ;;  %v12660_v24 = vld [vmem:[%s17880_s6 + $0x58] sm:$0xff]  ;;  %v2321_v61 = vand.u32 2147483647, %v13916_v33  ;;  %v2966_v7 = vpack.c.bf16 %v2965_v62, %v2965_v62  ;;  %v12617_v62 = vld [vmem:[%s17880_s6 + $0x20] sm:$0xff] }
  0xf9   : > { %v2021_v38 = vpop.f32.mrf.mxu1  ;;  %4034 = vmatpush.bf16.msrb.mxu1 %v12660_v24  ;;  %v2324_v5 = vor.u32 1.1754944e-38, %v2323_v57  ;;  %v12614_v24 = vld [vmem:[%s17880_s6 + $0x8] sm:$0xff] }
  0xfa   : > { %2724 = vst.msk [vmem:[%s13843_s25 + $0x28] sm:$0xff] %vm669_vm3, %v2692_v41  ;;  %v2300_v45 = vmul.f32 %v13117_v31, %v2299_v43  ;;  %v13932_v46 = vadd.f32 %v13749_v17, %v2021_v38  ;;  %3031 = vmatpush.bf16.msra.mxu2 %v12607_v36  ;;  %3068 = vmatpush.bf16.msrb.mxu3 %v12609_v37  ;;  %vm2322_vm8 = vcmp.eq.f32.partialorder %v2321_v61, 8.507059e+37  ;;  %v12613_v61 = vld [vmem:[%s17880_s6] sm:$0xff] }
  0xfb   : > { %2756 = vst.msk [vmem:[#allocation2 + $0x38] sm:$0xff] %vm669_vm3, %v2692_v41 }
  0xfc   : > { %v13119_v48 = vpop.eup %13118  ;;  %v2301_v50 = vadd.f32 %v13117_v31, %v2300_v45  ;;  %v10092_v51 = vmul.f32 -1.442695, %v13932_v46 }
  0xfd   : > { %v13121_v52 = vpop.eup %13120  ;;  %v2183_v53 = vadd.f32 1.0, %v13119_v48  ;;  %v12592_v48 = vld [vmem:[%s13646_s20 + $0x78] sm:$0xff] }
  0xfe   : > { %v2305_v54 = vsel %vm2304_vm1, %v13117_v31, %v2301_v50  ;;  %v2313_v55 = vmul.f32 %v13121_v52, %v13916_v33  ;;  %13122 = vpow2.f32 %v10092_v51  ;;  %vm2318_vm6 = vweird.f32 %v13121_v52 }
  0xff   : > { %v2310_v56 = vsel %vm2307_vm4, %v2309_v47, %v2305_v54  ;;  %13124 = vrcp.f32 %v2183_v53  ;;  %vm13959_vm7 = vmor %vm2317_vm5, %vm2318_vm6  ;;  %vm2332_vm9 = vweird.f32 %v2183_v53  ;;  %v2338_v22 = vand.u32 2147483648, %v2183_v53 }
 0x100   : > { %v2693_v59 = vmul.f32 %v2310_v56, %v13868_v42  ;;  %v2314_v60 = vsub.f32 1.0, %v2313_v55  ;;  %v12616_v42 = vld [vmem:[%s17880_s6 + $0x18] sm:$0xff]  ;;  %v2336_v25 = vand.u32 2147483647, %v2183_v53  ;;  %v12591_v56 = vld [vmem:[%s13646_s20 + $0x70] sm:$0xff] }
 0x101   : > { %v2024_v63 = vpop.f32.mrf.mxu1  ;;  %v2339_v26 = vor.u32 1.1754944e-38, %v2338_v22 }
 0x102   : > { %2725 = vst.msk [vmem:[%s13843_s25 + $0x30] sm:$0xff] %vm669_vm3, %v2693_v59  ;;  %v2315_v0 = vmul.f32 %v13121_v52, %v2314_v60  ;;  %v13948_v1 = vadd.f32 %v13749_v17, %v2024_v63  ;;  %vm2337_vm12 = vcmp.eq.f32.partialorder %v2336_v25, 8.507059e+37  ;;  %v3002_v39 = vld [vmem:[#allocation2 + $0x30] ss:$2 sm:$0xff]  ;;  %v3039_v44 = vld [vmem:[#allocation2 + $0x31] ss:$2 sm:$0xff] }
 0x103   : > { %2757 = vst.msk [vmem:[#allocation2 + $0x48] sm:$0xff] %vm669_vm3, %v2693_v59  ;;  %v3003_v51 = vpack.c.bf16 %v3002_v39, %v3002_v39 }
 0x104   : > { %v13123_v8 = vpop.eup %13122  ;;  %v2316_v9 = vadd.f32 %v13121_v52, %v2315_v0  ;;  %v10093_v10 = vmul.f32 -1.442695, %v13948_v1  ;;  %10080 = vmatmul.msk.bf16.gmra.mxu1 %vm886_vm2, %v12590_v11 }
 0x105   : > { %v13125_v12 = vpop.eup %13124  ;;  %v2184_v13 = vadd.f32 1.0, %v13123_v8  ;;  %10175 = vmatmul.msk.bf16.vlgmr.msrb.gmra.mxu2 %vm669_vm3, %v2929_v49  ;;  %10188 = vmatmul.msk.bf16.vlgmr.msra.gmra.mxu3 %vm669_vm3, %v2966_v7 }
 0x106   : > { %v2320_v15 = vsel %vm13959_vm7, %v13121_v52, %v2316_v9  ;;  %v2328_v16 = vmul.f32 %v13125_v12, %v2183_v53  ;;  %13126 = vpow2.f32 %v10093_v10  ;;  %3104 = vmatpush.bf16.msrb.mxu2 %v12612_v3  ;;  %3172 = vmatpush.bf16.msra.mxu3 %v12616_v42  ;;  %vm2333_vm10 = vweird.f32 %v13125_v12 }
 0x107   : > { %v2325_v20 = vsel %vm2322_vm8, %v2324_v5, %v2320_v15  ;;  %13128 = vrcp.f32 %v2184_v13  ;;  %vm2334_vm11 = vmor %vm2332_vm9, %vm2333_vm10  ;;  %vm2347_vm13 = vweird.f32 %v2184_v13  ;;  %v2353_v37 = vand.u32 2147483648, %v2184_v13 }
 0x108   : > { %v2694_v6 = vmul.f32 %v2325_v20, %v13892_v2  ;;  %v2329_v23 = vsub.f32 1.0, %v2328_v16  ;;  %v2351_v43 = vand.u32 2147483647, %v2184_v13  ;;  %v3040_v52 = vpack.c.bf16 %v3039_v44, %v3039_v44 }
 0x109   : > { %v2026_v27 = vpop.f32.mrf.mxu1  ;;  %v2354_v50 = vor.u32 1.1754944e-38, %v2353_v37 }
 0x10a   : > { %2726 = vst.msk [vmem:[%s13843_s25 + $0x38] sm:$0xff] %vm669_vm3, %v2694_v6  ;;  %v2330_v28 = vmul.f32 %v13125_v12, %v2329_v23  ;;  %v13980_v29 = vadd.f32 %v13749_v17, %v2026_v27  ;;  %3105 = vmatpush.bf16.msrb.mxu2 %v12611_v18  ;;  %3173 = vmatpush.bf16.msra.mxu3 %v12615_v19  ;;  %vm2352_vm0 = vcmp.eq.f32.partialorder %v2351_v43, 8.507059e+37  ;;  %v3076_v19 = vld [vmem:[#allocation2 + $0x32] ss:$2 sm:$0xff]  ;;  %v3145_v23 = vld [vmem:[#allocation2 + $0x31] ss:$2 sm:$0xff] }
 0x10b   : > { %2758 = vst.msk [vmem:[#allocation2 + $0x50] sm:$0xff] %vm669_vm3, %v2694_v6  ;;  %v12621_v43 = vld [vmem:[%s17880_s6 + $0x40] sm:$0xff] }
 0x10c   : > { %v13127_v30 = vpop.eup %13126  ;;  %v2331_v31 = vadd.f32 %v13125_v12, %v2330_v28  ;;  %v10094_v2 = vmul.f32 -1.442695, %v13980_v29 }
 0x10d   : > { %v13129_v32 = vpop.eup %13128  ;;  %v2185_v33 = vadd.f32 1.0, %v13127_v30  ;;  %v12622_v30 = vld [vmem:[%s17880_s6 + $0x48] sm:$0xff] }
 0x10e   : > { %v2335_v34 = vsel %vm2334_vm11, %v13125_v12, %v2331_v31  ;;  %v2343_v35 = vmul.f32 %v13129_v32, %v2184_v13  ;;  %13130 = vpow2.f32 %v10094_v2  ;;  %vm2348_vm14 = vweird.f32 %v13129_v32 }
 0x10f   : > { %v2340_v36 = vsel %vm2337_vm12, %v2339_v26, %v2335_v34  ;;  %13132 = vrcp.f32 %v2185_v33  ;;  %vm13999_vm15 = vmor %vm2347_vm13, %vm2348_vm14  ;;  %vm2362_vm1 = vweird.f32 %v2185_v33  ;;  %v2368_v0 = vand.u32 2147483648, %v2185_v33  ;;  %v12620_v26 = vld [vmem:[%s17880_s6 + $0x38] sm:$0xff] }
 0x110   : > { %v2695_v40 = vmul.f32 %v2340_v36, %v13905_v21  ;;  %v2344_v41 = vsub.f32 1.0, %v2343_v35  ;;  %v12618_v21 = vld [vmem:[%s17880_s6 + $0x28] sm:$0xff]  ;;  %v2366_v4 = vand.u32 2147483647, %v2185_v33  ;;  %v3077_v2 = vpack.c.bf16 %v3076_v19, %v3076_v19  ;;  %v12659_v19 = vld [vmem:[%s17880_s6 + $0x50] sm:$0xff] }
 0x111   : > { %v2029_v38 = vpop.f32.mrf.mxu1  ;;  %v2369_v8 = vor.u32 1.1754944e-38, %v2368_v0  ;;  %4035 = vmatpush.bf16.msrb.mxu1 %v12659_v19 }
 0x112   : > { %2727 = vst.msk [vmem:[%s13843_s25 + $0x40] sm:$0xff] %vm669_vm3, %v2695_v40  ;;  %v2345_v45 = vmul.f32 %v13129_v32, %v2344_v41  ;;  %v13989_v47 = vadd.f32 %v13749_v17, %v2029_v38  ;;  %vm2367_vm6 = vcmp.eq.f32.partialorder %v2366_v4, 8.507059e+37  ;;  %v12619_v41 = vld [vmem:[%s17880_s6 + $0x30] sm:$0xff] }
 0x113   : > { %2759 = vst.msk [vmem:[#allocation2 + $0x60] sm:$0xff] %vm669_vm3, %v2695_v40 }
 0x114   : > { %v13131_v53 = vpop.eup %13130  ;;  %v2346_v54 = vadd.f32 %v13129_v32, %v2345_v45  ;;  %v10095_v55 = vmul.f32 -1.442695, %v13989_v47  ;;  %10081 = vmatmul.msk.bf16.gmra.mxu1 %vm886_vm2, %v12591_v56 }
 0x115   : > { %v13133_v57 = vpop.eup %13132  ;;  %v2186_v58 = vadd.f32 1.0, %v13131_v53  ;;  %10201 = vmatmul.msk.bf16.vlgmr.msra.gmra.mxu2 %vm669_vm3, %v3003_v51  ;;  %10214 = vmatmul.msk.bf16.vlgmr.msrb.gmra.mxu3 %vm669_vm3, %v3040_v52 }
 0x116   : > { %v2350_v59 = vsel %vm13999_vm15, %v13129_v32, %v2346_v54  ;;  %v2358_v60 = vmul.f32 %v13133_v57, %v2185_v33  ;;  %13134 = vpow2.f32 %v10095_v55  ;;  %3200 = vmatpush.bf16.msra.mxu2 %v12614_v24  ;;  %3234 = vmatpush.bf16.msrb.mxu3 %v12618_v21  ;;  %vm2363_vm4 = vweird.f32 %v13133_v57 }
 0x117   : > { %v2355_v63 = vsel %vm2352_vm0, %v2354_v50, %v2350_v59  ;;  %13136 = vrcp.f32 %v2186_v58  ;;  %vm2364_vm5 = vmor %vm2362_vm1, %vm2363_vm4  ;;  %vm2377_vm7 = vweird.f32 %v2186_v58  ;;  %v2383_v18 = vand.u32 2147483648, %v2186_v58 }
 0x118   : > { %v2696_v3 = vmul.f32 %v2355_v63, %v13932_v46  ;;  %v2359_v42 = vsub.f32 1.0, %v2358_v60  ;;  %v2381_v6 = vand.u32 2147483647, %v2186_v58  ;;  %v3146_v32 = vpack.c.bf16 %v3145_v23, %v3145_v23  ;;  %v12625_v23 = vld [vmem:[%s17880_s6 + $0x60] sm:$0xff] }
 0x119   : > { %v2031_v5 = vpop.f32.mrf.mxu1  ;;  %v2384_v31 = vor.u32 1.1754944e-38, %v2383_v18 }
 0x11a   : > { %2728 = vst.msk [vmem:[%s13843_s25 + $0x48] sm:$0xff] %vm669_vm3, %v2696_v3  ;;  %v2360_v49 = vmul.f32 %v13133_v57, %v2359_v42  ;;  %v14020_v7 = vadd.f32 %v13749_v17, %v2031_v5  ;;  %3201 = vmatpush.bf16.msra.mxu2 %v12613_v61  ;;  %3235 = vmatpush.bf16.msrb.mxu3 %v12617_v62  ;;  %vm2382_vm10 = vcmp.eq.f32.partialorder %v2381_v6, 8.507059e+37  ;;  %v3139_v62 = vld [vmem:[#allocation2 + $0x30] ss:$2 sm:$0xff] }
 0x11b   : > { %2760 = vst.msk [vmem:[#allocation2 + $0x68] sm:$0xff] %vm669_vm3, %v2696_v3  ;;  %v3207_v42 = vld [vmem:[#allocation2 + $0x32] ss:$2 sm:$0xff] }
 0x11c   : > { %v13135_v9 = vpop.eup %13134  ;;  %v2361_v10 = vadd.f32 %v13133_v57, %v2360_v49  ;;  %v10096_v46 = vmul.f32 -1.442695, %v14020_v7  ;;  %v12623_v6 = vld [vmem:[%s17880_s6 + $0x50] sm:$0xff] }
 0x11d   : > { %v13137_v11 = vpop.eup %13136  ;;  %v2187_v12 = vadd.f32 1.0, %v13135_v9  ;;  %v12626_v9 = vld [vmem:[%s17880_s6 + $0x68] sm:$0xff] }
 0x11e   : > { %v2365_v13 = vsel %vm2364_vm5, %v13133_v57, %v2361_v10  ;;  %v2373_v15 = vmul.f32 %v13137_v11, %v2186_v58  ;;  %13138 = vpow2.f32 %v10096_v46  ;;  %vm2378_vm8 = vweird.f32 %v13137_v11 }
 0x11f   : > { %v2370_v16 = vsel %vm2367_vm6, %v2369_v8, %v2365_v13  ;;  %13140 = vrcp.f32 %v2187_v12  ;;  %vm14039_vm9 = vmor %vm2377_vm7, %vm2378_vm8  ;;  %vm2392_vm11 = vweird.f32 %v2187_v12  ;;  %v2398_v38 = vand.u32 2147483648, %v2187_v12  ;;  %v12624_v8 = vld [vmem:[%s17880_s6 + $0x58] sm:$0xff] }
 0x120   : > { %v2697_v20 = vmul.f32 %v2370_v16, %v13948_v1  ;;  %v2374_v22 = vsub.f32 1.0, %v2373_v15  ;;  %v2396_v21 = vand.u32 2147483647, %v2187_v12  ;;  %v3140_v46 = vpack.c.bf16 %v3139_v62, %v3139_v62  ;;  %v13073_v62 = vld [vmem:[%s17893_s0] ss:$0 sm:$0xff]  ;;  %s17895_s0 = sshll.u32 %s13637_s24, 10 }
 0x121   : > { %v2034_v25 = vpop.f32.mrf.mxu1  ;;  %v2399_v53 = vor.u32 1.1754944e-38, %v2398_v38  ;;  %s14179_s28 = scalar_lea.vmem %s17896_s14, %s17895_s0  ;;  %s9857_s0 = sshll.u32 %s13822_s27, 6 }
 0x122   : > { %2729 = vst.msk [vmem:[%s13843_s25 + $0x50] sm:$0xff] %vm669_vm3, %v2697_v20  ;;  %v2375_v27 = vmul.f32 %v13137_v11, %v2374_v22  ;;  %v14029_v28 = vadd.f32 %v13749_v17, %v2034_v25  ;;  %vm2397_vm14 = vcmp.eq.f32.partialorder %v2396_v21, 8.507059e+37  ;;  %s14814_s23 = scalar_lea.vmem [#allocation8], %s9857_s0  ;;  %s15826_s24 = scalar_lea.vmem [#allocation10], %s9858_s26 }
 0x123   : > { %2761 = vst.msk [vmem:[#allocation2 + $0x78] sm:$0xff] %vm669_vm3, %v2697_v20  ;;  %s9531_s14 = sand.u32 1, %s13600_s1   ;;  %s9579_s26 = sshll.u32 %s14814_s23, 4  ;;  %s9580_s26 = int_to_ptr.vmem [resolvable:$true] %s9579_s26 }
 0x124   : > { %v13139_v33 = vpop.eup %13138  ;;  %v2376_v34 = vadd.f32 %v13137_v11, %v2375_v27  ;;  %v10097_v35 = vmul.f32 -1.442695, %v14029_v28  ;;  %10082 = vmatmul.msk.bf16.gmra.mxu1 %vm886_vm2, %v12592_v48  ;;  %v12666_v48 = vld [vmem:[%s17880_s6 + $0x88] sm:$0xff]  ;;  %s17640_s22 = scalar_lea.sflag [#allocation9], %s9531_s14 }
 0x125   : > { %v13141_v36 = vpop.eup %13140  ;;  %v2188_v37 = vadd.f32 1.0, %v13139_v33  ;;  %10227 = vmatmul.msk.bf16.vlgmr.msrb.gmra.mxu2 %vm669_vm3, %v3077_v2  ;;  %10241 = vmatmul.msk.bf16.vlgmr.msra.gmra.mxu3 %vm669_vm3, %v3146_v32 }
 0x126   : > { %v2380_v39 = vsel %vm14039_vm9, %v13137_v11, %v2376_v34  ;;  %v2388_v40 = vmul.f32 %v13141_v36, %v2187_v12  ;;  %13142 = vpow2.f32 %v10097_v35  ;;  %3270 = vmatpush.bf16.msrb.mxu2 %v12620_v26  ;;  %3306 = vmatpush.bf16.msra.mxu3 %v12622_v30  ;;  %vm2393_vm12 = vweird.f32 %v13141_v36 }
 0x127   : > { %v2385_v44 = vsel %vm2382_vm10, %v2384_v31, %v2380_v39  ;;  %13144 = vrcp.f32 %v2188_v37  ;;  %vm2394_vm13 = vmor %vm2392_vm11, %vm2393_vm12  ;;  %vm2407_vm15 = vweird.f32 %v2188_v37  ;;  %v2413_v61 = vand.u32 2147483648, %v2188_v37  ;;  %4142 = vmatpush.bf16.msra.mxu1 %v12666_v48 }
 0x128   : > { %v2698_v45 = vmul.f32 %v2385_v44, %v13980_v29  ;;  %v2389_v24 = vsub.f32 1.0, %v2388_v40  ;;  %v2411_v3 = vand.u32 2147483647, %v2188_v37  ;;  %v3208_v11 = vpack.c.bf16 %v3207_v42, %v3207_v42  ;;  %v12665_v42 = vld [vmem:[%s17880_s6 + $0x80] sm:$0xff] }
 0x129   : > { %v2036_v50 = vpop.f32.mrf.mxu1  ;;  %v2414_v10 = vor.u32 1.1754944e-38, %v2413_v61 }
 0x12a   : > { %2730 = vst.msk [vmem:[%s13843_s25 + $0x58] sm:$0xff] %vm669_vm3, %v2698_v45  ;;  %v2390_v51 = vmul.f32 %v13141_v36, %v2389_v24  ;;  %v14059_v52 = vadd.f32 %v13749_v17, %v2036_v50  ;;  %3271 = vmatpush.bf16.msrb.mxu2 %v12619_v41  ;;  %3307 = vmatpush.bf16.msra.mxu3 %v12621_v43  ;;  %vm2412_vm4 = vcmp.eq.f32.partialorder %v2411_v3, 8.507059e+37  ;;  %v3243_v43 = vld [vmem:[#allocation2 + $0x48] ss:$2 sm:$0xff]  ;;  %v3279_v24 = vld [vmem:[#allocation2 + $0x49] ss:$2 sm:$0xff]  ;;  %v1673_v3 = vpop.f32.mrf.mxu2 }
 0x12b   : > { %2762 = vst.msk [vmem:[#allocation2 + $0x80] sm:$0xff] %vm669_vm3, %v2698_v45  ;;  %4143 = vmatpush.bf16.msra.mxu1 %v12665_v42 }
 0x12c   : > { %v13143_v29 = vpop.eup %13142  ;;  %v2391_v54 = vadd.f32 %v13141_v36, %v2390_v51  ;;  %v10098_v55 = vmul.f32 -1.442695, %v14059_v52  ;;  %v14125_v51 = vld [vmem:[%s17877_s5] ss:$0 sm:$0xff]  ;;  %s12571_s5 = sshll.u32 %s13600_s1, 2 }
 0x12d   : > { %v13145_v56 = vpop.eup %13144  ;;  %v2189_v57 = vadd.f32 1.0, %v13143_v29  ;;  %v12630_v29 = vld [vmem:[%s17880_s6 + $0x88] sm:$0xff] }
 0x12e   : > { %v2395_v58 = vsel %vm2394_vm13, %v13141_v36, %v2391_v54  ;;  %v2403_v59 = vmul.f32 %v13145_v56, %v2188_v37  ;;  %13146 = vpow2.f32 %v10098_v55  ;;  %vm2408_vm0 = vweird.f32 %v13145_v56  ;;  %v12633_v54 = vld [vmem:[%s17880_s6 + $0x10] sm:$0xff] }
 0x12f   : > { %v2400_v60 = vsel %vm2397_vm14, %v2399_v53, %v2395_v58  ;;  %13148 = vrcp.f32 %v2189_v57  ;;  %vm14079_vm1 = vmor %vm2407_vm15, %vm2408_vm0  ;;  %vm2422_vm5 = vweird.f32 %v2189_v57  ;;  %v2428_v27 = vand.u32 2147483648, %v2189_v57  ;;  %v12628_v53 = vld [vmem:[%s17880_s6 + $0x78] sm:$0xff] }
 0x130   : > { %v2699_v63 = vmul.f32 %v2400_v60, %v13989_v47  ;;  %v2404_v0 = vsub.f32 1.0, %v2403_v59  ;;  %v2426_v1 = vand.u32 2147483647, %v2189_v57 }
 0x131   : > { %v2039_v4 = vpop.f32.mrf.mxu1  ;;  %v2429_v33 = vor.u32 1.1754944e-38, %v2428_v27 }
 0x132   : > { %2731 = vst.msk [vmem:[%s13843_s25 + $0x60] sm:$0xff] %vm669_vm3, %v2699_v63  ;;  %v2405_v5 = vmul.f32 %v13145_v56, %v2404_v0  ;;  %v14069_v49 = vadd.f32 %v13749_v17, %v2039_v4  ;;  %vm2427_vm8 = vcmp.eq.f32.partialorder %v2426_v1, 8.507059e+37  ;;  %v3315_v1 = vld [vmem:[#allocation2 + $0x4a] ss:$2 sm:$0xff] }
 0x133   : > { %2763 = vst.msk [vmem:[#allocation2 + $0x90] sm:$0xff] %vm669_vm3, %v2699_v63 }
 0x134   : > { %v13147_v12 = vpop.eup %13146  ;;  %v2406_v13 = vadd.f32 %v13145_v56, %v2405_v5  ;;  %v10099_v15 = vmul.f32 -1.442695, %v14069_v49 }
 0x135   : > { %v13149_v16 = vpop.eup %13148  ;;  %v14084_v18 = vadd.f32 1.0, %v13147_v12  ;;  %10250 = vmatmul.msk.bf16.vlgmr.msra.gmra.mxu2 %vm669_vm3, %v3140_v46  ;;  %10263 = vmatmul.msk.bf16.vlgmr.msrb.gmra.mxu3 %vm669_vm3, %v3208_v11 }
 0x136   : > { %v2410_v20 = vsel %vm14079_vm1, %v13145_v56, %v2406_v13  ;;  %v2418_v22 = vmul.f32 %v13149_v16, %v2189_v57  ;;  %13150 = vpow2.f32 %v10099_v15  ;;  %3342 = vmatpush.bf16.msra.mxu2 %v12624_v8  ;;  %3378 = vmatpush.bf16.msrb.mxu3 %v12626_v9  ;;  %vm2423_vm6 = vweird.f32 %v13149_v16  ;;  %v12627_v8 = vld [vmem:[%s17880_s6 + $0x70] sm:$0xff]  ;;  %v12629_v9 = vld [vmem:[%s17880_s6 + $0x80] sm:$0xff] }
 0x137   : > { %v2415_v25 = vsel %vm2412_vm4, %v2414_v10, %v2410_v20  ;;  %13152 = vrcp.f32 %v14084_v18  ;;  %vm2424_vm7 = vmor %vm2422_vm5, %vm2423_vm6  ;;  %vm2437_vm9 = vweird.f32 %v14084_v18  ;;  %v2443_v41 = vand.u32 2147483648, %v14084_v18 }
 0x138   : > { %v2700_v26 = vmul.f32 %v2415_v25, %v14020_v7  ;;  %v2419_v30 = vsub.f32 1.0, %v2418_v22  ;;  %v2441_v45 = vand.u32 2147483647, %v14084_v18  ;;  %v3244_v56 = vpack.c.bf16 %v3243_v43, %v3243_v43 }
 0x139   : > { %v2041_v31 = vpop.f32.mrf.mxu1  ;;  %v2444_v55 = vor.u32 1.1754944e-38, %v2443_v41  ;;  %v3280_v57 = vpack.c.bf16 %v3279_v24, %v3279_v24  ;;  %v1674_v13 = vadd.f32 %v13073_v62, %v1673_v3 }
 0x13a   : > { %2732 = vst.msk [vmem:[%s13843_s25 + $0x68] sm:$0xff] %vm669_vm3, %v2700_v26  ;;  %v2420_v2 = vmul.f32 %v13149_v16, %v2419_v30  ;;  %v14104_v32 = vadd.f32 %v13749_v17, %v2041_v31  ;;  %3343 = vmatpush.bf16.msra.mxu2 %v12623_v6  ;;  %3379 = vmatpush.bf16.msrb.mxu3 %v12625_v23  ;;  %vm14143_vm12 = vcmp.eq.f32.partialorder %v2441_v45, 8.507059e+37 }
 0x13b   : > { %2764 = vst.msk [vmem:[#allocation2 + $0x98] sm:$0xff] %vm669_vm3, %v2700_v26 }
 0x13c   : > { %v13151_v34 = vpop.eup %13150  ;;  %v2421_v35 = vadd.f32 %v13149_v16, %v2420_v2  ;;  %v10100_v7 = vmul.f32 -1.442695, %v14104_v32  ;;  %1803 = vst.msk [vmem:[%s14179_s28 + $0x3f8] sm:$0xff] %vm669_vm3, %v1674_v13 }
 0x13d   : > { %v13153_v36 = vpop.eup %13152  ;;  %v14109_v37 = vadd.f32 1.0, %v13151_v34  ;;  %v3351_v34 = vld [vmem:[#allocation2 + $0x60] ss:$2 sm:$0xff] }
 0x13e   : > { %v2425_v39 = vsel %vm2424_vm7, %v13149_v16, %v2421_v35  ;;  %v2433_v17 = vmul.f32 %v13153_v36, %v14084_v18  ;;  %13154 = vpow2.f32 %v10100_v7  ;;  %vm2438_vm10 = vweird.f32 %v13153_v36 }
 0x13f   : > { %v2430_v40 = vsel %vm2427_vm8, %v2429_v33, %v2425_v39  ;;  %13156 = vrcp.f32 %v14109_v37  ;;  %vm14139_vm11 = vmor %vm2437_vm9, %vm2438_vm10  ;;  %vm2452_vm13 = vweird.f32 %v14109_v37  ;;  %v2456_v10 = vand.u32 2147483647, %v14109_v37  ;;  %v12634_v39 = vld [vmem:[%s17880_s6 + $0x18] sm:$0xff] }
 0x140   : > { %v2701_v44 = vmul.f32 %v2430_v40, %v14029_v28  ;;  %v2434_v38 = vsub.f32 1.0, %v2433_v17  ;;  %v2458_v46 = vand.u32 2147483648, %v14109_v37  ;;  %v3316_v40 = vpack.c.bf16 %v3315_v1, %v3315_v1 }
 0x141   : > { %v2044_v21 = vpop.f32.mrf.mxu1  ;;  %vm2457_vm0 = vcmp.eq.f32.partialorder %v2456_v10, 8.507059e+37  ;;  %v3352_v41 = vpack.c.bf16 %v3351_v34, %v3351_v34 }
 0x142   : > { %2733 = vst.msk [vmem:[%s13843_s25 + $0x70] sm:$0xff] %vm669_vm3, %v2701_v44  ;;  %v2435_v50 = vmul.f32 %v13153_v36, %v2434_v38  ;;  %v14128_v28 = vadd.f32 %v14125_v51, %v2044_v21  ;;  %v12672_v38 = vld [vmem:[%s17880_s6 + $0x28] sm:$0xff] }
 0x143   : > { %2765 = vst.msk [vmem:[#allocation2 + $0xa8] sm:$0xff] %vm669_vm3, %v2701_v44  ;;  %v12632_v44 = vld [vmem:[%s17880_s6 + $0x8] sm:$0xff] }
 0x144   : > { %v13155_v58 = vpop.eup %13154  ;;  %v2436_v59 = vadd.f32 %v13153_v36, %v2435_v50  ;;  %v10101_v61 = vmul.f32 -1.442695, %v14128_v28 }
 0x145   : > { %v13157_v63 = vpop.eup %13156  ;;  %v14151_v0 = vadd.f32 1.0, %v13155_v58  ;;  %10276 = vmatmul.msk.bf16.vlgmr.msrb.gmra.mxu2 %vm669_vm3, %v3244_v56  ;;  %10289 = vmatmul.msk.bf16.vlgmr.msra.gmra.mxu3 %vm669_vm3, %v3280_v57  ;;  %v12631_v57 = vld [vmem:[%s17880_s6] sm:$0xff] }
 0x146   : > { %v2440_v4 = vsel %vm14139_vm11, %v13153_v36, %v2436_v59  ;;  %v2448_v5 = vmul.f32 %v13157_v63, %v14109_v37  ;;  %13158 = vpow2.f32 %v10101_v61  ;;  %3414 = vmatpush.bf16.msrb.mxu2 %v12628_v53  ;;  %3450 = vmatpush.bf16.msra.mxu3 %v12630_v29  ;;  %vm2453_vm14 = vweird.f32 %v13157_v63  ;;  %v12671_v58 = vld [vmem:[%s17880_s6 + $0x20] sm:$0xff] }
 0x147   : > { %v2445_v47 = vsel %vm14143_vm12, %v2444_v55, %v2440_v4  ;;  %13160 = vrcp.f32 %v14151_v0  ;;  %vm2454_vm15 = vmor %vm2452_vm13, %vm2453_vm14  ;;  %vm2467_vm1 = vweird.f32 %v14151_v0  ;;  %v2473_v30 = vand.u32 2147483648, %v14151_v0 }
 0x148   : > { %v2702_v11 = vmul.f32 %v2445_v47, %v14059_v52  ;;  %v2449_v12 = vsub.f32 1.0, %v2448_v5  ;;  %v2459_v52 = vor.u32 1.1754944e-38, %v2458_v46  ;;  %v2471_v33 = vand.u32 2147483647, %v14151_v0 }
 0x149   : > { %v2046_v15 = vpop.f32.mrf.mxu1  ;;  %v2474_v17 = vor.u32 1.1754944e-38, %v2473_v30 }
 0x14a   : > { %2734 = vst.msk [vmem:[%s13843_s25 + $0x78] sm:$0xff] %vm669_vm3, %v2702_v11  ;;  %v2450_v16 = vmul.f32 %v13157_v63, %v2449_v12  ;;  %v14184_v18 = vadd.f32 %v14125_v51, %v2046_v15  ;;  %3415 = vmatpush.bf16.msrb.mxu2 %v12627_v8  ;;  %3451 = vmatpush.bf16.msra.mxu3 %v12629_v9  ;;  %vm2472_vm6 = vcmp.eq.f32.partialorder %v2471_v33, 8.507059e+37 }
 0x14b   : > { %2766 = vst.msk [vmem:[#allocation2 + $0xb0] sm:$0xff] %vm669_vm3, %v2702_v11  ;;  %v3387_v11 = vld [vmem:[#allocation2 + $0x61] ss:$2 sm:$0xff] }
 0x14c   : > { %v13159_v19 = vpop.eup %13158  ;;  %v2451_v20 = vadd.f32 %v13157_v63, %v2450_v16  ;;  %v10102_v22 = vmul.f32 -1.442695, %v14184_v18  ;;  %v3423_v16 = vld [vmem:[#allocation2 + $0x62] ss:$2 sm:$0xff] }
 0x14d   : > { %v13161_v6 = vpop.eup %13160  ;;  %v14192_v23 = vadd.f32 1.0, %v13159_v19 }
 0x14e   : > { %v2455_v25 = vsel %vm2454_vm15, %v13157_v63, %v2451_v20  ;;  %v2463_v27 = vmul.f32 %v13161_v6, %v14151_v0  ;;  %13162 = vpow2.f32 %v10102_v22  ;;  %vm2468_vm4 = vweird.f32 %v13161_v6  ;;  %v12636_v20 = vld [vmem:[%s17880_s6 + $0x28] sm:$0xff] }
 0x14f   : > { %v2460_v26 = vsel %vm2457_vm0, %v2459_v52, %v2455_v25  ;;  %13164 = vrcp.f32 %v14192_v23  ;;  %vm14211_vm5 = vmor %vm2467_vm1, %vm2468_vm4  ;;  %vm2482_vm7 = vweird.f32 %v14192_v23  ;;  %v2488_v56 = vand.u32 2147483648, %v14192_v23 }
 0x150   : > { %v2703_v31 = vmul.f32 %v2460_v26, %v14069_v49  ;;  %v2464_v2 = vsub.f32 1.0, %v2463_v27  ;;  %v2486_v61 = vand.u32 2147483647, %v14192_v23  ;;  %v12638_v27 = vld [vmem:[%s17880_s6 + $0x38] sm:$0xff] }
 0x151   : > { %v2049_v35 = vpop.f32.mrf.mxu1  ;;  %v2489_v3 = vor.u32 1.1754944e-38, %v2488_v56  ;;  %v12678_v26 = vld [vmem:[%s17880_s6 + $0x58] sm:$0xff] }
 0x152   : > { %2735 = vst.msk [vmem:[%s13843_s25 + $0x80] sm:$0xff] %vm669_vm3, %v2703_v31  ;;  %v2465_v7 = vmul.f32 %v13161_v6, %v2464_v2  ;;  %v4007_v36 = vld [vmem:[#allocation2 + $0xaa] ss:$2 sm:$0xff]  ;;  %v14203_v37 = vadd.f32 %v14125_v51, %v2049_v35  ;;  %vm2487_vm10 = vcmp.eq.f32.partialorder %v2486_v61, 8.507059e+37 }
 0x153   : > { %2767 = vst.msk [vmem:[#allocation2 + $0xc0] sm:$0xff] %vm669_vm3, %v2703_v31  ;;  %v4008_v43 = vpack.c.bf16 %v4007_v36, %v4007_v36  ;;  %v12635_v36 = vld [vmem:[%s17880_s6 + $0x20] sm:$0xff] }
 0x154   : > { %v13163_v45 = vpop.eup %13162  ;;  %v2466_v24 = vadd.f32 %v13161_v6, %v2465_v7  ;;  %v10103_v21 = vmul.f32 -1.442695, %v14203_v37 }
 0x155   : > { %v13165_v48 = vpop.eup %13164  ;;  %10302 = vmatmul.msk.bf16.vlgmr.msra.gmra.mxu2 %vm669_vm3, %v3316_v40  ;;  %10315 = vmatmul.msk.bf16.vlgmr.msrb.gmra.mxu3 %vm669_vm3, %v3352_v41  ;;  %v2194_v50 = vadd.f32 1.0, %v13163_v45  ;;  %v12637_v40 = vld [vmem:[%s17880_s6 + $0x30] sm:$0xff] }
 0x156   : > { %v2470_v53 = vsel %vm14211_vm5, %v13161_v6, %v2466_v24  ;;  %v2478_v29 = vmul.f32 %v13165_v48, %v14192_v23  ;;  %10530 = vmatmul.msk.bf16.vlgmr.msrb.gmra.mxu1 %vm669_vm3, %v4008_v43  ;;  %13166 = vpow2.f32 %v10103_v21  ;;  %3518 = vmatpush.bf16.msra.mxu2 %v12634_v39  ;;  %vm2483_vm8 = vweird.f32 %v13165_v48  ;;  %v12677_v41 = vld [vmem:[%s17880_s6 + $0x50] sm:$0xff] }
 0x157   : > { %v2475_v55 = vsel %vm2472_vm6, %v2474_v17, %v2470_v53  ;;  %13168 = vrcp.f32 %v2194_v50  ;;  %3546 = vmatpush.bf16.msrb.mxu3 %v12632_v44  ;;  %4272 = vmatpush.bf16.msrb.mxu1 %v12672_v38  ;;  %vm2484_vm9 = vmor %vm2482_vm7, %vm2483_vm8  ;;  %vm2497_vm11 = vweird.f32 %v2194_v50  ;;  %v2503_v46 = vand.u32 2147483648, %v2194_v50 }
 0x158   : > { %v2704_v59 = vmul.f32 %v2475_v55, %v14104_v32  ;;  %v2479_v60 = vsub.f32 1.0, %v2478_v29  ;;  %v2501_v15 = vand.u32 2147483647, %v2194_v50  ;;  %v3424_v23 = vpack.c.bf16 %v3423_v16, %v3423_v16  ;;  %v12684_v16 = vld [vmem:[%s17880_s6 + $0x88] sm:$0xff] }
 0x159   : > { %v2051_v62 = vpop.f32.mrf.mxu1  ;;  %v2504_v6 = vor.u32 1.1754944e-38, %v2503_v46  ;;  %v12640_v46 = vld [vmem:[%s17880_s6 + $0x48] sm:$0xff] }
 0x15a   : > { %2736 = vst.msk [vmem:[%s13843_s25 + $0x88] sm:$0xff] %vm669_vm3, %v2704_v59  ;;  %v2480_v63 = vmul.f32 %v13165_v48, %v2479_v60  ;;  %v14244_v0 = vadd.f32 %v14125_v51, %v2051_v62  ;;  %3519 = vmatpush.bf16.msra.mxu2 %v12633_v54  ;;  %vm2502_vm14 = vcmp.eq.f32.partialorder %v2501_v15, 8.507059e+37  ;;  %v12642_v15 = vld [vmem:[%s17880_s6 + $0x58] sm:$0xff] }
 0x15b   : > { %2768 = vst.msk [vmem:[#allocation2 + $0xc8] sm:$0xff] %vm669_vm3, %v2704_v59  ;;  %3547 = vmatpush.bf16.msrb.mxu3 %v12631_v57  ;;  %4273 = vmatpush.bf16.msrb.mxu1 %v12671_v58  ;;  %v3491_v57 = vld [vmem:[#allocation2 + $0x61] ss:$2 sm:$0xff] }
 0x15c   : > { %v13167_v32 = vpop.eup %13166  ;;  %v2481_v42 = vadd.f32 %v13165_v48, %v2480_v63  ;;  %v10104_v4 = vmul.f32 -1.442695, %v14244_v0 }
 0x15d   : > { %v13169_v5 = vpop.eup %13168  ;;  %v14250_v8 = vadd.f32 1.0, %v13167_v32 }
 0x15e   : > { %v2485_v9 = vsel %vm2484_vm9, %v13165_v48, %v2481_v42  ;;  %v2493_v47 = vmul.f32 %v13169_v5, %v2194_v50  ;;  %13170 = vpow2.f32 %v10104_v4  ;;  %vm2498_vm12 = vweird.f32 %v13169_v5 }
 0x15f   : > { %v2490_v10 = vsel %vm2487_vm10, %v2489_v3, %v2485_v9  ;;  %13172 = vrcp.f32 %v14250_v8  ;;  %vm14260_vm13 = vmor %vm2497_vm11, %vm2498_vm12  ;;  %vm2512_vm15 = vweird.f32 %v14250_v8  ;;  %v2516_v49 = vand.u32 2147483647, %v14250_v8  ;;  %v751_v9 = vld [vmem:[%s13789_s2 + $0x8] sm:$0xff] }
 0x160   : > { %v2705_v12 = vmul.f32 %v2490_v10, %v14128_v28  ;;  %v2494_v13 = vsub.f32 1.0, %v2493_v47  ;;  %v3388_v28 = vpack.c.bf16 %v3387_v11, %v3387_v11  ;;  %v2518_v17 = vand.u32 2147483648, %v14250_v8 }
 0x161   : > { %v2054_v31 = vpop.f32.mrf.mxu1  ;;  %vm2517_vm4 = vcmp.eq.f32.partialorder %v2516_v49, 8.507059e+37 }
 0x162   : > { %2737 = vst.msk [vmem:[%s13843_s25 + $0x90] sm:$0xff] %vm669_vm3, %v2705_v12  ;;  %v2495_v52 = vmul.f32 %v13169_v5, %v2494_v13  ;;  %v4115_v19 = vld [vmem:[#allocation2 + $0xc2] ss:$2 sm:$0xff]  ;;  %v14275_v34 = vadd.f32 %v14125_v51, %v2054_v31  ;;  %v2519_v48 = vor.u32 1.1754944e-38, %v2518_v17 }
 0x163   : > { %2769 = vst.msk [vmem:[#allocation2 + $0xd8] sm:$0xff] %vm669_vm3, %v2705_v12  ;;  %v4116_v25 = vpack.c.bf16 %v4115_v19, %v4115_v19  ;;  %v4245_v60 = vld [vmem:[#allocation2 + $0xc2] ss:$2 sm:$0xff]  ;;  %v3492_v12 = vpack.c.bf16 %v3491_v57, %v3491_v57 }
 0x164   : > { %v13171_v30 = vpop.eup %13170  ;;  %v2496_v1 = vadd.f32 %v13169_v5, %v2495_v52  ;;  %v10105_v24 = vmul.f32 -1.442695, %v14275_v34  ;;  %v4246_v10 = vpack.c.bf16 %v4245_v60, %v4245_v60  ;;  %v3553_v17 = vld [vmem:[#allocation2 + $0x62] ss:$2 sm:$0xff] }
 0x165   : > { %v13173_v2 = vpop.eup %13172  ;;  %10328 = vmatmul.msk.bf16.vlgmr.msrb.gmra.mxu2 %vm669_vm3, %v3388_v28  ;;  %10341 = vmatmul.msk.bf16.vlgmr.msra.gmra.mxu3 %vm669_vm3, %v3424_v23  ;;  %v14272_v33 = vadd.f32 1.0, %v13171_v30 }
 0x166   : > { %v2500_v35 = vsel %vm14260_vm13, %v13169_v5, %v2496_v1  ;;  %v2508_v7 = vmul.f32 %v13173_v2, %v14250_v8  ;;  %10569 = vmatmul.msk.bf16.vlgmr.msra.gmra.mxu1 %vm669_vm3, %v4116_v25  ;;  %3580 = vmatpush.bf16.msrb.mxu2 %v12636_v20  ;;  %vm2513_vm0 = vweird.f32 %v13173_v2  ;;  %v3485_v5 = vld [vmem:[#allocation2 + $0x60] ss:$2 sm:$0xff] }
 0x167   : > { %v2505_v39 = vsel %vm2502_vm14, %v2504_v6, %v2500_v35  ;;  %13174 = vrcp.f32 %v14272_v33  ;;  %3616 = vmatpush.bf16.msra.mxu3 %v12638_v27  ;;  %4380 = vmatpush.bf16.msra.mxu1 %v12678_v26  ;;  %vm2514_vm1 = vmor %vm2512_vm15, %vm2513_vm0  ;;  %vm2527_vm5 = vweird.f32 %v14272_v33  ;;  %v2533_v59 = vand.u32 2147483648, %v14272_v33  ;;  %v12639_v6 = vld [vmem:[%s17880_s6 + $0x40] sm:$0xff]  ;;  %v12641_v27 = vld [vmem:[%s17880_s6 + $0x50] sm:$0xff] }
 0x168   : > { %v2706_v43 = vmul.f32 %v2505_v39, %v14184_v18  ;;  %v2509_v44 = vsub.f32 1.0, %v2508_v7  ;;  %v14295_v38 = vpop.f32.mrf.mxu2  ;;  %v14297_v45 = vpop.f32.mrf.mxu3  ;;  %13176 = vpow2.f32 %v10105_v24  ;;  %v750_v18 = vld [vmem:[%s13789_s2] sm:$0xff]  ;;  %v2531_v32 = vand.u32 2147483647, %v14272_v33 }
 0x169   : > { %9867 = vmatmul.msk.f32.vlgmr.msra.gmra.mxu0 %vm886_vm2, %v750_v18  ;;  %v2056_v53 = vpop.f32.mrf.mxu1  ;;  %v2534_v11 = vor.u32 1.1754944e-38, %v2533_v59  ;;  %v3486_v13 = vpack.c.bf16 %v3485_v5, %v3485_v5  ;;  %v12683_v26 = vld [vmem:[%s17880_s6 + $0x80] sm:$0xff]  ;;  %v12646_v5 = vld [vmem:[%s17880_s6 + $0x78] sm:$0xff] }
 0x16a   : > { %2738 = vst.msk [vmem:[%s13843_s25 + $0x98] sm:$0xff] %vm669_vm3, %v2706_v43  ;;  %v2510_v21 = vmul.f32 %v13173_v2, %v2509_v44  ;;  %3581 = vmatpush.bf16.msrb.mxu2 %v12635_v36  ;;  %v14308_v54 = vadd.f32 %v14125_v51, %v2056_v53  ;;  %vm2532_vm8 = vcmp.eq.f32.partialorder %v2531_v32, 8.507059e+37 }
 0x16b   : > { %2770 = vst.msk [vmem:[#allocation2 + $0xe0] sm:$0xff] %vm669_vm3, %v2706_v43  ;;  %3617 = vmatpush.bf16.msra.mxu3 %v12637_v40  ;;  %4381 = vmatpush.bf16.msra.mxu1 %v12677_v41  ;;  %v3589_v43 = vld [vmem:[#allocation2 + $0x78] ss:$2 sm:$0xff] }
 0x16c   : > { %v2511_v50 = vadd.f32 %v13173_v2, %v2510_v21  ;;  %v10106_v61 = vmul.f32 -1.442695, %v14308_v54 }
 0x16d   : > { %v13175_v29 = vpop.eup %13174 }
 0x16e   : > { %v2515_v55 = vsel %vm2514_vm1, %v13173_v2, %v2511_v50  ;;  %v2523_v56 = vmul.f32 %v13175_v29, %v14272_v33  ;;  %v13177_v62 = vpop.eup %13176  ;;  %vm2528_vm6 = vweird.f32 %v13175_v29  ;;  %13178 = vpow2.f32 %v10106_v61  ;;  %v753_v61 = vld [vmem:[%s13789_s2 + $0x18] sm:$0xff] }
 0x16f   : > { %v2520_v58 = vsel %vm2517_vm4, %v2519_v48, %v2515_v55  ;;  %v14316_v8 = vadd.f32 1.0, %v13177_v62  ;;  %vm14327_vm7 = vmor %vm2527_vm5, %vm2528_vm6  ;;  %vm721_vm5 = vcmask 195584  }
 0x170   : > { %v2707_v63 = vmul.f32 %v2520_v58, %v14203_v37  ;;  %v2524_v3 = vsub.f32 1.0, %v2523_v56  ;;  %v2823_v42 = vpop.f32.mrf.mxu2  ;;  %v2851_v4 = vpop.f32.mrf.mxu3  ;;  %v3554_v56 = vpack.c.bf16 %v3553_v17, %v3553_v17  ;;  %v3590_v58 = vpack.c.bf16 %v3589_v43, %v3589_v43  ;;  %722 = vst.msk [vmem:[#allocation3] sm:$0xff] %vm721_vm5, %v13476_v14 }
 0x171   : > { %13180 = vrcp.f32 %v14316_v8  ;;  %9868 = vmatmul.msk.f32.gmra.mxu0 %vm886_vm2, %v751_v9  ;;  %v2059_v19 = vpop.f32.mrf.mxu1  ;;  %v2548_v7 = vand.u32 2147483648, %v14316_v8  ;;  %vm2542_vm9 = vweird.f32 %v14316_v8  ;;  %v2546_v39 = vand.u32 2147483647, %v14316_v8  ;;  %723 = vst.msk [vmem:[#allocation3 + $0x8] sm:$0xff] %vm721_vm5, %v13476_v14 }
 0x172   : > { %2739 = vst.msk [vmem:[%s13843_s25 + $0xa0] sm:$0xff] %vm669_vm3, %v2707_v63  ;;  %v2525_v47 = vmul.f32 %v13175_v29, %v2524_v3  ;;  %v14342_v20 = vadd.f32 %v14125_v51, %v2059_v19  ;;  %v4353_v44 = vld [vmem:[#allocation2 + $0xda] ss:$2 sm:$0xff] }
 0x173   : > { %2771 = vst.msk [vmem:[#allocation2 + $0xf0] sm:$0xff] %vm669_vm3, %v2707_v63  ;;  %v2549_v48 = vor.u32 1.1754944e-38, %v2548_v7  ;;  %vm2547_vm12 = vcmp.eq.f32.partialorder %v2546_v39, 8.507059e+37  ;;  %v4354_v59 = vpack.c.bf16 %v4353_v44, %v4353_v44  ;;  %v12644_v3 = vld [vmem:[%s17880_s6 + $0x68] sm:$0xff]  ;;  %v3625_v7 = vld [vmem:[#allocation2 + $0x79] ss:$2 sm:$0xff] }
 0x174   : > { %v2526_v52 = vadd.f32 %v13175_v29, %v2525_v47  ;;  %v13179_v28 = vpop.eup %13178  ;;  %v10107_v25 = vmul.f32 -1.442695, %v14342_v20  ;;  %v3661_v39 = vld [vmem:[#allocation2 + $0x7a] ss:$2 sm:$0xff]  ;;  %v3626_v21 = vpack.c.bf16 %v3625_v7, %v3625_v7  ;;  %724 = vst.msk [vmem:[#allocation3 + $0x10] sm:$0xff] %vm721_vm5, %v13476_v14 }
 0x175   : > { %10355 = vmatmul.msk.bf16.vlgmr.msra.gmra.mxu2 %vm669_vm3, %v3492_v12  ;;  %10364 = vmatmul.msk.bf16.vlgmr.msrb.gmra.mxu3 %vm669_vm3, %v3486_v13  ;;  %v14362_v2 = vadd.f32 1.0, %v13179_v28  ;;  %725 = vst.msk [vmem:[#allocation3 + $0x18] sm:$0xff] %vm721_vm5, %v13476_v14 }
 0x176   : > { %v2530_v22 = vsel %vm14327_vm7, %v13175_v29, %v2526_v52  ;;  %10605 = vmatmul.msk.bf16.vlgmr.msrb.gmra.mxu1 %vm669_vm3, %v4246_v10  ;;  %3652 = vmatpush.bf16.msra.mxu2 %v12640_v46  ;;  %13182 = vpow2.f32 %v10107_v25  ;;  %726 = vst.msk [vmem:[#allocation3 + $0x20] sm:$0xff] %vm721_vm5, %v13476_v14 }
 0x177   : > { %v2535_v23 = vsel %vm2532_vm8, %v2534_v11, %v2530_v22  ;;  %3688 = vmatpush.bf16.msrb.mxu3 %v12642_v15  ;;  %4488 = vmatpush.bf16.msrb.mxu1 %v12684_v16  ;;  %v13181_v33 = vpop.eup %13180  ;;  %13184 = vrcp.f32 %v14362_v2  ;;  %vm2557_vm13 = vweird.f32 %v14362_v2  ;;  %v2563_v63 = vand.u32 2147483648, %v14362_v2  ;;  %v12643_v11 = vld [vmem:[%s17880_s6 + $0x60] sm:$0xff]  ;;  %v12645_v15 = vld [vmem:[%s17880_s6 + $0x70] sm:$0xff]  ;;  %727 = vst.msk [vmem:[#allocation3 + $0x28] sm:$0xff] %vm721_vm5, %v13476_v14 }
 0x178   : > { %v2708_v30 = vmul.f32 %v2535_v23, %v14244_v0  ;;  %v14358_v1 = vpop.f32.mrf.mxu2  ;;  %v14360_v31 = vpop.f32.mrf.mxu3  ;;  %v2538_v35 = vmul.f32 %v13181_v33, %v14316_v8  ;;  %v752_v0 = vld [vmem:[%s13789_s2 + $0x10] sm:$0xff]  ;;  %vm2543_vm10 = vweird.f32 %v13181_v33  ;;  %v2561_v4 = vand.u32 2147483647, %v14362_v2  ;;  %v12690_v8 = vld [vmem:[%s17880_s6 + $0x28] sm:$0xff]  ;;  %v12689_v16 = vld [vmem:[%s17880_s6 + $0x20] sm:$0xff]  ;;  %728 = vst.msk [vmem:[#allocation3 + $0x30] sm:$0xff] %vm721_vm5, %v13476_v14 }
 0x179   : > { %9869 = vmatmul.msk.f32.gmra.mxu0 %vm886_vm2, %v752_v0  ;;  %v2061_v49 = vpop.f32.mrf.mxu1  ;;  %vm14377_vm11 = vmor %vm2542_vm9, %vm2543_vm10  ;;  %v754_v0 = vld [vmem:[%s13789_s2 + $0x20] sm:$0xff]  ;;  %729 = vst.msk [vmem:[#allocation3 + $0x38] sm:$0xff] %vm721_vm5, %v13476_v14 }
 0x17a   : > { %2740 = vst.msk [vmem:[%s13843_s25 + $0xa8] sm:$0xff] %vm669_vm3, %v2708_v30  ;;  %3653 = vmatpush.bf16.msra.mxu2 %v12639_v6  ;;  %v2539_v36 = vsub.f32 1.0, %v2538_v35  ;;  %v14375_v40 = vadd.f32 %v14125_v51, %v2061_v49  ;;  %vm2562_vm0 = vcmp.eq.f32.partialorder %v2561_v4, 8.507059e+37 }
 0x17b   : > { %2772 = vst.msk [vmem:[#allocation2 + $0xf8] sm:$0xff] %vm669_vm3, %v2708_v30  ;;  %3689 = vmatpush.bf16.msrb.mxu3 %v12641_v27  ;;  %4489 = vmatpush.bf16.msrb.mxu1 %v12683_v26 }
 0x17c   : > { %v2540_v41 = vmul.f32 %v13181_v33, %v2539_v36  ;;  %v13183_v24 = vpop.eup %13182  ;;  %v10108_v18 = vmul.f32 -1.442695, %v14375_v40  ;;  %730 = vst.msk [vmem:[#allocation3 + $0x40] sm:$0xff] %vm721_vm5, %v13476_v14 }
 0x17d   : > { %v13185_v50 = vpop.eup %13184  ;;  %v14382_v57 = vadd.f32 1.0, %v13183_v24  ;;  %731 = vst.msk [vmem:[#allocation3 + $0x48] sm:$0xff] %vm721_vm5, %v13476_v14 }
 0x17e   : > { %v2541_v55 = vadd.f32 %v13181_v33, %v2540_v41  ;;  %v2553_v60 = vmul.f32 %v13185_v50, %v14362_v2  ;;  %13186 = vpow2.f32 %v10108_v18  ;;  %vm2558_vm14 = vweird.f32 %v13185_v50  ;;  %732 = vst.msk [vmem:[#allocation3 + $0x50] sm:$0xff] %vm721_vm5, %v13476_v14 }
 0x17f   : > { %13188 = vrcp.f32 %v14382_v57  ;;  %vm14413_vm15 = vmor %vm2557_vm13, %vm2558_vm14  ;;  %vm2572_vm1 = vweird.f32 %v14382_v57  ;;  %v2578_v26 = vand.u32 2147483648, %v14382_v57  ;;  %v3662_v18 = vpack.c.bf16 %v3661_v39, %v3661_v39  ;;  %733 = vst.msk [vmem:[#allocation3 + $0x58] sm:$0xff] %vm721_vm5, %v13476_v14 }
 0x180   : > { %v2887_v53 = vpop.f32.mrf.mxu2  ;;  %v2924_v29 = vpop.f32.mrf.mxu3  ;;  %v2545_v62 = vsel %vm14377_vm11, %v13181_v33, %v2541_v55  ;;  %v2554_v42 = vsub.f32 1.0, %v2553_v60  ;;  %v2576_v33 = vand.u32 2147483647, %v14382_v57  ;;  %734 = vst.msk [vmem:[#allocation3 + $0x60] sm:$0xff] %vm721_vm5, %v13476_v14 }
 0x181   : > { %v2550_v32 = vsel %vm2547_vm12, %v2549_v48, %v2545_v62  ;;  %9870 = vmatmul.msk.f32.gmra.mxu0 %vm886_vm2, %v753_v61  ;;  %v2064_v47 = vpop.f32.mrf.mxu1  ;;  %v12652_v62 = vld [vmem:[%s17880_s6 + $0x18] sm:$0xff]  ;;  %735 = vst.msk [vmem:[#allocation3 + $0x68] sm:$0xff] %vm721_vm5, %v13476_v14 }
 0x182   : > { %v2709_v9 = vmul.f32 %v2550_v32, %v14275_v34  ;;  %v2555_v10 = vmul.f32 %v13185_v50, %v2554_v42  ;;  %v14406_v46 = vadd.f32 %v14125_v51, %v2064_v47  ;;  %v2564_v34 = vor.u32 1.1754944e-38, %v2563_v63  ;;  %v4461_v49 = vld [vmem:[#allocation2 + $0xf2] ss:$2 sm:$0xff]  ;;  %v755_v32 = vld [vmem:[%s13789_s2 + $0x28] sm:$0xff]  ;;  %736 = vst.msk [vmem:[#allocation3 + $0x70] sm:$0xff] %vm721_vm5, %v13476_v14 }
 0x183   : > { %vm2577_vm7 = vcmp.eq.f32.partialorder %v2576_v33, 8.507059e+37  ;;  %v12696_v63 = vld [vmem:[%s17880_s6 + $0x58] sm:$0xff]  ;;  %v12695_v47 = vld [vmem:[%s17880_s6 + $0x50] sm:$0xff]  ;;  %737 = vst.msk [vmem:[#allocation3 + $0x78] sm:$0xff] %vm721_vm5, %v13476_v14 }
 0x184   : > { %2741 = vst.msk [vmem:[%s13843_s25 + $0xb0] sm:$0xff] %vm669_vm3, %v2709_v9  ;;  %v13187_v12 = vpop.eup %13186  ;;  %v2556_v13 = vadd.f32 %v13185_v50, %v2555_v10  ;;  %v10109_v28 = vmul.f32 -1.442695, %v14406_v46 }
 0x185   : > { %10377 = vmatmul.msk.bf16.vlgmr.msrb.gmra.mxu2 %vm669_vm3, %v3554_v56  ;;  %10390 = vmatmul.msk.bf16.vlgmr.msra.gmra.mxu3 %vm669_vm3, %v3590_v58  ;;  %2773 = vst.msk [vmem:[#allocation2 + $0x108] sm:$0xff] %vm669_vm3, %v2709_v9  ;;  %v13189_v52 = vpop.eup %13188  ;;  %v14431_v6 = vadd.f32 1.0, %v13187_v12  ;;  %v12648_v58 = vld [vmem:[%s17880_s6 + $0x88] sm:$0xff]  ;;  %v12651_v9 = vld [vmem:[%s17880_s6 + $0x10] sm:$0xff] }
 0x186   : > { %10644 = vmatmul.msk.bf16.vlgmr.msra.gmra.mxu1 %vm669_vm3, %v4354_v59  ;;  %3724 = vmatpush.bf16.msrb.mxu2 %v12644_v3  ;;  %v2560_v23 = vsel %vm14413_vm15, %v13185_v50, %v2556_v13  ;;  %v2568_v25 = vmul.f32 %v13189_v52, %v14382_v57  ;;  %vm2573_vm4 = vweird.f32 %v13189_v52  ;;  %v4462_v50 = vpack.c.bf16 %v4461_v49, %v4461_v49 }
 0x187   : > { %3760 = vmatpush.bf16.msra.mxu3 %v12646_v5  ;;  %4618 = vmatpush.bf16.msra.mxu1 %v12690_v8  ;;  %v2565_v27 = vsel %vm2562_vm0, %v2564_v34, %v2560_v23  ;;  %13190 = vrcp.f32 %v14431_v6  ;;  %vm14448_vm6 = vmor %vm2572_vm1, %vm2573_vm4  ;;  %vm2587_vm8 = vweird.f32 %v14431_v6  ;;  %v2591_v56 = vand.u32 2147483647, %v14431_v6  ;;  %738 = vst.msk [vmem:[#allocation3 + $0x80] sm:$0xff] %vm721_vm5, %v13476_v14 }
 0x188   : > { %v14427_v19 = vpop.f32.mrf.mxu2  ;;  %v14429_v22 = vpop.f32.mrf.mxu3  ;;  %v2710_v30 = vmul.f32 %v2565_v27, %v14308_v54  ;;  %v2569_v2 = vsub.f32 1.0, %v2568_v25  ;;  %13192 = vpow2.f32 %v10109_v28  ;;  %v2579_v54 = vor.u32 1.1754944e-38, %v2578_v26  ;;  %v4591_v28 = vld [vmem:[#allocation2 + $0xf2] ss:$2 sm:$0xff]  ;;  %739 = vst.msk [vmem:[#allocation3 + $0x88] sm:$0xff] %vm721_vm5, %v13476_v14 }
 0x189   : > { %9871 = vmatmul.msk.f32.gmra.mxu0 %vm886_vm2, %v754_v0  ;;  %v14455_v41 = vpop.f32.mrf.mxu1  ;;  %v2593_v57 = vand.u32 2147483648, %v14431_v6  ;;  %vm2592_vm11 = vcmp.eq.f32.partialorder %v2591_v56, 8.507059e+37  ;;  %v3697_v26 = vld [vmem:[#allocation2 + $0x90] ss:$2 sm:$0xff]  ;;  %v4592_v36 = vpack.c.bf16 %v4591_v28, %v4591_v28 }
 0x18a   : > { %3725 = vmatpush.bf16.msrb.mxu2 %v12643_v11  ;;  %2742 = vst.msk [vmem:[%s13843_s25 + $0xb8] sm:$0xff] %vm669_vm3, %v2710_v30  ;;  %v2570_v35 = vmul.f32 %v13189_v52, %v2569_v2  ;;  %v14548_v2 = vadd.f32 %v14125_v51, %v14455_v41  ;;  %v3698_v49 = vpack.c.bf16 %v3697_v26, %v3697_v26  ;;  %v12654_v41 = vld [vmem:[%s17880_s6 + $0x28] sm:$0xff] }
 0x18b   : > { %3761 = vmatpush.bf16.msra.mxu3 %v12645_v15  ;;  %4619 = vmatpush.bf16.msra.mxu1 %v12689_v16  ;;  %2774 = vst.msk [vmem:[#allocation2 + $0x110] sm:$0xff] %vm669_vm3, %v2710_v30  ;;  %v3733_v30 = vld [vmem:[#allocation2 + $0x91] ss:$2 sm:$0xff] }
 0x18c   : > { %v2571_v17 = vadd.f32 %v13189_v52, %v2570_v35 }
 0x18d   : > { %v13191_v43 = vpop.eup %13190 }
 0x18e   : > { %v2575_v48 = vsel %vm14448_vm6, %v13189_v52, %v2571_v17  ;;  %v2583_v53 = vmul.f32 %v13191_v43, %v14431_v6  ;;  %v13193_v29 = vpop.eup %13192  ;;  %vm2588_vm9 = vweird.f32 %v13191_v43  ;;  %v756_v6 = vld [vmem:[%s13789_s2 + $0x30] sm:$0xff]  ;;  %v3734_v17 = vpack.c.bf16 %v3733_v30, %v3733_v30  ;;  %v12657_v30 = vld [vmem:[%s17880_s6 + $0x40] sm:$0xff] }
 0x18f   : > { %v2580_v55 = vsel %vm2577_vm7, %v2579_v54, %v2575_v48  ;;  %v14473_v61 = vadd.f32 1.0, %v13193_v29  ;;  %vm14498_vm10 = vmor %vm2587_vm8, %vm2588_vm9  ;;  %v10110_v54 = vmul.f32 -1.442695, %v14548_v2  ;;  %v12653_v29 = vld [vmem:[%s17880_s6 + $0x20] sm:$0xff] }
 0x190   : > { %v2961_v44 = vpop.f32.mrf.mxu2  ;;  %v2998_v24 = vpop.f32.mrf.mxu3  ;;  %v2711_v59 = vmul.f32 %v2580_v55, %v14342_v20  ;;  %v2584_v60 = vsub.f32 1.0, %v2583_v53  ;;  %v2850_v20 = vadd.f32 %v14297_v45, %v14295_v38  ;;  %v2594_v38 = vor.u32 1.1754944e-38, %v2593_v57  ;;  %v12647_v45 = vld [vmem:[%s17880_s6 + $0x80] sm:$0xff] }
 0x191   : > { %13194 = vrcp.f32 %v14473_v61  ;;  %v14508_v8 = vpop.f32.mrf.mxu1  ;;  %9872 = vmatmul.msk.f32.gmra.mxu0 %vm886_vm2, %v755_v32  ;;  %v2608_v52 = vand.u32 2147483648, %v14473_v61  ;;  %vm2602_vm12 = vweird.f32 %v14473_v61  ;;  %v13074_v53 = vld [vmem:[%s17913_s7] ss:$0 sm:$0xff] }
 0x192   : > { %2743 = vst.msk [vmem:[%s13843_s25 + $0xc0] sm:$0xff] %vm669_vm3, %v2711_v59  ;;  %v2585_v3 = vmul.f32 %v13191_v43, %v2584_v60  ;;  %v2889_v4 = vadd.f32 %v14358_v1, %v2850_v20  ;;  %13196 = vpow2.f32 %v10110_v54  ;;  %v758_v20 = vld [vmem:[%s13789_s2 + $0x40] sm:$0xff]  ;;  %v4699_v42 = vld [vmem:[#allocation2 + $0x10a] ss:$2 sm:$0xff] }
 0x193   : > { %2775 = vst.msk [vmem:[#allocation2 + $0x120] sm:$0xff] %vm669_vm3, %v2711_v59  ;;  %v2609_v7 = vor.u32 1.1754944e-38, %v2608_v52 }
 0x194   : > { %v2586_v5 = vadd.f32 %v13191_v43, %v2585_v3  ;;  %v2926_v12 = vadd.f32 %v14360_v31, %v2889_v4  ;;  %v3769_v4 = vld [vmem:[#allocation2 + $0x92] ss:$2 sm:$0xff] }
 0x195   : > { %10403 = vmatmul.msk.bf16.vlgmr.msra.gmra.mxu2 %vm669_vm3, %v3626_v21  ;;  %10416 = vmatmul.msk.bf16.vlgmr.msrb.gmra.mxu3 %vm669_vm3, %v3662_v18  ;;  %v757_v21 = vld [vmem:[%s13789_s2 + $0x38] sm:$0xff]  ;;  %v12649_v18 = vld [vmem:[%s17880_s6] sm:$0xff] }
 0x196   : > { %10683 = vmatmul.msk.bf16.vlgmr.msrb.gmra.mxu1 %vm669_vm3, %v4462_v50  ;;  %3796 = vmatpush.bf16.msra.mxu2 %v12648_v58  ;;  %v2590_v1 = vsel %vm14498_vm10, %v13191_v43, %v2586_v5  ;;  %v2963_v16 = vadd.f32 %v14427_v19, %v2926_v12  ;;  %v12702_v43 = vld [vmem:[%s17880_s6 + $0x88] sm:$0xff]  ;;  %v3837_v5 = vld [vmem:[#allocation2 + $0x91] ss:$2 sm:$0xff] }
 0x197   : > { %3864 = vmatpush.bf16.msrb.mxu3 %v12652_v62  ;;  %4726 = vmatpush.bf16.msrb.mxu1 %v12696_v63  ;;  %v2595_v34 = vsel %vm2592_vm11, %v2594_v38, %v2590_v1  ;;  %v13195_v11 = vpop.eup %13194  ;;  %v14608_v62 = vadd.f32 %v14125_v51, %v14508_v8 }
 0x198   : > { %v3033_v10 = vpop.f32.mrf.mxu2  ;;  %v14516_v37 = vpop.f32.mrf.mxu3  ;;  %v2712_v13 = vmul.f32 %v2595_v34, %v14375_v40  ;;  %v2598_v15 = vmul.f32 %v13195_v11, %v14473_v61  ;;  %vm2603_vm13 = vweird.f32 %v13195_v11  ;;  %v2606_v40 = vand.u32 2147483647, %v14473_v61 }
 0x199   : > { %v2071_v23 = vpop.f32.mrf.mxu1  ;;  %9873 = vmatmul.msk.f32.gmra.mxu0 %vm886_vm2, %v756_v6  ;;  %v3000_v33 = vadd.f32 %v14429_v22, %v2963_v16  ;;  %vm14554_vm14 = vmor %vm2602_vm12, %vm2603_vm13  ;;  %v12650_v22 = vld [vmem:[%s17880_s6 + $0x8] sm:$0xff]  ;;  %v13197_v59 = vpop.eup %13196  ;;  %v10111_v3 = vmul.f32 -1.442695, %v14608_v62  ;;  %v3770_v34 = vpack.c.bf16 %v3769_v4, %v3769_v4 }
 0x19a   : > { %3797 = vmatpush.bf16.msra.mxu2 %v12647_v45  ;;  %2744 = vst.msk [vmem:[%s13843_s25 + $0xc8] sm:$0xff] %vm669_vm3, %v2712_v13  ;;  %v2599_v31 = vsub.f32 1.0, %v2598_v15  ;;  %vm2607_vm15 = vcmp.eq.f32.partialorder %v2606_v40, 8.507059e+37  ;;  %v14604_v61 = vadd.f32 1.0, %v13197_v59  ;;  %v14615_v32 = vadd.f32 %v14125_v51, %v2071_v23  ;;  %v12658_v15 = vld [vmem:[%s17880_s6 + $0x48] sm:$0xff] }
 0x19b   : > { %3865 = vmatpush.bf16.msrb.mxu3 %v12651_v9  ;;  %4727 = vmatpush.bf16.msrb.mxu1 %v12695_v47  ;;  %2776 = vst.msk [vmem:[#allocation2 + $0x128] sm:$0xff] %vm669_vm3, %v2712_v13  ;;  %v3037_v39 = vadd.f32 %v3033_v10, %v3000_v33  ;;  %v4700_v47 = vpack.c.bf16 %v4699_v42, %v4699_v42  ;;  %v12708_v16 = vld [vmem:[%s17880_s6 + $0x28] sm:$0xff]  ;;  %v12707_v33 = vld [vmem:[%s17880_s6 + $0x20] sm:$0xff] }
 0x19c   : > { %v2600_v27 = vmul.f32 %v13195_v11, %v2599_v31  ;;  %13198 = vrcp.f32 %v14604_v61  ;;  %v10112_v8 = vmul.f32 -1.442695, %v14615_v32  ;;  %vm2617_vm0 = vweird.f32 %v14604_v61 }
 0x19d   : > { %v3074_v50 = vadd.f32 %v14516_v37, %v3037_v39  ;;  %v12656_v37 = vld [vmem:[%s17880_s6 + $0x38] sm:$0xff] }
 0x19e   : > { %v2601_v0 = vadd.f32 %v13195_v11, %v2600_v27  ;;  %v2621_v27 = vand.u32 2147483647, %v14604_v61 }
 0x1a0   : > { %v3035_v25 = vpop.f32.mrf.mxu2  ;;  %v3072_v19 = vpop.f32.mrf.mxu3  ;;  %v2605_v44 = vsel %vm14554_vm14, %v13195_v11, %v2601_v0  ;;  %v3838_v11 = vpack.c.bf16 %v3837_v5, %v3837_v5  ;;  %vm2622_vm6 = vcmp.eq.f32.partialorder %v2621_v27, 8.507059e+37  ;;  %v12669_v27 = vld [vmem:[%s17880_s6 + $0x10] sm:$0xff] }
 0x1a1   : > { %v2610_v24 = vsel %vm2607_vm15, %v2609_v7, %v2605_v44  ;;  %9874 = vmatmul.msk.f32.gmra.mxu0 %vm886_vm2, %v757_v21  ;;  %v2074_v58 = vpop.f32.mrf.mxu1  ;;  %v2623_v25 = vand.u32 2147483648, %v14604_v61  ;;  %v12655_v19 = vld [vmem:[%s17880_s6 + $0x30] sm:$0xff] }
 0x1a2   : > { %v2713_v48 = vmul.f32 %v2610_v24, %v14406_v46  ;;  %v12701_v46 = vld [vmem:[%s17880_s6 + $0x80] sm:$0xff]  ;;  %v14620_v9 = vadd.f32 %v14125_v51, %v2074_v58  ;;  %v13199_v1 = vpop.eup %13198 }
 0x1a3   : > { %v2613_v52 = vmul.f32 %v13199_v1, %v14604_v61  ;;  %vm2618_vm1 = vweird.f32 %v13199_v1  ;;  %v3899_v44 = vld [vmem:[#allocation2 + $0x92] ss:$2 sm:$0xff] }
 0x1a4   : > { %2745 = vst.msk [vmem:[%s13843_s25 + $0xd0] sm:$0xff] %vm669_vm3, %v2713_v48  ;;  %v10113_v12 = vmul.f32 -1.442695, %v14620_v9  ;;  %vm14667_vm4 = vmor %vm2617_vm0, %vm2618_vm1 }
 0x1a5   : > { %10429 = vmatmul.msk.bf16.vlgmr.msrb.gmra.mxu2 %vm669_vm3, %v3698_v49  ;;  %10442 = vmatmul.msk.bf16.vlgmr.msra.gmra.mxu3 %vm669_vm3, %v3734_v17  ;;  %2777 = vst.msk [vmem:[#allocation2 + $0x138] sm:$0xff] %vm669_vm3, %v2713_v48  ;;  %v2614_v23 = vsub.f32 1.0, %v2613_v52 }
 0x1a6   : > { %10719 = vmatmul.msk.bf16.vlgmr.msra.gmra.mxu1 %vm669_vm3, %v4592_v36  ;;  %3892 = vmatpush.bf16.msrb.mxu2 %v12650_v22  ;;  %v2624_v22 = vor.u32 1.1754944e-38, %v2623_v25 }
 0x1a7   : > { %3926 = vmatpush.bf16.msra.mxu3 %v12654_v41  ;;  %4834 = vmatpush.bf16.msra.mxu1 %v12702_v43  ;;  %v2615_v36 = vmul.f32 %v13199_v1, %v2614_v23  ;;  %v3831_v43 = vld [vmem:[#allocation2 + $0x90] ss:$2 sm:$0xff] }
 0x1a8   : > { %v3107_v55 = vpop.f32.mrf.mxu2  ;;  %v14598_v56 = vpop.f32.mrf.mxu3 }
 0x1a9   : > { %v3111_v57 = vadd.f32 %v3107_v55, %v3074_v50  ;;  %9875 = vmatmul.msk.f32.gmra.mxu0 %vm886_vm2, %v758_v20  ;;  %v2076_v10 = vpop.f32.mrf.mxu1  ;;  %v2616_v49 = vadd.f32 %v13199_v1, %v2615_v36  ;;  %v760_v50 = vld [vmem:[%s13789_s2 + $0x50] sm:$0xff] }
 0x1aa   : > { %3893 = vmatpush.bf16.msrb.mxu2 %v12649_v18  ;;  %v14627_v13 = vadd.f32 %v14125_v51, %v2076_v10  ;;  %v759_v51 = vld [vmem:[%s13789_s2 + $0x48] sm:$0xff] }
 0x1ab   : > { %v14602_v60 = vadd.f32 %v13074_v53, %v3111_v57  ;;  %3927 = vmatpush.bf16.msra.mxu3 %v12653_v29  ;;  %4835 = vmatpush.bf16.msra.mxu1 %v12701_v46  ;;  %v2620_v48 = vsel %vm14667_vm4, %v13199_v1, %v2616_v49  ;;  %v4807_v18 = vld [vmem:[#allocation2 + $0x122] ss:$2 sm:$0xff]  ;;  %v4183_v10 = vld [vmem:[#allocation2 + $0xc1] ss:$2 sm:$0xff] }
 0x1ac   : > { %v10114_v31 = vmul.f32 -1.442695, %v14627_v13  ;;  %v2625_v46 = vsel %vm2622_vm6, %v2624_v22, %v2620_v48  ;;  %v12663_v22 = vld [vmem:[%s17880_s6 + $0x70] sm:$0xff] }
 0x1ad   : > { %v10228_v63 = vmul.f32 -1.442695, %v14602_v60  ;;  %v2714_v59 = vmul.f32 %v2625_v46, %v14548_v2 }
 0x1af   : > { %13200 = vpow2.f32 %v10228_v63  ;;  %v3832_v63 = vpack.c.bf16 %v3831_v43, %v3831_v43  ;;  %2746 = vst.msk [vmem:[%s13843_s25 + $0xd8] sm:$0xff] %vm669_vm3, %v2714_v59 }
 0x1b0   : > { %v3109_v38 = vpop.f32.mrf.mxu2  ;;  %v3177_v45 = vpop.f32.mrf.mxu3  ;;  %13202 = vpow2.f32 %v10111_v3  ;;  %2778 = vst.msk [vmem:[#allocation2 + $0x140] sm:$0xff] %vm669_vm3, %v2714_v59 }
 0x1b1   : > { %13204 = vpow2.f32 %v10112_v8  ;;  %9876 = vmatmul.msk.f32.gmra.mxu0 %vm886_vm2, %v759_v51  ;;  %v3900_v38 = vpack.c.bf16 %v3899_v44, %v3899_v44  ;;  %v4808_v45 = vpack.c.bf16 %v4807_v18, %v4807_v18 }
 0x1b2   : > { %13206 = vpow2.f32 %v10113_v12  ;;  %v12664_v12 = vld [vmem:[%s17880_s6 + $0x78] sm:$0xff] }
 0x1b3   : > { %13208 = vpow2.f32 %v10114_v31 }
 0x1b5   : > { %v13201_v6 = vpop.eup %13200  ;;  %10455 = vmatmul.msk.bf16.vlgmr.msra.gmra.mxu2 %vm669_vm3, %v3770_v34  ;;  %10469 = vmatmul.msk.bf16.vlgmr.msrb.gmra.mxu3 %vm669_vm3, %v3838_v11 }
 0x1b6   : > { %v13203_v40 = vpop.eup %13202  ;;  %v14640_v28 = vadd.f32 1.0, %v13201_v6  ;;  %10758 = vmatmul.msk.bf16.vlgmr.msrb.gmra.mxu1 %vm669_vm3, %v4700_v47  ;;  %3962 = vmatpush.bf16.msra.mxu2 %v12656_v37  ;;  %v12662_v37 = vld [vmem:[%s17880_s6 + $0x68] sm:$0xff] }
 0x1b7   : > { %v14649_v26 = vadd.f32 1.0, %v13203_v40  ;;  %3998 = vmatpush.bf16.msrb.mxu3 %v12658_v15  ;;  %4964 = vmatpush.bf16.msrb.mxu1 %v12708_v16  ;;  %v13205_v35 = vpop.eup %13204  ;;  %v12714_v15 = vld [vmem:[%s17880_s6 + $0x58] sm:$0xff]  ;;  %v12668_v40 = vld [vmem:[%s17880_s6 + $0x8] sm:$0xff] }
 0x1b8   : > { %13210 = vrcp.f32 %v14640_v28  ;;  %v14658_v7 = vpop.f32.mrf.mxu2  ;;  %v14660_v0 = vpop.f32.mrf.mxu3  ;;  %v14671_v17 = vadd.f32 1.0, %v13205_v35  ;;  %v3130_v21 = vand.u32 2147483647, %v14640_v28  ;;  %v3132_v29 = vand.u32 2147483648, %v14640_v28  ;;  %v12661_v35 = vld [vmem:[%s17880_s6 + $0x60] sm:$0xff] }
 0x1b9   : > { %13212 = vrcp.f32 %v14649_v26  ;;  %v13207_v39 = vpop.eup %13206  ;;  %v2636_v55 = vand.u32 2147483647, %v14649_v26  ;;  %v2638_v61 = vand.u32 2147483648, %v14649_v26  ;;  %vm3126_vm7 = vweird.f32 %v14640_v28  ;;  %9877 = vmatmul.msk.f32.gmra.mxu0 %vm886_vm2, %v760_v50 }
 0x1ba   : > { %3963 = vmatpush.bf16.msra.mxu2 %v12655_v19  ;;  %v14673_v41 = vadd.f32 1.0, %v13207_v39  ;;  %v13209_v24 = vpop.eup %13208  ;;  %13214 = vrcp.f32 %v14671_v17  ;;  %vm14695_vm8 = vcmp.eq.f32.partialorder %v3130_v21, 8.507059e+37  ;;  %vm2632_vm9 = vweird.f32 %v14649_v26  ;;  %v761_v19 = vld [vmem:[%s13789_s2 + $0x58] sm:$0xff]  ;;  %v12713_v39 = vld [vmem:[%s17880_s6 + $0x50] sm:$0xff] }
 0x1bb   : > { %3999 = vmatpush.bf16.msrb.mxu3 %v12657_v30  ;;  %4965 = vmatpush.bf16.msrb.mxu1 %v12707_v33  ;;  %v14702_v2 = vadd.f32 1.0, %v13209_v24  ;;  %v3133_v8 = vor.u32 1.1754944e-38, %v3132_v29  ;;  %vm14706_vm11 = vcmp.eq.f32.partialorder %v2636_v55, 8.507059e+37  ;;  %v2639_v11 = vor.u32 1.1754944e-38, %v2638_v61  ;;  %v12676_v29 = vld [vmem:[%s17880_s6 + $0x48] sm:$0xff] }
 0x1bc   : > { %13216 = vrcp.f32 %v14673_v41  ;;  %vm2647_vm13 = vweird.f32 %v14671_v17  ;;  %v2651_v31 = vand.u32 2147483647, %v14671_v17  ;;  %v2653_v23 = vand.u32 2147483648, %v14671_v17 }
 0x1bd   : > { %13218 = vrcp.f32 %v14702_v2  ;;  %vm2662_vm15 = vweird.f32 %v14673_v41  ;;  %v2668_v33 = vand.u32 2147483648, %v14673_v41  ;;  %v2666_v54 = vand.u32 2147483647, %v14673_v41 }
 0x1be   : > { %v14680_v53 = vpop.eup %13210  ;;  %vm14780_vm6 = vcmp.eq.f32.partialorder %v2651_v31, 8.507059e+37  ;;  %v2654_v46 = vor.u32 1.1754944e-38, %v2653_v23  ;;  %v2683_v61 = vand.u32 2147483648, %v14702_v2  ;;  %v12720_v23 = vld [vmem:[%s17880_s6 + $0x88] sm:$0xff] }
 0x1bf   : > { %v14685_v57 = vpop.eup %13212  ;;  %v3122_v58 = vmul.f32 %v14680_v53, %v14640_v28  ;;  %vm3127_vm12 = vweird.f32 %v14680_v53 }
 0x1c0   : > { %v2628_v20 = vmul.f32 %v14685_v57, %v14649_v26  ;;  %v3205_v3 = vpop.f32.mrf.mxu2  ;;  %v3239_v42 = vpop.f32.mrf.mxu3  ;;  %vm2633_vm10 = vweird.f32 %v14685_v57  ;;  %vm14752_vm0 = vmor %vm3126_vm7, %vm3127_vm12 }
 0x1c1   : > { %v3123_v4 = vsub.f32 1.0, %v3122_v58  ;;  %v14713_v1 = vpop.eup %13214  ;;  %vm14737_vm14 = vmor %vm2632_vm9, %vm2633_vm10  ;;  %9878 = vmatmul.msk.f32.gmra.mxu0 %vm886_vm2, %v761_v19  ;;  %vm14819_vm9 = vcmp.eq.f32.partialorder %v2666_v54, 8.507059e+37  ;;  %vm2677_vm10 = vweird.f32 %v14702_v2  ;;  %v2681_v3 = vand.u32 2147483647, %v14702_v2  ;;  %v763_v19 = vld [vmem:[%s13789_s2 + $0x68] sm:$0xff] }
 0x1c2   : > { %v2629_v47 = vsub.f32 1.0, %v2628_v20  ;;  %v14724_v16 = vpop.eup %13216  ;;  %v2643_v6 = vmul.f32 %v14713_v1, %v14671_v17  ;;  %vm2648_vm1 = vweird.f32 %v14713_v1  ;;  %v2669_v17 = vor.u32 1.1754944e-38, %v2668_v33  ;;  %v5045_v54 = vld [vmem:[#allocation2 + $0x13a] ss:$2 sm:$0xff] }
 0x1c3   : > { %v3124_v34 = vmul.f32 %v14680_v53, %v3123_v4  ;;  %v2658_v25 = vmul.f32 %v14724_v16, %v14673_v41  ;;  %vm2663_vm4 = vweird.f32 %v14724_v16  ;;  %v13219_v18 = vpop.eup %13218  ;;  %vm14796_vm7 = vmor %vm2647_vm13, %vm2648_vm1  ;;  %vm2682_vm13 = vcmp.eq.f32.partialorder %v2681_v3, 8.507059e+37  ;;  %v13075_v41 = vld [vmem:[%s17913_s7] ss:$0 sm:$0xff] }
 0x1c4   : > { %v2630_v52 = vmul.f32 %v14685_v57, %v2629_v47  ;;  %v2644_v30 = vsub.f32 1.0, %v2643_v6  ;;  %v2673_v59 = vmul.f32 %v13219_v18, %v14702_v2  ;;  %v5046_v24 = vpack.c.bf16 %v5045_v54, %v5045_v54  ;;  %v14925_v3 = vld [vmem:[%s17894_s4] ss:$0 sm:$0xff]  ;;  %v4317_v54 = vld [vmem:[#allocation2 + $0xd9] ss:$2 sm:$0xff] }
 0x1c5   : > { %v3125_v51 = vadd.f32 %v14680_v53, %v3124_v34  ;;  %10478 = vmatmul.msk.bf16.vlgmr.msrb.gmra.mxu2 %vm669_vm3, %v3832_v63  ;;  %10491 = vmatmul.msk.bf16.vlgmr.msra.gmra.mxu3 %vm669_vm3, %v3900_v38  ;;  %v2659_v36 = vsub.f32 1.0, %v2658_v25 }
 0x1c6   : > { %v2631_v26 = vadd.f32 %v14685_v57, %v2630_v52  ;;  %10797 = vmatmul.msk.bf16.vlgmr.msra.gmra.mxu1 %vm669_vm3, %v4808_v45  ;;  %4070 = vmatpush.bf16.msrb.mxu2 %v12662_v37  ;;  %v2645_v44 = vmul.f32 %v14713_v1, %v2644_v30  ;;  %v2674_v20 = vsub.f32 1.0, %v2673_v59  ;;  %v762_v45 = vld [vmem:[%s13789_s2 + $0x60] sm:$0xff]  ;;  %v2684_v37 = vor.u32 1.1754944e-38, %v2683_v61 }
 0x1c7   : > { %v3129_v28 = vsel %vm14752_vm0, %v14680_v53, %v3125_v51  ;;  %4106 = vmatpush.bf16.msra.mxu3 %v12664_v12  ;;  %5072 = vmatpush.bf16.msra.mxu1 %v12714_v15  ;;  %v2660_v55 = vmul.f32 %v14724_v16, %v2659_v36  ;;  %v3935_v12 = vld [vmem:[#allocation2 + $0xa8] ss:$2 sm:$0xff]  ;;  %v3971_v15 = vld [vmem:[#allocation2 + $0xa9] ss:$2 sm:$0xff]  ;;  %v12719_v30 = vld [vmem:[%s17880_s6 + $0x80] sm:$0xff] }
 0x1c8   : > { %v3134_v49 = vsel %vm14695_vm8, %v3133_v8, %v3129_v28  ;;  %v2635_v43 = vsel %vm14737_vm14, %v14685_v57, %v2631_v26  ;;  %v14784_v21 = vpop.f32.mrf.mxu2  ;;  %v14786_v48 = vpop.f32.mrf.mxu3  ;;  %v2646_v58 = vadd.f32 %v14713_v1, %v2645_v44  ;;  %vm14807_vm8 = vmor %vm2662_vm15, %vm2663_vm4  ;;  %v2675_v8 = vmul.f32 %v13219_v18, %v2674_v20  ;;  %v764_v36 = vld [vmem:[%s13789_s2 + $0x70] sm:$0xff] }
 0x1c9   : > { %v3136_v50 = vmul.f32 %v3134_v49, %v14602_v60  ;;  %v2640_v53 = vsel %vm14706_vm11, %v2639_v11, %v2635_v43  ;;  %vm2678_vm11 = vweird.f32 %v13219_v18  ;;  %9879 = vmatmul.msk.f32.gmra.mxu0 %vm886_vm2, %v762_v45  ;;  %v3936_v31 = vpack.c.bf16 %v3935_v12, %v3935_v12  ;;  %v4043_v49 = vld [vmem:[#allocation2 + $0xc0] ss:$2 sm:$0xff]  ;;  %v4079_v43 = vld [vmem:[#allocation2 + $0xc1] ss:$2 sm:$0xff] }
 0x1ca   : > { %v2715_v57 = vmul.f32 %v2640_v53, %v14608_v62  ;;  %4071 = vmatpush.bf16.msrb.mxu2 %v12661_v35  ;;  %v2661_v62 = vadd.f32 %v14724_v16, %v2660_v55  ;;  %v2650_v63 = vsel %vm14796_vm7, %v14713_v1, %v2646_v58  ;;  %vm14845_vm12 = vmor %vm2677_vm10, %vm2678_vm11  ;;  %v4937_v1 = vld [vmem:[#allocation2 + $0x122] ss:$2 sm:$0xff]  ;;  %v2676_v34 = vadd.f32 %v13219_v18, %v2675_v8 }
 0x1cb   : > { %3137 = vst.msk [vmem:[%s14814_s23] sm:$0xff] %vm721_vm5, %v3136_v50  ;;  %4107 = vmatpush.bf16.msra.mxu3 %v12663_v22  ;;  %5073 = vmatpush.bf16.msra.mxu1 %v12713_v39  ;;  %v2655_v42 = vsel %vm14780_vm6, %v2654_v46, %v2650_v63  ;;  %v4938_v2 = vpack.c.bf16 %v4937_v1, %v4937_v1  ;;  %v12726_v46 = vld [vmem:[%s17880_s6 + $0x28] sm:$0xff]  ;;  %v12673_v55 = vld [vmem:[%s17880_s6 + $0x30] sm:$0xff]  ;;  %v12675_v58 = vld [vmem:[%s17880_s6 + $0x40] sm:$0xff]  ;;  %vm5585_vm4 = vcmask 1043456  }
 0x1cc   : > { %3138 = vst.msk [vmem:[#allocation3] sm:$0xff] %vm721_vm5, %v3136_v50  ;;  %v2665_v38 = vsel %vm14807_vm8, %v14724_v16, %v2661_v62  ;;  %v2716_v4 = vmul.f32 %v2655_v42, %v14615_v32  ;;  %v12670_v16 = vld [vmem:[%s17880_s6 + $0x18] sm:$0xff]  ;;  %v3972_v51 = vpack.c.bf16 %v3971_v15, %v3971_v15  ;;  %v3204_v26 = vadd.f32 %v14658_v7, %v14598_v56  ;;  %v12725_v60 = vld [vmem:[%s17880_s6 + $0x20] sm:$0xff] }
 0x1cd   : > { %2747 = vst.msk [vmem:[%s13843_s25 + $0xe0] sm:$0xff] %vm669_vm3, %v2715_v57  ;;  %v2670_v5 = vsel %vm14819_vm9, %v2669_v17, %v2665_v38  ;;  %v4080_v53 = vpack.c.bf16 %v4079_v43, %v4079_v43  ;;  %v766_v45 = vld [vmem:[%s13789_s2 + $0x80] sm:$0xff] }
 0x1ce   : > { %2779 = vst.msk [vmem:[#allocation2 + $0x150] sm:$0xff] %vm669_vm3, %v2715_v57  ;;  %v2717_v47 = vmul.f32 %v2670_v5, %v14620_v9  ;;  %v2680_v9 = vsel %vm14845_vm12, %v13219_v18, %v2676_v34  ;;  %v3241_v28 = vadd.f32 %v14660_v0, %v3204_v26  ;;  %v12674_v0 = vld [vmem:[%s17880_s6 + $0x38] sm:$0xff]  ;;  %v12680_v34 = vld [vmem:[%s17880_s6 + $0x68] sm:$0xff] }
 0x1cf   : > { %2748 = vst.msk [vmem:[%s13843_s25 + $0xe8] sm:$0xff] %vm669_vm3, %v2716_v4  ;;  %v2685_v52 = vsel %vm2682_vm13, %v2684_v37, %v2680_v9  ;;  %v4177_v37 = vld [vmem:[#allocation2 + $0xc0] ss:$2 sm:$0xff]  ;;  %v12682_v9 = vld [vmem:[%s17880_s6 + $0x78] sm:$0xff] }
 0x1d0   : > { %v3275_v32 = vpop.f32.mrf.mxu2  ;;  %v3311_v11 = vpop.f32.mrf.mxu3  ;;  %2780 = vst.msk [vmem:[#allocation2 + $0x158] sm:$0xff] %vm669_vm3, %v2716_v4  ;;  %v2718_v25 = vmul.f32 %v2685_v52, %v14627_v13  ;;  %v12667_v13 = vld [vmem:[%s17880_s6] sm:$0xff]  ;;  %v3277_v7 = vadd.f32 %v14784_v21, %v3241_v28  ;;  %v4044_v21 = vpack.c.bf16 %v4043_v49, %v4043_v49  ;;  %v4178_v12 = vpack.c.bf16 %v4177_v37, %v4177_v37  ;;  %v767_v52 = vld [vmem:[%s13789_s2 + $0x88] sm:$0xff]  ;;  %v12688_v49 = vld [vmem:[%s17880_s6 + $0x18] sm:$0xff] }
 0x1d1   : > { %2749 = vst.msk [vmem:[%s13843_s25 + $0xf0] sm:$0xff] %vm669_vm3, %v2717_v47  ;;  %9880 = vmatmul.msk.f32.gmra.mxu0 %vm886_vm2, %v763_v19  ;;  %v4184_v11 = vpack.c.bf16 %v4183_v10, %v4183_v10 }
 0x1d2   : > { %2781 = vst.msk [vmem:[#allocation2 + $0x168] sm:$0xff] %vm669_vm3, %v2717_v47  ;;  %v3313_v44 = vadd.f32 %v14786_v48, %v3277_v7  ;;  %v765_v48 = vld [vmem:[%s13789_s2 + $0x78] sm:$0xff] }
 0x1d3   : > { %v14861_v6 = vpop.f32.mrf.mxu1  ;;  %2750 = vst.msk [vmem:[%s13843_s25 + $0xf8] sm:$0xff] %vm669_vm3, %v2718_v25 }
 0x1d4   : > { %2782 = vst.msk [vmem:[#allocation2 + $0x170] sm:$0xff] %vm669_vm3, %v2718_v25 }
 0x1d5   : > { %10504 = vmatmul.msk.bf16.vlgmr.msra.gmra.mxu2 %vm669_vm3, %v3936_v31  ;;  %10517 = vmatmul.msk.bf16.vlgmr.msrb.gmra.mxu3 %vm669_vm3, %v3972_v51  ;;  %v12679_v31 = vld [vmem:[%s17880_s6 + $0x60] sm:$0xff] }
 0x1d6   : > { %10833 = vmatmul.msk.bf16.vlgmr.msrb.gmra.mxu1 %vm669_vm3, %v4938_v2  ;;  %4210 = vmatpush.bf16.msra.mxu2 %v12670_v16  ;;  %v12732_v2 = vld [vmem:[%s17880_s6 + $0x58] sm:$0xff] }
 0x1d7   : > { %4238 = vmatpush.bf16.msrb.mxu3 %v12668_v40  ;;  %5180 = vmatpush.bf16.msrb.mxu1 %v12720_v23  ;;  %v5153_v5 = vld [vmem:[#allocation2 + $0x152] ss:$2 sm:$0xff] }
 0x1d8   : > { %v3345_v33 = vpop.f32.mrf.mxu2  ;;  %v3381_v35 = vpop.f32.mrf.mxu3  ;;  %v5154_v1 = vpack.c.bf16 %v5153_v5, %v5153_v5  ;;  %v12681_v40 = vld [vmem:[%s17880_s6 + $0x70] sm:$0xff] }
 0x1d9   : > { %9881 = vmatmul.msk.f32.gmra.mxu0 %vm886_vm2, %v764_v36  ;;  %v3349_v18 = vadd.f32 %v3345_v33, %v3313_v44  ;;  %v12731_v23 = vld [vmem:[%s17880_s6 + $0x50] sm:$0xff]  ;;  %v4281_v36 = vld [vmem:[#allocation2 + $0xd8] ss:$2 sm:$0xff] }
 0x1da   : > { %4211 = vmatpush.bf16.msra.mxu2 %v12669_v27  ;;  %v768_v33 = vld [vmem:[%s13789_s2 + $0x90] sm:$0xff] }
 0x1db   : > { %v4039_v56 = vpop.f32.mrf.mxu1  ;;  %4239 = vmatpush.bf16.msrb.mxu3 %v12667_v13  ;;  %5181 = vmatpush.bf16.msrb.mxu1 %v12719_v30  ;;  %v3385_v57 = vadd.f32 %v3381_v35, %v3349_v18  ;;  %v5283_v35 = vld [vmem:[#allocation2 + $0x152] ss:$2 sm:$0xff] }
 0x1dc   : > { %v5391_v37 = vld [vmem:[#allocation2 + $0x16a] ss:$2 sm:$0xff] }
 0x1e0   : > { %v3347_v22 = vpop.f32.mrf.mxu2  ;;  %v3383_v39 = vpop.f32.mrf.mxu3 }
 0x1e1   : > { %9882 = vmatmul.msk.f32.gmra.mxu0 %vm886_vm2, %v765_v48  ;;  %v5284_v39 = vpack.c.bf16 %v5283_v35, %v5283_v35 }
 0x1e3   : > { %v14897_v50 = vpop.f32.mrf.mxu1 }
 0x1e5   : > { %10543 = vmatmul.msk.bf16.vlgmr.msrb.gmra.mxu2 %vm669_vm3, %v4044_v21  ;;  %10556 = vmatmul.msk.bf16.vlgmr.msra.gmra.mxu3 %vm669_vm3, %v4080_v53  ;;  %v12686_v21 = vld [vmem:[%s17880_s6 + $0x8] sm:$0xff] }
 0x1e6   : > { %10872 = vmatmul.msk.bf16.vlgmr.msra.gmra.mxu1 %vm669_vm3, %v5046_v24  ;;  %4308 = vmatpush.bf16.msrb.mxu2 %v12674_v0  ;;  %v1292_v20 = vpop.f32.mrf.mxu0  ;;  %v4282_v24 = vpack.c.bf16 %v4281_v36, %v4281_v36  ;;  %v4318_v0 = vpack.c.bf16 %v4317_v54, %v4317_v54  ;;  %v12738_v53 = vld [vmem:[%s17880_s6 + $0x88] sm:$0xff]  ;;  %v11066_v36 = vld [vmem:[%s17934_s8 + $0x44] sm:$0xf] }
 0x1e7   : > { %4344 = vmatpush.bf16.msra.mxu3 %v12676_v29  ;;  %5310 = vmatpush.bf16.msra.mxu1 %v12726_v46  ;;  %v1293_v42 = vadd.f32 %v14925_v3, %v1292_v20 }
 0x1e8   : > { %v3417_v17 = vpop.f32.mrf.mxu2  ;;  %v3453_v59 = vpop.f32.mrf.mxu3 }
 0x1e9   : > { %v3421_v62 = vadd.f32 %v3417_v17, %v3385_v57  ;;  %1676 = vst.msk [vmem:[%s14179_s28] sm:$0xff] %vm669_vm3, %v1293_v42  ;;  %9883 = vmatmul.msk.f32.gmra.mxu0 %vm886_vm2, %v766_v45  ;;  %v769_v57 = vld [vmem:[%s13789_s2 + $0x98] sm:$0xff]  ;;  %v12685_v17 = vld [vmem:[%s17880_s6] sm:$0xff] }
 0x1ea   : > { %4309 = vmatpush.bf16.msrb.mxu2 %v12673_v55 }
 0x1eb   : > { %v3457_v61 = vadd.f32 %v3453_v59, %v3421_v62  ;;  %v4147_v63 = vpop.f32.mrf.mxu1  ;;  %4345 = vmatpush.bf16.msra.mxu3 %v12675_v58  ;;  %5311 = vmatpush.bf16.msra.mxu1 %v12725_v60  ;;  %v12687_v58 = vld [vmem:[%s17880_s6 + $0x10] sm:$0xff]  ;;  %v12737_v59 = vld [vmem:[%s17880_s6 + $0x80] sm:$0xff] }
 0x1ed   : > { %v14928_v38 = vadd.f32 %v13075_v41, %v3457_v61 }
 0x1ee   : > { %v1295_v15 = vpop.f32.mrf.mxu0 }
 0x1ef   : > { %v10342_v4 = vmul.f32 -1.442695, %v14928_v38  ;;  %v1296_v16 = vadd.f32 %v14925_v3, %v1295_v15  ;;  %v5392_v15 = vpack.c.bf16 %v5391_v37, %v5391_v37 }
 0x1f0   : > { %v3419_v8 = vpop.f32.mrf.mxu2  ;;  %v3455_v47 = vpop.f32.mrf.mxu3 }
 0x1f1   : > { %13220 = vpow2.f32 %v10342_v4  ;;  %1677 = vst.msk [vmem:[%s14179_s28 + $0x8] sm:$0xff] %vm669_vm3, %v1296_v16  ;;  %9884 = vmatmul.msk.f32.gmra.mxu0 %vm886_vm2, %v767_v52  ;;  %v11042_v8 = vld [vmem:[%s17934_s8 + $0x20] sm:$0xf] }
 0x1f2   : > { %v770_v47 = vld [vmem:[%s13789_s2 + $0xa0] sm:$0xff]  ;;  %v5642_v10 = vunpack.c.l.b16 %v11042_v8 }
 0x1f3   : > { %v14938_v32 = vpop.f32.mrf.mxu1  ;;  %v774_v8 = vld [vmem:[%s13789_s2 + $0xc0] sm:$0xff] }
 0x1f5   : > { %10583 = vmatmul.msk.bf16.vlgmr.msra.gmra.mxu2 %vm669_vm3, %v4184_v11  ;;  %10592 = vmatmul.msk.bf16.vlgmr.msrb.gmra.mxu3 %vm669_vm3, %v4178_v12  ;;  %v4425_v11 = vld [vmem:[#allocation2 + $0xf1] ss:$2 sm:$0xff]  ;;  %v5644_v12 = vpack.c.b16 %v5642_v10, %v5642_v10 }
 0x1f6   : > { %10911 = vmatmul.msk.bf16.vlgmr.msrb.gmra.mxu1 %vm669_vm3, %v5154_v1  ;;  %4416 = vmatpush.bf16.msra.mxu2 %v12680_v34  ;;  %v1298_v13 = vpop.f32.mrf.mxu0  ;;  %v4389_v34 = vld [vmem:[#allocation2 + $0xf0] ss:$2 sm:$0xff]  ;;  %v4426_v52 = vpack.c.bf16 %v4425_v11, %v4425_v11 }
 0x1f7   : > { %v13221_v51 = vpop.eup %13220  ;;  %4452 = vmatpush.bf16.msrb.mxu3 %v12682_v9  ;;  %5418 = vmatpush.bf16.msrb.mxu1 %v12732_v2  ;;  %v1299_v30 = vadd.f32 %v14925_v3, %v1298_v13  ;;  %v12692_v9 = vld [vmem:[%s17880_s6 + $0x38] sm:$0xff]  ;;  %v4390_v16 = vpack.c.bf16 %v4389_v34, %v4389_v34  ;;  %v12693_v13 = vld [vmem:[%s17880_s6 + $0x40] sm:$0xff] }
 0x1f8   : > { %v3466_v25 = vadd.f32 1.0, %v13221_v51  ;;  %v14962_v19 = vpop.f32.mrf.mxu2  ;;  %v14964_v27 = vpop.f32.mrf.mxu3  ;;  %v5650_v51 = vsel %vm5585_vm4, %v5644_v12, 0  ;;  %v5631_v11 = vld [vmem:[#allocation3 + $0x2] ss:$2 sm:$0xf] }
 0x1f9   : > { %1678 = vst.msk [vmem:[%s14179_s28 + $0x10] sm:$0xff] %vm669_vm3, %v1299_v30  ;;  %9885 = vmatmul.msk.f32.gmra.mxu0 %vm886_vm2, %v768_v33  ;;  %v12741_v30 = vld [vmem:[%s17934_s8 + $0x18] sm:$0xff] }
 0x1fa   : > { %13222 = vrcp.f32 %v3466_v25  ;;  %4417 = vmatpush.bf16.msra.mxu2 %v12679_v31  ;;  %v3478_v29 = vand.u32 2147483648, %v3466_v25  ;;  %v3476_v55 = vand.u32 2147483647, %v3466_v25  ;;  %vm3472_vm15 = vweird.f32 %v3466_v25  ;;  %v12694_v31 = vld [vmem:[%s17880_s6 + $0x48] sm:$0xff] }
 0x1fb   : > { %v4277_v26 = vpop.f32.mrf.mxu1  ;;  %4453 = vmatpush.bf16.msrb.mxu3 %v12681_v40  ;;  %5419 = vmatpush.bf16.msrb.mxu1 %v12731_v23  ;;  %v771_v23 = vld [vmem:[%s13789_s2 + $0xa8] sm:$0xff] }
 0x1fc   : > { %v3479_v62 = vor.u32 1.1754944e-38, %v3478_v29  ;;  %vm3477_vm1 = vcmp.eq.f32.partialorder %v3476_v55, 8.507059e+37  ;;  %v12691_v26 = vld [vmem:[%s17880_s6 + $0x30] sm:$0xff]  ;;  %v12700_v55 = vld [vmem:[%s17880_s6 + $0x78] sm:$0xff] }
 0x1fe   : > { %v1301_v18 = vpop.f32.mrf.mxu0 }
 0x1ff   : > { %v1302_v46 = vadd.f32 %v14925_v3, %v1301_v18 }
 0x200   : > { %v13223_v28 = vpop.eup %13222  ;;  %v3523_v56 = vpop.f32.mrf.mxu2 }
 0x201   : > { %v3551_v7 = vpop.f32.mrf.mxu3  ;;  %v3468_v22 = vmul.f32 %v13223_v28, %v3466_v25  ;;  %vm3473_vm14 = vweird.f32 %v13223_v28  ;;  %1679 = vst.msk [vmem:[%s14179_s28 + $0x18] sm:$0xff] %vm669_vm3, %v1302_v46  ;;  %9886 = vmatmul.msk.f32.gmra.mxu0 %vm886_vm2, %v769_v57 }
 0x202   : > { %vm3474_vm0 = vmor %vm3472_vm15, %vm3473_vm14  ;;  %v772_v7 = vld [vmem:[%s13789_s2 + $0xb0] sm:$0xff] }
 0x203   : > { %v3469_v43 = vsub.f32 1.0, %v3468_v22  ;;  %v14975_v44 = vpop.f32.mrf.mxu1  ;;  %v5750_v22 = vunpack.c.l.b16 %v11066_v36 }
 0x205   : > { %v3470_v48 = vmul.f32 %v13223_v28, %v3469_v43  ;;  %10618 = vmatmul.msk.bf16.vlgmr.msrb.gmra.mxu2 %vm669_vm3, %v4282_v24  ;;  %10631 = vmatmul.msk.bf16.vlgmr.msra.gmra.mxu3 %vm669_vm3, %v4318_v0  ;;  %v4529_v24 = vld [vmem:[#allocation2 + $0xf1] ss:$2 sm:$0xff]  ;;  %v4523_v0 = vld [vmem:[#allocation2 + $0xf0] ss:$2 sm:$0xff]  ;;  %v5752_v18 = vpack.c.b16 %v5750_v22, %v5750_v22 }
 0x206   : > { %10947 = vmatmul.msk.bf16.vlgmr.msra.gmra.mxu1 %vm669_vm3, %v5284_v39  ;;  %4556 = vmatpush.bf16.msrb.mxu2 %v12688_v49  ;;  %v1304_v4 = vpop.f32.mrf.mxu0  ;;  %v5499_v39 = vld [vmem:[#allocation2 + $0x182] ss:$2 sm:$0xff]  ;;  %v4530_v46 = vpack.c.bf16 %v4529_v24, %v4529_v24 }
 0x207   : > { %v3471_v60 = vadd.f32 %v13223_v28, %v3470_v48  ;;  %4584 = vmatpush.bf16.msra.mxu3 %v12686_v21  ;;  %5526 = vmatpush.bf16.msra.mxu1 %v12738_v53  ;;  %v1305_v5 = vadd.f32 %v14925_v3, %v1304_v4  ;;  %v5500_v21 = vpack.c.bf16 %v5499_v39, %v5499_v39  ;;  %v12698_v53 = vld [vmem:[%s17880_s6 + $0x68] sm:$0xff]  ;;  %v5758_v57 = vsel %vm5585_vm4, %v5752_v18, 0  ;;  %v776_v22 = vld [vmem:[%s13789_s2 + $0xd0] sm:$0xff] }
 0x208   : > { %v15000_v41 = vpop.f32.mrf.mxu2  ;;  %v4524_v48 = vpack.c.bf16 %v4523_v0, %v4523_v0  ;;  %v11090_v39 = vld [vmem:[%s17934_s8 + $0x68] sm:$0xf] }
 0x209   : > { %v15002_v61 = vpop.f32.mrf.mxu3  ;;  %v3475_v63 = vsel %vm3474_vm0, %v13223_v28, %v3471_v60  ;;  %1680 = vst.msk [vmem:[%s14179_s28 + $0x20] sm:$0xff] %vm669_vm3, %v1305_v5  ;;  %9887 = vmatmul.msk.f32.gmra.mxu0 %vm886_vm2, %v770_v47  ;;  %v4735_v18 = vld [vmem:[#allocation2 + $0x120] ss:$2 sm:$0xff] }
 0x20a   : > { %v3480_v20 = vsel %vm3477_vm1, %v3479_v62, %v3475_v63  ;;  %4557 = vmatpush.bf16.msrb.mxu2 %v12687_v58  ;;  %v3550_v58 = vadd.f32 %v14964_v27, %v14962_v19  ;;  %v12697_v62 = vld [vmem:[%s17880_s6 + $0x60] sm:$0xff]  ;;  %v12699_v19 = vld [vmem:[%s17880_s6 + $0x70] sm:$0xff] }
 0x20b   : > { %v3482_v42 = vmul.f32 %v3480_v20, %v14928_v38  ;;  %v4385_v45 = vpop.f32.mrf.mxu1  ;;  %4585 = vmatpush.bf16.msra.mxu3 %v12685_v17  ;;  %5527 = vmatpush.bf16.msra.mxu1 %v12737_v59  ;;  %v773_v17 = vld [vmem:[%s13789_s2 + $0xb8] sm:$0xff] }
 0x20c   : > { %v3587_v63 = vadd.f32 %v15000_v41, %v3550_v58  ;;  %v12744_v27 = vld [vmem:[%s17934_s8 + $0x3c] sm:$0xff]  ;;  %v4736_v58 = vpack.c.bf16 %v4735_v18, %v4735_v18 }
 0x20d   : > { %3483 = vst.msk [vmem:[%s14814_s23 + $0x8] sm:$0xff] %vm721_vm5, %v3482_v42 }
 0x20e   : > { %3484 = vst.msk [vmem:[#allocation3 + $0x10] sm:$0xff] %vm721_vm5, %v3482_v42  ;;  %v1307_v40 = vpop.f32.mrf.mxu0  ;;  %v3623_v41 = vadd.f32 %v15002_v61, %v3587_v63  ;;  %v12706_v61 = vld [vmem:[%s17880_s6 + $0x18] sm:$0xff] }
 0x20f   : > { %v1308_v25 = vadd.f32 %v14925_v3, %v1307_v40  ;;  %v775_v40 = vld [vmem:[%s13789_s2 + $0xc8] sm:$0xff] }
 0x210   : > { %v3585_v38 = vpop.f32.mrf.mxu2 }
 0x211   : > { %v3621_v1 = vpop.f32.mrf.mxu3  ;;  %1681 = vst.msk [vmem:[%s14179_s28 + $0x28] sm:$0xff] %vm669_vm3, %v1308_v25  ;;  %9888 = vmatmul.msk.f32.gmra.mxu0 %vm886_vm2, %v771_v23  ;;  %v4627_v38 = vld [vmem:[#allocation2 + $0x108] ss:$2 sm:$0xff] }
 0x212   : > { %v4663_v1 = vld [vmem:[#allocation2 + $0x109] ss:$2 sm:$0xff] }
 0x213   : > { %v15020_v2 = vpop.f32.mrf.mxu1  ;;  %v12705_v25 = vld [vmem:[%s17880_s6 + $0x10] sm:$0xff] }
 0x215   : > { %10657 = vmatmul.msk.bf16.vlgmr.msra.gmra.mxu2 %vm669_vm3, %v4390_v16  ;;  %10670 = vmatmul.msk.bf16.vlgmr.msrb.gmra.mxu3 %vm669_vm3, %v4426_v52  ;;  %v4664_v16 = vpack.c.bf16 %v4663_v1, %v4663_v1  ;;  %v12704_v52 = vld [vmem:[%s17880_s6 + $0x8] sm:$0xff] }
 0x216   : > { %10986 = vmatmul.msk.bf16.vlgmr.msrb.gmra.mxu1 %vm669_vm3, %v5392_v15  ;;  %4654 = vmatpush.bf16.msra.mxu2 %v12692_v9  ;;  %v1310_v56 = vpop.f32.mrf.mxu0  ;;  %v4628_v9 = vpack.c.bf16 %v4627_v38, %v4627_v38 }
 0x217   : > { %4690 = vmatpush.bf16.msrb.mxu3 %v12694_v31  ;;  %5658 = vmatpush.bf16.msrb.mxu1 %v5650_v51  ;;  %v1311_v54 = vadd.f32 %v14925_v3, %v1310_v56  ;;  %v5632_v31 = vpack.c.bf16 %v5631_v11, %v5631_v11 }
 0x218   : > { %v3655_v33 = vpop.f32.mrf.mxu2 }
 0x219   : > { %v3691_v35 = vpop.f32.mrf.mxu3  ;;  %1682 = vst.msk [vmem:[%s14179_s28 + $0x30] sm:$0xff] %vm669_vm3, %v1311_v54  ;;  %9889 = vmatmul.msk.f32.gmra.mxu0 %vm886_vm2, %v772_v7  ;;  %v3659_v4 = vadd.f32 %v3655_v33, %v3623_v41  ;;  %v12709_v41 = vld [vmem:[%s17880_s6 + $0x30] sm:$0xff] }
 0x21a   : > { %4655 = vmatpush.bf16.msra.mxu2 %v12691_v26 }
 0x21b   : > { %v4493_v28 = vpop.f32.mrf.mxu1  ;;  %4691 = vmatpush.bf16.msrb.mxu3 %v12693_v13  ;;  %5659 = vmatpush.bf16.msrb.mxu1 %v12741_v30  ;;  %v3695_v34 = vadd.f32 %v3691_v35, %v3659_v4  ;;  %v13076_v13 = vld [vmem:[%s17913_s7] ss:$0 sm:$0xff] }
 0x21c   : > { %v12703_v30 = vld [vmem:[%s17880_s6] sm:$0xff] }
 0x21e   : > { %v1313_v60 = vpop.f32.mrf.mxu0 }
 0x21f   : > { %v1314_v59 = vadd.f32 %v14925_v3, %v1313_v60 }
 0x220   : > { %v3657_v49 = vpop.f32.mrf.mxu2 }
 0x221   : > { %v3693_v43 = vpop.f32.mrf.mxu3  ;;  %1683 = vst.msk [vmem:[%s14179_s28 + $0x38] sm:$0xff] %vm669_vm3, %v1314_v59  ;;  %9890 = vmatmul.msk.f32.gmra.mxu0 %vm886_vm2, %v773_v17  ;;  %v12712_v17 = vld [vmem:[%s17880_s6 + $0x48] sm:$0xff]  ;;  %v12747_v59 = vld [vmem:[%s17934_s8 + $0x60] sm:$0xff] }
 0x222   : > { %v5858_v43 = vunpack.c.l.b16 %v11090_v39 }
 0x223   : > { %v15054_v29 = vpop.f32.mrf.mxu1 }
 0x225   : > { %10697 = vmatmul.msk.bf16.vlgmr.msrb.gmra.mxu2 %vm669_vm3, %v4530_v46  ;;  %10706 = vmatmul.msk.bf16.vlgmr.msra.gmra.mxu3 %vm669_vm3, %v4524_v48  ;;  %v5739_v46 = vld [vmem:[#allocation3 + $0x12] ss:$2 sm:$0xf]  ;;  %v12710_v48 = vld [vmem:[%s17880_s6 + $0x38] sm:$0xff] }
 0x226   : > { %11025 = vmatmul.msk.bf16.vlgmr.msra.gmra.mxu1 %vm669_vm3, %v5500_v21  ;;  %4762 = vmatpush.bf16.msrb.mxu2 %v12698_v53  ;;  %v1316_v5 = vpop.f32.mrf.mxu0  ;;  %v4771_v21 = vld [vmem:[#allocation2 + $0x121] ss:$2 sm:$0xff]  ;;  %v5860_v53 = vpack.c.b16 %v5858_v43, %v5858_v43  ;;  %v12717_v43 = vld [vmem:[%s17880_s6 + $0x70] sm:$0xff] }
 0x227   : > { %4798 = vmatpush.bf16.msra.mxu3 %v12700_v55  ;;  %5766 = vmatpush.bf16.msra.mxu1 %v5758_v57  ;;  %v1317_v47 = vadd.f32 %v14925_v3, %v1316_v5  ;;  %v4772_v60 = vpack.c.bf16 %v4771_v21, %v4771_v21 }
 0x228   : > { %v3727_v20 = vpop.f32.mrf.mxu2  ;;  %v5866_v55 = vsel %vm5585_vm4, %v5860_v53, 0 }
 0x229   : > { %v3763_v42 = vpop.f32.mrf.mxu3  ;;  %1684 = vst.msk [vmem:[%s14179_s28 + $0x40] sm:$0xff] %vm669_vm3, %v1317_v47  ;;  %9891 = vmatmul.msk.f32.gmra.mxu0 %vm886_vm2, %v774_v8  ;;  %v3731_v12 = vadd.f32 %v3727_v20, %v3695_v34 }
 0x22a   : > { %4763 = vmatpush.bf16.msrb.mxu2 %v12697_v62  ;;  %v5740_v62 = vpack.c.bf16 %v5739_v46, %v5739_v46 }
 0x22b   : > { %v4623_v45 = vpop.f32.mrf.mxu1  ;;  %4799 = vmatpush.bf16.msra.mxu3 %v12699_v19  ;;  %5767 = vmatpush.bf16.msra.mxu1 %v12744_v27  ;;  %v3767_v26 = vadd.f32 %v3763_v42, %v3731_v12  ;;  %v777_v27 = vld [vmem:[%s13789_s2 + $0xd8] sm:$0xff] }
 0x22c   : > { %v12711_v45 = vld [vmem:[%s17880_s6 + $0x40] sm:$0xff] }
 0x22e   : > { %v1319_v51 = vpop.f32.mrf.mxu0 }
 0x22f   : > { %v1320_v23 = vadd.f32 %v14925_v3, %v1319_v51 }
 0x230   : > { %v3729_v10 = vpop.f32.mrf.mxu2 }
 0x231   : > { %v3765_v37 = vpop.f32.mrf.mxu3  ;;  %1685 = vst.msk [vmem:[%s14179_s28 + $0x48] sm:$0xff] %vm669_vm3, %v1320_v23  ;;  %9892 = vmatmul.msk.f32.gmra.mxu0 %vm886_vm2, %v775_v40  ;;  %v778_v10 = vld [vmem:[%s13789_s2 + $0xe0] sm:$0xff]  ;;  %v12716_v40 = vld [vmem:[%s17880_s6 + $0x68] sm:$0xff]  ;;  %v12718_v23 = vld [vmem:[%s17880_s6 + $0x78] sm:$0xff] }
 0x232   : > { %v11112_v37 = vld [vmem:[%s17934_s8 + $0x20] sm:$0xf] }
 0x233   : > { %v15089_v15 = vpop.f32.mrf.mxu1  ;;  %v5986_v34 = vunpack.c.l.b16 %v11112_v37 }
 0x235   : > { %10732 = vmatmul.msk.bf16.vlgmr.msra.gmra.mxu2 %vm669_vm3, %v4628_v9  ;;  %10745 = vmatmul.msk.bf16.vlgmr.msrb.gmra.mxu3 %vm669_vm3, %v4664_v16  ;;  %v4875_v9 = vld [vmem:[#allocation2 + $0x121] ss:$2 sm:$0xff]  ;;  %v4869_v16 = vld [vmem:[#allocation2 + $0x120] ss:$2 sm:$0xff] }
 0x236   : > { %11047 = vmatmul.msk.bf16.vlgmr.msrb.gmra.mxu1 %vm721_vm5, %v5632_v31  ;;  %4902 = vmatpush.bf16.msra.mxu2 %v12706_v61  ;;  %v1322_v54 = vpop.f32.mrf.mxu0 }
 0x237   : > { %4930 = vmatpush.bf16.msrb.mxu3 %v12704_v52  ;;  %v1323_v49 = vadd.f32 %v14925_v3, %v1322_v54  ;;  %5874 = vmatpush.bf16.msrb.mxu1 %v5866_v55  ;;  %v5988_v52 = vpack.c.b16 %v5986_v34, %v5986_v34  ;;  %v779_v54 = vld [vmem:[%s13789_s2 + $0xe8] sm:$0xff]  ;;  %v12721_v34 = vld [vmem:[%s17880_s6] sm:$0xff] }
 0x238   : > { %v3799_v33 = vpop.f32.mrf.mxu2 }
 0x239   : > { %v15108_v35 = vpop.f32.mrf.mxu3  ;;  %v3803_v28 = vadd.f32 %v3799_v33, %v3767_v26  ;;  %1686 = vst.msk [vmem:[%s14179_s28 + $0x50] sm:$0xff] %vm669_vm3, %v1323_v49  ;;  %9893 = vmatmul.msk.f32.gmra.mxu0 %vm886_vm2, %v776_v22  ;;  %v4876_v33 = vpack.c.bf16 %v4875_v9, %v4875_v9  ;;  %v12715_v49 = vld [vmem:[%s17880_s6 + $0x60] sm:$0xff] }
 0x23a   : > { %4903 = vmatpush.bf16.msra.mxu2 %v12705_v25  ;;  %v5994_v25 = vsel %vm5585_vm4, %v5988_v52, 0 }
 0x23b   : > { %v15113_v56 = vadd.f32 %v13076_v13, %v3803_v28  ;;  %v4731_v7 = vpop.f32.mrf.mxu1  ;;  %4931 = vmatpush.bf16.msrb.mxu3 %v12703_v30  ;;  %5875 = vmatpush.bf16.msrb.mxu1 %v12747_v59  ;;  %v4870_v28 = vpack.c.bf16 %v4869_v16, %v4869_v16  ;;  %v13077_v16 = vld [vmem:[%s17913_s7] ss:$0 sm:$0xff] }
 0x23d   : > { %v10456_v36 = vmul.f32 -1.442695, %v15113_v56 }
 0x23e   : > { %v1325_v19 = vpop.f32.mrf.mxu0 }
 0x23f   : > { %13224 = vpow2.f32 %v10456_v36  ;;  %v1326_v42 = vadd.f32 %v14925_v3, %v1325_v19 }
 0x240   : > { %v3801_v24 = vpop.f32.mrf.mxu2 }
 0x241   : > { %v3869_v0 = vpop.f32.mrf.mxu3  ;;  %1687 = vst.msk [vmem:[%s14179_s28 + $0x58] sm:$0xff] %vm669_vm3, %v1326_v42  ;;  %9894 = vmatmul.msk.f32.gmra.mxu0 %vm886_vm2, %v777_v27  ;;  %v12750_v24 = vld [vmem:[%s17934_s8 + $0x18] sm:$0xff] }
 0x242   : > { %v5009_v27 = vld [vmem:[#allocation2 + $0x139] ss:$2 sm:$0xff] }
 0x243   : > { %v15128_v57 = vpop.f32.mrf.mxu1 }
 0x245   : > { %v13225_v63 = vpop.eup %13224  ;;  %10771 = vmatmul.msk.bf16.vlgmr.msrb.gmra.mxu2 %vm669_vm3, %v4736_v58  ;;  %10784 = vmatmul.msk.bf16.vlgmr.msra.gmra.mxu3 %vm669_vm3, %v4772_v60 }
 0x246   : > { %v3812_v20 = vadd.f32 1.0, %v13225_v63  ;;  %11071 = vmatmul.msk.bf16.vlgmr.msra.gmra.mxu1 %vm721_vm5, %v5740_v62  ;;  %5000 = vmatpush.bf16.msrb.mxu2 %v12710_v48  ;;  %v1328_v47 = vpop.f32.mrf.mxu0 }
 0x247   : > { %5036 = vmatpush.bf16.msra.mxu3 %v12712_v17  ;;  %v1329_v1 = vadd.f32 %v14925_v3, %v1328_v47  ;;  %6002 = vmatpush.bf16.msra.mxu1 %v5994_v25  ;;  %v780_v17 = vld [vmem:[%s13789_s2 + $0xf0] sm:$0xff] }
 0x248   : > { %13226 = vrcp.f32 %v3812_v20  ;;  %v3895_v4 = vpop.f32.mrf.mxu2  ;;  %v3824_v51 = vand.u32 2147483648, %v3812_v20  ;;  %v3822_v13 = vand.u32 2147483647, %v3812_v20  ;;  %vm3818_vm7 = vweird.f32 %v3812_v20  ;;  %v5081_v25 = vld [vmem:[#allocation2 + $0x150] ss:$2 sm:$0xff] }
 0x249   : > { %v3929_v5 = vpop.f32.mrf.mxu3  ;;  %1688 = vst.msk [vmem:[%s14179_s28 + $0x60] sm:$0xff] %vm669_vm3, %v1329_v1  ;;  %9895 = vmatmul.msk.f32.gmra.mxu0 %vm886_vm2, %v778_v10  ;;  %v3896_v48 = vadd.f32 %v3895_v4, %v15108_v35  ;;  %v12724_v35 = vld [vmem:[%s17880_s6 + $0x18] sm:$0xff] }
 0x24a   : > { %5001 = vmatpush.bf16.msrb.mxu2 %v12709_v41  ;;  %v3825_v22 = vor.u32 1.1754944e-38, %v3824_v51  ;;  %vm3823_vm9 = vcmp.eq.f32.partialorder %v3822_v13, 8.507059e+37  ;;  %v781_v10 = vld [vmem:[%s13789_s2 + $0xf8] sm:$0xff]  ;;  %v782_v51 = vld [vmem:[%s13789_s2 + $0x100] sm:$0xff] }
 0x24b   : > { %v4839_v8 = vpop.f32.mrf.mxu1  ;;  %5037 = vmatpush.bf16.msra.mxu3 %v12711_v45  ;;  %6003 = vmatpush.bf16.msra.mxu1 %v12750_v24  ;;  %v3933_v58 = vadd.f32 %v3929_v5, %v3896_v48  ;;  %v5010_v45 = vpack.c.bf16 %v5009_v27, %v5009_v27  ;;  %v12722_v5 = vld [vmem:[%s17880_s6 + $0x8] sm:$0xff] }
 0x24e   : > { %v13227_v38 = vpop.eup %13226  ;;  %v1331_v36 = vpop.f32.mrf.mxu0 }
 0x24f   : > { %v3814_v11 = vmul.f32 %v13227_v38, %v3812_v20  ;;  %vm3819_vm6 = vweird.f32 %v13227_v38  ;;  %v1332_v39 = vadd.f32 %v14925_v3, %v1331_v36  ;;  %v12728_v36 = vld [vmem:[%s17880_s6 + $0x38] sm:$0xff] }
 0x250   : > { %v3897_v61 = vpop.f32.mrf.mxu2  ;;  %vm3820_vm8 = vmor %vm3818_vm7, %vm3819_vm6 }
 0x251   : > { %v3931_v12 = vpop.f32.mrf.mxu3  ;;  %v3815_v31 = vsub.f32 1.0, %v3814_v11  ;;  %1689 = vst.msk [vmem:[%s14179_s28 + $0x68] sm:$0xff] %vm669_vm3, %v1332_v39  ;;  %9896 = vmatmul.msk.f32.gmra.mxu0 %vm886_vm2, %v779_v54  ;;  %v5082_v39 = vpack.c.bf16 %v5081_v25, %v5081_v25 }
 0x253   : > { %v3816_v26 = vmul.f32 %v13227_v38, %v3815_v31  ;;  %v15165_v30 = vpop.f32.mrf.mxu1 }
 0x255   : > { %v3817_v7 = vadd.f32 %v13227_v38, %v3816_v26  ;;  %10811 = vmatmul.msk.bf16.vlgmr.msra.gmra.mxu2 %vm669_vm3, %v4876_v33  ;;  %10820 = vmatmul.msk.bf16.vlgmr.msrb.gmra.mxu3 %vm669_vm3, %v4870_v28  ;;  %v5117_v33 = vld [vmem:[#allocation2 + $0x151] ss:$2 sm:$0xff] }
 0x256   : > { %5108 = vmatpush.bf16.msra.mxu2 %v12716_v40  ;;  %5144 = vmatpush.bf16.msrb.mxu3 %v12718_v23  ;;  %v1334_v60 = vpop.f32.mrf.mxu0 }
 0x257   : > { %v3821_v0 = vsel %vm3820_vm8, %v13227_v38, %v3817_v7  ;;  %v1335_v59 = vadd.f32 %v14925_v3, %v1334_v60  ;;  %v12723_v38 = vld [vmem:[%s17880_s6 + $0x10] sm:$0xff] }
 0x258   : > { %v3826_v18 = vsel %vm3823_vm9, %v3825_v22, %v3821_v0  ;;  %v3965_v21 = vpop.f32.mrf.mxu2 }
 0x259   : > { %v4001_v53 = vpop.f32.mrf.mxu3  ;;  %v3828_v46 = vmul.f32 %v3826_v18, %v15113_v56  ;;  %v3969_v62 = vadd.f32 %v3965_v21, %v3933_v58  ;;  %v4973_v56 = vld [vmem:[#allocation2 + $0x138] ss:$2 sm:$0xff]  ;;  %1690 = vst.msk [vmem:[%s14179_s28 + $0x70] sm:$0xff] %vm669_vm3, %v1335_v59  ;;  %9897 = vmatmul.msk.f32.gmra.mxu0 %vm886_vm2, %v780_v17  ;;  %v783_v21 = vld [vmem:[%s13789_s2 + $0x108] sm:$0xff] }
 0x25a   : > { %5109 = vmatpush.bf16.msra.mxu2 %v12715_v49  ;;  %5145 = vmatpush.bf16.msrb.mxu3 %v12717_v43  ;;  %v4974_v41 = vpack.c.bf16 %v4973_v56, %v4973_v56  ;;  %v5118_v49 = vpack.c.bf16 %v5117_v33, %v5117_v33  ;;  %v12730_v43 = vld [vmem:[%s17880_s6 + $0x48] sm:$0xff]  ;;  %v12753_v58 = vld [vmem:[%s17934_s8 + $0x3c] sm:$0xff]  ;;  %v784_v56 = vld [vmem:[%s13789_s2 + $0x110] sm:$0xff] }
 0x25b   : > { %3829 = vst.msk [vmem:[%s14814_s23 + $0x10] sm:$0xff] %vm721_vm5, %v3828_v46  ;;  %v4969_v55 = vpop.f32.mrf.mxu1  ;;  %v4005_v20 = vadd.f32 %v4001_v53, %v3969_v62 }
 0x25c   : > { %3830 = vst.msk [vmem:[#allocation3 + $0x20] sm:$0xff] %vm721_vm5, %v3828_v46  ;;  %v12727_v46 = vld [vmem:[%s17880_s6 + $0x30] sm:$0xff]  ;;  %v12729_v55 = vld [vmem:[%s17880_s6 + $0x40] sm:$0xff] }
 0x25d   : > { %v4041_v1 = vadd.f32 %v14861_v6, %v4005_v20 }
 0x25e   : > { %v1337_v47 = vpop.f32.mrf.mxu0 }
 0x25f   : > { %v1338_v37 = vadd.f32 %v14925_v3, %v1337_v47 }
 0x260   : > { %v3967_v63 = vpop.f32.mrf.mxu2 }
 0x261   : > { %v4003_v19 = vpop.f32.mrf.mxu3  ;;  %1691 = vst.msk [vmem:[%s14179_s28 + $0x78] sm:$0xff] %vm669_vm3, %v1338_v37  ;;  %9898 = vmatmul.msk.f32.gmra.mxu0 %vm886_vm2, %v781_v10 }
 0x263   : > { %v15196_v42 = vpop.f32.mrf.mxu1  ;;  %v5847_v4 = vld [vmem:[#allocation3 + $0x22] ss:$2 sm:$0xf] }
 0x264   : > { %v5848_v8 = vpack.c.bf16 %v5847_v4, %v5847_v4  ;;  %v5976_v28 = vld [vmem:[#allocation3 + $0x22] ss:$2 sm:$0xf] }
 0x265   : > { %10846 = vmatmul.msk.bf16.vlgmr.msrb.gmra.mxu2 %vm669_vm3, %v4974_v41  ;;  %10859 = vmatmul.msk.bf16.vlgmr.msra.gmra.mxu3 %vm669_vm3, %v5010_v45  ;;  %v5977_v24 = vpack.c.bf16 %v5976_v28, %v5976_v28  ;;  %v5221_v41 = vld [vmem:[#allocation2 + $0x151] ss:$2 sm:$0xff]  ;;  %v5215_v45 = vld [vmem:[#allocation2 + $0x150] ss:$2 sm:$0xff] }
 0x266   : > { %11095 = vmatmul.msk.bf16.vlgmr.msrb.gmra.mxu1 %vm721_vm5, %v5848_v8  ;;  %5248 = vmatpush.bf16.msrb.mxu2 %v12724_v35  ;;  %v1340_v31 = vpop.f32.mrf.mxu0  ;;  %v12736_v8 = vld [vmem:[%s17880_s6 + $0x78] sm:$0xff]  ;;  %v5222_v37 = vpack.c.bf16 %v5221_v41, %v5221_v41  ;;  %v12739_v41 = vld [vmem:[%s17934_s8] sm:$0xff] }
 0x267   : > { %5276 = vmatpush.bf16.msra.mxu3 %v12722_v5  ;;  %v1341_v40 = vadd.f32 %v14925_v3, %v1340_v31  ;;  %v12734_v5 = vld [vmem:[%s17880_s6 + $0x68] sm:$0xff] }
 0x268   : > { %v4073_v11 = vpop.f32.mrf.mxu2 }
 0x269   : > { %v4109_v61 = vpop.f32.mrf.mxu3  ;;  %v4077_v12 = vadd.f32 %v4073_v11, %v4041_v1  ;;  %1692 = vst.msk [vmem:[%s14179_s28 + $0x80] sm:$0xff] %vm669_vm3, %v1341_v40  ;;  %9899 = vmatmul.msk.f32.gmra.mxu0 %vm886_vm2, %v782_v51  ;;  %v785_v11 = vld [vmem:[%s13789_s2 + $0x118] sm:$0xff] }
 0x26a   : > { %5249 = vmatpush.bf16.msrb.mxu2 %v12723_v38  ;;  %v5216_v38 = vpack.c.bf16 %v5215_v45, %v5215_v45 }
 0x26b   : > { %v4113_v9 = vadd.f32 %v4109_v61, %v4077_v12  ;;  %v5077_v6 = vpop.f32.mrf.mxu1  ;;  %5277 = vmatpush.bf16.msra.mxu3 %v12721_v34 }
 0x26d   : > { %v4149_v52 = vadd.f32 %v14897_v50, %v4113_v9  ;;  %v11136_v50 = vld [vmem:[%s17934_s8 + $0x44] sm:$0xf] }
 0x26e   : > { %v6091_v54 = vunpack.c.l.b16 %v11136_v50  ;;  %v1343_v18 = vpop.f32.mrf.mxu0  ;;  %v12733_v9 = vld [vmem:[%s17880_s6 + $0x60] sm:$0xff] }
 0x26f   : > { %v15222_v23 = vadd.f32 %v13077_v16, %v4149_v52  ;;  %v1344_v53 = vadd.f32 %v14925_v3, %v1343_v18  ;;  %v12735_v16 = vld [vmem:[%s17880_s6 + $0x70] sm:$0xff] }
 0x270   : > { %v4075_v26 = vpop.f32.mrf.mxu2  ;;  %v6093_v0 = vpack.c.b16 %v6091_v54, %v6091_v54  ;;  %v786_v54 = vld [vmem:[%s13789_s2 + $0x120] sm:$0xff]  ;;  %v5319_v18 = vld [vmem:[#allocation2 + $0x168] ss:$2 sm:$0xff] }
 0x271   : > { %v4111_v13 = vpop.f32.mrf.mxu3  ;;  %v10570_v7 = vmul.f32 -1.442695, %v15222_v23  ;;  %1693 = vst.msk [vmem:[%s14179_s28 + $0x88] sm:$0xff] %vm669_vm3, %v1344_v53  ;;  %9900 = vmatmul.msk.f32.gmra.mxu0 %vm886_vm2, %v783_v21  ;;  %v5355_v53 = vld [vmem:[#allocation2 + $0x169] ss:$2 sm:$0xff] }
 0x272   : > { %v6099_v48 = vsel %vm5585_vm4, %v6093_v0, 0 }
 0x273   : > { %13228 = vpow2.f32 %v10570_v7  ;;  %v15234_v22 = vpop.f32.mrf.mxu1  ;;  %6107 = vmatpush.bf16.msrb.mxu1 %v6099_v48 }
 0x275   : > { %10885 = vmatmul.msk.bf16.vlgmr.msra.gmra.mxu2 %vm669_vm3, %v5082_v39  ;;  %10898 = vmatmul.msk.bf16.vlgmr.msrb.gmra.mxu3 %vm669_vm3, %v5118_v49  ;;  %v11029_v39 = vld [vmem:[%s17934_s8 + $0x14] sm:$0xf]  ;;  %v5565_v49 = vld [vmem:[%s17934_s8 + $0x8] sm:$0xf] }
 0x276   : > { %11117 = vmatmul.msk.bf16.vlgmr.msra.gmra.mxu1 %vm721_vm5, %v5977_v24  ;;  %5346 = vmatpush.bf16.msra.mxu2 %v12728_v36  ;;  %v1346_v19 = vpop.f32.mrf.mxu0  ;;  %v5578_v24 = vunpack.c.l.b16 %v11029_v39  ;;  %v5607_v0 = vunpack.c.l.b16 %v5565_v49  ;;  %v789_v39 = vld [vmem:[%s13789_s2 + $0x138] sm:$0xff] }
 0x277   : > { %5382 = vmatpush.bf16.msrb.mxu3 %v12730_v43  ;;  %6108 = vmatpush.bf16.msrb.mxu1 %v12753_v58  ;;  %v1347_v27 = vadd.f32 %v14925_v3, %v1346_v19  ;;  %v787_v19 = vld [vmem:[%s13789_s2 + $0x128] sm:$0xff] }
 0x278   : > { %v4213_v60 = vpop.f32.mrf.mxu2  ;;  %v5609_v48 = vpack.c.b16 %v5607_v0, %v5607_v0  ;;  %v12742_v0 = vld [vmem:[%s17934_s8 + $0x24] sm:$0xff] }
 0x279   : > { %v4241_v17 = vpop.f32.mrf.mxu3  ;;  %v13229_v59 = vpop.eup %13228  ;;  %1694 = vst.msk [vmem:[%s14179_s28 + $0x90] sm:$0xff] %vm669_vm3, %v1347_v27  ;;  %9901 = vmatmul.msk.f32.gmra.mxu0 %vm886_vm2, %v784_v56  ;;  %v12740_v27 = vld [vmem:[%s17934_s8 + $0xc] sm:$0xff] }
 0x27a   : > { %v4158_v62 = vadd.f32 1.0, %v13229_v59  ;;  %5347 = vmatpush.bf16.msra.mxu2 %v12727_v46  ;;  %v4242_v25 = vadd.f32 %v4241_v17, %v4213_v60  ;;  %v5580_v46 = vpack.c.b16 %v5578_v24, %v5578_v24  ;;  %v5356_v17 = vpack.c.bf16 %v5355_v53, %v5355_v53  ;;  %v12756_v53 = vld [vmem:[%s17934_s8 + $0x60] sm:$0xff] }
 0x27b   : > { %v5185_v63 = vpop.f32.mrf.mxu1  ;;  %5383 = vmatpush.bf16.msrb.mxu3 %v12729_v55  ;;  %v5320_v55 = vpack.c.bf16 %v5319_v18, %v5319_v18 }
 0x27c   : > { %13230 = vrcp.f32 %v4158_v62  ;;  %v4170_v61 = vand.u32 2147483648, %v4158_v62  ;;  %v4168_v52 = vand.u32 2147483647, %v4158_v62  ;;  %vm4164_vm11 = vweird.f32 %v4158_v62 }
 0x27d   : > { %v4279_v50 = vadd.f32 %v14938_v32, %v4242_v25  ;;  %v5587_v59 = vsel %vm5585_vm4, %v5580_v46, 0 }
 0x27e   : > { %v1349_v34 = vpop.f32.mrf.mxu0  ;;  %v4171_v26 = vor.u32 1.1754944e-38, %v4170_v61  ;;  %vm4169_vm13 = vcmp.eq.f32.partialorder %v4168_v52, 8.507059e+37 }
 0x27f   : > { %v1350_v12 = vadd.f32 %v14925_v3, %v1349_v34  ;;  %v5463_v34 = vld [vmem:[#allocation2 + $0x181] ss:$2 sm:$0xff] }
 0x280   : > { %v4215_v35 = vpop.f32.mrf.mxu2  ;;  %v5464_v25 = vpack.c.bf16 %v5463_v34, %v5463_v34 }
 0x281   : > { %v4243_v20 = vpop.f32.mrf.mxu3  ;;  %1695 = vst.msk [vmem:[%s14179_s28 + $0x98] sm:$0xff] %vm669_vm3, %v1350_v12  ;;  %9902 = vmatmul.msk.f32.gmra.mxu0 %vm886_vm2, %v785_v11  ;;  %v788_v12 = vld [vmem:[%s13789_s2 + $0x130] sm:$0xff] }
 0x282   : > { %v13231_v4 = vpop.eup %13230 }
 0x283   : > { %v4160_v47 = vmul.f32 %v13231_v4, %v4158_v62  ;;  %v15268_v10 = vpop.f32.mrf.mxu1  ;;  %vm4165_vm10 = vweird.f32 %v13231_v4  ;;  %v5615_v62 = vsel %vm5585_vm4, %v5609_v48, 0 }
 0x284   : > { %vm4166_vm12 = vmor %vm4164_vm11, %vm4165_vm10 }
 0x285   : > { %v4161_v1 = vsub.f32 1.0, %v4160_v47  ;;  %10925 = vmatmul.msk.bf16.vlgmr.msrb.gmra.mxu2 %vm669_vm3, %v5222_v37  ;;  %10934 = vmatmul.msk.bf16.vlgmr.msra.gmra.mxu3 %vm669_vm3, %v5216_v38 }
 0x286   : > { %5454 = vmatpush.bf16.msrb.mxu2 %v12734_v5  ;;  %5490 = vmatpush.bf16.msra.mxu3 %v12736_v8  ;;  %v1352_v36 = vpop.f32.mrf.mxu0 }
 0x287   : > { %v4162_v6 = vmul.f32 %v13231_v4, %v4161_v1  ;;  %v1353_v43 = vadd.f32 %v14925_v3, %v1352_v36  ;;  %v5427_v1 = vld [vmem:[#allocation2 + $0x180] ss:$2 sm:$0xff] }
 0x288   : > { %v4311_v31 = vpop.f32.mrf.mxu2 }
 0x289   : > { %v4347_v51 = vpop.f32.mrf.mxu3  ;;  %v4163_v40 = vadd.f32 %v13231_v4, %v4162_v6  ;;  %9903 = vmatmul.msk.f32.gmra.mxu0 %vm886_vm2, %v786_v54  ;;  %1696 = vst.msk [vmem:[%s14179_s28 + $0xa0] sm:$0xff] %vm669_vm3, %v1353_v43  ;;  %v15349_v43 = vld [vmem:[%s17894_s4] ss:$0 sm:$0xff] }
 0x28a   : > { %5455 = vmatpush.bf16.msrb.mxu2 %v12733_v9  ;;  %5491 = vmatpush.bf16.msra.mxu3 %v12735_v16  ;;  %v11050_v9 = vld [vmem:[%s17934_s8 + $0x2c] sm:$0xf]  ;;  %v11058_v16 = vld [vmem:[%s17934_s8 + $0x38] sm:$0xf] }
 0x28b   : > { %v4167_v13 = vsel %vm4166_vm12, %v13231_v4, %v4163_v40  ;;  %v5315_v33 = vpop.f32.mrf.mxu1  ;;  %v5678_v52 = vunpack.c.l.b16 %v11050_v9  ;;  %v5428_v40 = vpack.c.bf16 %v5427_v1, %v5427_v1 }
 0x28c   : > { %v4172_v28 = vsel %vm4169_vm13, %v4171_v26, %v4167_v13  ;;  %v11160_v33 = vld [vmem:[%s17934_s8 + $0x68] sm:$0xf] }
 0x28d   : > { %v4174_v7 = vmul.f32 %v4172_v28, %v15222_v23  ;;  %v4315_v23 = vadd.f32 %v4311_v31, %v4279_v50  ;;  %v5714_v31 = vunpack.c.l.b16 %v11058_v16  ;;  %v5680_v26 = vpack.c.b16 %v5678_v52, %v5678_v52 }
 0x28e   : > { %v1355_v63 = vpop.f32.mrf.mxu0  ;;  %v6196_v36 = vunpack.c.l.b16 %v11160_v33 }
 0x28f   : > { %4175 = vst.msk [vmem:[%s14814_s23 + $0x18] sm:$0xff] %vm721_vm5, %v4174_v7  ;;  %v4351_v58 = vadd.f32 %v4347_v51, %v4315_v23  ;;  %v1356_v56 = vadd.f32 %v14925_v3, %v1355_v63  ;;  %v5716_v13 = vpack.c.b16 %v5714_v31, %v5714_v31  ;;  %v12743_v23 = vld [vmem:[%s17934_s8 + $0x30] sm:$0xff]  ;;  %v5567_v63 = vld [vmem:[#allocation3 + $0x1] ss:$2 sm:$0xf]  ;;  %v791_v31 = vld [vmem:[%s13789_s2 + $0x148] sm:$0xff] }
 0x290   : > { %4176 = vst.msk [vmem:[#allocation3 + $0x30] sm:$0xff] %vm721_vm5, %v4174_v7  ;;  %v4313_v32 = vpop.f32.mrf.mxu2  ;;  %v5686_v7 = vsel %vm5585_vm4, %v5680_v26, 0  ;;  %v6198_v49 = vpack.c.b16 %v6196_v36, %v6196_v36  ;;  %v12759_v36 = vld [vmem:[%s17934_s8 + $0x18] sm:$0xff] }
 0x291   : > { %v4349_v21 = vpop.f32.mrf.mxu3  ;;  %v4387_v35 = vadd.f32 %v14975_v44, %v4351_v58  ;;  %1697 = vst.msk [vmem:[%s14179_s28 + $0xa8] sm:$0xff] %vm669_vm3, %v1356_v56  ;;  %9904 = vmatmul.msk.f32.gmra.mxu0 %vm886_vm2, %v787_v19  ;;  %v13078_v44 = vld [vmem:[%s17913_s7] ss:$0 sm:$0xff]  ;;  %v5722_v50 = vsel %vm5585_vm4, %v5716_v13, 0  ;;  %v11082_v56 = vld [vmem:[%s17934_s8 + $0x5c] sm:$0xf] }
 0x292   : > { %v6204_v18 = vsel %vm5585_vm4, %v6198_v49, 0 }
 0x293   : > { %v15299_v60 = vpop.f32.mrf.mxu1  ;;  %6212 = vmatpush.bf16.msra.mxu1 %v6204_v18 }
 0x295   : > { %10960 = vmatmul.msk.bf16.vlgmr.msra.gmra.mxu2 %vm669_vm3, %v5320_v55  ;;  %10973 = vmatmul.msk.bf16.vlgmr.msrb.gmra.mxu3 %vm669_vm3, %v5356_v17 }
 0x296   : > { %5595 = vmatpush.bf16.msra.mxu2 %v5587_v59  ;;  %5623 = vmatpush.bf16.msrb.mxu3 %v5615_v62  ;;  %v1358_v11 = vpop.f32.mrf.mxu0  ;;  %v790_v59 = vld [vmem:[%s13789_s2 + $0x140] sm:$0xff]  ;;  %v11074_v62 = vld [vmem:[%s17934_s8 + $0x50] sm:$0xf] }
 0x297   : > { %v6081_v20 = vld [vmem:[#allocation3 + $0x32] ss:$2 sm:$0xf]  ;;  %v1359_v61 = vadd.f32 %v14925_v3, %v1358_v11  ;;  %6213 = vmatpush.bf16.msra.mxu1 %v12756_v53  ;;  %v5786_v19 = vunpack.c.l.b16 %v11074_v62 }
 0x298   : > { %v4419_v45 = vpop.f32.mrf.mxu2  ;;  %v6082_v5 = vpack.c.bf16 %v6081_v20, %v6081_v20  ;;  %v5561_v20 = vld [vmem:[#allocation3] ss:$2 sm:$0xf]  ;;  %v5914_v53 = vld [vmem:[%s17934_s8 + $0x8] sm:$0xf] }
 0x299   : > { %v4455_v4 = vpop.f32.mrf.mxu3  ;;  %v4423_v8 = vadd.f32 %v4419_v45, %v4387_v35  ;;  %1698 = vst.msk [vmem:[%s14179_s28 + $0xb0] sm:$0xff] %vm669_vm3, %v1359_v61  ;;  %9905 = vmatmul.msk.f32.gmra.mxu0 %vm886_vm2, %v788_v12  ;;  %v5788_v45 = vpack.c.b16 %v5786_v19, %v5786_v19 }
 0x29a   : > { %11141 = vmatmul.msk.bf16.vlgmr.msrb.gmra.mxu1 %vm721_vm5, %v6082_v5  ;;  %5596 = vmatpush.bf16.msra.mxu2 %v12740_v27  ;;  %v5568_v5 = vpack.c.bf16 %v5567_v63, %v5567_v63 }
 0x29b   : > { %v4459_v47 = vadd.f32 %v4455_v4, %v4423_v8  ;;  %v5423_v37 = vpop.f32.mrf.mxu1  ;;  %5624 = vmatpush.bf16.msrb.mxu3 %v12739_v41  ;;  %v5822_v41 = vunpack.c.l.b16 %v11082_v56  ;;  %v5794_v1 = vsel %vm5585_vm4, %v5788_v45, 0 }
 0x29d   : > { %v4495_v38 = vadd.f32 %v15020_v2, %v4459_v47  ;;  %v5824_v8 = vpack.c.b16 %v5822_v41, %v5822_v41  ;;  %v11182_v47 = vld [vmem:[%s17934_s8 + $0x20] sm:$0xf] }
 0x29e   : > { %v1361_v54 = vpop.f32.mrf.mxu0  ;;  %v6323_v34 = vunpack.c.l.b16 %v11182_v47 }
 0x29f   : > { %v15330_v6 = vadd.f32 %v13078_v44, %v4495_v38  ;;  %v1362_v24 = vadd.f32 %v15349_v43, %v1361_v54  ;;  %v5562_v38 = vpack.c.bf16 %v5561_v20, %v5561_v20  ;;  %v5830_v11 = vsel %vm5585_vm4, %v5824_v8, 0 }
 0x2a0   : > { %v4421_v51 = vpop.f32.mrf.mxu2  ;;  %v6325_v9 = vpack.c.b16 %v6323_v34, %v6323_v34 }
 0x2a1   : > { %v4457_v2 = vpop.f32.mrf.mxu3  ;;  %v10684_v3 = vmul.f32 -1.442695, %v15330_v6  ;;  %1699 = vst.msk [vmem:[%s14179_s28 + $0xb8] sm:$0xff] %vm669_vm3, %v1362_v24  ;;  %9906 = vmatmul.msk.f32.gmra.mxu0 %vm886_vm2, %v789_v39  ;;  %v12745_v51 = vld [vmem:[%s17934_s8 + $0x48] sm:$0xff] }
 0x2a2   : > { %v12746_v2 = vld [vmem:[%s17934_s8 + $0x54] sm:$0xff] }
 0x2a3   : > { %13232 = vpow2.f32 %v10684_v3  ;;  %v15339_v28 = vpop.f32.mrf.mxu1 }
 0x2a5   : > { %10999 = vmatmul.msk.bf16.vlgmr.msrb.gmra.mxu2 %vm669_vm3, %v5428_v40  ;;  %11012 = vmatmul.msk.bf16.vlgmr.msra.gmra.mxu3 %vm669_vm3, %v5464_v25  ;;  %v6331_v25 = vsel %vm5585_vm4, %v6325_v9, 0 }
 0x2a6   : > { %5694 = vmatpush.bf16.msrb.mxu2 %v5686_v7  ;;  %5730 = vmatpush.bf16.msra.mxu3 %v5722_v50  ;;  %v1364_v58 = vpop.f32.mrf.mxu0 }
 0x2a7   : > { %v1365_v17 = vadd.f32 %v15349_v43, %v1364_v58  ;;  %6339 = vmatpush.bf16.msrb.mxu1 %v6331_v25  ;;  %v5811_v25 = vld [vmem:[#allocation3 + $0x21] ss:$2 sm:$0xf] }
 0x2a8   : > { %v4559_v32 = vpop.f32.mrf.mxu2 }
 0x2a9   : > { %v4587_v21 = vpop.f32.mrf.mxu3  ;;  %v13233_v46 = vpop.eup %13232  ;;  %1700 = vst.msk [vmem:[%s14179_s28 + $0xc0] sm:$0xff] %vm669_vm3, %v1365_v17  ;;  %9907 = vmatmul.msk.f32.gmra.mxu0 %vm886_vm2, %v790_v59  ;;  %v5703_v17 = vld [vmem:[#allocation3 + $0x11] ss:$2 sm:$0xf] }
 0x2aa   : > { %v4504_v48 = vadd.f32 1.0, %v13233_v46  ;;  %5695 = vmatpush.bf16.msrb.mxu2 %v12742_v0  ;;  %5731 = vmatpush.bf16.msra.mxu3 %v12743_v23  ;;  %v4588_v7 = vadd.f32 %v4587_v21, %v4559_v32  ;;  %v792_v32 = vld [vmem:[%s13789_s2 + $0x150] sm:$0xff] }
 0x2ab   : > { %v5531_v55 = vpop.f32.mrf.mxu1  ;;  %6340 = vmatpush.bf16.msrb.mxu1 %v12759_v36  ;;  %v11099_v21 = vld [vmem:[%s17934_s8 + $0x14] sm:$0xf] }
 0x2ac   : > { %13234 = vrcp.f32 %v4504_v48  ;;  %v4516_v16 = vand.u32 2147483648, %v4504_v48  ;;  %v4514_v3 = vand.u32 2147483647, %v4504_v48  ;;  %vm4510_vm15 = vweird.f32 %v4504_v48 }
 0x2ad   : > { %v4625_v0 = vadd.f32 %v15054_v29, %v4588_v7  ;;  %v5953_v55 = vunpack.c.l.b16 %v5914_v53 }
 0x2ae   : > { %v1367_v12 = vpop.f32.mrf.mxu0  ;;  %v4517_v50 = vor.u32 1.1754944e-38, %v4516_v16  ;;  %vm4515_vm1 = vcmp.eq.f32.partialorder %v4514_v3, 8.507059e+37  ;;  %v5775_v3 = vld [vmem:[#allocation3 + $0x20] ss:$2 sm:$0xf] }
 0x2af   : > { %v1368_v52 = vadd.f32 %v15349_v43, %v1367_v12  ;;  %v5955_v62 = vpack.c.b16 %v5953_v55, %v5953_v55 }
 0x2b0   : > { %v4561_v27 = vpop.f32.mrf.mxu2 }
 0x2b1   : > { %v4589_v35 = vpop.f32.mrf.mxu3  ;;  %1701 = vst.msk [vmem:[%s14179_s28 + $0xc8] sm:$0xff] %vm669_vm3, %v1368_v52  ;;  %9908 = vmatmul.msk.f32.gmra.mxu0 %vm886_vm2, %v791_v31  ;;  %v5704_v27 = vpack.c.bf16 %v5703_v17, %v5703_v17  ;;  %v5961_v20 = vsel %vm5585_vm4, %v5955_v62, 0  ;;  %v794_v31 = vld [vmem:[%s13789_s2 + $0x160] sm:$0xff] }
 0x2b2   : > { %v13235_v4 = vpop.eup %13234 }
 0x2b3   : > { %v4506_v44 = vmul.f32 %v13235_v4, %v4504_v48  ;;  %v15379_v37 = vpop.f32.mrf.mxu1  ;;  %vm4511_vm14 = vweird.f32 %v13235_v4  ;;  %v5667_v48 = vld [vmem:[#allocation3 + $0x10] ss:$2 sm:$0xf] }
 0x2b4   : > { %vm4512_vm0 = vmor %vm4510_vm15, %vm4511_vm14  ;;  %v5668_v63 = vpack.c.bf16 %v5667_v48, %v5667_v48  ;;  %v12751_v48 = vld [vmem:[%s17934_s8 + $0x24] sm:$0xff]  ;;  %vm740_vm14 = vcmask 326656  }
 0x2b5   : > { %v4507_v61 = vsub.f32 1.0, %v4506_v44  ;;  %11034 = vmatmul.msk.bf16.vlgmr.msra.gmra.mxu2 %vm721_vm5, %v5568_v5  ;;  %11039 = vmatmul.msk.bf16.vlgmr.msrb.gmra.mxu3 %vm721_vm5, %v5562_v38  ;;  %v12749_v5 = vld [vmem:[%s17934_s8 + $0xc] sm:$0xff]  ;;  %v12748_v44 = vld [vmem:[%s17934_s8] sm:$0xff]  ;;  %741 = vst.msk [vmem:[#allocation4] sm:$0xff] %vm740_vm14, %v13476_v14 }
 0x2b6   : > { %5802 = vmatpush.bf16.msra.mxu2 %v5794_v1  ;;  %5838 = vmatpush.bf16.msrb.mxu3 %v5830_v11  ;;  %v1370_v23 = vpop.f32.mrf.mxu0  ;;  %742 = vst.msk [vmem:[#allocation4 + $0x8] sm:$0xff] %vm740_vm14, %v13476_v14 }
 0x2b7   : > { %v4508_v40 = vmul.f32 %v13235_v4, %v4507_v61  ;;  %v1371_v18 = vadd.f32 %v15349_v43, %v1370_v23  ;;  %743 = vst.msk [vmem:[#allocation4 + $0x10] sm:$0xff] %vm740_vm14, %v13476_v14 }
 0x2b8   : > { %v4657_v26 = vpop.f32.mrf.mxu2  ;;  %744 = vst.msk [vmem:[#allocation4 + $0x18] sm:$0xff] %vm740_vm14, %v13476_v14 }
 0x2b9   : > { %v4693_v13 = vpop.f32.mrf.mxu3  ;;  %v4509_v33 = vadd.f32 %v13235_v4, %v4508_v40  ;;  %v4661_v46 = vadd.f32 %v4657_v26, %v4625_v0  ;;  %9909 = vmatmul.msk.f32.gmra.mxu0 %vm886_vm2, %v792_v32  ;;  %1702 = vst.msk [vmem:[%s14179_s28 + $0xd0] sm:$0xff] %vm669_vm3, %v1371_v18 }
 0x2ba   : > { %5803 = vmatpush.bf16.msra.mxu2 %v12745_v51  ;;  %5839 = vmatpush.bf16.msrb.mxu3 %v12746_v2  ;;  %v11120_v51 = vld [vmem:[%s17934_s8 + $0x2c] sm:$0xf]  ;;  %v11128_v2 = vld [vmem:[%s17934_s8 + $0x38] sm:$0xf]  ;;  %745 = vst.msk [vmem:[#allocation4 + $0x20] sm:$0xff] %vm740_vm14, %v13476_v14 }
 0x2bb   : > { %v4513_v54 = vsel %vm4512_vm0, %v13235_v4, %v4509_v33  ;;  %v5663_v39 = vpop.f32.mrf.mxu1  ;;  %v4697_v19 = vadd.f32 %v4693_v13, %v4661_v46  ;;  %v793_v4 = vld [vmem:[%s13789_s2 + $0x158] sm:$0xff]  ;;  %v6021_v26 = vunpack.c.l.b16 %v11120_v51  ;;  %v6056_v13 = vunpack.c.l.b16 %v11128_v2 }
 0x2bc   : > { %v4518_v49 = vsel %vm4515_vm1, %v4517_v50, %v4513_v54  ;;  %v5776_v54 = vpack.c.bf16 %v5775_v3, %v5775_v3  ;;  %v5812_v39 = vpack.c.bf16 %v5811_v25, %v5811_v25  ;;  %v797_v3 = vld [vmem:[%s13789_s2 + $0x178] sm:$0xff]  ;;  %v12754_v25 = vld [vmem:[%s17934_s8 + $0x48] sm:$0xff] }
 0x2bd   : > { %v4520_v24 = vmul.f32 %v4518_v49, %v15330_v6  ;;  %v5925_v6 = vunpack.c.l.b16 %v11099_v21  ;;  %v4733_v8 = vadd.f32 %v15089_v15, %v4697_v19  ;;  %v13079_v15 = vld [vmem:[%s17913_s7] ss:$0 sm:$0xff]  ;;  %v6023_v50 = vpack.c.b16 %v6021_v26, %v6021_v26  ;;  %v11206_v49 = vld [vmem:[%s17934_s8 + $0x44] sm:$0xf]  ;;  %v795_v21 = vld [vmem:[%s13789_s2 + $0x168] sm:$0xff] }
 0x2be   : > { %v1373_v41 = vpop.f32.mrf.mxu0  ;;  %v6058_v36 = vpack.c.b16 %v6056_v13, %v6056_v13  ;;  %v6428_v23 = vunpack.c.l.b16 %v11206_v49  ;;  %v12755_v26 = vld [vmem:[%s17934_s8 + $0x54] sm:$0xff] }
 0x2bf   : > { %4521 = vst.msk [vmem:[%s14814_s23 + $0x20] sm:$0xff] %vm721_vm5, %v4520_v24  ;;  %v5927_v59 = vpack.c.b16 %v5925_v6, %v5925_v6  ;;  %v1374_v45 = vadd.f32 %v15349_v43, %v1373_v41  ;;  %v12752_v6 = vld [vmem:[%s17934_s8 + $0x30] sm:$0xff]  ;;  %v5915_v41 = vld [vmem:[#allocation3 + $0x21] ss:$2 sm:$0xf] }
 0x2c0   : > { %4522 = vst.msk [vmem:[#allocation3 + $0x40] sm:$0xff] %vm721_vm5, %v4520_v24  ;;  %v4659_v29 = vpop.f32.mrf.mxu2  ;;  %v6029_v24 = vsel %vm5585_vm4, %v6023_v50, 0  ;;  %v6064_v0 = vsel %vm5585_vm4, %v6058_v36, 0  ;;  %v6430_v53 = vpack.c.b16 %v6428_v23, %v6428_v23 }
 0x2c1   : > { %v4695_v58 = vpop.f32.mrf.mxu3  ;;  %v5933_v35 = vsel %vm5585_vm4, %v5927_v59, 0  ;;  %1703 = vst.msk [vmem:[%s14179_s28 + $0xd8] sm:$0xff] %vm669_vm3, %v1374_v45  ;;  %9910 = vmatmul.msk.f32.gmra.mxu0 %vm886_vm2, %v793_v4  ;;  %v12762_v59 = vld [vmem:[%s17934_s8 + $0x3c] sm:$0xff] }
 0x2c2   : > { %v6436_v55 = vsel %vm5585_vm4, %v6430_v53, 0  ;;  %v11152_v4 = vld [vmem:[%s17934_s8 + $0x5c] sm:$0xf]  ;;  %v11169_v53 = vld [vmem:[%s17934_s8 + $0x14] sm:$0xf] }
 0x2c3   : > { %v15416_v56 = vpop.f32.mrf.mxu1 }
 0x2c5   : > { %11055 = vmatmul.msk.bf16.vlgmr.msrb.gmra.mxu2 %vm721_vm5, %v5668_v63  ;;  %11063 = vmatmul.msk.bf16.vlgmr.msra.gmra.mxu3 %vm721_vm5, %v5704_v27 }
 0x2c6   : > { %5941 = vmatpush.bf16.msrb.mxu2 %v5933_v35  ;;  %5969 = vmatpush.bf16.msra.mxu3 %v5961_v20  ;;  %v1376_v16 = vpop.f32.mrf.mxu0  ;;  %v796_v35 = vld [vmem:[%s13789_s2 + $0x170] sm:$0xff] }
 0x2c7   : > { %v6186_v47 = vld [vmem:[#allocation3 + $0x42] ss:$2 sm:$0xf]  ;;  %v1377_v52 = vadd.f32 %v15349_v43, %v1376_v16  ;;  %v11144_v20 = vld [vmem:[%s17934_s8 + $0x50] sm:$0xf] }
 0x2c8   : > { %v4765_v38 = vpop.f32.mrf.mxu2  ;;  %v6187_v34 = vpack.c.bf16 %v6186_v47, %v6186_v47  ;;  %v6313_v18 = vld [vmem:[#allocation3 + $0x42] ss:$2 sm:$0xf]  ;;  %v6126_v45 = vunpack.c.l.b16 %v11144_v20 }
 0x2c9   : > { %v4801_v1 = vpop.f32.mrf.mxu3  ;;  %v4769_v11 = vadd.f32 %v4765_v38, %v4733_v8  ;;  %1704 = vst.msk [vmem:[%s14179_s28 + $0xe0] sm:$0xff] %vm669_vm3, %v1377_v52  ;;  %9911 = vmatmul.msk.f32.gmra.mxu0 %vm886_vm2, %v794_v31  ;;  %v6314_v17 = vpack.c.bf16 %v6313_v18, %v6313_v18  ;;  %v5910_v47 = vld [vmem:[#allocation3 + $0x20] ss:$2 sm:$0xf] }
 0x2ca   : > { %11165 = vmatmul.msk.bf16.vlgmr.msra.gmra.mxu1 %vm721_vm5, %v6187_v34  ;;  %5942 = vmatpush.bf16.msrb.mxu2 %v12749_v5  ;;  %v6128_v38 = vpack.c.b16 %v6126_v45, %v6126_v45 }
 0x2cb   : > { %v4805_v61 = vadd.f32 %v4801_v1, %v4769_v11  ;;  %v5771_v12 = vpop.f32.mrf.mxu1  ;;  %5970 = vmatpush.bf16.msra.mxu3 %v12748_v44  ;;  %6444 = vmatpush.bf16.msra.mxu1 %v6436_v55  ;;  %v6161_v44 = vunpack.c.l.b16 %v11152_v4  ;;  %v799_v4 = vld [vmem:[%s13789_s2 + $0x188] sm:$0xff] }
 0x2cc   : > { %v5911_v12 = vpack.c.bf16 %v5910_v47, %v5910_v47 }
 0x2cd   : > { %v4841_v9 = vadd.f32 %v15128_v57, %v4805_v61  ;;  %v6163_v34 = vpack.c.b16 %v6161_v44, %v6161_v44  ;;  %v12757_v44 = vld [vmem:[%s17934_s8] sm:$0xff] }
 0x2ce   : > { %v1379_v32 = vpop.f32.mrf.mxu0 }
 0x2cf   : > { %v15447_v40 = vadd.f32 %v13079_v15, %v4841_v9  ;;  %v1380_v46 = vadd.f32 %v15349_v43, %v1379_v32  ;;  %6445 = vmatpush.bf16.msra.mxu1 %v12762_v59  ;;  %v5916_v15 = vpack.c.bf16 %v5915_v41, %v5915_v41  ;;  %v6134_v9 = vsel %vm5585_vm4, %v6128_v38, 0 }
 0x2d0   : > { %v4767_v33 = vpop.f32.mrf.mxu2  ;;  %v6169_v16 = vsel %vm5585_vm4, %v6163_v34, 0 }
 0x2d1   : > { %v4803_v57 = vpop.f32.mrf.mxu3  ;;  %v10798_v7 = vmul.f32 -1.442695, %v15447_v40  ;;  %1705 = vst.msk [vmem:[%s14179_s28 + $0xe8] sm:$0xff] %vm669_vm3, %v1380_v46  ;;  %9912 = vmatmul.msk.f32.gmra.mxu0 %vm886_vm2, %v795_v21  ;;  %v798_v21 = vld [vmem:[%s13789_s2 + $0x180] sm:$0xff]  ;;  %v6251_v46 = vld [vmem:[%s17934_s8 + $0x8] sm:$0xf] }
 0x2d2   : > { %v6290_v55 = vunpack.c.l.b16 %v6251_v46  ;;  %v12760_v46 = vld [vmem:[%s17934_s8 + $0x24] sm:$0xff] }
 0x2d3   : > { %13236 = vpow2.f32 %v10798_v7 }
 0x2d4   : > { %v6292_v59 = vpack.c.b16 %v6290_v55, %v6290_v55 }
 0x2d5   : > { %11079 = vmatmul.msk.bf16.vlgmr.msra.gmra.mxu2 %vm721_vm5, %v5776_v54  ;;  %11087 = vmatmul.msk.bf16.vlgmr.msrb.gmra.mxu3 %vm721_vm5, %v5812_v39 }
 0x2d6   : > { %6037 = vmatpush.bf16.msra.mxu2 %v6029_v24  ;;  %6072 = vmatpush.bf16.msrb.mxu3 %v6064_v0  ;;  %v1382_v19 = vpop.f32.mrf.mxu0  ;;  %v6298_v20 = vsel %vm5585_vm4, %v6292_v59, 0 }
 0x2d7   : > { %v1383_v27 = vadd.f32 %v15349_v43, %v1382_v19 }
 0x2d8   : > { %v4905_v29 = vpop.f32.mrf.mxu2 }
 0x2d9   : > { %v4933_v58 = vpop.f32.mrf.mxu3  ;;  %v13237_v62 = vpop.eup %13236  ;;  %1706 = vst.msk [vmem:[%s14179_s28 + $0xf0] sm:$0xff] %vm669_vm3, %v1383_v27  ;;  %9913 = vmatmul.msk.f32.gmra.mxu0 %vm886_vm2, %v796_v35 }
 0x2da   : > { %v4850_v63 = vadd.f32 1.0, %v13237_v62  ;;  %11187 = vmatmul.msk.bf16.vlgmr.msrb.gmra.mxu1 %vm721_vm5, %v6314_v17  ;;  %6038 = vmatpush.bf16.msra.mxu2 %v12751_v48  ;;  %v4934_v36 = vadd.f32 %v4933_v58, %v4905_v29  ;;  %v6046_v58 = vld [vmem:[#allocation3 + $0x31] ss:$2 sm:$0xf] }
 0x2db   : > { %6073 = vmatpush.bf16.msrb.mxu3 %v12752_v6  ;;  %v6011_v6 = vld [vmem:[#allocation3 + $0x30] ss:$2 sm:$0xf]  ;;  %v6047_v27 = vpack.c.bf16 %v6046_v58, %v6046_v58 }
 0x2dc   : > { %13238 = vrcp.f32 %v4850_v63  ;;  %v4862_v51 = vand.u32 2147483648, %v4850_v63  ;;  %v4860_v33 = vand.u32 2147483647, %v4850_v63  ;;  %vm4856_vm7 = vweird.f32 %v4850_v63 }
 0x2dd   : > { %v4971_v23 = vadd.f32 %v15165_v30, %v4934_v36  ;;  %v6012_v62 = vpack.c.bf16 %v6011_v6, %v6011_v6 }
 0x2de   : > { %v1385_v31 = vpop.f32.mrf.mxu0  ;;  %v4863_v54 = vor.u32 1.1754944e-38, %v4862_v51  ;;  %vm4861_vm9 = vcmp.eq.f32.partialorder %v4860_v33, 8.507059e+37  ;;  %v11190_v51 = vld [vmem:[%s17934_s8 + $0x2c] sm:$0xf] }
 0x2df   : > { %v1386_v2 = vadd.f32 %v15349_v43, %v1385_v31  ;;  %v800_v31 = vld [vmem:[%s13789_s2 + $0x190] sm:$0xff] }
 0x2e0   : > { %v4907_v5 = vpop.f32.mrf.mxu2 }
 0x2e1   : > { %v4935_v8 = vpop.f32.mrf.mxu3  ;;  %1707 = vst.msk [vmem:[%s14179_s28 + $0xf8] sm:$0xff] %vm669_vm3, %v1386_v2  ;;  %9914 = vmatmul.msk.f32.gmra.mxu0 %vm886_vm2, %v797_v3  ;;  %v12758_v5 = vld [vmem:[%s17934_s8 + $0xc] sm:$0xff]  ;;  %v11198_v2 = vld [vmem:[%s17934_s8 + $0x38] sm:$0xf] }
 0x2e2   : > { %v13239_v1 = vpop.eup %13238 }
 0x2e3   : > { %v4852_v11 = vmul.f32 %v13239_v1, %v4850_v63  ;;  %v15487_v61 = vpop.f32.mrf.mxu1  ;;  %vm4857_vm6 = vweird.f32 %v13239_v1 }
 0x2e4   : > { %vm4858_vm8 = vmor %vm4856_vm7, %vm4857_vm6 }
 0x2e5   : > { %v4853_v52 = vsub.f32 1.0, %v4852_v11  ;;  %11104 = vmatmul.msk.bf16.vlgmr.msrb.gmra.mxu2 %vm721_vm5, %v5916_v15  ;;  %11109 = vmatmul.msk.bf16.vlgmr.msra.gmra.mxu3 %vm721_vm5, %v5911_v12 }
 0x2e6   : > { %6142 = vmatpush.bf16.msrb.mxu2 %v6134_v9  ;;  %6177 = vmatpush.bf16.msra.mxu3 %v6169_v16  ;;  %v1388_v18 = vpop.f32.mrf.mxu0 }
 0x2e7   : > { %v4854_v13 = vmul.f32 %v13239_v1, %v4853_v52  ;;  %v1389_v32 = vadd.f32 %v15349_v43, %v1388_v18 }
 0x2e8   : > { %v5003_v57 = vpop.f32.mrf.mxu2 }
 0x2e9   : > { %v5039_v7 = vpop.f32.mrf.mxu3  ;;  %v4855_v50 = vadd.f32 %v13239_v1, %v4854_v13  ;;  %v5007_v48 = vadd.f32 %v5003_v57, %v4971_v23  ;;  %9915 = vmatmul.msk.f32.gmra.mxu0 %vm886_vm2, %v798_v21  ;;  %1708 = vst.msk [vmem:[%s14179_s28 + $0x100] sm:$0xff] %vm669_vm3, %v1389_v32  ;;  %v6393_v13 = vunpack.c.l.b16 %v11198_v2  ;;  %v801_v21 = vld [vmem:[%s13789_s2 + $0x198] sm:$0xff]  ;;  %v803_v2 = vld [vmem:[%s13789_s2 + $0x1a8] sm:$0xff] }
 0x2ea   : > { %6143 = vmatpush.bf16.msrb.mxu2 %v12754_v25  ;;  %6178 = vmatpush.bf16.msra.mxu3 %v12755_v26  ;;  %v6116_v25 = vld [vmem:[#allocation3 + $0x40] ss:$2 sm:$0xf]  ;;  %v6358_v26 = vunpack.c.l.b16 %v11190_v51 }
 0x2eb   : > { %v4859_v39 = vsel %vm4858_vm8, %v13239_v1, %v4855_v50  ;;  %v5879_v49 = vpop.f32.mrf.mxu1  ;;  %v5043_v63 = vadd.f32 %v5039_v7, %v5007_v48  ;;  %v6395_v36 = vpack.c.b16 %v6393_v13, %v6393_v13  ;;  %v12761_v48 = vld [vmem:[%s17934_s8 + $0x30] sm:$0xff] }
 0x2ec   : > { %v4864_v24 = vsel %vm4861_vm9, %v4863_v54, %v4859_v39  ;;  %v6360_v50 = vpack.c.b16 %v6358_v26, %v6358_v26  ;;  %v11230_v54 = vld [vmem:[%s17934_s8 + $0x68] sm:$0xf]  ;;  %v6117_v39 = vpack.c.bf16 %v6116_v25, %v6116_v25  ;;  %v12764_v26 = vld [vmem:[%s17934_s8 + $0x54] sm:$0xff] }
 0x2ed   : > { %v4866_v0 = vmul.f32 %v4864_v24, %v15447_v40  ;;  %v6262_v40 = vunpack.c.l.b16 %v11169_v53  ;;  %v5079_v8 = vadd.f32 %v15196_v42, %v5043_v63  ;;  %v13080_v42 = vld [vmem:[%s17913_s7] ss:$0 sm:$0xff]  ;;  %v6533_v49 = vunpack.c.l.b16 %v11230_v54  ;;  %v11214_v63 = vld [vmem:[%s17934_s8 + $0x50] sm:$0xf]  ;;  %v12763_v25 = vld [vmem:[%s17934_s8 + $0x48] sm:$0xff] }
 0x2ee   : > { %v1391_v41 = vpop.f32.mrf.mxu0  ;;  %v6401_v23 = vsel %vm5585_vm4, %v6395_v36, 0 }
 0x2ef   : > { %4867 = vst.msk [vmem:[%s14814_s23 + $0x28] sm:$0xff] %vm721_vm5, %v4866_v0  ;;  %v6264_v17 = vpack.c.b16 %v6262_v40, %v6262_v40  ;;  %v1392_v45 = vadd.f32 %v15349_v43, %v1391_v41  ;;  %v6535_v18 = vpack.c.b16 %v6533_v49, %v6533_v49  ;;  %v12765_v40 = vld [vmem:[%s17934_s8 + $0x60] sm:$0xff]  ;;  %v12768_v49 = vld [vmem:[%s17934_s8 + $0x18] sm:$0xff] }
 0x2f0   : > { %4868 = vst.msk [vmem:[#allocation3 + $0x50] sm:$0xff] %vm721_vm5, %v4866_v0  ;;  %v5005_v30 = vpop.f32.mrf.mxu2  ;;  %v6366_v0 = vsel %vm5585_vm4, %v6360_v50, 0 }
 0x2f1   : > { %v5041_v29 = vpop.f32.mrf.mxu3  ;;  %v6270_v35 = vsel %vm5585_vm4, %v6264_v17, 0  ;;  %1709 = vst.msk [vmem:[%s14179_s28 + $0x108] sm:$0xff] %vm669_vm3, %v1392_v45  ;;  %9916 = vmatmul.msk.f32.gmra.mxu0 %vm886_vm2, %v799_v4  ;;  %v6541_v6 = vsel %vm5585_vm4, %v6535_v18, 0  ;;  %v6247_v4 = vld [vmem:[#allocation3 + $0x40] ss:$2 sm:$0xf] }
 0x2f2   : > { %6549 = vmatpush.bf16.msrb.mxu1 %v6541_v6 }
 0x2f3   : > { %v15520_v19 = vpop.f32.mrf.mxu1 }
 0x2f5   : > { %11125 = vmatmul.msk.bf16.vlgmr.msra.gmra.mxu2 %vm721_vm5, %v6012_v62  ;;  %11133 = vmatmul.msk.bf16.vlgmr.msrb.gmra.mxu3 %vm721_vm5, %v6047_v27  ;;  %v802_v62 = vld [vmem:[%s13789_s2 + $0x1a0] sm:$0xff]  ;;  %v6252_v27 = vld [vmem:[#allocation3 + $0x41] ss:$2 sm:$0xf] }
 0x2f6   : > { %6278 = vmatpush.bf16.msra.mxu2 %v6270_v35  ;;  %6306 = vmatpush.bf16.msrb.mxu3 %v6298_v20  ;;  %v1394_v16 = vpop.f32.mrf.mxu0  ;;  %v6463_v35 = vunpack.c.l.b16 %v11214_v63  ;;  %v11222_v20 = vld [vmem:[%s17934_s8 + $0x5c] sm:$0xf] }
 0x2f7   : > { %v6418_v47 = vld [vmem:[#allocation3 + $0x52] ss:$2 sm:$0xf]  ;;  %v1395_v52 = vadd.f32 %v15349_v43, %v1394_v16  ;;  %6550 = vmatpush.bf16.msrb.mxu1 %v12765_v40 }
 0x2f8   : > { %v5111_v38 = vpop.f32.mrf.mxu2  ;;  %v6419_v34 = vpack.c.bf16 %v6418_v47, %v6418_v47 }
 0x2f9   : > { %v5147_v1 = vpop.f32.mrf.mxu3  ;;  %v5115_v11 = vadd.f32 %v5111_v38, %v5079_v8  ;;  %1710 = vst.msk [vmem:[%s14179_s28 + $0x110] sm:$0xff] %vm669_vm3, %v1395_v52  ;;  %9917 = vmatmul.msk.f32.gmra.mxu0 %vm886_vm2, %v800_v31  ;;  %v6465_v8 = vpack.c.b16 %v6463_v35, %v6463_v35 }
 0x2fa   : > { %11211 = vmatmul.msk.bf16.vlgmr.msra.gmra.mxu1 %vm721_vm5, %v6419_v34  ;;  %6279 = vmatpush.bf16.msra.mxu2 %v12758_v5  ;;  %v6498_v5 = vunpack.c.l.b16 %v11222_v20 }
 0x2fb   : > { %v5151_v15 = vadd.f32 %v5147_v1, %v5115_v11  ;;  %v6007_v12 = vpop.f32.mrf.mxu1  ;;  %6307 = vmatpush.bf16.msrb.mxu3 %v12757_v44  ;;  %v6253_v44 = vpack.c.bf16 %v6252_v27, %v6252_v27  ;;  %v11252_v1 = vld [vmem:[%s17934_s8 + $0x20] sm:$0xf]  ;;  %v6248_v11 = vpack.c.bf16 %v6247_v4, %v6247_v4  ;;  %v805_v4 = vld [vmem:[%s13789_s2 + $0x1b8] sm:$0xff] }
 0x2fc   : > { %v6500_v38 = vpack.c.b16 %v6498_v5, %v6498_v5  ;;  %v12767_v5 = vld [vmem:[%s17934_s8 + $0xc] sm:$0xff] }
 0x2fd   : > { %v5187_v9 = vadd.f32 %v15234_v22, %v5151_v15  ;;  %v6151_v22 = vld [vmem:[#allocation3 + $0x41] ss:$2 sm:$0xf]  ;;  %v6471_v15 = vsel %vm5585_vm4, %v6465_v8, 0 }
 0x2fe   : > { %v6152_v24 = vpack.c.bf16 %v6151_v22, %v6151_v22  ;;  %v1397_v32 = vpop.f32.mrf.mxu0  ;;  %v6506_v12 = vsel %vm5585_vm4, %v6500_v38, 0 }
 0x2ff   : > { %v15551_v3 = vadd.f32 %v13080_v42, %v5187_v9  ;;  %v1398_v53 = vadd.f32 %v15349_v43, %v1397_v32  ;;  %v6660_v42 = vunpack.c.l.b16 %v11252_v1 }
 0x300   : > { %v5113_v33 = vpop.f32.mrf.mxu2 }
 0x301   : > { %v5149_v57 = vpop.f32.mrf.mxu3  ;;  %v10912_v7 = vmul.f32 -1.442695, %v15551_v3  ;;  %1711 = vst.msk [vmem:[%s14179_s28 + $0x118] sm:$0xff] %vm669_vm3, %v1398_v53  ;;  %9918 = vmatmul.msk.f32.gmra.mxu0 %vm886_vm2, %v801_v21  ;;  %v6662_v52 = vpack.c.b16 %v6660_v42, %v6660_v42  ;;  %v804_v53 = vld [vmem:[%s13789_s2 + $0x1b0] sm:$0xff] }
 0x303   : > { %13240 = vpow2.f32 %v10912_v7  ;;  %v6668_v22 = vsel %vm5585_vm4, %v6662_v52, 0 }
 0x304   : > { %6676 = vmatpush.bf16.msra.mxu1 %v6668_v22 }
 0x305   : > { %11149 = vmatmul.msk.bf16.vlgmr.msrb.gmra.mxu2 %vm721_vm5, %v6117_v39  ;;  %11157 = vmatmul.msk.bf16.vlgmr.msra.gmra.mxu3 %vm721_vm5, %v6152_v24 }
 0x306   : > { %6374 = vmatpush.bf16.msrb.mxu2 %v6366_v0  ;;  %6409 = vmatpush.bf16.msra.mxu3 %v6401_v23  ;;  %v1400_v17 = vpop.f32.mrf.mxu0 }
 0x307   : > { %v1401_v59 = vadd.f32 %v15349_v43, %v1400_v17 }
 0x308   : > { %v5251_v55 = vpop.f32.mrf.mxu2  ;;  %6677 = vmatpush.bf16.msra.mxu1 %v12768_v49 }
 0x309   : > { %v5279_v30 = vpop.f32.mrf.mxu3  ;;  %v13241_v29 = vpop.eup %13240  ;;  %1712 = vst.msk [vmem:[%s14179_s28 + $0x120] sm:$0xff] %vm669_vm3, %v1401_v59  ;;  %9919 = vmatmul.msk.f32.gmra.mxu0 %vm886_vm2, %v802_v62 }
 0x30a   : > { %v5196_v58 = vadd.f32 1.0, %v13241_v29  ;;  %6375 = vmatpush.bf16.msrb.mxu2 %v12760_v46  ;;  %6410 = vmatpush.bf16.msra.mxu3 %v12761_v48  ;;  %v5280_v54 = vadd.f32 %v5279_v30, %v5251_v55  ;;  %v11239_v46 = vld [vmem:[%s17934_s8 + $0x14] sm:$0xf]  ;;  %v6588_v48 = vld [vmem:[%s17934_s8 + $0x8] sm:$0xf] }
 0x30b   : > { %v6599_v55 = vunpack.c.l.b16 %v11239_v46 }
 0x30c   : > { %13242 = vrcp.f32 %v5196_v58  ;;  %v5208_v31 = vand.u32 2147483648, %v5196_v58  ;;  %v5206_v33 = vand.u32 2147483647, %v5196_v58  ;;  %vm5202_vm11 = vweird.f32 %v5196_v58 }
 0x30d   : > { %v5317_v18 = vadd.f32 %v15268_v10, %v5280_v54  ;;  %v6627_v10 = vunpack.c.l.b16 %v6588_v48  ;;  %v6601_v17 = vpack.c.b16 %v6599_v55, %v6599_v55  ;;  %v12769_v48 = vld [vmem:[%s17934_s8 + $0x24] sm:$0xff] }
 0x30e   : > { %v1403_v16 = vpop.f32.mrf.mxu0  ;;  %v5209_v39 = vor.u32 1.1754944e-38, %v5208_v31  ;;  %vm5207_vm13 = vcmp.eq.f32.partialorder %v5206_v33, 8.507059e+37 }
 0x30f   : > { %v1404_v51 = vadd.f32 %v15349_v43, %v1403_v16  ;;  %v6629_v59 = vpack.c.b16 %v6627_v10, %v6627_v10  ;;  %v6607_v35 = vsel %vm5585_vm4, %v6601_v17, 0  ;;  %v806_v16 = vld [vmem:[%s13789_s2 + $0x1c0] sm:$0xff] }
 0x310   : > { %v5253_v41 = vpop.f32.mrf.mxu2 }
 0x311   : > { %v5281_v45 = vpop.f32.mrf.mxu3  ;;  %1713 = vst.msk [vmem:[%s14179_s28 + $0x128] sm:$0xff] %vm669_vm3, %v1404_v51  ;;  %9920 = vmatmul.msk.f32.gmra.mxu0 %vm886_vm2, %v803_v2  ;;  %v6635_v20 = vsel %vm5585_vm4, %v6629_v59, 0  ;;  %v808_v59 = vld [vmem:[%s13789_s2 + $0x1d0] sm:$0xff] }
 0x312   : > { %v13243_v47 = vpop.eup %13242 }
 0x313   : > { %v5198_v34 = vmul.f32 %v13243_v47, %v5196_v58  ;;  %vm5203_vm10 = vweird.f32 %v13243_v47  ;;  %v6383_v58 = vld [vmem:[#allocation3 + $0x51] ss:$2 sm:$0xf] }
 0x314   : > { %vm5204_vm12 = vmor %vm5202_vm11, %vm5203_vm10  ;;  %v6384_v27 = vpack.c.bf16 %v6383_v58, %v6383_v58  ;;  %vm5907_vm10 = vcmask 322560  }
 0x315   : > { %v5199_v9 = vsub.f32 1.0, %v5198_v34  ;;  %11174 = vmatmul.msk.bf16.vlgmr.msra.gmra.mxu2 %vm721_vm5, %v6253_v44  ;;  %11179 = vmatmul.msk.bf16.vlgmr.msrb.gmra.mxu3 %vm721_vm5, %v6248_v11  ;;  %v12766_v44 = vld [vmem:[%s17934_s8] sm:$0xff] }
 0x316   : > { %6479 = vmatpush.bf16.msra.mxu2 %v6471_v15  ;;  %6514 = vmatpush.bf16.msrb.mxu3 %v6506_v12  ;;  %v1406_v32 = vpop.f32.mrf.mxu0 }
 0x317   : > { %v5200_v13 = vmul.f32 %v13243_v47, %v5199_v9  ;;  %v15605_v57 = vpop.f32.mrf.mxu1  ;;  %v1407_v21 = vadd.f32 %v15349_v43, %v1406_v32 }
 0x318   : > { %v5349_v7 = vpop.f32.mrf.mxu2 }
 0x319   : > { %v5385_v50 = vpop.f32.mrf.mxu3  ;;  %v5201_v36 = vadd.f32 %v13243_v47, %v5200_v13  ;;  %v5353_v6 = vadd.f32 %v5349_v7, %v5317_v18  ;;  %9921 = vmatmul.msk.f32.gmra.mxu0 %vm886_vm2, %v804_v53  ;;  %1714 = vst.msk [vmem:[%s14179_s28 + $0x130] sm:$0xff] %vm669_vm3, %v1407_v21  ;;  %v11276_v7 = vld [vmem:[%s17934_s8 + $0x44] sm:$0xf]  ;;  %v807_v18 = vld [vmem:[%s13789_s2 + $0x1c8] sm:$0xff] }
 0x31a   : > { %6480 = vmatpush.bf16.msra.mxu2 %v12763_v25  ;;  %6515 = vmatpush.bf16.msrb.mxu3 %v12764_v26  ;;  %v11260_v26 = vld [vmem:[%s17934_s8 + $0x2c] sm:$0xf] }
 0x31b   : > { %v5205_v24 = vsel %vm5204_vm12, %v13243_v47, %v5201_v36  ;;  %v5389_v63 = vadd.f32 %v5385_v50, %v5353_v6  ;;  %v6695_v33 = vunpack.c.l.b16 %v11260_v26  ;;  %v6765_v36 = vunpack.c.l.b16 %v11276_v7  ;;  %v12770_v6 = vld [vmem:[%s17934_s8 + $0x30] sm:$0xff]  ;;  %v11300_v7 = vld [vmem:[%s17934_s8 + $0x68] sm:$0xf] }
 0x31c   : > { %v5210_v0 = vsel %vm5207_vm13, %v5209_v39, %v5205_v24 }
 0x31d   : > { %v5212_v23 = vmul.f32 %v5210_v0, %v15551_v3  ;;  %v6348_v3 = vld [vmem:[#allocation3 + $0x50] ss:$2 sm:$0xf]  ;;  %v5425_v8 = vadd.f32 %v15299_v60, %v5389_v63  ;;  %v13081_v60 = vld [vmem:[%s17913_s7] ss:$0 sm:$0xff]  ;;  %v6697_v39 = vpack.c.b16 %v6695_v33, %v6695_v33  ;;  %v6767_v24 = vpack.c.b16 %v6765_v36, %v6765_v36  ;;  %s9859_s7 = sshll.u32 %s13822_s27, 2 }
 0x31e   : > { %v6349_v62 = vpack.c.bf16 %v6348_v3, %v6348_v3  ;;  %v1409_v41 = vpop.f32.mrf.mxu0  ;;  %v6870_v36 = vunpack.c.l.b16 %v11300_v7  ;;  %v12776_v7 = vld [vmem:[%s17936_s10 + $0x8] sm:$0xff]  ;;  %s16507_s20 = scalar_lea.vmem [#allocation11], %s9859_s7 }
 0x31f   : > { %5213 = vst.msk [vmem:[%s14814_s23 + $0x30] sm:$0xff] %vm721_vm5, %v5212_v23  ;;  %v6112_v40 = vpop.f32.mrf.mxu1  ;;  %v1410_v45 = vadd.f32 %v15349_v43, %v1409_v41  ;;  %v6703_v32 = vsel %vm5585_vm4, %v6697_v39, 0  ;;  %v6773_v46 = vsel %vm5585_vm4, %v6767_v24, 0  ;;  %v11284_v41 = vld [vmem:[%s17934_s8 + $0x50] sm:$0xf] }
 0x320   : > { %5214 = vst.msk [vmem:[#allocation3 + $0x60] sm:$0xff] %vm721_vm5, %v5212_v23  ;;  %v5351_v30 = vpop.f32.mrf.mxu2  ;;  %v12771_v40 = vld [vmem:[%s17934_s8 + $0x3c] sm:$0xff] }
 0x321   : > { %v5387_v29 = vpop.f32.mrf.mxu3  ;;  %9922 = vmatmul.msk.f32.gmra.mxu0 %vm886_vm2, %v805_v4  ;;  %1715 = vst.msk [vmem:[%s14179_s28 + $0x138] sm:$0xff] %vm669_vm3, %v1410_v45  ;;  %v15734_v24 = vld [vmem:[%s17894_s4] ss:$0 sm:$0xff] }
 0x325   : > { %11195 = vmatmul.msk.bf16.vlgmr.msrb.gmra.mxu2 %vm721_vm5, %v6349_v62  ;;  %11203 = vmatmul.msk.bf16.vlgmr.msra.gmra.mxu3 %vm721_vm5, %v6384_v27 }
 0x326   : > { %6615 = vmatpush.bf16.msrb.mxu2 %v6607_v35  ;;  %6643 = vmatpush.bf16.msra.mxu3 %v6635_v20  ;;  %v1412_v12 = vpop.f32.mrf.mxu0 }
 0x327   : > { %v6523_v47 = vld [vmem:[#allocation3 + $0x62] ss:$2 sm:$0xf]  ;;  %v1413_v9 = vadd.f32 %v15349_v43, %v1412_v12  ;;  %v6488_v51 = vld [vmem:[#allocation3 + $0x61] ss:$2 sm:$0xf] }
 0x328   : > { %v5457_v38 = vpop.f32.mrf.mxu2  ;;  %v6524_v34 = vpack.c.bf16 %v6523_v47, %v6523_v47  ;;  %v6453_v31 = vld [vmem:[#allocation3 + $0x60] ss:$2 sm:$0xf]  ;;  %v6489_v54 = vpack.c.bf16 %v6488_v51, %v6488_v51  ;;  %v6589_v62 = vld [vmem:[#allocation3 + $0x61] ss:$2 sm:$0xf] }
 0x329   : > { %v5493_v1 = vpop.f32.mrf.mxu3  ;;  %v5461_v11 = vadd.f32 %v5457_v38, %v5425_v8  ;;  %1716 = vst.msk [vmem:[%s14179_s28 + $0x140] sm:$0xff] %vm669_vm3, %v1413_v9  ;;  %9923 = vmatmul.msk.f32.gmra.mxu0 %vm886_vm2, %v806_v16  ;;  %v6454_v50 = vpack.c.bf16 %v6453_v31, %v6453_v31  ;;  %v6650_v0 = vld [vmem:[#allocation3 + $0x62] ss:$2 sm:$0xf]  ;;  %v6590_v4 = vpack.c.bf16 %v6589_v62, %v6589_v62  ;;  %v6800_v8 = vunpack.c.l.b16 %v11284_v41 }
 0x32a   : > { %11235 = vmatmul.msk.bf16.vlgmr.msrb.gmra.mxu1 %vm721_vm5, %v6524_v34  ;;  %6616 = vmatpush.bf16.msrb.mxu2 %v12767_v5  ;;  %v6651_v10 = vpack.c.bf16 %v6650_v0, %v6650_v0  ;;  %v6584_v35 = vld [vmem:[#allocation3 + $0x60] ss:$2 sm:$0xf] }
 0x32b   : > { %v5497_v15 = vadd.f32 %v5493_v1, %v5461_v11  ;;  %6644 = vmatpush.bf16.msra.mxu3 %v12766_v44  ;;  %6781 = vmatpush.bf16.msrb.mxu1 %v6773_v46  ;;  %v6585_v5 = vpack.c.bf16 %v6584_v35, %v6584_v35  ;;  %v11292_v47 = vld [vmem:[%s17934_s8 + $0x5c] sm:$0xf]  ;;  %v6802_v34 = vpack.c.b16 %v6800_v8, %v6800_v8  ;;  %v11311_v8 = vld [vmem:[%s17936_s10 + $0x24] sm:$0xf] }
 0x32c   : > { %v6835_v44 = vunpack.c.l.b16 %v11292_v47  ;;  %v6927_v47 = vld [vmem:[%s17936_s10 + $0x10] sm:$0xf] }
 0x32d   : > { %v5533_v42 = vadd.f32 %v15339_v28, %v5497_v15  ;;  %v11268_v28 = vld [vmem:[%s17934_s8 + $0x38] sm:$0xf]  ;;  %v6808_v31 = vsel %vm5585_vm4, %v6802_v34, 0  ;;  %v6980_v34 = vunpack.c.l.b16 %v6927_v47 }
 0x32e   : > { %v6730_v22 = vunpack.c.l.b16 %v11268_v28  ;;  %v1415_v23 = vpop.f32.mrf.mxu0 }
 0x32f   : > { %v15653_v52 = vadd.f32 %v13081_v60, %v5533_v42  ;;  %v1416_v53 = vadd.f32 %v15349_v43, %v1415_v23  ;;  %6782 = vmatpush.bf16.msrb.mxu1 %v12771_v40  ;;  %v809_v60 = vld [vmem:[%s13789_s2 + $0x1d8] sm:$0xff]  ;;  %v6837_v42 = vpack.c.b16 %v6835_v44, %v6835_v44  ;;  %v810_v23 = vld [vmem:[%s13789_s2 + $0x1e0] sm:$0xff] }
 0x330   : > { %v5459_v2 = vpop.f32.mrf.mxu2  ;;  %v6732_v49 = vpack.c.b16 %v6730_v22, %v6730_v22  ;;  %v12773_v22 = vld [vmem:[%s17934_s8 + $0x54] sm:$0xff] }
 0x331   : > { %v5495_v25 = vpop.f32.mrf.mxu3  ;;  %v11026_v13 = vmul.f32 -1.442695, %v15653_v52  ;;  %1717 = vst.msk [vmem:[%s14179_s28 + $0x148] sm:$0xff] %vm669_vm3, %v1416_v53  ;;  %9924 = vmatmul.msk.f32.gmra.mxu0 %vm886_vm2, %v807_v18  ;;  %v6872_v18 = vpack.c.b16 %v6870_v36, %v6870_v36 }
 0x332   : > { %v6738_v21 = vsel %vm5585_vm4, %v6732_v49, 0  ;;  %v6843_v25 = vsel %vm5585_vm4, %v6837_v42, 0 }
 0x333   : > { %13244 = vpow2.f32 %v11026_v13  ;;  %v12772_v13 = vld [vmem:[%s17934_s8 + $0x48] sm:$0xff]  ;;  %v6878_v53 = vsel %vm5585_vm4, %v6872_v18, 0  ;;  %v12777_v18 = vld [vmem:[%s17936_s10 + $0x14] sm:$0xff] }
 0x335   : > { %11219 = vmatmul.msk.bf16.vlgmr.msra.gmra.mxu2 %vm721_vm5, %v6454_v50  ;;  %11227 = vmatmul.msk.bf16.vlgmr.msrb.gmra.mxu3 %vm721_vm5, %v6489_v54 }
 0x336   : > { %6711 = vmatpush.bf16.msra.mxu2 %v6703_v32  ;;  %6746 = vmatpush.bf16.msrb.mxu3 %v6738_v21  ;;  %v1418_v58 = vpop.f32.mrf.mxu0 }
 0x337   : > { %v1419_v17 = vadd.f32 %v15349_v43, %v1418_v58 }
 0x338   : > { %v5598_v3 = vpop.f32.mrf.mxu2 }
 0x339   : > { %v5626_v55 = vpop.f32.mrf.mxu3  ;;  %v13245_v30 = vpop.eup %13244  ;;  %1718 = vst.msk [vmem:[%s14179_s28 + $0x150] sm:$0xff] %vm669_vm3, %v1419_v17  ;;  %9925 = vmatmul.msk.f32.gmra.mxu0 %vm886_vm2, %v808_v59 }
 0x33a   : > { %v5542_v29 = vadd.f32 1.0, %v13245_v30  ;;  %11257 = vmatmul.msk.bf16.vlgmr.msra.gmra.mxu1 %vm721_vm5, %v6651_v10  ;;  %6712 = vmatpush.bf16.msra.mxu2 %v12769_v48  ;;  %v12774_v48 = vld [vmem:[%s17934_s8 + $0x60] sm:$0xff]  ;;  %s17631_s8 = scalar_lea.hbm %s17840_s18, %s12571_s5 }
 0x33b   : > { %6747 = vmatpush.bf16.msrb.mxu3 %v12770_v6  ;;  %6886 = vmatpush.bf16.msra.mxu1 %v6878_v53 }
 0x33c   : > { %13246 = vrcp.f32 %v5542_v29  ;;  %v5554_v11 = vand.u32 2147483648, %v5542_v29  ;;  %v5552_v9 = vand.u32 2147483647, %v5542_v29  ;;  %vm5548_vm0 = vweird.f32 %v5542_v29 }
 0x33e   : > { %v1421_v1 = vpop.f32.mrf.mxu0  ;;  %v5555_v28 = vor.u32 1.1754944e-38, %v5554_v11  ;;  %vm5553_vm6 = vcmp.eq.f32.partialorder %v5552_v9, 8.507059e+37  ;;  %v6983_v9 = vpack.c.b16 %v6980_v34, %v6980_v34  ;;  %v816_v34 = vld [vmem:[%s13789_s2 + $0x210] sm:$0xff] }
 0x33f   : > { %v1422_v15 = vadd.f32 %v15349_v43, %v1421_v1  ;;  %v5627_v43 = vadd.f32 %v5626_v55, %v5598_v3  ;;  %6887 = vmatpush.bf16.msra.mxu1 %v12774_v48  ;;  %v811_v3 = vld [vmem:[%s13789_s2 + $0x1e8] sm:$0xff]  ;;  %v6946_v1 = vunpack.c.l.b16 %v11311_v8  ;;  %v814_v48 = vld [vmem:[%s13789_s2 + $0x200] sm:$0xff] }
 0x340   : > { %v5600_v63 = vpop.f32.mrf.mxu2 }
 0x341   : > { %v5628_v27 = vpop.f32.mrf.mxu3  ;;  %1719 = vst.msk [vmem:[%s14179_s28 + $0x158] sm:$0xff] %vm669_vm3, %v1422_v15  ;;  %9926 = vmatmul.msk.f32.gmra.mxu0 %vm886_vm2, %v809_v60  ;;  %v5665_v39 = vadd.f32 %v15379_v37, %v5627_v43  ;;  %v6860_v43 = vld [vmem:[#allocation3 + $0x82] ss:$2 sm:$0xf] }
 0x342   : > { %v13247_v20 = vpop.eup %13246 }
 0x343   : > { %v5544_v45 = vmul.f32 %v13247_v20, %v5542_v29  ;;  %vm5549_vm15 = vweird.f32 %v13247_v20 }
 0x344   : > { %vm5550_vm1 = vmor %vm5548_vm0, %vm5549_vm15 }
 0x345   : > { %v5545_v38 = vsub.f32 1.0, %v5544_v45  ;;  %11244 = vmatmul.msk.bf16.vlgmr.msrb.gmra.mxu2 %vm721_vm5, %v6590_v4  ;;  %11249 = vmatmul.msk.bf16.vlgmr.msra.gmra.mxu3 %vm721_vm5, %v6585_v5  ;;  %v812_v5 = vld [vmem:[%s13789_s2 + $0x1f0] sm:$0xff] }
 0x346   : > { %6816 = vmatpush.bf16.msrb.mxu2 %v6808_v31  ;;  %6851 = vmatpush.bf16.msra.mxu3 %v6843_v25  ;;  %v1424_v49 = vpop.f32.mrf.mxu0  ;;  %v6790_v31 = vld [vmem:[#allocation3 + $0x80] ss:$2 sm:$0xf] }
 0x347   : > { %v5546_v12 = vmul.f32 %v13247_v20, %v5545_v38  ;;  %v15713_v16 = vpop.f32.mrf.mxu1  ;;  %v1425_v0 = vadd.f32 %v15734_v24, %v1424_v49  ;;  %v6791_v36 = vpack.c.bf16 %v6790_v31, %v6790_v31  ;;  %v6861_v49 = vpack.c.bf16 %v6860_v43, %v6860_v43 }
 0x348   : > { %v5697_v51 = vpop.f32.mrf.mxu2 }
 0x349   : > { %v5733_v2 = vpop.f32.mrf.mxu3  ;;  %v5547_v26 = vadd.f32 %v13247_v20, %v5546_v12  ;;  %v5701_v32 = vadd.f32 %v5697_v51, %v5665_v39  ;;  %9927 = vmatmul.msk.f32.gmra.mxu0 %vm886_vm2, %v810_v23  ;;  %1720 = vst.msk [vmem:[%s14179_s28 + $0x160] sm:$0xff] %vm669_vm3, %v1425_v0  ;;  %v6949_v12 = vpack.c.b16 %v6946_v1, %v6946_v1 }
 0x34a   : > { %6817 = vmatpush.bf16.msrb.mxu2 %v12772_v13  ;;  %6852 = vmatpush.bf16.msra.mxu3 %v12773_v22  ;;  %v12778_v13 = vld [vmem:[%s17936_s10 + $0x1c] sm:$0xff] }
 0x34b   : > { %v5551_v33 = vsel %vm5550_vm1, %v13247_v20, %v5547_v26  ;;  %v5737_v46 = vadd.f32 %v5733_v2, %v5701_v32  ;;  %v6825_v2 = vld [vmem:[#allocation3 + $0x81] ss:$2 sm:$0xf]  ;;  %v6956_v25 = vsel %vm5585_vm4, %v6949_v12, 0  ;;  %v6990_v26 = vsel %vm5585_vm4, %v6983_v9, 0 }
 0x34c   : > { %v5556_v50 = vsel %vm5553_vm6, %v5555_v28, %v5551_v33  ;;  %v813_v22 = vld [vmem:[%s13789_s2 + $0x1f8] sm:$0xff] }
 0x34d   : > { %v5558_v54 = vmul.f32 %v5556_v50, %v15653_v52  ;;  %v5773_v10 = vadd.f32 %v15416_v56, %v5737_v46  ;;  %v13082_v56 = vld [vmem:[%s17935_s9] ss:$0 sm:$0xff]  ;;  %v12780_v50 = vld [vmem:[%s17936_s10 + $0x30] sm:$0xff]  ;;  %v817_v12 = vld [vmem:[%s13789_s2 + $0x218] sm:$0xff] }
 0x34e   : > { %v1427_v6 = vpop.f32.mrf.mxu0 }
 0x34f   : > { %5559 = vst.msk [vmem:[%s14814_s23 + $0x38] sm:$0xff] %vm721_vm5, %v5558_v54  ;;  %v6217_v21 = vpop.f32.mrf.mxu1  ;;  %v1428_v40 = vadd.f32 %v15734_v24, %v1427_v6  ;;  %s13311_s23 = scalar_lea.hbm %s17838_s16, 128 }
 0x350   : > { %5560 = vst.msk [vmem:[#allocation3 + $0x70] sm:$0xff] %vm721_vm5, %v5558_v54  ;;  %v5699_v52 = vpop.f32.mrf.mxu2  ;;  %v6826_v54 = vpack.c.bf16 %v6825_v2, %v6825_v2  ;;  %v12775_v21 = vld [vmem:[%s17936_s10] sm:$0xff] }
 0x351   : > { %v5735_v37 = vpop.f32.mrf.mxu3  ;;  %1721 = vst.msk [vmem:[%s14179_s28 + $0x168] sm:$0xff] %vm669_vm3, %v1428_v40  ;;  %9928 = vmatmul.msk.f32.gmra.mxu0 %vm886_vm2, %v811_v3  ;;  %v12779_v52 = vld [vmem:[%s17936_s10 + $0x28] sm:$0xff] }
 0x356   : > { %v1430_v45 = vpop.f32.mrf.mxu0 }
 0x357   : > { %v15750_v55 = vpop.f32.mrf.mxu1  ;;  %v6685_v30 = vld [vmem:[#allocation3 + $0x70] ss:$2 sm:$0xf]  ;;  %v6720_v29 = vld [vmem:[#allocation3 + $0x71] ss:$2 sm:$0xf]  ;;  %v1431_v4 = vadd.f32 %v15734_v24, %v1430_v45 }
 0x358   : > { %v5805_v58 = vpop.f32.mrf.mxu2  ;;  %v6686_v59 = vpack.c.bf16 %v6685_v30, %v6685_v30  ;;  %v6721_v62 = vpack.c.bf16 %v6720_v29, %v6720_v29  ;;  %v6755_v63 = vld [vmem:[#allocation3 + $0x72] ss:$2 sm:$0xf] }
 0x359   : > { %v5841_v17 = vpop.f32.mrf.mxu3  ;;  %v5809_v27 = vadd.f32 %v5805_v58, %v5773_v10  ;;  %v6756_v35 = vpack.c.bf16 %v6755_v63, %v6755_v63  ;;  %1722 = vst.msk [vmem:[%s14179_s28 + $0x170] sm:$0xff] %vm669_vm3, %v1431_v4  ;;  %9929 = vmatmul.msk.f32.gmra.mxu0 %vm886_vm2, %v812_v5 }
 0x35a   : > { %11265 = vmatmul.msk.bf16.vlgmr.msra.gmra.mxu2 %vm721_vm5, %v6686_v59  ;;  %11273 = vmatmul.msk.bf16.vlgmr.msrb.gmra.mxu3 %vm721_vm5, %v6721_v62  ;;  %v815_v59 = vld [vmem:[%s13789_s2 + $0x208] sm:$0xff] }
 0x35b   : > { %v5845_v20 = vadd.f32 %v5841_v17, %v5809_v27  ;;  %11281 = vmatmul.msk.bf16.vlgmr.msrb.gmra.mxu1 %vm721_vm5, %v6756_v35  ;;  %6963 = vmatpush.bf16.msra.mxu2 %v6956_v25 }
 0x35c   : > { %6997 = vmatpush.bf16.msrb.mxu3 %v6990_v26 }
 0x35d   : > { %v5881_v41 = vadd.f32 %v15487_v61, %v5845_v20  ;;  %v11334_v61 = vld [vmem:[%s17936_s10 + $0x38] sm:$0xf] }
 0x35e   : > { %v7023_v60 = vunpack.c.l.b16 %v11334_v61  ;;  %v1433_v33 = vpop.f32.mrf.mxu0 }
 0x35f   : > { %v15771_v44 = vadd.f32 %v13082_v56, %v5881_v41  ;;  %v6344_v38 = vpop.f32.mrf.mxu1  ;;  %v1434_v39 = vadd.f32 %v15734_v24, %v1433_v33  ;;  %6964 = vmatpush.bf16.msra.mxu2 %v12778_v13 }
 0x360   : > { %v5807_v11 = vpop.f32.mrf.mxu2  ;;  %v7026_v51 = vpack.c.b16 %v7023_v60, %v7023_v60  ;;  %6998 = vmatpush.bf16.msrb.mxu3 %v12776_v7 }
 0x361   : > { %v5843_v15 = vpop.f32.mrf.mxu3  ;;  %v11096_v42 = vmul.f32 -1.442695, %v15771_v44  ;;  %1723 = vst.msk [vmem:[%s14179_s28 + $0x178] sm:$0xff] %vm669_vm3, %v1434_v39  ;;  %9930 = vmatmul.msk.f32.gmra.mxu0 %vm886_vm2, %v813_v22  ;;  %v13083_v22 = vld [vmem:[%s17935_s9] ss:$0 sm:$0xff] }
 0x362   : > { %v7033_v28 = vsel %vm5585_vm4, %v7026_v51, 0  ;;  %v11348_v39 = vld [vmem:[%s17936_s10 + $0x4c] sm:$0xf] }
 0x363   : > { %13248 = vpow2.f32 %v11096_v42  ;;  %7040 = vmatpush.bf16.msrb.mxu1 %v7033_v28  ;;  %6965 = vmatpush.bf16.msra.mxu2 %v12777_v18 }
 0x364   : > { %6999 = vmatpush.bf16.msrb.mxu3 %v12775_v21 }
 0x366   : > { %v1436_v53 = vpop.f32.mrf.mxu0 }
 0x367   : > { %7041 = vmatpush.bf16.msrb.mxu1 %v12780_v50  ;;  %v1437_v46 = vadd.f32 %v15734_v24, %v1436_v53 }
 0x368   : > { %v5944_v0 = vpop.f32.mrf.mxu2 }
 0x369   : > { %v5972_v23 = vpop.f32.mrf.mxu3  ;;  %v13249_v32 = vpop.eup %13248  ;;  %1724 = vst.msk [vmem:[%s14179_s28 + $0x180] sm:$0xff] %vm669_vm3, %v1437_v46  ;;  %9931 = vmatmul.msk.f32.gmra.mxu0 %vm886_vm2, %v814_v48 }
 0x36a   : > { %v5890_v37 = vadd.f32 1.0, %v13249_v32  ;;  %11289 = vmatmul.msk.bf16.vlgmr.msrb.gmra.mxu2 %vm721_vm5, %v6791_v36  ;;  %11297 = vmatmul.msk.bf16.vlgmr.msra.gmra.mxu3 %vm721_vm5, %v6826_v54  ;;  %v5973_v41 = vadd.f32 %v5972_v23, %v5944_v0  ;;  %v818_v54 = vld [vmem:[%s13789_s2 + $0x220] sm:$0xff]  ;;  %v7067_v23 = vunpack.c.l.b16 %v11348_v39 }
 0x36b   : > { %11305 = vmatmul.msk.bf16.vlgmr.msra.gmra.mxu1 %vm721_vm5, %v6861_v49  ;;  %v11362_v49 = vld [vmem:[%s17936_s10 + $0x60] sm:$0xf] }
 0x36c   : > { %13250 = vrcp.f32 %v5890_v37  ;;  %7042 = vmatpush.bf16.msrb.mxu1 %v12779_v52  ;;  %v5902_v58 = vand.u32 2147483648, %v5890_v37  ;;  %v5900_v63 = vand.u32 2147483647, %v5890_v37  ;;  %vm5896_vm7 = vweird.f32 %v5890_v37 }
 0x36d   : > { %v6009_v47 = vadd.f32 %v15520_v19, %v5973_v41  ;;  %v7111_v18 = vunpack.c.l.b16 %v11362_v49  ;;  %v7070_v53 = vpack.c.b16 %v7067_v23, %v7067_v23  ;;  %v12785_v41 = vld [vmem:[%s17936_s10 + $0x64] sm:$0xff] }
 0x36e   : > { %v1439_v29 = vpop.f32.mrf.mxu0  ;;  %v5903_v45 = vor.u32 1.1754944e-38, %v5902_v58  ;;  %vm5901_vm9 = vcmp.eq.f32.partialorder %v5900_v63, 8.507059e+37  ;;  %v12784_v58 = vld [vmem:[%s17936_s10 + $0x58] sm:$0xff] }
 0x36f   : > { %v1440_v17 = vadd.f32 %v15734_v24, %v1439_v29  ;;  %v7114_v46 = vpack.c.b16 %v7111_v18, %v7111_v18  ;;  %v819_v29 = vld [vmem:[%s13789_s2 + $0x228] sm:$0xff] }
 0x370   : > { %v5946_v6 = vpop.f32.mrf.mxu2 }
 0x371   : > { %v5974_v40 = vpop.f32.mrf.mxu3  ;;  %1725 = vst.msk [vmem:[%s14179_s28 + $0x188] sm:$0xff] %vm669_vm3, %v1440_v17  ;;  %9932 = vmatmul.msk.f32.gmra.mxu0 %vm886_vm2, %v815_v59  ;;  %v7077_v6 = vsel %vm5585_vm4, %v7070_v53, 0  ;;  %v12786_v17 = vld [vmem:[%s17936_s10 + $0x6c] sm:$0xff] }
 0x372   : > { %v13251_v3 = vpop.eup %13250  ;;  %v7121_v40 = vsel %vm5585_vm4, %v7114_v46, 0  ;;  %7084 = vmatpush.bf16.msrb.mxu2 %v7077_v6 }
 0x373   : > { %v5892_v10 = vmul.f32 %v13251_v3, %v5890_v37  ;;  %vm5897_vm5 = vweird.f32 %v13251_v3  ;;  %7128 = vmatpush.bf16.msra.mxu3 %v7121_v40 }
 0x374   : > { %vm5898_vm8 = vmor %vm5896_vm7, %vm5897_vm5 }
 0x375   : > { %v5893_v30 = vsub.f32 1.0, %v5892_v10  ;;  %v12782_v10 = vld [vmem:[%s17936_s10 + $0x44] sm:$0xff] }
 0x376   : > { %v1442_v38 = vpop.f32.mrf.mxu0  ;;  %7085 = vmatpush.bf16.msrb.mxu2 %v12782_v10 }
 0x377   : > { %v5894_v62 = vmul.f32 %v13251_v3, %v5893_v30  ;;  %v15816_v27 = vpop.f32.mrf.mxu1  ;;  %v1443_v1 = vadd.f32 %v15734_v24, %v1442_v38  ;;  %7129 = vmatpush.bf16.msra.mxu3 %v12784_v58  ;;  %v11390_v58 = vld [vmem:[%s17936_s10 + $0x88] sm:$0xf] }
 0x378   : > { %v6040_v35 = vpop.f32.mrf.mxu2 }
 0x379   : > { %v6075_v20 = vpop.f32.mrf.mxu3  ;;  %v5895_v56 = vadd.f32 %v13251_v3, %v5894_v62  ;;  %v6044_v61 = vadd.f32 %v6040_v35, %v6009_v47  ;;  %9933 = vmatmul.msk.f32.gmra.mxu0 %vm886_vm2, %v816_v34  ;;  %1726 = vst.msk [vmem:[%s14179_s28 + $0x190] sm:$0xff] %vm669_vm3, %v1443_v1  ;;  %v12781_v35 = vld [vmem:[%s17936_s10 + $0x3c] sm:$0xff] }
 0x37a   : > { %7086 = vmatpush.bf16.msrb.mxu2 %v12781_v35 }
 0x37b   : > { %v5899_v4 = vsel %vm5898_vm8, %v13251_v3, %v5895_v56  ;;  %v6079_v19 = vadd.f32 %v6075_v20, %v6044_v61  ;;  %v12783_v56 = vld [vmem:[%s17936_s10 + $0x50] sm:$0xff] }
 0x37c   : > { %v5904_v5 = vsel %vm5901_vm9, %v5903_v45, %v5899_v4  ;;  %7130 = vmatpush.bf16.msra.mxu3 %v12783_v56 }
 0x37d   : > { %v5906_v8 = vmul.f32 %v5904_v5, %v15771_v44  ;;  %v6114_v9 = vadd.f32 %v15605_v57, %v6079_v19  ;;  %v821_v19 = vld [vmem:[%s13789_s2 + $0x238] sm:$0xff] }
 0x37e   : > { %v1445_v44 = vpop.f32.mrf.mxu0 }
 0x37f   : > { %5908 = vst.msk [vmem:[%s15826_s24] sm:$0xf] %vm5907_vm10, %v5906_v8  ;;  %v6449_v11 = vpop.f32.mrf.mxu1  ;;  %v1446_v42 = vadd.f32 %v15734_v24, %v1445_v44 }
 0x380   : > { %5909 = vst.msk [vmem:[#allocation4] sm:$0xf] %vm5907_vm10, %v5906_v8  ;;  %v6042_v15 = vpop.f32.mrf.mxu2  ;;  %v820_v8 = vld [vmem:[%s13789_s2 + $0x230] sm:$0xff] }
 0x381   : > { %v6077_v60 = vpop.f32.mrf.mxu3  ;;  %1727 = vst.msk [vmem:[%s14179_s28 + $0x198] sm:$0xff] %vm669_vm3, %v1446_v42  ;;  %9934 = vmatmul.msk.f32.gmra.mxu0 %vm886_vm2, %v817_v12 }
 0x386   : > { %v1448_v50 = vpop.f32.mrf.mxu0 }
 0x387   : > { %v6929_v31 = vld [vmem:[#allocation4 + $0x1] ss:$2 sm:$0x3]  ;;  %v6921_v51 = vld [vmem:[#allocation4] ss:$2 sm:$0x3]  ;;  %v1449_v36 = vadd.f32 %v15734_v24, %v1448_v50 }
 0x388   : > { %v6145_v2 = vpop.f32.mrf.mxu2  ;;  %v6930_v26 = vpack.c.bf16 %v6929_v31, %v6929_v31  ;;  %v6922_v43 = vpack.c.bf16 %v6921_v51, %v6921_v51  ;;  %v7006_v28 = vld [vmem:[#allocation4 + $0x2] ss:$2 sm:$0x3] }
 0x389   : > { %v6180_v25 = vpop.f32.mrf.mxu3  ;;  %v6149_v13 = vadd.f32 %v6145_v2, %v6114_v9  ;;  %v7007_v33 = vpack.c.bf16 %v7006_v28, %v7006_v28  ;;  %1728 = vst.msk [vmem:[%s14179_s28 + $0x1a0] sm:$0xff] %vm669_vm3, %v1449_v36  ;;  %9935 = vmatmul.msk.f32.gmra.mxu0 %vm886_vm2, %v818_v54 }
 0x38a   : > { %11320 = vmatmul.msk.bf16.vlgmr.msra.gmra.mxu2 %vm740_vm14, %v6930_v26  ;;  %11329 = vmatmul.msk.bf16.vlgmr.msrb.gmra.mxu3 %vm740_vm14, %v6922_v43 }
 0x38b   : > { %v6184_v57 = vadd.f32 %v6180_v25, %v6149_v13  ;;  %11343 = vmatmul.msk.bf16.vlgmr.msrb.gmra.mxu1 %vm740_vm14, %v7007_v33 }
 0x38d   : > { %v6219_v7 = vadd.f32 %v15713_v16, %v6184_v57  ;;  %v11376_v16 = vld [vmem:[%s17936_s10 + $0x74] sm:$0xf] }
 0x38e   : > { %v7155_v52 = vunpack.c.l.b16 %v11376_v16  ;;  %v1451_v30 = vpop.f32.mrf.mxu0 }
 0x38f   : > { %v15855_v0 = vadd.f32 %v13083_v22, %v6219_v7  ;;  %v1452_v59 = vadd.f32 %v15734_v24, %v1451_v30  ;;  %v822_v22 = vld [vmem:[%s13789_s2 + $0x240] sm:$0xff] }
 0x390   : > { %v6147_v32 = vpop.f32.mrf.mxu2  ;;  %v7158_v48 = vpack.c.b16 %v7155_v52, %v7155_v52 }
 0x391   : > { %v6182_v21 = vpop.f32.mrf.mxu3  ;;  %v11166_v37 = vmul.f32 -1.442695, %v15855_v0  ;;  %1729 = vst.msk [vmem:[%s14179_s28 + $0x1a8] sm:$0xff] %vm669_vm3, %v1452_v59  ;;  %9936 = vmatmul.msk.f32.gmra.mxu0 %vm886_vm2, %v819_v29  ;;  %v824_v29 = vld [vmem:[%s13789_s2 + $0x250] sm:$0xff] }
 0x392   : > { %v7165_v3 = vsel %vm5585_vm4, %v7158_v48, 0 }
 0x393   : > { %13252 = vpow2.f32 %v11166_v37  ;;  %7172 = vmatpush.bf16.msra.mxu1 %v7165_v3 }
 0x396   : > { %v1454_v4 = vpop.f32.mrf.mxu0 }
 0x397   : > { %7173 = vmatpush.bf16.msra.mxu1 %v12786_v17  ;;  %v1455_v5 = vadd.f32 %v15734_v24, %v1454_v4  ;;  %v11404_v17 = vld [vmem:[%s17936_s10 + $0x9c] sm:$0xf] }
 0x398   : > { %v6281_v62 = vpop.f32.mrf.mxu2  ;;  %v7243_v35 = vunpack.c.l.b16 %v11404_v17  ;;  %v12795_v17 = vld [vmem:[%s17936_s10 + $0x14] sm:$0xff] }
 0x399   : > { %v6309_v63 = vpop.f32.mrf.mxu3  ;;  %v13253_v20 = vpop.eup %13252  ;;  %1730 = vst.msk [vmem:[%s14179_s28 + $0x1b0] sm:$0xff] %vm669_vm3, %v1455_v5  ;;  %9937 = vmatmul.msk.f32.gmra.mxu0 %vm886_vm2, %v820_v8 }
 0x39a   : > { %v6228_v45 = vadd.f32 1.0, %v13253_v20  ;;  %v6310_v2 = vadd.f32 %v6309_v63, %v6281_v62  ;;  %v7199_v63 = vunpack.c.l.b16 %v11390_v58  ;;  %v11418_v20 = vld [vmem:[%s17936_s10 + $0xb0] sm:$0xf]  ;;  %v7246_v8 = vpack.c.b16 %v7243_v35, %v7243_v35 }
 0x39b   : > { %7174 = vmatpush.bf16.msra.mxu1 %v12785_v41 }
 0x39c   : > { %13254 = vrcp.f32 %v6228_v45  ;;  %v6240_v15 = vand.u32 2147483648, %v6228_v45  ;;  %v6238_v42 = vand.u32 2147483647, %v6228_v45  ;;  %vm6234_vm12 = vweird.f32 %v6228_v45 }
 0x39d   : > { %v6346_v13 = vadd.f32 %v15750_v55, %v6310_v2  ;;  %v7202_v5 = vpack.c.b16 %v7199_v63, %v7199_v63  ;;  %v12791_v2 = vld [vmem:[%s17936_s10 + $0xa0] sm:$0xff]  ;;  %v12797_v63 = vld [vmem:[%s17936_s10 + $0x28] sm:$0xff] }
 0x39e   : > { %v1457_v11 = vpop.f32.mrf.mxu0  ;;  %v6241_v25 = vor.u32 1.1754944e-38, %v6240_v15  ;;  %vm6239_vm15 = vcmp.eq.f32.partialorder %v6238_v42, 8.507059e+37  ;;  %v825_v15 = vld [vmem:[%s13789_s2 + $0x258] sm:$0xff] }
 0x39f   : > { %v1458_v60 = vadd.f32 %v15734_v24, %v1457_v11 }
 0x3a0   : > { %v6283_v47 = vpop.f32.mrf.mxu2 }
 0x3a1   : > { %v6311_v38 = vpop.f32.mrf.mxu3  ;;  %1731 = vst.msk [vmem:[%s14179_s28 + $0x1b8] sm:$0xff] %vm669_vm3, %v1458_v60  ;;  %9938 = vmatmul.msk.f32.gmra.mxu0 %vm886_vm2, %v821_v19  ;;  %v12790_v60 = vld [vmem:[%s17936_s10 + $0x94] sm:$0xff]  ;;  %v12792_v19 = vld [vmem:[%s17936_s10 + $0xa8] sm:$0xff] }
 0x3a2   : > { %v13255_v1 = vpop.eup %13254  ;;  %v7209_v38 = vsel %vm5585_vm4, %v7202_v5, 0 }
 0x3a3   : > { %v6230_v34 = vmul.f32 %v13255_v1, %v6228_v45  ;;  %vm6235_vm11 = vweird.f32 %v13255_v1  ;;  %v7287_v45 = vunpack.c.l.b16 %v11418_v20  ;;  %7216 = vmatpush.bf16.msra.mxu2 %v7209_v38 }
 0x3a4   : > { %vm6236_vm13 = vmor %vm6234_vm12, %vm6235_vm11 }
 0x3a5   : > { %v6231_v61 = vsub.f32 1.0, %v6230_v34  ;;  %v7290_v47 = vpack.c.b16 %v7287_v45, %v7287_v45 }
 0x3a6   : > { %v1460_v33 = vpop.f32.mrf.mxu0 }
 0x3a7   : > { %v6232_v44 = vmul.f32 %v13255_v1, %v6231_v61  ;;  %v6552_v12 = vpop.f32.mrf.mxu1  ;;  %v1461_v57 = vadd.f32 %v15734_v24, %v1460_v33  ;;  %v7297_v34 = vsel %vm5585_vm4, %v7290_v47, 0  ;;  %v12788_v61 = vld [vmem:[%s17936_s10 + $0x80] sm:$0xff]  ;;  %v7347_v33 = vld [vmem:[%s17936_s10 + $0x10] sm:$0xf] }
 0x3a8   : > { %v6377_v9 = vpop.f32.mrf.mxu2  ;;  %7304 = vmatpush.bf16.msrb.mxu1 %v7297_v34  ;;  %7217 = vmatpush.bf16.msra.mxu2 %v12788_v61 }
 0x3a9   : > { %v6412_v31 = vpop.f32.mrf.mxu3  ;;  %v6233_v51 = vadd.f32 %v13255_v1, %v6232_v44  ;;  %v6381_v7 = vadd.f32 %v6377_v9, %v6346_v13  ;;  %9939 = vmatmul.msk.f32.gmra.mxu0 %vm886_vm2, %v822_v22  ;;  %1732 = vst.msk [vmem:[%s14179_s28 + $0x1c0] sm:$0xff] %vm669_vm3, %v1461_v57  ;;  %v12787_v9 = vld [vmem:[%s17936_s10 + $0x78] sm:$0xff]  ;;  %v11433_v13 = vld [vmem:[%s17936_s10 + $0x24] sm:$0xf]  ;;  %v7398_v22 = vunpack.c.l.b16 %v7347_v33 }
 0x3aa   : > { %v7364_v57 = vunpack.c.l.b16 %v11433_v13  ;;  %v830_v13 = vld [vmem:[%s13789_s2 + $0x280] sm:$0xff] }
 0x3ab   : > { %v6237_v26 = vsel %vm6236_vm13, %v13255_v1, %v6233_v51  ;;  %v6416_v39 = vadd.f32 %v6412_v31, %v6381_v7  ;;  %v7253_v1 = vsel %vm5585_vm4, %v7246_v8, 0  ;;  %v12789_v51 = vld [vmem:[%s17936_s10 + $0x8c] sm:$0xff]  ;;  %v11456_v7 = vld [vmem:[%s17936_s10 + $0x38] sm:$0xf] }
 0x3ac   : > { %v6242_v43 = vsel %vm6239_vm15, %v6241_v25, %v6237_v26  ;;  %7260 = vmatpush.bf16.msrb.mxu3 %v7253_v1  ;;  %7305 = vmatpush.bf16.msrb.mxu1 %v12792_v19  ;;  %v828_v8 = vld [vmem:[%s13789_s2 + $0x270] sm:$0xff]  ;;  %vm7338_vm15 = vcmask 910336  }
 0x3ad   : > { %v6244_v28 = vmul.f32 %v6242_v43, %v15855_v0  ;;  %v823_v0 = vld [vmem:[%s13789_s2 + $0x248] sm:$0xff]  ;;  %v6451_v18 = vadd.f32 %v15816_v27, %v6416_v39  ;;  %v13084_v27 = vld [vmem:[%s17935_s9] ss:$0 sm:$0xff]  ;;  %7218 = vmatpush.bf16.msra.mxu2 %v12787_v9  ;;  %v7367_v39 = vpack.c.b16 %v7364_v57, %v7364_v57 }
 0x3ae   : > { %v1463_v49 = vpop.f32.mrf.mxu0  ;;  %v826_v43 = vld [vmem:[%s13789_s2 + $0x260] sm:$0xff] }
 0x3af   : > { %6245 = vst.msk [vmem:[%s15826_s24 + $0x4] sm:$0xf] %vm5907_vm10, %v6244_v28  ;;  %v6554_v50 = vpop.f32.mrf.mxu1  ;;  %v1464_v55 = vadd.f32 %v15734_v24, %v1463_v49  ;;  %v7401_v49 = vpack.c.b16 %v7398_v22, %v7398_v22  ;;  %v13085_v22 = vld [vmem:[%s17935_s9] ss:$0 sm:$0xff]  ;;  %s9578_s9 = scalar_lea.hbm %s17838_s16, %s13001_s29 }
 0x3b0   : > { %6246 = vst.msk [vmem:[#allocation4 + $0x8] sm:$0xf] %vm5907_vm10, %v6244_v28  ;;  %v6379_v36 = vpop.f32.mrf.mxu2  ;;  %7261 = vmatpush.bf16.msrb.mxu3 %v12790_v60  ;;  %7306 = vmatpush.bf16.msrb.mxu1 %v12791_v2 }
 0x3b1   : > { %v6414_v54 = vpop.f32.mrf.mxu3  ;;  %1733 = vst.msk [vmem:[%s14179_s28 + $0x1c8] sm:$0xff] %vm669_vm3, %v1464_v55  ;;  %9940 = vmatmul.msk.f32.gmra.mxu0 %vm886_vm2, %v823_v0 }
 0x3b2   : > { %v7439_v54 = vunpack.c.l.b16 %v11456_v7 }
 0x3b4   : > { %7262 = vmatpush.bf16.msrb.mxu3 %v12789_v51  ;;  %v7442_v0 = vpack.c.b16 %v7439_v54, %v7439_v54  ;;  %v11484_v54 = vld [vmem:[%s17936_s10 + $0x60] sm:$0xf] }
 0x3b6   : > { %v1466_v10 = vpop.f32.mrf.mxu0 }
 0x3b7   : > { %v15912_v23 = vpop.f32.mrf.mxu1  ;;  %v7050_v16 = vld [vmem:[#allocation4 + $0x8] ss:$2 sm:$0x3]  ;;  %v7094_v32 = vld [vmem:[#allocation4 + $0x9] ss:$2 sm:$0x3]  ;;  %v1467_v30 = vadd.f32 %v15734_v24, %v1466_v10 }
 0x3b8   : > { %v6482_v21 = vpop.f32.mrf.mxu2  ;;  %v7051_v37 = vpack.c.bf16 %v7050_v16, %v7050_v16  ;;  %v7095_v53 = vpack.c.bf16 %v7094_v32, %v7094_v32  ;;  %v7138_v46 = vld [vmem:[#allocation4 + $0xa] ss:$2 sm:$0x3]  ;;  %v7374_v16 = vsel %vm5585_vm4, %v7367_v39, 0  ;;  %v7408_v32 = vsel %vm5585_vm4, %v7401_v49, 0 }
 0x3b9   : > { %v6517_v52 = vpop.f32.mrf.mxu3  ;;  %v6486_v48 = vadd.f32 %v6482_v21, %v6451_v18  ;;  %v7139_v6 = vpack.c.bf16 %v7138_v46, %v7138_v46  ;;  %1734 = vst.msk [vmem:[%s14179_s28 + $0x1d0] sm:$0xff] %vm669_vm3, %v1467_v30  ;;  %9941 = vmatmul.msk.f32.gmra.mxu0 %vm886_vm2, %v824_v29  ;;  %v7449_v21 = vsel %vm5585_vm4, %v7442_v0, 0  ;;  %v12798_v10 = vld [vmem:[%s17936_s10 + $0x30] sm:$0xff] }
 0x3ba   : > { %11357 = vmatmul.msk.bf16.vlgmr.msrb.gmra.mxu2 %vm740_vm14, %v7051_v37  ;;  %11371 = vmatmul.msk.bf16.vlgmr.msra.gmra.mxu3 %vm740_vm14, %v7095_v53  ;;  %v11498_v39 = vld [vmem:[%s17936_s10 + $0x74] sm:$0xf] }
 0x3bb   : > { %v6521_v40 = vadd.f32 %v6517_v52, %v6486_v48  ;;  %11385 = vmatmul.msk.bf16.vlgmr.msra.gmra.mxu1 %vm740_vm14, %v7139_v6  ;;  %7381 = vmatpush.bf16.msrb.mxu2 %v7374_v16  ;;  %v827_v48 = vld [vmem:[%s13789_s2 + $0x268] sm:$0xff]  ;;  %v12796_v6 = vld [vmem:[%s17936_s10 + $0x1c] sm:$0xff]  ;;  %v7568_v0 = vunpack.c.l.b16 %v11498_v39 }
 0x3bc   : > { %7415 = vmatpush.bf16.msra.mxu3 %v7408_v32  ;;  %7456 = vmatpush.bf16.msra.mxu1 %v7449_v21 }
 0x3bd   : > { %v6556_v3 = vadd.f32 %v6552_v12, %v6521_v40  ;;  %v12794_v40 = vld [vmem:[%s17936_s10 + $0x8] sm:$0xff] }
 0x3be   : > { %v1469_v11 = vpop.f32.mrf.mxu0 }
 0x3bf   : > { %v15932_v59 = vadd.f32 %v13084_v27, %v6556_v3  ;;  %v6681_v62 = vpop.f32.mrf.mxu1  ;;  %v1470_v44 = vadd.f32 %v15734_v24, %v1469_v11  ;;  %7382 = vmatpush.bf16.msrb.mxu2 %v12796_v6 }
 0x3c0   : > { %v6484_v56 = vpop.f32.mrf.mxu2  ;;  %7416 = vmatpush.bf16.msra.mxu3 %v12794_v40  ;;  %7457 = vmatpush.bf16.msra.mxu1 %v12798_v10  ;;  %v12793_v62 = vld [vmem:[%s17936_s10] sm:$0xff] }
 0x3c1   : > { %v6519_v41 = vpop.f32.mrf.mxu3  ;;  %v11236_v4 = vmul.f32 -1.442695, %v15932_v59  ;;  %1735 = vst.msk [vmem:[%s14179_s28 + $0x1d8] sm:$0xff] %vm669_vm3, %v1470_v44  ;;  %9942 = vmatmul.msk.f32.gmra.mxu0 %vm886_vm2, %v825_v15  ;;  %v829_v15 = vld [vmem:[%s13789_s2 + $0x278] sm:$0xff] }
 0x3c3   : > { %13256 = vpow2.f32 %v11236_v4  ;;  %7383 = vmatpush.bf16.msrb.mxu2 %v12795_v17 }
 0x3c4   : > { %7417 = vmatpush.bf16.msra.mxu3 %v12793_v62  ;;  %7458 = vmatpush.bf16.msra.mxu1 %v12797_v63  ;;  %v12800_v62 = vld [vmem:[%s17936_s10 + $0x44] sm:$0xff] }
 0x3c6   : > { %v1472_v26 = vpop.f32.mrf.mxu0 }
 0x3c7   : > { %v1473_v28 = vadd.f32 %v15734_v24, %v1472_v26 }
 0x3c8   : > { %v15955_v42 = vpop.f32.mrf.mxu2 }
 0x3c9   : > { %v15957_v12 = vpop.f32.mrf.mxu3  ;;  %v13257_v31 = vpop.eup %13256  ;;  %1736 = vst.msk [vmem:[%s14179_s28 + $0x1e0] sm:$0xff] %vm669_vm3, %v1473_v28  ;;  %9943 = vmatmul.msk.f32.gmra.mxu0 %vm886_vm2, %v826_v43 }
 0x3ca   : > { %v6565_v25 = vadd.f32 1.0, %v13257_v31  ;;  %v6647_v4 = vadd.f32 %v15957_v12, %v15955_v42 }
 0x3cc   : > { %13258 = vrcp.f32 %v6565_v25  ;;  %v6577_v53 = vand.u32 2147483648, %v6565_v25  ;;  %v6575_v3 = vand.u32 2147483647, %v6565_v25  ;;  %vm6571_vm1 = vweird.f32 %v6565_v25 }
 0x3ce   : > { %v1475_v37 = vpop.f32.mrf.mxu0  ;;  %v6578_v58 = vor.u32 1.1754944e-38, %v6577_v53  ;;  %vm6576_vm5 = vcmp.eq.f32.partialorder %v6575_v3, 8.507059e+37 }
 0x3cf   : > { %v1476_v46 = vadd.f32 %v15734_v24, %v1475_v37  ;;  %v831_v37 = vld [vmem:[%s13789_s2 + $0x288] sm:$0xff] }
 0x3d0   : > { %v6620_v50 = vpop.f32.mrf.mxu2 }
 0x3d1   : > { %v6648_v36 = vpop.f32.mrf.mxu3  ;;  %1737 = vst.msk [vmem:[%s14179_s28 + $0x1e8] sm:$0xff] %vm669_vm3, %v1476_v46  ;;  %9944 = vmatmul.msk.f32.gmra.mxu0 %vm886_vm2, %v827_v48  ;;  %v7571_v48 = vpack.c.b16 %v7568_v0, %v7568_v0 }
 0x3d2   : > { %v13259_v55 = vpop.eup %13258  ;;  %v11470_v36 = vld [vmem:[%s17936_s10 + $0x4c] sm:$0xf] }
 0x3d3   : > { %v6567_v18 = vmul.f32 %v13259_v55, %v6565_v25  ;;  %vm6572_vm0 = vweird.f32 %v13259_v55  ;;  %v7482_v49 = vunpack.c.l.b16 %v11470_v36 }
 0x3d4   : > { %vm6573_vm6 = vmor %vm6571_vm1, %vm6572_vm0 }
 0x3d5   : > { %v6568_v52 = vsub.f32 1.0, %v6567_v18  ;;  %v7485_v53 = vpack.c.b16 %v7482_v49, %v7482_v49 }
 0x3d6   : > { %v1478_v5 = vpop.f32.mrf.mxu0 }
 0x3d7   : > { %v6569_v27 = vmul.f32 %v13259_v55, %v6568_v52  ;;  %v1479_v47 = vadd.f32 %v15734_v24, %v1478_v5  ;;  %v7492_v10 = vsel %vm5585_vm4, %v7485_v53, 0 }
 0x3d8   : > { %v6784_v30 = vpop.f32.mrf.mxu1 }
 0x3d9   : > { %v6570_v29 = vadd.f32 %v13259_v55, %v6569_v27  ;;  %9945 = vmatmul.msk.f32.gmra.mxu0 %vm886_vm2, %v828_v8  ;;  %1738 = vst.msk [vmem:[%s14179_s28 + $0x1f0] sm:$0xff] %vm669_vm3, %v1479_v47 }
 0x3db   : > { %v6574_v35 = vsel %vm6573_vm6, %v13259_v55, %v6570_v29  ;;  %v7525_v55 = vunpack.c.l.b16 %v11484_v54  ;;  %v7578_v29 = vsel %vm5585_vm4, %v7571_v48, 0  ;;  %v834_v54 = vld [vmem:[%s13789_s2 + $0x2a0] sm:$0xff] }
 0x3dc   : > { %v6579_v20 = vsel %vm6576_vm5, %v6578_v58, %v6574_v35  ;;  %v12802_v35 = vld [vmem:[%s17936_s10 + $0x58] sm:$0xff]  ;;  %v12809_v48 = vld [vmem:[%s17936_s10 + $0xa0] sm:$0xff] }
 0x3dd   : > { %v6581_v56 = vmul.f32 %v6579_v20, %v15932_v59  ;;  %v6714_v41 = vpop.f32.mrf.mxu2  ;;  %v6749_v45 = vpop.f32.mrf.mxu3  ;;  %v6683_v59 = vadd.f32 %v15912_v23, %v6647_v4  ;;  %v7528_v46 = vpack.c.b16 %v7525_v55, %v7525_v55  ;;  %v12804_v20 = vld [vmem:[%s17936_s10 + $0x6c] sm:$0xff]  ;;  %v12803_v4 = vld [vmem:[%s17936_s10 + $0x64] sm:$0xff] }
 0x3de   : > { %v1481_v11 = vpop.f32.mrf.mxu0 }
 0x3df   : > { %6582 = vst.msk [vmem:[%s15826_s24 + $0x8] sm:$0xf] %vm5907_vm10, %v6581_v56  ;;  %v6718_v1 = vadd.f32 %v6714_v41, %v6683_v59  ;;  %v1482_v44 = vadd.f32 %v15734_v24, %v1481_v11  ;;  %v832_v41 = vld [vmem:[%s13789_s2 + $0x290] sm:$0xff]  ;;  %v11512_v59 = vld [vmem:[%s17936_s10 + $0x88] sm:$0xf] }
 0x3e0   : > { %6583 = vst.msk [vmem:[#allocation4 + $0x10] sm:$0xf] %vm5907_vm10, %v6581_v56  ;;  %v6786_v38 = vpop.f32.mrf.mxu1  ;;  %v12799_v56 = vld [vmem:[%s17936_s10 + $0x3c] sm:$0xff]  ;;  %v11540_v11 = vld [vmem:[%s17936_s10 + $0xb0] sm:$0xf] }
 0x3e1   : > { %v6753_v42 = vadd.f32 %v6749_v45, %v6718_v1  ;;  %9946 = vmatmul.msk.f32.gmra.mxu0 %vm886_vm2, %v829_v15  ;;  %1739 = vst.msk [vmem:[%s14179_s28 + $0x1f8] sm:$0xff] %vm669_vm3, %v1482_v44  ;;  %v12801_v45 = vld [vmem:[%s17936_s10 + $0x50] sm:$0xff]  ;;  %v11526_v1 = vld [vmem:[%s17936_s10 + $0x9c] sm:$0xf] }
 0x3e2   : > { %v833_v44 = vld [vmem:[%s13789_s2 + $0x298] sm:$0xff] }
 0x3e3   : > { %v6788_v23 = vadd.f32 %v6784_v30, %v6753_v42  ;;  %v7535_v30 = vsel %vm5585_vm4, %v7528_v46, 0 }
 0x3e5   : > { %v6716_v34 = vpop.f32.mrf.mxu2  ;;  %v6751_v61 = vpop.f32.mrf.mxu3 }
 0x3e6   : > { %v1484_v28 = vpop.f32.mrf.mxu0  ;;  %v7611_v34 = vunpack.c.l.b16 %v11512_v59  ;;  %v7654_v61 = vunpack.c.l.b16 %v11526_v1 }
 0x3e7   : > { %v7182_v60 = vld [vmem:[#allocation4 + $0x10] ss:$2 sm:$0x3]  ;;  %v7226_v19 = vld [vmem:[#allocation4 + $0x11] ss:$2 sm:$0x3]  ;;  %v1485_v33 = vadd.f32 %v15734_v24, %v1484_v28 }
 0x3e8   : > { %v7183_v12 = vpack.c.bf16 %v7182_v60, %v7182_v60  ;;  %v7227_v9 = vpack.c.bf16 %v7226_v19, %v7226_v19  ;;  %v7270_v31 = vld [vmem:[#allocation4 + $0x12] ss:$2 sm:$0x3]  ;;  %v6889_v51 = vpop.f32.mrf.mxu1  ;;  %v7348_v16 = vld [vmem:[#allocation4 + $0x11] ss:$2 sm:$0x3]  ;;  %v7614_v15 = vpack.c.b16 %v7611_v34, %v7611_v34  ;;  %v7657_v60 = vpack.c.b16 %v7654_v61, %v7654_v61 }
 0x3e9   : > { %v7271_v2 = vpack.c.bf16 %v7270_v31, %v7270_v31  ;;  %9947 = vmatmul.msk.f32.gmra.mxu0 %vm886_vm2, %v830_v13  ;;  %1740 = vst.msk [vmem:[%s14179_s28 + $0x200] sm:$0xff] %vm669_vm3, %v1485_v33  ;;  %v7341_v52 = vld [vmem:[#allocation4 + $0x10] ss:$2 sm:$0x3]  ;;  %v7349_v58 = vpack.c.bf16 %v7348_v16, %v7348_v16  ;;  %v7697_v19 = vunpack.c.l.b16 %v11540_v11  ;;  %v16119_v16 = vld [vmem:[%s17894_s4] ss:$0 sm:$0xff] }
 0x3ea   : > { %11399 = vmatmul.msk.bf16.vlgmr.msra.gmra.mxu2 %vm740_vm14, %v7183_v12  ;;  %11413 = vmatmul.msk.bf16.vlgmr.msrb.gmra.mxu3 %vm740_vm14, %v7227_v9  ;;  %v7423_v40 = vld [vmem:[#allocation4 + $0x12] ss:$2 sm:$0x3]  ;;  %v7342_v17 = vpack.c.bf16 %v7341_v52, %v7341_v52  ;;  %v7621_v12 = vsel %vm5585_vm4, %v7614_v15, 0  ;;  %v7664_v9 = vsel %vm5585_vm4, %v7657_v60, 0  ;;  %v838_v34 = vld [vmem:[%s13789_s2 + $0x2c0] sm:$0xff] }
 0x3eb   : > { %11427 = vmatmul.msk.bf16.vlgmr.msrb.gmra.mxu1 %vm740_vm14, %v7271_v2  ;;  %7499 = vmatpush.bf16.msra.mxu2 %v7492_v10  ;;  %v7424_v63 = vpack.c.bf16 %v7423_v40, %v7423_v40  ;;  %v7700_v31 = vpack.c.b16 %v7697_v19, %v7697_v19  ;;  %v12805_v33 = vld [vmem:[%s17936_s10 + $0x78] sm:$0xff]  ;;  %v839_v15 = vld [vmem:[%s13789_s2 + $0x2c8] sm:$0xff] }
 0x3ec   : > { %7542 = vmatpush.bf16.msrb.mxu3 %v7535_v30  ;;  %7585 = vmatpush.bf16.msrb.mxu1 %v7578_v29 }
 0x3ed   : > { %v6819_v25 = vpop.f32.mrf.mxu2  ;;  %v6854_v26 = vpop.f32.mrf.mxu3  ;;  %v7707_v28 = vsel %vm5585_vm4, %v7700_v31, 0 }
 0x3ee   : > { %v6823_v43 = vadd.f32 %v6819_v25, %v6788_v23  ;;  %v1487_v27 = vpop.f32.mrf.mxu0  ;;  %v12806_v23 = vld [vmem:[%s17936_s10 + $0x80] sm:$0xff]  ;;  %v12808_v25 = vld [vmem:[%s17936_s10 + $0x94] sm:$0xff] }
 0x3ef   : > { %v1488_v3 = vadd.f32 %v15734_v24, %v1487_v27  ;;  %7500 = vmatpush.bf16.msra.mxu2 %v12800_v62 }
 0x3f0   : > { %v6858_v57 = vadd.f32 %v6854_v26, %v6823_v43  ;;  %v6891_v7 = vpop.f32.mrf.mxu1  ;;  %7543 = vmatpush.bf16.msrb.mxu3 %v12802_v35  ;;  %7586 = vmatpush.bf16.msrb.mxu1 %v12804_v20 }
 0x3f1   : > { %9948 = vmatmul.msk.f32.gmra.mxu0 %vm886_vm2, %v831_v37  ;;  %1741 = vst.msk [vmem:[%s14179_s28 + $0x208] sm:$0xff] %vm669_vm3, %v1488_v3  ;;  %v835_v3 = vld [vmem:[%s13789_s2 + $0x2a8] sm:$0xff] }
 0x3f2   : > { %v6893_v50 = vadd.f32 %v6889_v51, %v6858_v57  ;;  %v12807_v57 = vld [vmem:[%s17936_s10 + $0x8c] sm:$0xff] }
 0x3f3   : > { %7501 = vmatpush.bf16.msra.mxu2 %v12799_v56 }
 0x3f4   : > { %v16049_v18 = vadd.f32 %v13085_v22, %v6893_v50  ;;  %7544 = vmatpush.bf16.msrb.mxu3 %v12801_v45  ;;  %7587 = vmatpush.bf16.msrb.mxu1 %v12803_v4 }
 0x3f5   : > { %v6821_v32 = vpop.f32.mrf.mxu2  ;;  %v6856_v21 = vpop.f32.mrf.mxu3 }
 0x3f6   : > { %v11306_v6 = vmul.f32 -1.442695, %v16049_v18  ;;  %v1490_v8 = vpop.f32.mrf.mxu0  ;;  %v12810_v21 = vld [vmem:[%s17936_s10 + $0xa8] sm:$0xff] }
 0x3f7   : > { %v1491_v38 = vadd.f32 %v15734_v24, %v1490_v8  ;;  %v7638_v8 = vld [vmem:[#allocation4 + $0x21] ss:$2 sm:$0x3] }
 0x3f8   : > { %13260 = vpow2.f32 %v11306_v6  ;;  %v7639_v59 = vpack.c.bf16 %v7638_v8, %v7638_v8  ;;  %v12843_v8 = vld [vmem:[%s17834_s12 + $0x100] sm:$0xf0] }
 0x3f9   : > { %9949 = vmatmul.msk.f32.gmra.mxu0 %vm886_vm2, %v832_v41  ;;  %1742 = vst.msk [vmem:[%s14179_s28 + $0x210] sm:$0xff] %vm669_vm3, %v1491_v38  ;;  %v837_v41 = vld [vmem:[%s13789_s2 + $0x2b8] sm:$0xff] }
 0x3fa   : > { %11442 = vmatmul.msk.bf16.vlgmr.msrb.gmra.mxu2 %vm740_vm14, %v7349_v58  ;;  %11451 = vmatmul.msk.bf16.vlgmr.msra.gmra.mxu3 %vm740_vm14, %v7342_v17 }
 0x3fb   : > { %11465 = vmatmul.msk.bf16.vlgmr.msra.gmra.mxu1 %vm740_vm14, %v7424_v63  ;;  %7628 = vmatpush.bf16.msrb.mxu2 %v7621_v12  ;;  %v836_v63 = vld [vmem:[%s13789_s2 + $0x2b0] sm:$0xff] }
 0x3fc   : > { %7671 = vmatpush.bf16.msra.mxu3 %v7664_v9  ;;  %7714 = vmatpush.bf16.msra.mxu1 %v7707_v28  ;;  %v840_v9 = vld [vmem:[%s13789_s2 + $0x2d0] sm:$0xff] }
 0x3fe   : > { %v13261_v5 = vpop.eup %13260  ;;  %v1493_v42 = vpop.f32.mrf.mxu0 }
 0x3ff   : > { %v6902_v47 = vadd.f32 1.0, %v13261_v5  ;;  %v1494_v2 = vadd.f32 %v15734_v24, %v1493_v42  ;;  %7629 = vmatpush.bf16.msrb.mxu2 %v12806_v23  ;;  %v7595_v5 = vld [vmem:[#allocation4 + $0x20] ss:$2 sm:$0x3] }
 0x400   : > { %7672 = vmatpush.bf16.msra.mxu3 %v12808_v25  ;;  %7715 = vmatpush.bf16.msra.mxu1 %v12810_v21  ;;  %v7596_v38 = vpack.c.bf16 %v7595_v5, %v7595_v5  ;;  %v12847_v21 = vld [vmem:[%s17834_s12 + $0x124] sm:$0xf]  ;;  %v11625_v5 = vld [vmem:[%s17834_s12 + $0xf8] sm:$0xf] }
 0x401   : > { %13262 = vrcp.f32 %v6902_v47  ;;  %9950 = vmatmul.msk.f32.gmra.mxu0 %vm886_vm2, %v833_v44  ;;  %1743 = vst.msk [vmem:[%s14179_s28 + $0x218] sm:$0xff] %vm669_vm3, %v1494_v2  ;;  %v6914_v13 = vand.u32 2147483648, %v6902_v47  ;;  %v6912_v7 = vand.u32 2147483647, %v6902_v47  ;;  %vm6908_vm4 = vweird.f32 %v6902_v47 }
 0x403   : > { %v6915_v0 = vor.u32 1.1754944e-38, %v6914_v13  ;;  %7630 = vmatpush.bf16.msrb.mxu2 %v12805_v33  ;;  %vm6913_vm9 = vcmp.eq.f32.partialorder %v6912_v7, 8.507059e+37  ;;  %v12851_v13 = vld [vmem:[%s17834_s12 + $0x140] sm:$0xf0] }
 0x404   : > { %7673 = vmatpush.bf16.msra.mxu3 %v12807_v57  ;;  %7716 = vmatpush.bf16.msra.mxu1 %v12809_v48  ;;  %v12850_v57 = vld [vmem:[%s17834_s12 + $0x13c] sm:$0xf]  ;;  %v12849_v48 = vld [vmem:[%s17834_s12 + $0x130] sm:$0xf0] }
 0x406   : > { %v1496_v55 = vpop.f32.mrf.mxu0 }
 0x407   : > { %v13263_v51 = vpop.eup %13262  ;;  %v1497_v32 = vadd.f32 %v16119_v16, %v1496_v55 }
 0x408   : > { %v6904_v26 = vmul.f32 %v13263_v51, %v6902_v47  ;;  %v7044_v43 = vpop.f32.mrf.mxu1  ;;  %vm6909_vm7 = vweird.f32 %v13263_v51  ;;  %v7681_v47 = vld [vmem:[#allocation4 + $0x22] ss:$2 sm:$0x3] }
 0x409   : > { %vm6910_vm8 = vmor %vm6908_vm4, %vm6909_vm7  ;;  %9951 = vmatmul.msk.f32.gmra.mxu0 %vm886_vm2, %v834_v54  ;;  %1744 = vst.msk [vmem:[%s14179_s28 + $0x220] sm:$0xff] %vm669_vm3, %v1497_v32  ;;  %v7682_v1 = vpack.c.bf16 %v7681_v47, %v7681_v47  ;;  %v12848_v32 = vld [vmem:[%s17834_s12 + $0x128] sm:$0xf0] }
 0x40a   : > { %v6905_v24 = vsub.f32 1.0, %v6904_v26  ;;  %v841_v26 = vld [vmem:[%s13789_s2 + $0x2d8] sm:$0xff] }
 0x40c   : > { %v6906_v22 = vmul.f32 %v13263_v51, %v6905_v24  ;;  %v11653_v24 = vld [vmem:[%s17834_s12 + $0x138] sm:$0xf] }
 0x40d   : > { %v6967_v50 = vpop.f32.mrf.mxu2  ;;  %v7001_v36 = vpop.f32.mrf.mxu3  ;;  %v11654_v33 = vor.u32 %v12851_v13, %v11653_v24  ;;  %v11601_v24 = vld [vmem:[%s17834_s12 + $0xc8] sm:$0xf]  ;;  %v12837_v13 = vld [vmem:[%s17834_s12 + $0xd0] sm:$0xf0] }
 0x40e   : > { %v6907_v39 = vadd.f32 %v13263_v51, %v6906_v22  ;;  %v7002_v49 = vadd.f32 %v7001_v36, %v6967_v50  ;;  %v1499_v10 = vpop.f32.mrf.mxu0  ;;  %v11655_v22 = vld [vmem:[%s17834_s12 + $0x144] sm:$0xf0]  ;;  %v11661_v50 = vld [vmem:[%s17834_s12 + $0x140] sm:$0xf]  ;;  %v12852_v36 = vld [vmem:[%s17834_s12 + $0x148] sm:$0xf0] }
 0x40f   : > { %v1500_v30 = vadd.f32 %v16119_v16, %v1499_v10  ;;  %v11658_v7 = vor.u32 %v12850_v57, %v11655_v22  ;;  %v11662_v54 = vor.u32 %v12852_v36, %v11661_v50  ;;  %v12845_v10 = vld [vmem:[%s17834_s12 + $0x110] sm:$0xf0]  ;;  %v11602_v22 = vor.u32 %v12837_v13, %v11601_v24  ;;  %v845_v50 = vld [vmem:[%s13789_s2 + $0x2f8] sm:$0xff]  ;;  %v11581_v36 = vld [vmem:[%s17834_s12 + $0xa8] sm:$0xf] }
 0x410   : > { %v6911_v52 = vsel %vm6910_vm8, %v13263_v51, %v6907_v39  ;;  %v7046_v37 = vpop.f32.mrf.mxu1  ;;  %v16126_v53 = vadd.f32 %v7044_v43, %v7002_v49  ;;  %v842_v39 = vld [vmem:[%s13789_s2 + $0x2e0] sm:$0xff]  ;;  %v11712_v24 = vld [vmem:[%s17834_s12 + $0x50] sm:$0xf]  ;;  %v12822_v13 = vld [vmem:[%s17834_s12 + $0x58] sm:$0xf0] }
 0x411   : > { %v6916_v46 = vsel %vm6913_vm9, %v6915_v0, %v6911_v52  ;;  %9952 = vmatmul.msk.f32.gmra.mxu0 %vm886_vm2, %v835_v3  ;;  %1745 = vst.msk [vmem:[%s14179_s28 + $0x228] sm:$0xff] %vm669_vm3, %v1500_v30  ;;  %v11641_v0 = vld [vmem:[%s17834_s12 + $0x120] sm:$0xf]  ;;  %v11643_v52 = vld [vmem:[%s17834_s12 + $0x12c] sm:$0xf0] }
 0x412   : > { %v6918_v6 = vmul.f32 %v6916_v46, %v16049_v18  ;;  %v11642_v37 = vor.u32 %v12848_v32, %v11641_v0  ;;  %v11646_v46 = vor.u32 %v12847_v21, %v11643_v52  ;;  %v11629_v3 = vld [vmem:[%s17834_s12 + $0x108] sm:$0xf]  ;;  %v12834_v52 = vld [vmem:[%s17834_s12 + $0xb8] sm:$0xf0] }
 0x414   : > { %6919 = vst.msk [vmem:[%s15826_s24 + $0xc] sm:$0xf] %vm5907_vm10, %v6918_v6 }
 0x415   : > { %6920 = vst.msk [vmem:[#allocation4 + $0x18] sm:$0xf] %vm5907_vm10, %v6918_v6  ;;  %v6969_v40 = vpop.f32.mrf.mxu2  ;;  %v7003_v27 = vpop.f32.mrf.mxu3 }
 0x416   : > { %v1502_v20 = vpop.f32.mrf.mxu0  ;;  %v843_v27 = vld [vmem:[%s13789_s2 + $0x2e8] sm:$0xff] }
 0x417   : > { %v1503_v56 = vadd.f32 %v16119_v16, %v1502_v20  ;;  %v11617_v20 = vld [vmem:[%s17834_s12 + $0xf0] sm:$0xf] }
 0x419   : > { %9953 = vmatmul.msk.f32.gmra.mxu0 %vm886_vm2, %v836_v63  ;;  %1746 = vst.msk [vmem:[%s14179_s28 + $0x230] sm:$0xff] %vm669_vm3, %v1503_v56  ;;  %v12846_v63 = vld [vmem:[%s17834_s12 + $0x118] sm:$0xf0] }
 0x41a   : > { %v12842_v56 = vld [vmem:[%s17834_s12 + $0xf8] sm:$0xf0] }
 0x41c   : > { %v7466_v29 = vld [vmem:[#allocation4 + $0x18] ss:$2 sm:$0x3]  ;;  %v7509_v18 = vld [vmem:[#allocation4 + $0x19] ss:$2 sm:$0x3] }
 0x41d   : > { %v7467_v58 = vpack.c.bf16 %v7466_v29, %v7466_v29  ;;  %v7510_v17 = vpack.c.bf16 %v7509_v18, %v7509_v18  ;;  %v7552_v62 = vld [vmem:[#allocation4 + $0x1a] ss:$2 sm:$0x3]  ;;  %v11630_v29 = vor.u32 %v12845_v10, %v11629_v3  ;;  %v12844_v18 = vld [vmem:[%s17834_s12 + $0x10c] sm:$0xf] }
 0x41e   : > { %v7553_v35 = vpack.c.bf16 %v7552_v62, %v7552_v62  ;;  %v1505_v45 = vpop.f32.mrf.mxu0  ;;  %v12831_v3 = vld [vmem:[%s17834_s12 + $0xa0] sm:$0xf0] }
 0x41f   : > { %11479 = vmatmul.msk.bf16.vlgmr.msra.gmra.mxu2 %vm740_vm14, %v7467_v58  ;;  %11493 = vmatmul.msk.bf16.vlgmr.msrb.gmra.mxu3 %vm740_vm14, %v7510_v17  ;;  %v1506_v4 = vadd.f32 %v16119_v16, %v1505_v45  ;;  %v11631_v58 = vld [vmem:[%s17834_s12 + $0x114] sm:$0xf0]  ;;  %v11637_v17 = vld [vmem:[%s17834_s12 + $0x110] sm:$0xf]  ;;  %v11618_v45 = vor.u32 %v12842_v56, %v11617_v20 }
 0x420   : > { %11507 = vmatmul.msk.bf16.vlgmr.msrb.gmra.mxu1 %vm740_vm14, %v7553_v35  ;;  %7927 = vmatpush.bf16.msra.mxu2 %v11654_v33  ;;  %v11634_v62 = vor.u32 %v12844_v18, %v11631_v58  ;;  %v11638_v35 = vor.u32 %v12846_v63, %v11637_v17  ;;  %v12826_v18 = vld [vmem:[%s17834_s12 + $0x7c] sm:$0xf]  ;;  %v11736_v63 = vld [vmem:[%s17834_s12 + $0x80] sm:$0xf] }
 0x421   : > { %9954 = vmatmul.msk.f32.gmra.mxu0 %vm886_vm2, %v837_v41  ;;  %1747 = vst.msk [vmem:[%s14179_s28 + $0x238] sm:$0xff] %vm669_vm3, %v1506_v4  ;;  %7940 = vmatpush.bf16.msrb.mxu3 %v11658_v7  ;;  %v12841_v41 = vld [vmem:[%s17834_s12 + $0xf4] sm:$0xf]  ;;  %v11619_v4 = vld [vmem:[%s17834_s12 + $0xfc] sm:$0xf0] }
 0x422   : > { %7953 = vmatpush.bf16.msrb.mxu1 %v11662_v54  ;;  %v11622_v47 = vor.u32 %v12841_v41, %v11619_v4  ;;  %v12833_v54 = vld [vmem:[%s17834_s12 + $0xb0] sm:$0xf0]  ;;  %v13086_v4 = vld [vmem:[%s17937_s11] ss:$0 sm:$0xff] }
 0x424   : > { %7928 = vmatpush.bf16.msra.mxu2 %v11642_v37  ;;  %v11740_v37 = vld [vmem:[%s17834_s12 + $0x90] sm:$0xf] }
 0x425   : > { %7941 = vmatpush.bf16.msrb.mxu3 %v11646_v46  ;;  %v12830_v46 = vld [vmem:[%s17834_s12 + $0x98] sm:$0xf0] }
 0x426   : > { %v1508_v61 = vpop.f32.mrf.mxu0 }
 0x427   : > { %v1509_v11 = vadd.f32 %v16119_v16, %v1508_v61  ;;  %v12839_v61 = vld [vmem:[%s17834_s12 + $0xe0] sm:$0xf0] }
 0x428   : > { %7929 = vmatpush.bf16.msra.mxu2 %v11630_v29  ;;  %v12827_v29 = vld [vmem:[%s17834_s12 + $0x80] sm:$0xf0] }
 0x429   : > { %9955 = vmatmul.msk.f32.gmra.mxu0 %vm886_vm2, %v838_v34  ;;  %1748 = vst.msk [vmem:[%s14179_s28 + $0x240] sm:$0xff] %vm669_vm3, %v1509_v11  ;;  %7942 = vmatpush.bf16.msrb.mxu3 %v11634_v62  ;;  %v11605_v34 = vld [vmem:[%s17834_s12 + $0xd8] sm:$0xf]  ;;  %v11730_v62 = vld [vmem:[%s17834_s12 + $0x84] sm:$0xf0] }
 0x42a   : > { %v11733_v41 = vor.u32 %v12826_v18, %v11730_v62  ;;  %v12812_v62 = vld [vmem:[%s17834_s12 + $0x8] sm:$0xf0] }
 0x42c   : > { %7930 = vmatpush.bf16.msra.mxu2 %v11618_v45 }
 0x42d   : > { %7943 = vmatpush.bf16.msrb.mxu3 %v11622_v47 }
 0x42e   : > { %v1511_v60 = vpop.f32.mrf.mxu0 }
 0x42f   : > { %11521 = vmatmul.msk.bf16.vlgmr.msrb.gmra.mxu2 %vm740_vm14, %v7596_v38  ;;  %11535 = vmatmul.msk.bf16.vlgmr.msra.gmra.mxu3 %vm740_vm14, %v7639_v59  ;;  %v1512_v19 = vadd.f32 %v16119_v16, %v1511_v60  ;;  %v11626_v38 = vor.u32 %v12843_v8, %v11625_v5  ;;  %v12838_v60 = vld [vmem:[%s17834_s12 + $0xdc] sm:$0xf]  ;;  %v846_v8 = vld [vmem:[%s13789_s2 + $0x300] sm:$0xff] }
 0x430   : > { %11549 = vmatmul.msk.bf16.vlgmr.msra.gmra.mxu1 %vm740_vm14, %v7682_v1  ;;  %vm746_vm14 = vcmask 916480   ;;  %v844_v1 = vld [vmem:[%s13789_s2 + $0x2f0] sm:$0xff] }
 0x431   : > { %9956 = vmatmul.msk.f32.gmra.mxu0 %vm886_vm2, %v839_v15  ;;  %1749 = vst.msk [vmem:[%s14179_s28 + $0x248] sm:$0xff] %vm669_vm3, %v1512_v19  ;;  %v11606_v15 = vor.u32 %v12839_v61, %v11605_v34  ;;  %v11607_v19 = vld [vmem:[%s17834_s12 + $0xe4] sm:$0xf0] }
 0x432   : > { %747 = vst.msk [vmem:[#allocation5] sm:$0xff] %vm746_vm14, %v13476_v14 }
 0x433   : > { %748 = vst.msk [vmem:[#allocation5 + $0x8] sm:$0xff] %vm746_vm14, %v13476_v14  ;;  %7931 = vmatpush.bf16.msra.mxu2 %v11606_v15  ;;  %v11718_v15 = vld [vmem:[%s17834_s12 + $0x6c] sm:$0xf0] }
 0x434   : > { %749 = vst.msk [vmem:[#allocation5 + $0x10] sm:$0xff] %vm746_vm14, %v13476_v14  ;;  %v11649_v14 = vld [vmem:[%s17834_s12 + $0x128] sm:$0xf] }
 0x435   : > { %v11650_v6 = vor.u32 %v12849_v48, %v11649_v14  ;;  %v12829_v48 = vld [vmem:[%s17834_s12 + $0x94] sm:$0xf] }
 0x436   : > { %v1514_v31 = vpop.f32.mrf.mxu0 }
 0x437   : > { %v1515_v51 = vadd.f32 %v16119_v16, %v1514_v31  ;;  %7954 = vmatpush.bf16.msrb.mxu1 %v11650_v6  ;;  %v11610_v31 = vor.u32 %v12838_v60, %v11607_v19  ;;  %v11742_v6 = vld [vmem:[%s17834_s12 + $0x9c] sm:$0xf0]  ;;  %v11724_v60 = vld [vmem:[%s17834_s12 + $0x68] sm:$0xf]  ;;  %v12825_v19 = vld [vmem:[%s17834_s12 + $0x70] sm:$0xf0] }
 0x438   : > { %v16165_v44 = vpop.f32.mrf.mxu1 }
 0x439   : > { %9957 = vmatmul.msk.f32.gmra.mxu0 %vm886_vm2, %v840_v9  ;;  %1750 = vst.msk [vmem:[%s14179_s28 + $0x250] sm:$0xff] %vm669_vm3, %v1515_v51  ;;  %v11613_v9 = vld [vmem:[%s17834_s12 + $0xe0] sm:$0xf]  ;;  %v12840_v51 = vld [vmem:[%s17834_s12 + $0xe8] sm:$0xf0]  ;;  %7944 = vmatpush.bf16.msrb.mxu3 %v11610_v31  ;;  %v11725_v31 = vor.u32 %v12825_v19, %v11724_v60 }
 0x43b   : > { %7955 = vmatpush.bf16.msrb.mxu1 %v11638_v35  ;;  %v12828_v35 = vld [vmem:[%s17834_s12 + $0x88] sm:$0xf0] }
 0x43c   : > { %v11737_v45 = vor.u32 %v12828_v35, %v11736_v63  ;;  %v12811_v63 = vld [vmem:[%s17834_s12 + $0x4] sm:$0xf] }
 0x43d   : > { %v16170_v42 = vpop.f32.mrf.mxu2  ;;  %v16172_v12 = vpop.f32.mrf.mxu3 }
 0x43e   : > { %v1517_v43 = vpop.f32.mrf.mxu0  ;;  %v7092_v33 = vadd.f32 %v16170_v42, %v16126_v53  ;;  %v12832_v53 = vld [vmem:[%s17834_s12 + $0xac] sm:$0xf]  ;;  %v11583_v42 = vld [vmem:[%s17834_s12 + $0xb4] sm:$0xf0] }
 0x43f   : > { %v1518_v28 = vadd.f32 %v16119_v16, %v1517_v43  ;;  %7956 = vmatpush.bf16.msrb.mxu1 %v11626_v38  ;;  %v11586_v21 = vor.u32 %v12832_v53, %v11583_v42  ;;  %v11716_v38 = vld [vmem:[%s17834_s12 + $0x60] sm:$0xf]  ;;  %v12817_v53 = vld [vmem:[%s17834_s12 + $0x34] sm:$0xf] }
 0x440   : > { %v7178_v2 = vpop.f32.mrf.mxu1  ;;  %v7136_v0 = vadd.f32 %v16172_v12, %v7092_v33  ;;  %v11741_v12 = vor.u32 %v12830_v46, %v11740_v37  ;;  %v11694_v42 = vld [vmem:[%s17834_s12 + $0x3c] sm:$0xf0]  ;;  %v11680_v46 = vld [vmem:[%s17834_s12 + $0x18] sm:$0xf] }
 0x441   : > { %9958 = vmatmul.msk.f32.gmra.mxu0 %vm886_vm2, %v841_v26  ;;  %1751 = vst.msk [vmem:[%s14179_s28 + $0x258] sm:$0xff] %vm669_vm3, %v1518_v28  ;;  %v11614_v2 = vor.u32 %v12840_v51, %v11613_v9  ;;  %v12835_v26 = vld [vmem:[%s17834_s12 + $0xc4] sm:$0xf]  ;;  %v11595_v28 = vld [vmem:[%s17834_s12 + $0xcc] sm:$0xf0]  ;;  %v11697_v37 = vor.u32 %v12817_v53, %v11694_v42 }
 0x442   : > { %v11598_v57 = vor.u32 %v12835_v26, %v11595_v28  ;;  %v7180_v58 = vadd.f32 %v16165_v44, %v7136_v0  ;;  %v11706_v28 = vld [vmem:[%s17834_s12 + $0x54] sm:$0xf0] }
 0x443   : > { %7957 = vmatpush.bf16.msrb.mxu1 %v11614_v2  ;;  %v11704_v2 = vld [vmem:[%s17834_s12 + $0x48] sm:$0xf] }
 0x444   : > { %7945 = vmatpush.bf16.msrb.mxu3 %v11598_v57 }
 0x445   : > { %v7090_v23 = vpop.f32.mrf.mxu2  ;;  %v7134_v25 = vpop.f32.mrf.mxu3 }
 0x446   : > { %v1520_v49 = vpop.f32.mrf.mxu0  ;;  %v11593_v23 = vld [vmem:[%s17834_s12 + $0xc0] sm:$0xf]  ;;  %v12836_v25 = vld [vmem:[%s17834_s12 + $0xc8] sm:$0xf0] }
 0x447   : > { %v1521_v55 = vadd.f32 %v16119_v16, %v1520_v49  ;;  %v11594_v43 = vor.u32 %v12836_v25, %v11593_v23  ;;  %7958 = vmatpush.bf16.msrb.mxu1 %v11602_v22  ;;  %v11582_v49 = vor.u32 %v12833_v54, %v11581_v36  ;;  %v12821_v23 = vld [vmem:[%s17834_s12 + $0x50] sm:$0xf0]  ;;  %v12820_v25 = vld [vmem:[%s17834_s12 + $0x4c] sm:$0xf]  ;;  %v11692_v36 = vld [vmem:[%s17834_s12 + $0x30] sm:$0xf] }
 0x448   : > { %7946 = vmatpush.bf16.msrb.mxu3 %v11586_v21  ;;  %v11709_v22 = vor.u32 %v12820_v25, %v11706_v28  ;;  %v12818_v54 = vld [vmem:[%s17834_s12 + $0x38] sm:$0xf0]  ;;  %v12819_v21 = vld [vmem:[%s17834_s12 + $0x40] sm:$0xf0] }
 0x449   : > { %9959 = vmatmul.msk.f32.gmra.mxu0 %vm886_vm2, %v842_v39  ;;  %1752 = vst.msk [vmem:[%s14179_s28 + $0x260] sm:$0xff] %vm669_vm3, %v1521_v55  ;;  %7932 = vmatpush.bf16.msra.mxu2 %v11594_v43  ;;  %v11589_v55 = vld [vmem:[%s17834_s12 + $0xb0] sm:$0xf]  ;;  %v11705_v43 = vor.u32 %v12821_v23, %v11704_v2  ;;  %v11693_v0 = vor.u32 %v12818_v54, %v11692_v36  ;;  %v850_v2 = vld [vmem:[%s13789_s2 + $0x320] sm:$0xff]  ;;  %v12872_v36 = vld [vmem:[%s17834_s12 + $0x1e8] sm:$0xf0] }
 0x44a   : > { %v11590_v14 = vor.u32 %v12834_v52, %v11589_v55  ;;  %v11857_v54 = vld [vmem:[%s17834_s12 + $0x1ec] sm:$0xf0] }
 0x44c   : > { %7959 = vmatpush.bf16.msrb.mxu1 %v11590_v14  ;;  %v12815_v14 = vld [vmem:[%s17834_s12 + $0x20] sm:$0xf0] }
 0x44d   : > { %7933 = vmatpush.bf16.msra.mxu2 %v11582_v49 }
 0x44e   : > { %v1523_v40 = vpop.f32.mrf.mxu0 }
 0x44f   : > { %v1524_v30 = vadd.f32 %v16119_v16, %v1523_v40  ;;  %v11745_v40 = vor.u32 %v12829_v48, %v11742_v6  ;;  %v12814_v48 = vld [vmem:[%s17834_s12 + $0x1c] sm:$0xf]  ;;  %v11682_v6 = vld [vmem:[%s17834_s12 + $0x24] sm:$0xf0] }
 0x451   : > { %9960 = vmatmul.msk.f32.gmra.mxu0 %vm886_vm2, %v843_v27  ;;  %1753 = vst.msk [vmem:[%s14179_s28 + $0x268] sm:$0xff] %vm669_vm3, %v1524_v30  ;;  %v11748_v27 = vld [vmem:[%s17834_s12 + $0x98] sm:$0xf]  ;;  %8081 = vmatpush.bf16.msrb.mxu2 %v11741_v12 }
 0x452   : > { %v11749_v10 = vor.u32 %v12831_v3, %v11748_v27  ;;  %v11728_v30 = vld [vmem:[%s17834_s12 + $0x78] sm:$0xf]  ;;  %8094 = vmatpush.bf16.msra.mxu3 %v11745_v40  ;;  %v11688_v40 = vld [vmem:[%s17834_s12 + $0x20] sm:$0xf]  ;;  %v12816_v27 = vld [vmem:[%s17834_s12 + $0x28] sm:$0xf0]  ;;  %v11681_v3 = vor.u32 %v12815_v14, %v11680_v46 }
 0x453   : > { %v11729_v17 = vor.u32 %v12827_v29, %v11728_v30  ;;  %v848_v30 = vld [vmem:[%s13789_s2 + $0x310] sm:$0xff]  ;;  %v12868_v46 = vld [vmem:[%s17834_s12 + $0x1cc] sm:$0xf] }
 0x454   : > { %8107 = vmatpush.bf16.msra.mxu1 %v11749_v10  ;;  %v11685_v10 = vor.u32 %v12814_v48, %v11682_v6  ;;  %v11851_v48 = vld [vmem:[%s17834_s12 + $0x1d0] sm:$0xf]  ;;  %v12870_v6 = vld [vmem:[%s17834_s12 + $0x1d8] sm:$0xf0] }
 0x455   : > { %8082 = vmatpush.bf16.msrb.mxu2 %v11729_v17  ;;  %v11668_v17 = vld [vmem:[%s17834_s12] sm:$0xf] }
 0x456   : > { %v1526_v59 = vpop.f32.mrf.mxu0  ;;  %8095 = vmatpush.bf16.msra.mxu3 %v11733_v41  ;;  %v11676_v41 = vld [vmem:[%s17834_s12 + $0x8] sm:$0xf] }
 0x457   : > { %v1527_v11 = vadd.f32 %v16119_v16, %v1526_v59  ;;  %v12824_v59 = vld [vmem:[%s17834_s12 + $0x68] sm:$0xf0] }
 0x458   : > { %8108 = vmatpush.bf16.msra.mxu1 %v11737_v45  ;;  %v12813_v45 = vld [vmem:[%s17834_s12 + $0x10] sm:$0xf0] }
 0x459   : > { %9961 = vmatmul.msk.f32.gmra.mxu0 %vm886_vm2, %v844_v1  ;;  %1754 = vst.msk [vmem:[%s14179_s28 + $0x270] sm:$0xff] %vm669_vm3, %v1527_v11  ;;  %v12823_v1 = vld [vmem:[%s17834_s12 + $0x64] sm:$0xf]  ;;  %v11717_v11 = vor.u32 %v12824_v59, %v11716_v38  ;;  %v11677_v38 = vor.u32 %v12813_v45, %v11676_v41 }
 0x45a   : > { %v11721_v9 = vor.u32 %v12823_v1, %v11718_v15 }
 0x45b   : > { %8083 = vmatpush.bf16.msrb.mxu2 %v11717_v11 }
 0x45c   : > { %8096 = vmatpush.bf16.msra.mxu3 %v11721_v9  ;;  %8109 = vmatpush.bf16.msra.mxu1 %v11725_v31 }
 0x45e   : > { %v1529_v7 = vpop.f32.mrf.mxu0 }
 0x45f   : > { %v1530_v39 = vadd.f32 %v16119_v16, %v1529_v7  ;;  %v11713_v7 = vor.u32 %v12822_v13, %v11712_v24  ;;  %8084 = vmatpush.bf16.msrb.mxu2 %v11705_v43 }
 0x460   : > { %8097 = vmatpush.bf16.msra.mxu3 %v11709_v22 }
 0x461   : > { %9962 = vmatmul.msk.f32.gmra.mxu0 %vm886_vm2, %v845_v50  ;;  %1755 = vst.msk [vmem:[%s14179_s28 + $0x278] sm:$0xff] %vm669_vm3, %v1530_v39  ;;  %v847_v50 = vld [vmem:[%s13789_s2 + $0x308] sm:$0xff]  ;;  %8110 = vmatpush.bf16.msra.mxu1 %v11713_v7  ;;  %v11855_v7 = vld [vmem:[%s17834_s12 + $0x1e0] sm:$0xf] }
 0x462   : > { %v11856_v42 = vor.u32 %v12872_v36, %v11855_v7  ;;  %v11795_v36 = vld [vmem:[%s17834_s12 + $0x168] sm:$0xf] }
 0x463   : > { %8085 = vmatpush.bf16.msrb.mxu2 %v11693_v0 }
 0x464   : > { %8098 = vmatpush.bf16.msra.mxu3 %v11697_v37  ;;  %v12869_v37 = vld [vmem:[%s17834_s12 + $0x1d0] sm:$0xf0] }
 0x466   : > { %v1532_v5 = vpop.f32.mrf.mxu0 }
 0x467   : > { %v1533_v47 = vadd.f32 %v16119_v16, %v1532_v5  ;;  %8086 = vmatpush.bf16.msrb.mxu2 %v11681_v3  ;;  %v11669_v5 = vor.u32 %v12812_v62, %v11668_v17  ;;  %v11852_v17 = vor.u32 %v12870_v6, %v11851_v48  ;;  %v12866_v62 = vld [vmem:[%s17834_s12 + $0x1b8] sm:$0xf0] }
 0x468   : > { %v7308_v32 = vpop.f32.mrf.mxu1  ;;  %8099 = vmatpush.bf16.msra.mxu3 %v11685_v10  ;;  %v11831_v10 = vld [vmem:[%s17834_s12 + $0x1b0] sm:$0xf] }
 0x469   : > { %9963 = vmatmul.msk.f32.gmra.mxu0 %vm886_vm2, %v846_v8  ;;  %1756 = vst.msk [vmem:[%s14179_s28 + $0x280] sm:$0xff] %vm669_vm3, %v1533_v47 }
 0x46b   : > { %8087 = vmatpush.bf16.msrb.mxu2 %v11669_v5 }
 0x46d   : > { %v7220_v20 = vpop.f32.mrf.mxu2  ;;  %v7264_v56 = vpop.f32.mrf.mxu3 }
 0x46e   : > { %v7224_v44 = vadd.f32 %v7220_v20, %v7180_v58  ;;  %v1535_v49 = vpop.f32.mrf.mxu0  ;;  %v11689_v58 = vor.u32 %v12816_v27, %v11688_v40  ;;  %v852_v27 = vld [vmem:[%s13789_s2 + $0x330] sm:$0xff] }
 0x46f   : > { %v1536_v55 = vadd.f32 %v16119_v16, %v1535_v49  ;;  %v12873_v49 = vld [vmem:[%s17834_s12 + $0x1f0] sm:$0xf0] }
 0x470   : > { %v7268_v34 = vadd.f32 %v7264_v56, %v7224_v44  ;;  %v7310_v61 = vpop.f32.mrf.mxu1  ;;  %v11670_v56 = vld [vmem:[%s17834_s12 + $0xc] sm:$0xf0] }
 0x471   : > { %9964 = vmatmul.msk.f32.gmra.mxu0 %vm886_vm2, %v847_v50  ;;  %1757 = vst.msk [vmem:[%s14179_s28 + $0x288] sm:$0xff] %vm669_vm3, %v1536_v55  ;;  %v11673_v47 = vor.u32 %v12811_v63, %v11670_v56  ;;  %v12865_v63 = vld [vmem:[%s17834_s12 + $0x1b4] sm:$0xf]  ;;  %v12867_v56 = vld [vmem:[%s17834_s12 + $0x1c0] sm:$0xf0] }
 0x472   : > { %v7312_v51 = vadd.f32 %v7308_v32, %v7268_v34  ;;  %v11700_v32 = vld [vmem:[%s17834_s12 + $0x38] sm:$0xf] }
 0x473   : > { %v11701_v12 = vor.u32 %v12819_v21, %v11700_v32  ;;  %8100 = vmatpush.bf16.msra.mxu3 %v11673_v47  ;;  %v849_v34 = vld [vmem:[%s13789_s2 + $0x318] sm:$0xff]  ;;  %v11843_v21 = vld [vmem:[%s17834_s12 + $0x1c8] sm:$0xf] }
 0x474   : > { %v16411_v26 = vadd.f32 %v13086_v4, %v7312_v51  ;;  %v11844_v3 = vor.u32 %v12869_v37, %v11843_v21  ;;  %v11819_v47 = vld [vmem:[%s17834_s12 + $0x198] sm:$0xf]  ;;  %v11783_v37 = vld [vmem:[%s17834_s12 + $0x150] sm:$0xf] }
 0x475   : > { %v7222_v33 = vpop.f32.mrf.mxu2  ;;  %v7266_v57 = vpop.f32.mrf.mxu3  ;;  %8111 = vmatpush.bf16.msra.mxu1 %v11701_v12  ;;  %v11845_v12 = vld [vmem:[%s17834_s12 + $0x1d4] sm:$0xf0] }
 0x476   : > { %v11428_v39 = vmul.f32 -1.442695, %v16411_v26  ;;  %v1538_v20 = vpop.f32.mrf.mxu0  ;;  %v851_v57 = vld [vmem:[%s13789_s2 + $0x328] sm:$0xff] }
 0x477   : > { %v1539_v4 = vadd.f32 %v16119_v16, %v1538_v20  ;;  %v11839_v20 = vld [vmem:[%s17834_s12 + $0x1b8] sm:$0xf] }
 0x478   : > { %13264 = vpow2.f32 %v11428_v39  ;;  %v16443_v52 = vpop.f32.mrf.mxu1  ;;  %v11863_v39 = vld [vmem:[%s17834_s12 + $0x1e8] sm:$0xf] }
 0x479   : > { %9965 = vmatmul.msk.f32.gmra.mxu0 %vm886_vm2, %v848_v30  ;;  %1758 = vst.msk [vmem:[%s14179_s28 + $0x290] sm:$0xff] %vm669_vm3, %v1539_v4  ;;  %8112 = vmatpush.bf16.msra.mxu1 %v11689_v58  ;;  %v11864_v32 = vor.u32 %v12873_v49, %v11863_v39  ;;  %v11848_v58 = vor.u32 %v12868_v46, %v11845_v12  ;;  %v11797_v49 = vld [vmem:[%s17834_s12 + $0x174] sm:$0xf0]  ;;  %v12854_v46 = vld [vmem:[%s17834_s12 + $0x158] sm:$0xf0] }
 0x47a   : > { %v11832_v4 = vor.u32 %v12866_v62, %v11831_v10 }
 0x47d   : > { %v16467_v29 = vpop.f32.mrf.mxu2  ;;  %v16469_v18 = vpop.f32.mrf.mxu3  ;;  %8113 = vmatpush.bf16.msra.mxu1 %v11677_v38  ;;  %v12863_v38 = vld [vmem:[%s17834_s12 + $0x1a0] sm:$0xf0] }
 0x47e   : > { %v13265_v35 = vpop.eup %13264  ;;  %v1541_v61 = vpop.f32.mrf.mxu0 }
 0x47f   : > { %v7321_v44 = vadd.f32 1.0, %v13265_v35  ;;  %v1542_v15 = vadd.f32 %v16119_v16, %v1541_v61  ;;  %v11833_v35 = vld [vmem:[%s17834_s12 + $0x1bc] sm:$0xf0] }
 0x480   : > { %v7462_v8 = vpop.f32.mrf.mxu1  ;;  %v11836_v5 = vor.u32 %v12865_v63, %v11833_v35  ;;  %v12893_v63 = vld [vmem:[%s17834_s12 + $0x290] sm:$0xf0]  ;;  %v11972_v35 = vld [vmem:[%s17834_s12 + $0x294] sm:$0xf0] }
 0x481   : > { %13266 = vrcp.f32 %v7321_v44  ;;  %9966 = vmatmul.msk.f32.gmra.mxu0 %vm886_vm2, %v849_v34  ;;  %1759 = vst.msk [vmem:[%s14179_s28 + $0x298] sm:$0xff] %vm669_vm3, %v1542_v15  ;;  %v7333_v9 = vand.u32 2147483648, %v7321_v44  ;;  %v7331_v51 = vand.u32 2147483647, %v7321_v44  ;;  %vm7327_vm11 = vweird.f32 %v7321_v44  ;;  %v12864_v34 = vld [vmem:[%s17834_s12 + $0x1a8] sm:$0xf0] }
 0x482   : > { %v11840_v8 = vor.u32 %v12867_v56, %v11839_v20  ;;  %v11784_v56 = vor.u32 %v12854_v46, %v11783_v37  ;;  %v856_v46 = vld [vmem:[%s13789_s2 + $0x350] sm:$0xff] }
 0x483   : > { %v7334_v43 = vor.u32 1.1754944e-38, %v7333_v9  ;;  %vm7332_vm13 = vcmp.eq.f32.partialorder %v7331_v51, 8.507059e+37  ;;  %v12860_v9 = vld [vmem:[%s17834_s12 + $0x188] sm:$0xf0] }
 0x485   : > { %v7387_v59 = vpop.f32.mrf.mxu2  ;;  %v7421_v1 = vpop.f32.mrf.mxu3 }
 0x486   : > { %v1544_v25 = vpop.f32.mrf.mxu0  ;;  %v12862_v59 = vld [vmem:[%s17834_s12 + $0x19c] sm:$0xf] }
 0x487   : > { %v13267_v11 = vpop.eup %13266  ;;  %v1545_v28 = vadd.f32 %v16119_v16, %v1544_v25  ;;  %v11815_v25 = vld [vmem:[%s17834_s12 + $0x188] sm:$0xf] }
 0x488   : > { %v7323_v60 = vmul.f32 %v13267_v11, %v7321_v44  ;;  %vm7328_vm10 = vweird.f32 %v13267_v11  ;;  %v7420_v44 = vadd.f32 %v16469_v18, %v16467_v29  ;;  %v11821_v29 = vld [vmem:[%s17834_s12 + $0x1a4] sm:$0xf0]  ;;  %v11827_v18 = vld [vmem:[%s17834_s12 + $0x1a0] sm:$0xf] }
 0x489   : > { %vm7329_vm12 = vmor %vm7327_vm11, %vm7328_vm10  ;;  %9967 = vmatmul.msk.f32.gmra.mxu0 %vm886_vm2, %v850_v2  ;;  %1760 = vst.msk [vmem:[%s14179_s28 + $0x2a0] sm:$0xff] %vm669_vm3, %v1545_v28  ;;  %v11824_v51 = vor.u32 %v12862_v59, %v11821_v29  ;;  %v11828_v2 = vor.u32 %v12864_v34, %v11827_v18  ;;  %v11958_v59 = vld [vmem:[%s17834_s12 + $0x270] sm:$0xf]  ;;  %v12889_v34 = vld [vmem:[%s17834_s12 + $0x274] sm:$0xf] }
 0x48a   : > { %v7324_v19 = vsub.f32 1.0, %v7323_v60  ;;  %v7464_v15 = vadd.f32 %v16443_v52, %v7420_v44  ;;  %v11820_v60 = vor.u32 %v12863_v38, %v11819_v47  ;;  %v12859_v52 = vld [vmem:[%s17834_s12 + $0x184] sm:$0xf] }
 0x48c   : > { %v7325_v31 = vmul.f32 %v13267_v11, %v7324_v19  ;;  %v11807_v19 = vld [vmem:[%s17834_s12 + $0x180] sm:$0xf] }
 0x48e   : > { %v7326_v23 = vadd.f32 %v13267_v11, %v7325_v31  ;;  %v1547_v22 = vpop.f32.mrf.mxu0 }
 0x48f   : > { %v1548_v50 = vadd.f32 %v16119_v16, %v1547_v22 }
 0x490   : > { %v7330_v24 = vsel %vm7329_vm12, %v13267_v11, %v7326_v23  ;;  %v853_v11 = vld [vmem:[%s13789_s2 + $0x338] sm:$0xff]  ;;  %v11809_v23 = vld [vmem:[%s17834_s12 + $0x18c] sm:$0xf0] }
 0x491   : > { %v7335_v13 = vsel %vm7332_vm13, %v7334_v43, %v7330_v24  ;;  %9968 = vmatmul.msk.f32.gmra.mxu0 %vm886_vm2, %v851_v57  ;;  %1761 = vst.msk [vmem:[%s14179_s28 + $0x2a8] sm:$0xff] %vm669_vm3, %v1548_v50  ;;  %v12861_v24 = vld [vmem:[%s17834_s12 + $0x190] sm:$0xf0]  ;;  %v11808_v57 = vor.u32 %v12860_v9, %v11807_v19  ;;  %v11812_v7 = vor.u32 %v12859_v52, %v11809_v23  ;;  %v12891_v19 = vld [vmem:[%s17834_s12 + $0x280] sm:$0xf0] }
 0x492   : > { %v7337_v33 = vmul.f32 %v7335_v13, %v16411_v26  ;;  %v12871_v26 = vld [vmem:[%s17834_s12 + $0x1e4] sm:$0xf]  ;;  %v11816_v50 = vor.u32 %v12861_v24, %v11815_v25  ;;  %v8119_v9 = vld [vmem:[#allocation5 + $0x2] sm:$0x1]  ;;  %v11946_v25 = vld [vmem:[%s17834_s12 + $0x258] sm:$0xf] }
 0x493   : > { %v11860_v0 = vor.u32 %v12871_v26, %v11857_v54  ;;  %v12857_v26 = vld [vmem:[%s17834_s12 + $0x170] sm:$0xf0]  ;;  %v12856_v54 = vld [vmem:[%s17834_s12 + $0x16c] sm:$0xf] }
 0x494   : > { %7340 = vst.msk [vmem:[#allocation5] sm:$0x3] %vm7338_vm15, %v7337_v33  ;;  %v11796_v21 = vor.u32 %v12857_v26, %v11795_v36  ;;  %v11800_v48 = vor.u32 %v12856_v54, %v11797_v49  ;;  %v11934_v54 = vld [vmem:[%s17834_s12 + $0x240] sm:$0xf]  ;;  %v12884_v49 = vld [vmem:[%s17834_s12 + $0x248] sm:$0xf0] }
 0x495   : > { %7339 = vst.msk [vmem:[%s16507_s20] sm:$0x3] %vm7338_vm15, %v7337_v33 }
 0x496   : > { %v1550_v40 = vpop.f32.mrf.mxu0 }
 0x497   : > { %v1551_v30 = vadd.f32 %v16119_v16, %v1550_v40  ;;  %v12853_v40 = vld [vmem:[%s17834_s12 + $0x154] sm:$0xf] }
 0x499   : > { %1762 = vst.msk [vmem:[%s14179_s28 + $0x2b0] sm:$0xff] %vm669_vm3, %v1551_v30  ;;  %9969 = vmatmul.msk.f32.gmra.mxu0 %vm886_vm2, %v852_v27  ;;  %v11785_v27 = vld [vmem:[%s17834_s12 + $0x15c] sm:$0xf0]  ;;  %v12855_v30 = vld [vmem:[%s17834_s12 + $0x160] sm:$0xf0] }
 0x49a   : > { %v11788_v44 = vor.u32 %v12853_v40, %v11785_v27  ;;  %v12881_v27 = vld [vmem:[%s17834_s12 + $0x230] sm:$0xf0] }
 0x49b   : > { %v7780_v53 = vld [vmem:[#allocation5 + $0x1] sm:$0x1]  ;;  %v7750_v28 = vld [vmem:[#allocation5] sm:$0x1] }
 0x49c   : > { %v7781_v55 = vpack.c.bf16 %v7780_v53, %v7780_v53  ;;  %v7751_v22 = vpack.c.bf16 %v7750_v28, %v7750_v28  ;;  %v11803_v53 = vld [vmem:[%s17834_s12 + $0x170] sm:$0xf] }
 0x49d   : > { %v16542_v14 = vpop.f32.mrf.mxu1 }
 0x49e   : > { %11663 = vmatmul.msk.bf16.vlgmr.msra.gmra.mxu2 %vm746_vm14, %v7781_v55  ;;  %11664 = vmatmul.msk.bf16.vlgmr.msrb.gmra.mxu3 %vm746_vm14, %v7781_v55  ;;  %v1553_v61 = vpop.f32.mrf.mxu0 }
 0x49f   : > { %11665 = vmatmul.msk.bf16.vlgmr.msrb.gmra.mxu1 %vm746_vm14, %v7781_v55  ;;  %8266 = vmatpush.bf16.msra.mxu2 %v11856_v42  ;;  %v1554_v31 = vadd.f32 %v16119_v16, %v1553_v61  ;;  %v12858_v42 = vld [vmem:[%s17834_s12 + $0x178] sm:$0xf0]  ;;  %v11960_v61 = vld [vmem:[%s17834_s12 + $0x27c] sm:$0xf0] }
 0x4a0   : > { %8279 = vmatpush.bf16.msrb.mxu3 %v11860_v0  ;;  %8292 = vmatpush.bf16.msrb.mxu1 %v11864_v32  ;;  %v854_v32 = vld [vmem:[%s13789_s2 + $0x340] sm:$0xff]  ;;  %v11804_v6 = vor.u32 %v12858_v42, %v11803_v53  ;;  %v11963_v23 = vor.u32 %v12889_v34, %v11960_v61  ;;  %v11936_v42 = vld [vmem:[%s17834_s12 + $0x24c] sm:$0xf0]  ;;  %v11900_v61 = vld [vmem:[%s17834_s12 + $0x204] sm:$0xf0] }
 0x4a1   : > { %1763 = vst.msk [vmem:[%s14179_s28 + $0x2b8] sm:$0xff] %vm669_vm3, %v1554_v31  ;;  %9970 = vmatmul.msk.f32.gmra.mxu0 %vm886_vm2, %v853_v11  ;;  %v11966_v11 = vld [vmem:[%s17834_s12 + $0x278] sm:$0xf]  ;;  %v12883_v53 = vld [vmem:[%s17834_s12 + $0x244] sm:$0xf] }
 0x4a2   : > { %v7503_v41 = vpop.f32.mrf.mxu2  ;;  %v7546_v45 = vpop.f32.mrf.mxu3  ;;  %v11967_v24 = vor.u32 %v12891_v19, %v11966_v11  ;;  %v11906_v11 = vld [vmem:[%s17834_s12 + $0x200] sm:$0xf]  ;;  %v12914_v19 = vld [vmem:[%s17834_s12 + $0x338] sm:$0xf0] }
 0x4a3   : > { %8267 = vmatpush.bf16.msra.mxu2 %v11844_v3  ;;  %v7507_v43 = vadd.f32 %v7503_v41, %v7464_v15  ;;  %v11791_v3 = vld [vmem:[%s17834_s12 + $0x158] sm:$0xf]  ;;  %v11978_v41 = vld [vmem:[%s17834_s12 + $0x290] sm:$0xf] }
 0x4a4   : > { %8280 = vmatpush.bf16.msrb.mxu3 %v11848_v58  ;;  %8293 = vmatpush.bf16.msrb.mxu1 %v11852_v17  ;;  %v11970_v58 = vld [vmem:[%s17834_s12 + $0x288] sm:$0xf] }
 0x4a5   : > { %v7591_v1 = vpop.f32.mrf.mxu1  ;;  %v7550_v39 = vadd.f32 %v7546_v45, %v7507_v43  ;;  %v12894_v45 = vld [vmem:[%s17834_s12 + $0x298] sm:$0xf0]  ;;  %v11971_v47 = vor.u32 %v12893_v63, %v11970_v58  ;;  %v11930_v58 = vld [vmem:[%s17834_s12 + $0x230] sm:$0xf] }
 0x4a6   : > { %v1556_v0 = vpop.f32.mrf.mxu0  ;;  %v12890_v1 = vld [vmem:[%s17834_s12 + $0x278] sm:$0xf0]  ;;  %v11979_v18 = vor.u32 %v12894_v45, %v11978_v41  ;;  %v12877_v41 = vld [vmem:[%s17834_s12 + $0x214] sm:$0xf]  ;;  %v11912_v45 = vld [vmem:[%s17834_s12 + $0x21c] sm:$0xf0] }
 0x4a7   : > { %8268 = vmatpush.bf16.msra.mxu2 %v11832_v4  ;;  %v1557_v12 = vadd.f32 %v16119_v16, %v1556_v0  ;;  %v7593_v10 = vadd.f32 %v16542_v14, %v7550_v39  ;;  %v12892_v14 = vld [vmem:[%s17834_s12 + $0x28c] sm:$0xf]  ;;  %v11792_v4 = vor.u32 %v12855_v30, %v11791_v3  ;;  %v11959_v52 = vor.u32 %v12890_v1, %v11958_v59  ;;  %v11942_v0 = vld [vmem:[%s17834_s12 + $0x248] sm:$0xf] }
 0x4a8   : > { %8281 = vmatpush.bf16.msrb.mxu3 %v11836_v5  ;;  %8294 = vmatpush.bf16.msrb.mxu1 %v11840_v8  ;;  %v13087_v8 = vld [vmem:[%s17937_s11] ss:$0 sm:$0xff]  ;;  %v11975_v38 = vor.u32 %v12892_v14, %v11972_v35  ;;  %v12880_v3 = vld [vmem:[%s17834_s12 + $0x22c] sm:$0xf]  ;;  %v11910_v35 = vld [vmem:[%s17834_s12 + $0x210] sm:$0xf]  ;;  %v11915_v1 = vor.u32 %v12877_v41, %v11912_v45 }
 0x4a9   : > { %1764 = vst.msk [vmem:[%s14179_s28 + $0x2c0] sm:$0xff] %vm669_vm3, %v1557_v12  ;;  %9971 = vmatmul.msk.f32.gmra.mxu0 %vm886_vm2, %v854_v32  ;;  %v12885_v32 = vld [vmem:[%s17834_s12 + $0x250] sm:$0xf0]  ;;  %v11935_v12 = vor.u32 %v12884_v49, %v11934_v54  ;;  %v12081_v49 = vld [vmem:[%s17834_s12 + $0x320] sm:$0xf]  ;;  %s9581_s11 = sshll.u32 %s9578_s9, 4  ;;  %s9582_s11 = int_to_ptr.hbm [resolvable:$true] %s9581_s11 }
 0x4aa   : > { %v7505_v13 = vpop.f32.mrf.mxu2  ;;  %v7548_v33 = vpop.f32.mrf.mxu3  ;;  %v11943_v40 = vor.u32 %v12885_v32, %v11942_v0  ;;  %v858_v0 = vld [vmem:[%s13789_s2 + $0x360] sm:$0xff]  ;;  %v12905_v41 = vld [vmem:[%s17834_s12 + $0x2f0] sm:$0xf0]  ;;  %v12904_v45 = vld [vmem:[%s17834_s12 + $0x2ec] sm:$0xf]  ;;  %s13305_s29 = sshra.s32 %s9582_s11, 4  ;;  %s13306_s29 = int_to_ptr.hbm [resolvable:$true] %s13305_s29 }
 0x4ab   : > { %8269 = vmatpush.bf16.msra.mxu2 %v11820_v60  ;;  %v12887_v13 = vld [vmem:[%s17834_s12 + $0x260] sm:$0xf0]  ;;  %v12886_v33 = vld [vmem:[%s17834_s12 + $0x25c] sm:$0xf]  ;;  %s13307_s0 = scalar_lea.hbm %s13306_s29, 64  ;;  %p13312_p0 = scmp.lt.s32.totalorder %s13306_s29, %s17838_s16 }
 0x4ac   : > { %8282 = vmatpush.bf16.msrb.mxu3 %v11824_v51  ;;  %8295 = vmatpush.bf16.msrb.mxu1 %v11828_v2  ;;  %v855_v51 = vld [vmem:[%s13789_s2 + $0x348] sm:$0xff]  ;;  %v11947_v36 = vor.u32 %v12887_v13, %v11946_v25  ;;  %v12073_v13 = vld [vmem:[%s17834_s12 + $0x318] sm:$0xf]  ;;  %p13308_p11 = scmp.ne.s32.totalorder %s13306_s29, %s13307_s0  ;;  %p13313_p1 = scmp.lt.s32.totalorder %s13311_s23, %s13307_s0 }
 0x4ad   : > { %v7718_v55 = vpop.f32.mrf.mxu1 }
 0x4ae   : > { %11750 = vmatmul.msk.bf16.vlgmr.msrb.gmra.mxu2 %vm746_vm14, %v7751_v22  ;;  %11751 = vmatmul.msk.bf16.vlgmr.msra.gmra.mxu3 %vm746_vm14, %v7751_v22  ;;  %v1559_v15 = vpop.f32.mrf.mxu0  ;;  %p13309_p12 = pnand %p13308_p11, %p13619_p5  ;;  %p13314_p2 = por %p13313_p1, %p13312_p0 }
 0x4af   : > { %11752 = vmatmul.msk.bf16.vlgmr.msra.gmra.mxu1 %vm746_vm14, %v7751_v22  ;;  %8270 = vmatpush.bf16.msra.mxu2 %v11808_v57  ;;  %v1560_v31 = vadd.f32 %v16119_v16, %v1559_v15  ;;  %v8120_v16 = vpack.c.bf16 %v8119_v9, %v8119_v9  ;;  %v11948_v57 = vld [vmem:[%s17834_s12 + $0x264] sm:$0xf0]  ;;  %v12876_v15 = vld [vmem:[%s17834_s12 + $0x208] sm:$0xf0]  ;;  %v12913_v9 = vld [vmem:[%s17834_s12 + $0x334] sm:$0xf] }
 0x4b0   : > { %8283 = vmatpush.bf16.msrb.mxu3 %v11812_v7  ;;  %8296 = vmatpush.bf16.msrb.mxu1 %v11816_v50  ;;  %v11954_v7 = vld [vmem:[%s17834_s12 + $0x260] sm:$0xf]  ;;  %v12888_v50 = vld [vmem:[%s17834_s12 + $0x268] sm:$0xf0]  ;;  %v11951_v26 = vor.u32 %v12886_v33, %v11948_v57  ;;  %v12911_v33 = vld [vmem:[%s17834_s12 + $0x320] sm:$0xf0]  ;;  %p13310_p13 = pneg %p13309_p12 }
 0x4b1   : > { %1765 = vst.msk [vmem:[%s14179_s28 + $0x2c8] sm:$0xff] %vm669_vm3, %v1560_v31  ;;  %9972 = vmatmul.msk.f32.gmra.mxu0 %vm886_vm2, %v855_v51  ;;  %v11955_v39 = vor.u32 %v12888_v50, %v11954_v7  ;;  %v12087_v51 = vld [vmem:[%s17834_s12 + $0x33c] sm:$0xf0]  ;;  %v12074_v32 = vor.u32 %v12911_v33, %v12073_v13 }
 0x4b2   : > { %v7632_v17 = vpop.f32.mrf.mxu2  ;;  %v7675_v62 = vpop.f32.mrf.mxu3  ;;  %v12090_v7 = vor.u32 %v12913_v9, %v12087_v51  ;;  %v12899_v51 = vld [vmem:[%s17834_s12 + $0x2c0] sm:$0xf0]  ;;  %v12013_v33 = vld [vmem:[%s17834_s12 + $0x2a0] sm:$0xf]  ;;  %p13315_p3 = pnand %p13314_p2, %p13310_p13 }
 0x4b3   : > { %v7636_v20 = vadd.f32 %v7632_v17, %v7593_v10  ;;  %8271 = vmatpush.bf16.msra.mxu2 %v11796_v21  ;;  %v16757_v21 = vld [vmem:[%s17894_s4] ss:$0 sm:$0xff]  ;;  %v11924_v10 = vld [vmem:[%s17834_s12 + $0x234] sm:$0xf0]  ;;  %v12882_v17 = vld [vmem:[%s17834_s12 + $0x238] sm:$0xf0] }
 0x4b4   : > { %8284 = vmatpush.bf16.msrb.mxu3 %v11800_v48  ;;  %8297 = vmatpush.bf16.msrb.mxu1 %v11804_v6  ;;  %v11939_v48 = vor.u32 %v12883_v53, %v11936_v42  ;;  %v11922_v6 = vld [vmem:[%s17834_s12 + $0x228] sm:$0xf]  ;;  %v11927_v14 = vor.u32 %v12880_v3, %v11924_v10  ;;  %v12912_v53 = vld [vmem:[%s17834_s12 + $0x328] sm:$0xf0] }
 0x4b5   : > { %v7679_v5 = vadd.f32 %v7675_v62, %v7636_v20  ;;  %v7720_v29 = vpop.f32.mrf.mxu1  ;;  %v11923_v63 = vor.u32 %v12881_v27, %v11922_v6  ;;  %v11931_v20 = vor.u32 %v12882_v17, %v11930_v58  ;;  %v12908_v6 = vld [vmem:[%s17834_s12 + $0x308] sm:$0xf0]  ;;  %v12063_v27 = vld [vmem:[%s17834_s12 + $0x30c] sm:$0xf0]  ;;  %v12069_v10 = vld [vmem:[%s17834_s12 + $0x308] sm:$0xf] }
 0x4b6   : > { %v12875_v29 = vld [vmem:[%s17834_s12 + $0x200] sm:$0xf0] }
 0x4b7   : > { %v7722_v60 = vadd.f32 %v7718_v55, %v7679_v5  ;;  %8272 = vmatpush.bf16.msra.mxu2 %v11784_v56  ;;  %v1562_v55 = vpop.f32.mrf.mxu0  ;;  %v12878_v56 = vld [vmem:[%s17834_s12 + $0x218] sm:$0xf0]  ;;  %v12879_v5 = vld [vmem:[%s17834_s12 + $0x220] sm:$0xf0] }
 0x4b8   : > { %8285 = vmatpush.bf16.msrb.mxu3 %v11788_v44  ;;  %8298 = vmatpush.bf16.msrb.mxu1 %v11792_v4  ;;  %v1563_v37 = vadd.f32 %v16757_v21, %v1562_v55  ;;  %v11918_v4 = vld [vmem:[%s17834_s12 + $0x218] sm:$0xf]  ;;  %v11911_v59 = vor.u32 %v12878_v56, %v11910_v35  ;;  %v12049_v56 = vld [vmem:[%s17834_s12 + $0x2e8] sm:$0xf] }
 0x4b9   : > { %v16709_v2 = vadd.f32 %v13087_v8, %v7722_v60  ;;  %9973 = vmatmul.msk.f32.gmra.mxu0 %vm886_vm2, %v856_v46  ;;  %v11919_v34 = vor.u32 %v12879_v5, %v11918_v4  ;;  %v12085_v60 = vld [vmem:[%s17834_s12 + $0x330] sm:$0xf]  ;;  %v12906_v5 = vld [vmem:[%s17834_s12 + $0x2f8] sm:$0xf0] }
 0x4ba   : > { %v7634_v43 = vpop.f32.mrf.mxu2  ;;  %v7677_v28 = vpop.f32.mrf.mxu3  ;;  %1766 = vst.msk [vmem:[%s14179_s28 + $0x2d0] sm:$0xff] %vm669_vm3, %v1563_v37  ;;  %v12061_v37 = vld [vmem:[%s17834_s12 + $0x300] sm:$0xf]  ;;  %v12057_v4 = vld [vmem:[%s17834_s12 + $0x2f0] sm:$0xf] }
 0x4bb   : > { %8454 = vmatpush.bf16.msrb.mxu2 %v11971_v47  ;;  %v11550_v22 = vmul.f32 -1.442695, %v16709_v2  ;;  %v857_v47 = vld [vmem:[%s13789_s2 + $0x358] sm:$0xff] }
 0x4bc   : > { %8467 = vmatpush.bf16.msra.mxu3 %v11975_v38  ;;  %8480 = vmatpush.bf16.msra.mxu1 %v11979_v18  ;;  %v11898_v38 = vld [vmem:[%s17834_s12 + $0x1f8] sm:$0xf]  ;;  %v12874_v18 = vld [vmem:[%s17834_s12 + $0x1fc] sm:$0xf] }
 0x4bd   : > { %13268 = vpow2.f32 %v11550_v22  ;;  %v11899_v43 = vor.u32 %v12875_v29, %v11898_v38  ;;  %v11903_v28 = vor.u32 %v12874_v18, %v11900_v61  ;;  %v12037_v38 = vld [vmem:[%s17834_s12 + $0x2d0] sm:$0xf]  ;;  %v12902_v29 = vld [vmem:[%s17834_s12 + $0x2d8] sm:$0xf0]  ;;  %v12901_v18 = vld [vmem:[%s17834_s12 + $0x2d4] sm:$0xf] }
 0x4be   : > { %11865 = vmatmul.msk.bf16.vlgmr.msra.gmra.mxu2 %vm746_vm14, %v8120_v16  ;;  %11866 = vmatmul.msk.bf16.vlgmr.msrb.gmra.mxu3 %vm746_vm14, %v8120_v16  ;;  %v12045_v61 = vld [vmem:[%s17834_s12 + $0x2d8] sm:$0xf] }
 0x4bf   : > { %8455 = vmatpush.bf16.msrb.mxu2 %v11959_v52  ;;  %11867 = vmatmul.msk.bf16.vlgmr.msrb.gmra.mxu1 %vm746_vm14, %v8120_v16  ;;  %v1565_v44 = vpop.f32.mrf.mxu0  ;;  %v12093_v52 = vld [vmem:[%s17834_s12 + $0x338] sm:$0xf]  ;;  %v12086_v16 = vor.u32 %v12914_v19, %v12085_v60 }
 0x4c0   : > { %8468 = vmatpush.bf16.msra.mxu3 %v11963_v23  ;;  %8481 = vmatpush.bf16.msra.mxu1 %v11967_v24  ;;  %v1566_v8 = vadd.f32 %v16757_v21, %v1565_v44  ;;  %v12915_v23 = vld [vmem:[%s17834_s12 + $0x340] sm:$0xf0]  ;;  %v11907_v24 = vor.u32 %v12876_v15, %v11906_v11  ;;  %v12038_v15 = vor.u32 %v12902_v29, %v12037_v38  ;;  %v12025_v60 = vld [vmem:[%s17834_s12 + $0x2b8] sm:$0xf]  ;;  %v12164_v29 = vld [vmem:[%s17834_s12 + $0x390] sm:$0xf] }
 0x4c1   : > { %9974 = vmatmul.msk.f32.gmra.mxu0 %vm886_vm2, %v857_v47  ;;  %v12094_v50 = vor.u32 %v12915_v23, %v12093_v52  ;;  %v12050_v47 = vor.u32 %v12905_v41, %v12049_v56  ;;  %v12903_v11 = vld [vmem:[%s17834_s12 + $0x2e0] sm:$0xf0]  ;;  %v12898_v52 = vld [vmem:[%s17834_s12 + $0x2bc] sm:$0xf]  ;;  %v12027_v23 = vld [vmem:[%s17834_s12 + $0x2c4] sm:$0xf0]  ;;  %v12026_v13 = vor.u32 %v12899_v51, %v12025_v60 }
 0x4c2   : > { %1767 = vst.msk [vmem:[%s14179_s28 + $0x2d8] sm:$0xff] %vm669_vm3, %v1566_v8  ;;  %v859_v8 = vld [vmem:[%s13789_s2 + $0x368] sm:$0xff]  ;;  %v12927_v60 = vld [vmem:[%s17834_s12 + $0x3a0] sm:$0xf0]  ;;  %v12152_v51 = vld [vmem:[%s17834_s12 + $0x378] sm:$0xf] }
 0x4c3   : > { %8456 = vmatpush.bf16.msrb.mxu2 %v11947_v36  ;;  %v13269_v30 = vpop.eup %13268  ;;  %v12910_v36 = vld [vmem:[%s17834_s12 + $0x31c] sm:$0xf]  ;;  %v12176_v56 = vld [vmem:[%s17834_s12 + $0x3a8] sm:$0xf] }
 0x4c4   : > { %8469 = vmatpush.bf16.msra.mxu3 %v11951_v26  ;;  %8482 = vmatpush.bf16.msra.mxu1 %v11955_v39  ;;  %v16782_v62 = vadd.f32 1.0, %v13269_v30  ;;  %v12075_v26 = vld [vmem:[%s17834_s12 + $0x324] sm:$0xf0]  ;;  %v12909_v30 = vld [vmem:[%s17834_s12 + $0x310] sm:$0xf0] }
 0x4c6   : > { %13270 = vrcp.f32 %v16782_v62  ;;  %v7743_v39 = vand.u32 2147483648, %v16782_v62  ;;  %v7741_v55 = vand.u32 2147483647, %v16782_v62  ;;  %vm7737_vm1 = vweird.f32 %v16782_v62 }
 0x4c7   : > { %8457 = vmatpush.bf16.msrb.mxu2 %v11935_v12  ;;  %v1568_v57 = vpop.f32.mrf.mxu0  ;;  %v12078_v12 = vor.u32 %v12910_v36, %v12075_v26  ;;  %v12895_v36 = vld [vmem:[%s17834_s12 + $0x2a4] sm:$0xf]  ;;  %v12015_v26 = vld [vmem:[%s17834_s12 + $0x2ac] sm:$0xf0] }
 0x4c8   : > { %8470 = vmatpush.bf16.msra.mxu3 %v11939_v48  ;;  %8483 = vmatpush.bf16.msra.mxu1 %v11943_v40  ;;  %v1569_v54 = vadd.f32 %v16757_v21, %v1568_v57  ;;  %v12082_v48 = vor.u32 %v12912_v53, %v12081_v49  ;;  %v12907_v40 = vld [vmem:[%s17834_s12 + $0x304] sm:$0xf]  ;;  %v7744_v3 = vor.u32 1.1754944e-38, %v7743_v39  ;;  %vm7742_vm5 = vcmp.eq.f32.partialorder %v7741_v55, 8.507059e+37  ;;  %v860_v57 = vld [vmem:[%s13789_s2 + $0x370] sm:$0xff] }
 0x4c9   : > { %9975 = vmatmul.msk.f32.gmra.mxu0 %vm886_vm2, %v858_v0  ;;  %v12897_v39 = vld [vmem:[%s17834_s12 + $0x2b0] sm:$0xf0]  ;;  %v12200_v49 = vld [vmem:[%s17834_s12 + $0x3d8] sm:$0xf]  ;;  %v12935_v53 = vld [vmem:[%s17834_s12 + $0x3e0] sm:$0xf0] }
 0x4ca   : > { %1768 = vst.msk [vmem:[%s14179_s28 + $0x2e0] sm:$0xff] %vm669_vm3, %v1569_v54  ;;  %v12021_v54 = vld [vmem:[%s17834_s12 + $0x2a8] sm:$0xf] }
 0x4cb   : > { %8458 = vmatpush.bf16.msrb.mxu2 %v11923_v63  ;;  %v12066_v63 = vor.u32 %v12907_v40, %v12063_v27  ;;  %v12202_v55 = vld [vmem:[%s17834_s12 + $0x3e4] sm:$0xf0]  ;;  %v12201_v40 = vor.u32 %v12935_v53, %v12200_v49  ;;  %v12921_v49 = vld [vmem:[%s17834_s12 + $0x370] sm:$0xf0] }
 0x4cc   : > { %8471 = vmatpush.bf16.msra.mxu3 %v11927_v14  ;;  %8484 = vmatpush.bf16.msra.mxu1 %v11931_v20  ;;  %v13271_v31 = vpop.eup %13270  ;;  %v12070_v20 = vor.u32 %v12909_v30, %v12069_v10  ;;  %v12932_v10 = vld [vmem:[%s17834_s12 + $0x3c8] sm:$0xf0]  ;;  %v12128_v53 = vld [vmem:[%s17834_s12 + $0x348] sm:$0xf] }
 0x4cd   : > { %v7733_v25 = vmul.f32 %v13271_v31, %v16782_v62  ;;  %vm7738_vm0 = vweird.f32 %v13271_v31  ;;  %v12062_v62 = vor.u32 %v12908_v6, %v12061_v37  ;;  %v12936_v37 = vld [vmem:[%s17834_s12 + $0x3e8] sm:$0xf0] }
 0x4ce   : > { %vm7739_vm6 = vmor %vm7737_vm1, %vm7738_vm0 }
 0x4cf   : > { %8459 = vmatpush.bf16.msrb.mxu2 %v11911_v59  ;;  %v7734_v22 = vsub.f32 1.0, %v7733_v25  ;;  %v1571_v14 = vpop.f32.mrf.mxu0 }
 0x4d0   : > { %8472 = vmatpush.bf16.msra.mxu3 %v11915_v1  ;;  %8485 = vmatpush.bf16.msra.mxu1 %v11919_v34  ;;  %v1572_v44 = vadd.f32 %v16757_v21, %v1571_v14  ;;  %v12058_v1 = vor.u32 %v12906_v5, %v12057_v4  ;;  %v12039_v34 = vld [vmem:[%s17834_s12 + $0x2dc] sm:$0xf0]  ;;  %v861_v14 = vld [vmem:[%s13789_s2 + $0x378] sm:$0xff]  ;;  %v12184_v4 = vld [vmem:[%s17834_s12 + $0x3b0] sm:$0xf] }
 0x4d1   : > { %v7735_v42 = vmul.f32 %v13271_v31, %v7734_v22  ;;  %9976 = vmatmul.msk.f32.gmra.mxu0 %vm886_vm2, %v859_v8  ;;  %v12042_v9 = vor.u32 %v12901_v18, %v12039_v34  ;;  %v12030_v22 = vor.u32 %v12898_v52, %v12027_v23  ;;  %v12930_v5 = vld [vmem:[%s17834_s12 + $0x3b8] sm:$0xf0]  ;;  %v862_v52 = vld [vmem:[%s13789_s2 + $0x380] sm:$0xff] }
 0x4d2   : > { %1769 = vst.msk [vmem:[%s14179_s28 + $0x2e8] sm:$0xff] %vm669_vm3, %v1572_v44  ;;  %v12928_v44 = vld [vmem:[%s17834_s12 + $0x3ac] sm:$0xf]  ;;  %v12926_v18 = vld [vmem:[%s17834_s12 + $0x398] sm:$0xf0]  ;;  %v12185_v34 = vor.u32 %v12930_v5, %v12184_v4 }
 0x4d3   : > { %8460 = vmatpush.bf16.msrb.mxu2 %v11899_v43  ;;  %v7736_v46 = vadd.f32 %v13271_v31, %v7735_v42  ;;  %v12934_v42 = vld [vmem:[%s17834_s12 + $0x3dc] sm:$0xf]  ;;  %v12952_v4 = vld [vmem:[%s17834_s12 + $0x46c] sm:$0xf] }
 0x4d4   : > { %8473 = vmatpush.bf16.msra.mxu3 %v11903_v28  ;;  %8486 = vmatpush.bf16.msra.mxu1 %v11907_v24  ;;  %v12033_v28 = vld [vmem:[%s17834_s12 + $0x2c0] sm:$0xf]  ;;  %v12900_v24 = vld [vmem:[%s17834_s12 + $0x2c8] sm:$0xf0]  ;;  %v12205_v27 = vor.u32 %v12934_v42, %v12202_v55 }
 0x4d5   : > { %v7740_v58 = vsel %vm7739_vm6, %v13271_v31, %v7736_v46  ;;  %v12046_v31 = vor.u32 %v12903_v11, %v12045_v61  ;;  %v12925_v61 = vld [vmem:[%s17834_s12 + $0x394] sm:$0xf]  ;;  %v12166_v11 = vld [vmem:[%s17834_s12 + $0x39c] sm:$0xf0] }
 0x4d6   : > { %v7745_v17 = vsel %vm7742_vm5, %v7744_v3, %v7740_v58  ;;  %v12188_v3 = vld [vmem:[%s17834_s12 + $0x3c0] sm:$0xf]  ;;  %v12931_v58 = vld [vmem:[%s17834_s12 + $0x3c4] sm:$0xf] }
 0x4d7   : > { %8642 = vmatpush.bf16.msra.mxu2 %v12086_v16  ;;  %v7747_v35 = vmul.f32 %v7745_v17, %v16709_v2  ;;  %v12051_v2 = vld [vmem:[%s17834_s12 + $0x2f4] sm:$0xf0]  ;;  %v1574_v19 = vpop.f32.mrf.mxu0  ;;  %v12190_v17 = vld [vmem:[%s17834_s12 + $0x3cc] sm:$0xf0] }
 0x4d8   : > { %8655 = vmatpush.bf16.msrb.mxu3 %v12090_v7  ;;  %8668 = vmatpush.bf16.msrb.mxu1 %v12094_v50  ;;  %v12054_v59 = vor.u32 %v12904_v45, %v12051_v2  ;;  %v1575_v25 = vadd.f32 %v16757_v21, %v1574_v19  ;;  %v12034_v7 = vor.u32 %v12900_v24, %v12033_v28  ;;  %v12896_v50 = vld [vmem:[%s17834_s12 + $0x2a8] sm:$0xf0]  ;;  %v12929_v45 = vld [vmem:[%s17834_s12 + $0x3b0] sm:$0xf0]  ;;  %v12178_v2 = vld [vmem:[%s17834_s12 + $0x3b4] sm:$0xf0] }
 0x4d9   : > { %7749 = vst.msk [vmem:[#allocation5 + $0x8] sm:$0x3] %vm7338_vm15, %v7747_v35  ;;  %9977 = vmatmul.msk.f32.gmra.mxu0 %vm886_vm2, %v860_v57  ;;  %v12014_v0 = vor.u32 %v12896_v50, %v12013_v33  ;;  %v12177_v38 = vor.u32 %v12929_v45, %v12176_v56  ;;  %v12154_v28 = vld [vmem:[%s17834_s12 + $0x384] sm:$0xf0]  ;;  %v12160_v24 = vld [vmem:[%s17834_s12 + $0x380] sm:$0xf] }
 0x4da   : > { %7748 = vst.msk [vmem:[%s16507_s20 + $0x2] sm:$0x3] %vm7338_vm15, %v7747_v35  ;;  %v12189_v35 = vor.u32 %v12932_v10, %v12188_v3  ;;  %v12920_v50 = vld [vmem:[%s17834_s12 + $0x368] sm:$0xf0]  ;;  %v12955_v3 = vld [vmem:[%s17834_s12 + $0x484] sm:$0xf] }
 0x4db   : > { %8643 = vmatpush.bf16.msra.mxu2 %v12074_v32  ;;  %1770 = vst.msk [vmem:[%s14179_s28 + $0x2f0] sm:$0xff] %vm669_vm3, %v1575_v25  ;;  %v12208_v32 = vld [vmem:[%s17834_s12 + $0x3e0] sm:$0xf]  ;;  %v12923_v25 = vld [vmem:[%s17834_s12 + $0x380] sm:$0xf0] }
 0x4dc   : > { %8656 = vmatpush.bf16.msrb.mxu3 %v12078_v12  ;;  %8669 = vmatpush.bf16.msrb.mxu1 %v12082_v48  ;;  %v12018_v12 = vor.u32 %v12895_v36, %v12015_v26  ;;  %v12022_v48 = vor.u32 %v12897_v39, %v12021_v54  ;;  %v12209_v30 = vor.u32 %v12936_v37, %v12208_v32  ;;  %v12919_v26 = vld [vmem:[%s17834_s12 + $0x364] sm:$0xf]  ;;  %v12142_v54 = vld [vmem:[%s17834_s12 + $0x36c] sm:$0xf0]  ;;  %v12148_v39 = vld [vmem:[%s17834_s12 + $0x368] sm:$0xf] }
 0x4dd   : > { %v12153_v57 = vor.u32 %v12923_v25, %v12152_v51  ;;  %v12145_v55 = vor.u32 %v12919_v26, %v12142_v54  ;;  %v12916_v32 = vld [vmem:[%s17834_s12 + $0x34c] sm:$0xf]  ;;  %v12279_v25 = vld [vmem:[%s17834_s12 + $0x438] sm:$0xf]  ;;  %v12943_v26 = vld [vmem:[%s17834_s12 + $0x424] sm:$0xf] }
 0x4de   : > { %v863_v37 = vld [vmem:[%s13789_s2 + $0x388] sm:$0xff] }
 0x4df   : > { %8644 = vmatpush.bf16.msra.mxu2 %v12062_v62  ;;  %v1577_v46 = vpop.f32.mrf.mxu0  ;;  %v12196_v62 = vld [vmem:[%s17834_s12 + $0x3c8] sm:$0xf] }
 0x4e0   : > { %8657 = vmatpush.bf16.msrb.mxu3 %v12066_v63  ;;  %8670 = vmatpush.bf16.msrb.mxu1 %v12070_v20  ;;  %v8307_v43 = vld [vmem:[#allocation5 + $0x8] sm:$0x1]  ;;  %v1578_v6 = vadd.f32 %v16757_v21, %v1577_v46  ;;  %v12933_v63 = vld [vmem:[%s17834_s12 + $0x3d0] sm:$0xf0]  ;;  %v12193_v20 = vor.u32 %v12931_v58, %v12190_v17  ;;  %v12149_v46 = vor.u32 %v12921_v49, %v12148_v39  ;;  %v12323_v58 = vld [vmem:[%s17834_s12 + $0x488] sm:$0xf] }
 0x4e1   : > { %v8308_v16 = vpack.c.bf16 %v8307_v43, %v8307_v43  ;;  %v12197_v41 = vor.u32 %v12933_v63, %v12196_v62  ;;  %9978 = vmatmul.msk.f32.gmra.mxu0 %vm886_vm2, %v861_v14  ;;  %v12922_v43 = vld [vmem:[%s17834_s12 + $0x37c] sm:$0xf]  ;;  %v12957_v17 = vld [vmem:[%s17834_s12 + $0x490] sm:$0xf0]  ;;  %v12269_v39 = vld [vmem:[%s17834_s12 + $0x42c] sm:$0xf0] }
 0x4e2   : > { %1771 = vst.msk [vmem:[%s14179_s28 + $0x2f8] sm:$0xff] %vm669_vm3, %v1578_v6  ;;  %v12918_v6 = vld [vmem:[%s17834_s12 + $0x358] sm:$0xf0]  ;;  %v12324_v45 = vor.u32 %v12957_v17, %v12323_v58  ;;  %v12275_v49 = vld [vmem:[%s17834_s12 + $0x428] sm:$0xf] }
 0x4e3   : > { %8645 = vmatpush.bf16.msra.mxu2 %v12050_v47  ;;  %11981 = vmatmul.msk.bf16.vlgmr.msra.gmra.mxu3 %vm746_vm14, %v8308_v16 }
 0x4e4   : > { %8658 = vmatpush.bf16.msrb.mxu3 %v12054_v59  ;;  %8671 = vmatpush.bf16.msrb.mxu1 %v12058_v1  ;;  %v12181_v59 = vor.u32 %v12928_v44, %v12178_v2  ;;  %v8495_v1 = vld [vmem:[#allocation5 + $0x9] sm:$0x1]  ;;  %v12303_v44 = vld [vmem:[%s17834_s12 + $0x468] sm:$0xf]  ;;  %v12953_v2 = vld [vmem:[%s17834_s12 + $0x470] sm:$0xf0] }
 0x4e5   : > { %11980 = vmatmul.msk.bf16.vlgmr.msrb.gmra.mxu2 %vm746_vm14, %v8308_v16  ;;  %11982 = vmatmul.msk.bf16.vlgmr.msra.gmra.mxu1 %vm746_vm14, %v8308_v16  ;;  %v8496_v19 = vpack.c.bf16 %v8495_v1, %v8495_v1  ;;  %v12924_v16 = vld [vmem:[%s17834_s12 + $0x388] sm:$0xf0]  ;;  %v864_v1 = vld [vmem:[%s13789_s2 + $0x390] sm:$0xff] }
 0x4e6   : > { %v12161_v36 = vor.u32 %v12924_v16, %v12160_v24  ;;  %v12281_v24 = vld [vmem:[%s17834_s12 + $0x444] sm:$0xf0]  ;;  %v12287_v16 = vld [vmem:[%s17834_s12 + $0x440] sm:$0xf] }
 0x4e7   : > { %8646 = vmatpush.bf16.msra.mxu2 %v12038_v15  ;;  %v1580_v8 = vpop.f32.mrf.mxu0  ;;  %v12172_v15 = vld [vmem:[%s17834_s12 + $0x398] sm:$0xf] }
 0x4e8   : > { %8659 = vmatpush.bf16.msrb.mxu3 %v12042_v9  ;;  %8672 = vmatpush.bf16.msrb.mxu1 %v12046_v31  ;;  %v1581_v47 = vadd.f32 %v16757_v21, %v1580_v8  ;;  %v12165_v9 = vor.u32 %v12926_v18, %v12164_v29  ;;  %v12169_v31 = vor.u32 %v12925_v61, %v12166_v11  ;;  %v12305_v8 = vld [vmem:[%s17834_s12 + $0x474] sm:$0xf0]  ;;  %v12950_v61 = vld [vmem:[%s17834_s12 + $0x458] sm:$0xf0]  ;;  %v12949_v11 = vld [vmem:[%s17834_s12 + $0x454] sm:$0xf] }
 0x4e9   : > { %v12173_v23 = vor.u32 %v12927_v60, %v12172_v15  ;;  %9979 = vmatmul.msk.f32.gmra.mxu0 %vm886_vm2, %v862_v52  ;;  %v12308_v29 = vor.u32 %v12952_v4, %v12305_v8  ;;  %v12293_v60 = vld [vmem:[%s17834_s12 + $0x45c] sm:$0xf0]  ;;  %v12438_v4 = vld [vmem:[%s17834_s12 + $0x530] sm:$0xf]  ;;  %v12978_v8 = vld [vmem:[%s17834_s12 + $0x538] sm:$0xf0] }
 0x4ea   : > { %1772 = vst.msk [vmem:[%s14179_s28 + $0x300] sm:$0xff] %vm669_vm3, %v1581_v47  ;;  %v12311_v47 = vld [vmem:[%s17834_s12 + $0x470] sm:$0xf]  ;;  %v12296_v52 = vor.u32 %v12949_v11, %v12293_v60  ;;  %v12973_v60 = vld [vmem:[%s17834_s12 + $0x514] sm:$0xf] }
 0x4eb   : > { %8647 = vmatpush.bf16.msra.mxu2 %v12026_v13 }
 0x4ec   : > { %8660 = vmatpush.bf16.msrb.mxu3 %v12030_v22  ;;  %8673 = vmatpush.bf16.msrb.mxu1 %v12034_v7  ;;  %v12157_v22 = vor.u32 %v12922_v43, %v12154_v28  ;;  %v12140_v7 = vld [vmem:[%s17834_s12 + $0x360] sm:$0xf]  ;;  %v12947_v43 = vld [vmem:[%s17834_s12 + $0x440] sm:$0xf0]  ;;  %v12946_v28 = vld [vmem:[%s17834_s12 + $0x43c] sm:$0xf] }
 0x4ed   : > { %v12141_v42 = vor.u32 %v12920_v50, %v12140_v7  ;;  %v12267_v50 = vld [vmem:[%s17834_s12 + $0x420] sm:$0xf] }
 0x4ef   : > { %8648 = vmatpush.bf16.msra.mxu2 %v12014_v0  ;;  %v1583_v13 = vpop.f32.mrf.mxu0  ;;  %v12917_v0 = vld [vmem:[%s17834_s12 + $0x350] sm:$0xf0] }
 0x4f0   : > { %8661 = vmatpush.bf16.msrb.mxu3 %v12018_v12  ;;  %8674 = vmatpush.bf16.msrb.mxu1 %v12022_v48  ;;  %v1584_v33 = vadd.f32 %v16757_v21, %v1583_v13  ;;  %v12130_v12 = vld [vmem:[%s17834_s12 + $0x354] sm:$0xf0]  ;;  %v12136_v48 = vld [vmem:[%s17834_s12 + $0x350] sm:$0xf]  ;;  %v12129_v63 = vor.u32 %v12917_v0, %v12128_v53  ;;  %v12948_v13 = vld [vmem:[%s17834_s12 + $0x448] sm:$0xf0]  ;;  %v12272_v0 = vor.u32 %v12943_v26, %v12269_v39 }
 0x4f1   : > { %9980 = vmatmul.msk.f32.gmra.mxu0 %vm886_vm2, %v863_v37  ;;  %v12133_v14 = vor.u32 %v12916_v32, %v12130_v12  ;;  %v12288_v7 = vor.u32 %v12948_v13, %v12287_v16  ;;  %v12945_v53 = vld [vmem:[%s17834_s12 + $0x430] sm:$0xf0]  ;;  %v12255_v37 = vld [vmem:[%s17834_s12 + $0x408] sm:$0xf]  ;;  %v12940_v12 = vld [vmem:[%s17834_s12 + $0x40c] sm:$0xf] }
 0x4f2   : > { %1773 = vst.msk [vmem:[%s14179_s28 + $0x308] sm:$0xff] %vm669_vm3, %v1584_v33  ;;  %v12280_v33 = vor.u32 %v12947_v43, %v12279_v25  ;;  %v12276_v32 = vor.u32 %v12945_v53, %v12275_v49  ;;  %v12406_v25 = vld [vmem:[%s17834_s12 + $0x4f8] sm:$0xf]  ;;  %v867_v43 = vld [vmem:[%s13789_s2 + $0x3a8] sm:$0xff]  ;;  %v12971_v16 = vld [vmem:[%s17834_s12 + $0x500] sm:$0xf0] }
 0x4f3   : > { %8830 = vmatpush.bf16.msrb.mxu2 %v12201_v40  ;;  %12096 = vmatmul.msk.bf16.vlgmr.msrb.gmra.mxu3 %vm746_vm14, %v8496_v19  ;;  %v12315_v40 = vld [vmem:[%s17834_s12 + $0x480] sm:$0xf]  ;;  %v12970_v13 = vld [vmem:[%s17834_s12 + $0x4fc] sm:$0xf]  ;;  %v12968_v53 = vld [vmem:[%s17834_s12 + $0x4e8] sm:$0xf0] }
 0x4f4   : > { %8843 = vmatpush.bf16.msra.mxu3 %v12205_v27  ;;  %8856 = vmatpush.bf16.msra.mxu1 %v12209_v30  ;;  %v12956_v27 = vld [vmem:[%s17834_s12 + $0x488] sm:$0xf0]  ;;  %v12317_v30 = vld [vmem:[%s17834_s12 + $0x48c] sm:$0xf0] }
 0x4f5   : > { %12095 = vmatmul.msk.bf16.vlgmr.msra.gmra.mxu2 %vm746_vm14, %v8496_v19  ;;  %12097 = vmatmul.msk.bf16.vlgmr.msrb.gmra.mxu1 %vm746_vm14, %v8496_v19  ;;  %v12316_v56 = vor.u32 %v12956_v27, %v12315_v40  ;;  %v12299_v19 = vld [vmem:[%s17834_s12 + $0x458] sm:$0xf]  ;;  %v12942_v40 = vld [vmem:[%s17834_s12 + $0x418] sm:$0xf0] }
 0x4f7   : > { %8831 = vmatpush.bf16.msrb.mxu2 %v12189_v35  ;;  %v1586_v10 = vpop.f32.mrf.mxu0  ;;  %v8683_v35 = vld [vmem:[#allocation5 + $0xa] sm:$0x1] }
 0x4f8   : > { %8844 = vmatpush.bf16.msra.mxu3 %v12193_v20  ;;  %8857 = vmatpush.bf16.msra.mxu1 %v12197_v41  ;;  %v1587_v62 = vadd.f32 %v16757_v21, %v1586_v10  ;;  %v12137_v20 = vor.u32 %v12918_v6, %v12136_v48  ;;  %v12320_v41 = vor.u32 %v12955_v3, %v12317_v30  ;;  %v12257_v48 = vld [vmem:[%s17834_s12 + $0x414] sm:$0xf0]  ;;  %v12263_v6 = vld [vmem:[%s17834_s12 + $0x410] sm:$0xf]  ;;  %v12938_v10 = vld [vmem:[%s17834_s12 + $0x3f8] sm:$0xf0] }
 0x4f9   : > { %v8684_v5 = vpack.c.bf16 %v8683_v35, %v8683_v35  ;;  %9981 = vmatmul.msk.f32.gmra.mxu0 %vm886_vm2, %v864_v1  ;;  %v12243_v3 = vld [vmem:[%s17834_s12 + $0x3f0] sm:$0xf]  ;;  %v866_v30 = vld [vmem:[%s13789_s2 + $0x3a0] sm:$0xff]  ;;  %v12260_v58 = vor.u32 %v12940_v12, %v12257_v48  ;;  %v12264_v17 = vor.u32 %v12942_v40, %v12263_v6  ;;  %v12382_v48 = vld [vmem:[%s17834_s12 + $0x4c8] sm:$0xf] }
 0x4fa   : > { %1774 = vst.msk [vmem:[%s14179_s28 + $0x310] sm:$0xff] %vm669_vm3, %v1587_v62  ;;  %v12937_v62 = vld [vmem:[%s17834_s12 + $0x3f4] sm:$0xf] }
 0x4fb   : > { %8832 = vmatpush.bf16.msrb.mxu2 %v12177_v38  ;;  %v12954_v38 = vld [vmem:[%s17834_s12 + $0x478] sm:$0xf0]  ;;  %v868_v6 = vld [vmem:[%s13789_s2 + $0x3b0] sm:$0xff] }
 0x4fc   : > { %8845 = vmatpush.bf16.msra.mxu3 %v12181_v59  ;;  %8858 = vmatpush.bf16.msra.mxu1 %v12185_v34  ;;  %v12304_v59 = vor.u32 %v12953_v2, %v12303_v44  ;;  %v12312_v18 = vor.u32 %v12954_v38, %v12311_v47  ;;  %v12291_v34 = vld [vmem:[%s17834_s12 + $0x450] sm:$0xf]  ;;  %v12976_v44 = vld [vmem:[%s17834_s12 + $0x52c] sm:$0xf]  ;;  %v12432_v2 = vld [vmem:[%s17834_s12 + $0x534] sm:$0xf0] }
 0x4fd   : > { %v12292_v51 = vor.u32 %v12950_v61, %v12291_v34  ;;  %v8871_v47 = vld [vmem:[#allocation5 + $0x10] sm:$0x1]  ;;  %v12439_v61 = vor.u32 %v12978_v8, %v12438_v4  ;;  %v12963_v8 = vld [vmem:[%s17834_s12 + $0x4c0] sm:$0xf0] }
 0x4fe   : > { %v8872_v11 = vpack.c.bf16 %v8871_v47, %v8871_v47  ;;  %v12358_v47 = vld [vmem:[%s17834_s12 + $0x498] sm:$0xf] }
 0x4ff   : > { %8833 = vmatpush.bf16.msrb.mxu2 %v12165_v9  ;;  %v1589_v15 = vpop.f32.mrf.mxu0  ;;  %v12951_v9 = vld [vmem:[%s17834_s12 + $0x460] sm:$0xf0] }
 0x500   : > { %8846 = vmatpush.bf16.msra.mxu3 %v12169_v31  ;;  %8859 = vmatpush.bf16.msra.mxu1 %v12173_v23  ;;  %v1590_v31 = vadd.f32 %v16757_v21, %v1589_v15  ;;  %v12300_v23 = vor.u32 %v12951_v9, %v12299_v19  ;;  %v12974_v15 = vld [vmem:[%s17834_s12 + $0x518] sm:$0xf0]  ;;  %v12420_v19 = vld [vmem:[%s17834_s12 + $0x51c] sm:$0xf0]  ;;  %v12426_v9 = vld [vmem:[%s17834_s12 + $0x518] sm:$0xf] }
 0x502   : > { %1775 = vst.msk [vmem:[%s14179_s28 + $0x318] sm:$0xff] %vm669_vm3, %v1590_v31  ;;  %v12975_v31 = vld [vmem:[%s17834_s12 + $0x520] sm:$0xf0] }
 0x503   : > { %8834 = vmatpush.bf16.msrb.mxu2 %v12153_v57  ;;  %v865_v57 = vld [vmem:[%s13789_s2 + $0x398] sm:$0xff] }
 0x504   : > { %8847 = vmatpush.bf16.msra.mxu3 %v12157_v22  ;;  %8860 = vmatpush.bf16.msra.mxu1 %v12161_v36  ;;  %v12284_v22 = vor.u32 %v12946_v28, %v12281_v24  ;;  %v12944_v36 = vld [vmem:[%s17834_s12 + $0x428] sm:$0xf0]  ;;  %v12427_v24 = vor.u32 %v12975_v31, %v12426_v9  ;;  %v12545_v9 = vld [vmem:[%s17834_s12 + $0x5d0] sm:$0xf] }
 0x505   : > { %9982 = vmatmul.msk.f32.gmra.mxu0 %vm886_vm2, %v865_v57 }
 0x507   : > { %8835 = vmatpush.bf16.msrb.mxu2 %v12141_v42  ;;  %v1592_v54 = vpop.f32.mrf.mxu0 }
 0x508   : > { %8848 = vmatpush.bf16.msra.mxu3 %v12145_v55  ;;  %8861 = vmatpush.bf16.msra.mxu1 %v12149_v46  ;;  %v1593_v42 = vadd.f32 %v16757_v21, %v1592_v54  ;;  %v12268_v55 = vor.u32 %v12944_v36, %v12267_v50  ;;  %v12941_v46 = vld [vmem:[%s17834_s12 + $0x410] sm:$0xf0]  ;;  %v12972_v50 = vld [vmem:[%s17834_s12 + $0x508] sm:$0xf0]  ;;  %v12407_v36 = vor.u32 %v12971_v16, %v12406_v25  ;;  %v12394_v54 = vld [vmem:[%s17834_s12 + $0x4e0] sm:$0xf] }
 0x509   : > { %v12256_v27 = vor.u32 %v12941_v46, %v12255_v37  ;;  %v12395_v46 = vor.u32 %v12968_v53, %v12394_v54  ;;  %v12995_v54 = vld [vmem:[%s17834_s12 + $0x5c0] sm:$0xf0]  ;;  %v12535_v53 = vld [vmem:[%s17834_s12 + $0x5c4] sm:$0xf0] }
 0x50a   : > { %1776 = vst.msk [vmem:[%s14179_s28 + $0x320] sm:$0xff] %vm669_vm3, %v1593_v42  ;;  %v12967_v42 = vld [vmem:[%s17834_s12 + $0x4e4] sm:$0xf] }
 0x50b   : > { %8836 = vmatpush.bf16.msrb.mxu2 %v12129_v63  ;;  %v12245_v63 = vld [vmem:[%s17834_s12 + $0x3fc] sm:$0xf0] }
 0x50c   : > { %8849 = vmatpush.bf16.msra.mxu3 %v12133_v14  ;;  %8862 = vmatpush.bf16.msra.mxu1 %v12137_v20  ;;  %v12251_v14 = vld [vmem:[%s17834_s12 + $0x3f8] sm:$0xf]  ;;  %v12939_v20 = vld [vmem:[%s17834_s12 + $0x400] sm:$0xf0]  ;;  %v12248_v38 = vor.u32 %v12937_v62, %v12245_v63  ;;  %v12390_v62 = vld [vmem:[%s17834_s12 + $0x4d0] sm:$0xf] }
 0x50d   : > { %9983 = vmatmul.msk.f32.gmra.mxu0 %vm886_vm2, %v866_v30  ;;  %v12384_v30 = vld [vmem:[%s17834_s12 + $0x4d4] sm:$0xf0]  ;;  %v12966_v63 = vld [vmem:[%s17834_s12 + $0x4d8] sm:$0xf0] }
 0x50e   : > { %12210 = vmatmul.msk.bf16.vlgmr.msrb.gmra.mxu2 %vm746_vm14, %v8684_v5 }
 0x50f   : > { %9018 = vmatpush.bf16.msra.mxu2 %v12316_v56  ;;  %12211 = vmatmul.msk.bf16.vlgmr.msra.gmra.mxu3 %vm746_vm14, %v8684_v5  ;;  %v1595_v35 = vpop.f32.mrf.mxu0  ;;  %v12430_v56 = vld [vmem:[%s17834_s12 + $0x528] sm:$0xf] }
 0x510   : > { %9031 = vmatpush.bf16.msrb.mxu3 %v12320_v41  ;;  %9044 = vmatpush.bf16.msrb.mxu1 %v12324_v45  ;;  %v12977_v41 = vld [vmem:[%s17834_s12 + $0x530] sm:$0xf0]  ;;  %v1596_v45 = vadd.f32 %v16757_v21, %v1595_v35 }
 0x511   : > { %12212 = vmatmul.msk.bf16.vlgmr.msra.gmra.mxu1 %vm746_vm14, %v8684_v5  ;;  %v12244_v5 = vor.u32 %v12938_v10, %v12243_v3  ;;  %v12431_v1 = vor.u32 %v12977_v41, %v12430_v56  ;;  %v12965_v3 = vld [vmem:[%s17834_s12 + $0x4d0] sm:$0xf0]  ;;  %v12964_v10 = vld [vmem:[%s17834_s12 + $0x4cc] sm:$0xf]  ;;  %v12391_v41 = vor.u32 %v12966_v63, %v12390_v62 }
 0x512   : > { %1777 = vst.msk [vmem:[%s14179_s28 + $0x328] sm:$0xff] %vm669_vm3, %v1596_v45  ;;  %v12387_v35 = vor.u32 %v12964_v10, %v12384_v30  ;;  %v12962_v45 = vld [vmem:[%s17834_s12 + $0x4b8] sm:$0xf0]  ;;  %v12992_v10 = vld [vmem:[%s17834_s12 + $0x5a8] sm:$0xf0] }
 0x513   : > { %9019 = vmatpush.bf16.msra.mxu2 %v12304_v59  ;;  %v12252_v59 = vor.u32 %v12939_v20, %v12251_v14  ;;  %v12383_v14 = vor.u32 %v12965_v3, %v12382_v48  ;;  %v12370_v20 = vld [vmem:[%s17834_s12 + $0x4b0] sm:$0xf]  ;;  %v12991_v30 = vld [vmem:[%s17834_s12 + $0x5a4] sm:$0xf]  ;;  %v12993_v62 = vld [vmem:[%s17834_s12 + $0x5b0] sm:$0xf0] }
 0x514   : > { %9032 = vmatpush.bf16.msrb.mxu3 %v12308_v29  ;;  %9045 = vmatpush.bf16.msrb.mxu1 %v12312_v18  ;;  %v12435_v29 = vor.u32 %v12976_v44, %v12432_v2  ;;  %v12418_v18 = vld [vmem:[%s17834_s12 + $0x510] sm:$0xf]  ;;  %v12961_v44 = vld [vmem:[%s17834_s12 + $0x4b4] sm:$0xf]  ;;  %v12372_v2 = vld [vmem:[%s17834_s12 + $0x4bc] sm:$0xf0] }
 0x515   : > { %9984 = vmatmul.msk.f32.gmra.mxu0 %vm886_vm2, %v867_v43  ;;  %v12547_v43 = vld [vmem:[%s17834_s12 + $0x5dc] sm:$0xf0] }
 0x517   : > { %9020 = vmatpush.bf16.msra.mxu2 %v12292_v51  ;;  %v1598_v51 = vpop.f32.mrf.mxu0 }
 0x518   : > { %9033 = vmatpush.bf16.msrb.mxu3 %v12296_v52  ;;  %9046 = vmatpush.bf16.msrb.mxu1 %v12300_v23  ;;  %v12419_v52 = vor.u32 %v12974_v15, %v12418_v18  ;;  %v12423_v23 = vor.u32 %v12973_v60, %v12420_v19  ;;  %v1599_v28 = vadd.f32 %v16757_v21, %v1598_v51  ;;  %v12958_v18 = vld [vmem:[%s17834_s12 + $0x49c] sm:$0xf]  ;;  %v12366_v60 = vld [vmem:[%s17834_s12 + $0x4a0] sm:$0xf]  ;;  %v12960_v19 = vld [vmem:[%s17834_s12 + $0x4a8] sm:$0xf0] }
 0x51a   : > { %1778 = vst.msk [vmem:[%s14179_s28 + $0x330] sm:$0xff] %vm669_vm3, %v1599_v28  ;;  %v12553_v28 = vld [vmem:[%s17834_s12 + $0x5d8] sm:$0xf] }
 0x51b   : > { %9021 = vmatpush.bf16.msra.mxu2 %v12280_v33  ;;  %v12408_v33 = vld [vmem:[%s17834_s12 + $0x504] sm:$0xf0] }
 0x51c   : > { %9034 = vmatpush.bf16.msrb.mxu3 %v12284_v22  ;;  %9047 = vmatpush.bf16.msrb.mxu1 %v12288_v7  ;;  %v17291_v34 = vpop.f32.mrf.mxu1  ;;  %v12414_v7 = vld [vmem:[%s17834_s12 + $0x500] sm:$0xf]  ;;  %v12411_v26 = vor.u32 %v12970_v13, %v12408_v33 }
 0x51d   : > { %v12415_v49 = vor.u32 %v12972_v50, %v12414_v7  ;;  %9985 = vmatmul.msk.f32.gmra.mxu0 %vm886_vm2, %v868_v6  ;;  %v9059_v33 = vld [vmem:[#allocation5 + $0x11] sm:$0x1] }
 0x51f   : > { %9022 = vmatpush.bf16.msra.mxu2 %v12268_v55  ;;  %v12396_v55 = vld [vmem:[%s17834_s12 + $0x4ec] sm:$0xf0]  ;;  %v1601_v37 = vpop.f32.mrf.mxu0 }
 0x520   : > { %9035 = vmatpush.bf16.msrb.mxu3 %v12272_v0  ;;  %9048 = vmatpush.bf16.msrb.mxu1 %v12276_v32  ;;  %v12402_v0 = vld [vmem:[%s17834_s12 + $0x4e8] sm:$0xf]  ;;  %v12969_v32 = vld [vmem:[%s17834_s12 + $0x4f0] sm:$0xf0]  ;;  %v12399_v12 = vor.u32 %v12967_v42, %v12396_v55  ;;  %v1602_v40 = vadd.f32 %v16757_v21, %v1601_v37  ;;  %v12541_v42 = vld [vmem:[%s17834_s12 + $0x5c0] sm:$0xf] }
 0x521   : > { %v17325_v57 = vpop.f32.mrf.mxu2  ;;  %v17327_v22 = vpop.f32.mrf.mxu3  ;;  %v12996_v55 = vld [vmem:[%s17834_s12 + $0x5c8] sm:$0xf0]  ;;  %v12521_v37 = vld [vmem:[%s17834_s12 + $0x5a0] sm:$0xf] }
 0x522   : > { %1779 = vst.msk [vmem:[%s14179_s28 + $0x338] sm:$0xff] %vm669_vm3, %v1602_v40  ;;  %v12542_v40 = vor.u32 %v12996_v55, %v12541_v42  ;;  %v12481_v55 = vld [vmem:[%s17834_s12 + $0x548] sm:$0xf] }
 0x523   : > { %9023 = vmatpush.bf16.msra.mxu2 %v12256_v27  ;;  %v12403_v27 = vor.u32 %v12969_v32, %v12402_v0 }
 0x524   : > { %9036 = vmatpush.bf16.msrb.mxu3 %v12260_v58  ;;  %9049 = vmatpush.bf16.msrb.mxu1 %v12264_v17  ;;  %v7963_v39 = vpop.f32.mrf.mxu1 }
 0x525   : > { %v12994_v39 = vld [vmem:[%s17834_s12 + $0x5bc] sm:$0xf] }
 0x526   : > { %v12538_v6 = vor.u32 %v12994_v39, %v12535_v53  ;;  %v12980_v39 = vld [vmem:[%s17834_s12 + $0x548] sm:$0xf0]  ;;  %v12475_v53 = vld [vmem:[%s17834_s12 + $0x54c] sm:$0xf0] }
 0x527   : > { %9024 = vmatpush.bf16.msra.mxu2 %v12244_v5  ;;  %v12378_v5 = vld [vmem:[%s17834_s12 + $0x4b8] sm:$0xf] }
 0x528   : > { %9037 = vmatpush.bf16.msrb.mxu3 %v12248_v38  ;;  %9050 = vmatpush.bf16.msrb.mxu1 %v12252_v59  ;;  %v12959_v38 = vld [vmem:[%s17834_s12 + $0x4a0] sm:$0xf0]  ;;  %v1604_v59 = vpop.f32.mrf.mxu0  ;;  %v12379_v15 = vor.u32 %v12963_v8, %v12378_v5  ;;  %v12990_v5 = vld [vmem:[%s17834_s12 + $0x598] sm:$0xf0] }
 0x529   : > { %v7937_v58 = vpop.f32.mrf.mxu2  ;;  %v7950_v17 = vpop.f32.mrf.mxu3  ;;  %v12359_v16 = vor.u32 %v12959_v38, %v12358_v47  ;;  %v12497_v38 = vld [vmem:[%s17834_s12 + $0x570] sm:$0xf] }
 0x52a   : > { %12325 = vmatmul.msk.bf16.vlgmr.msra.gmra.mxu2 %vm746_vm14, %v8872_v11  ;;  %v12523_v58 = vld [vmem:[%s17834_s12 + $0x5ac] sm:$0xf0]  ;;  %v12529_v17 = vld [vmem:[%s17834_s12 + $0x5a8] sm:$0xf] }
 0x52b   : > { %9206 = vmatpush.bf16.msrb.mxu2 %v12431_v1  ;;  %12326 = vmatmul.msk.bf16.vlgmr.msrb.gmra.mxu3 %vm746_vm14, %v8872_v11  ;;  %v12371_v1 = vor.u32 %v12962_v45, %v12370_v20  ;;  %v12526_v20 = vor.u32 %v12991_v30, %v12523_v58  ;;  %v12989_v45 = vld [vmem:[%s17834_s12 + $0x590] sm:$0xf0]  ;;  %v874_v30 = vld [vmem:[%s13789_s2 + $0x3e0] sm:$0xff] }
 0x52c   : > { %9219 = vmatpush.bf16.msra.mxu3 %v12435_v29  ;;  %9232 = vmatpush.bf16.msra.mxu1 %v12439_v61  ;;  %v8115_v56 = vpop.f32.mrf.mxu1  ;;  %v12375_v29 = vor.u32 %v12961_v44, %v12372_v2  ;;  %v869_v61 = vld [vmem:[%s13789_s2 + $0x3b8] sm:$0xff]  ;;  %v12988_v44 = vld [vmem:[%s17834_s12 + $0x58c] sm:$0xf] }
 0x52d   : > { %12327 = vmatmul.msk.bf16.vlgmr.msrb.gmra.mxu1 %vm746_vm14, %v8872_v11  ;;  %v17392_v4 = vadd.f32 %v8115_v56, %v17291_v34  ;;  %v12360_v34 = vld [vmem:[%s17834_s12 + $0x4a4] sm:$0xf0]  ;;  %v1605_v11 = vadd.f32 %v16757_v21, %v1604_v59  ;;  %v12998_v21 = vld [vmem:[%s17834_s12 + $0x5d8] sm:$0xf0]  ;;  %9986 = vmatmul.msk.f32.gmra.mxu0 %vm886_vm2, %v869_v61  ;;  %v12530_v56 = vor.u32 %v12993_v62, %v12529_v17  ;;  %v12511_v2 = vld [vmem:[%s17834_s12 + $0x594] sm:$0xf0] }
 0x52e   : > { %v12363_v13 = vor.u32 %v12958_v18, %v12360_v34  ;;  %v12546_v7 = vor.u32 %v12998_v21, %v12545_v9  ;;  %v871_v59 = vld [vmem:[%s13789_s2 + $0x3c8] sm:$0xff]  ;;  %v12986_v61 = vld [vmem:[%s17834_s12 + $0x578] sm:$0xf0]  ;;  %v12505_v9 = vld [vmem:[%s17834_s12 + $0x578] sm:$0xf] }
 0x52f   : > { %9207 = vmatpush.bf16.msrb.mxu2 %v12419_v52  ;;  %v12997_v52 = vld [vmem:[%s17834_s12 + $0x5d4] sm:$0xf]  ;;  %1780 = vst.msk [vmem:[%s14179_s28 + $0x340] sm:$0xff] %vm669_vm3, %v1605_v11  ;;  %v12498_v21 = vor.u32 %v12986_v61, %v12497_v38  ;;  %v875_v62 = vld [vmem:[%s13789_s2 + $0x3e8] sm:$0xff] }
 0x530   : > { %9220 = vmatpush.bf16.msra.mxu3 %v12423_v23  ;;  %9233 = vmatpush.bf16.msra.mxu1 %v12427_v24  ;;  %v12999_v24 = vld [vmem:[%s17834_s12 + $0x5e0] sm:$0xf0]  ;;  %v12550_v50 = vor.u32 %v12997_v52, %v12547_v43  ;;  %v1607_v0 = vpop.f32.mrf.mxu0  ;;  %v12985_v11 = vld [vmem:[%s17834_s12 + $0x574] sm:$0xf] }
 0x531   : > { %v8089_v31 = vpop.f32.mrf.mxu2  ;;  %v8102_v51 = vpop.f32.mrf.mxu3 }
 0x532   : > { %v17432_v23 = vadd.f32 %v8089_v31, %v17325_v57  ;;  %v17435_v25 = vadd.f32 %v8102_v51, %v17327_v22  ;;  %v12367_v22 = vor.u32 %v12960_v19, %v12366_v60  ;;  %v12987_v31 = vld [vmem:[%s17834_s12 + $0x580] sm:$0xf0] }
 0x533   : > { %9208 = vmatpush.bf16.msrb.mxu2 %v12407_v36  ;;  %v12554_v36 = vor.u32 %v12999_v24, %v12553_v28  ;;  %v12506_v43 = vor.u32 %v12987_v31, %v12505_v9  ;;  %v12485_v28 = vld [vmem:[%s17834_s12 + $0x558] sm:$0xf]  ;;  %v12983_v24 = vld [vmem:[%s17834_s12 + $0x560] sm:$0xf0] }
 0x534   : > { %9221 = vmatpush.bf16.msra.mxu3 %v12411_v26  ;;  %9234 = vmatpush.bf16.msra.mxu1 %v12415_v49  ;;  %v8117_v57 = vpop.f32.mrf.mxu1  ;;  %v12533_v26 = vld [vmem:[%s17834_s12 + $0x5b8] sm:$0xf]  ;;  %v9060_v49 = vpack.c.bf16 %v9059_v33, %v9059_v33  ;;  %v12984_v33 = vld [vmem:[%s17834_s12 + $0x568] sm:$0xf0] }
 0x535   : > { %v12534_v32 = vor.u32 %v12995_v54, %v12533_v26 }
 0x537   : > { %9209 = vmatpush.bf16.msrb.mxu2 %v12395_v46  ;;  %v870_v46 = vld [vmem:[%s13789_s2 + $0x3c0] sm:$0xff] }
 0x538   : > { %9222 = vmatpush.bf16.msra.mxu3 %v12399_v12  ;;  %9235 = vmatpush.bf16.msra.mxu1 %v12403_v27  ;;  %v17472_v12 = vld [vmem:[%s17894_s4] ss:$0 sm:$0xff]  ;;  %v1610_v8 = vpop.f32.mrf.mxu0 }
 0x539   : > { %v1608_v48 = vadd.f32 %v17472_v12, %v1607_v0  ;;  %v8091_v27 = vpop.f32.mrf.mxu2  ;;  %v8104_v3 = vpop.f32.mrf.mxu3  ;;  %9987 = vmatmul.msk.f32.gmra.mxu0 %vm886_vm2, %v870_v46  ;;  %v12981_v0 = vld [vmem:[%s17834_s12 + $0x550] sm:$0xf0]  ;;  %v9247_v46 = vld [vmem:[#allocation5 + $0x12] sm:$0x1] }
 0x53a   : > { %v873_v27 = vld [vmem:[%s13789_s2 + $0x3d8] sm:$0xff] }
 0x53b   : > { %9210 = vmatpush.bf16.msrb.mxu2 %v12383_v14  ;;  %1781 = vst.msk [vmem:[%s14179_s28 + $0x348] sm:$0xff] %vm669_vm3, %v1608_v48  ;;  %v12522_v14 = vor.u32 %v12992_v10, %v12521_v37 }
 0x53c   : > { %9223 = vmatpush.bf16.msra.mxu3 %v12387_v35  ;;  %9236 = vmatpush.bf16.msra.mxu1 %v12391_v41  ;;  %v8300_v63 = vpop.f32.mrf.mxu1  ;;  %v12509_v41 = vld [vmem:[%s17834_s12 + $0x588] sm:$0xf] }
 0x53d   : > { %v17497_v35 = vadd.f32 %v8300_v63, %v17392_v4  ;;  %v12517_v4 = vld [vmem:[%s17834_s12 + $0x590] sm:$0xf]  ;;  %v12510_v47 = vor.u32 %v12989_v45, %v12509_v41 }
 0x53e   : > { %v12518_v18 = vor.u32 %v12990_v5, %v12517_v4  ;;  %v876_v4 = vld [vmem:[%s13789_s2 + $0x3f0] sm:$0xff] }
 0x53f   : > { %9211 = vmatpush.bf16.msrb.mxu2 %v12371_v1  ;;  %v1611_v1 = vadd.f32 %v17472_v12, %v1610_v8 }
 0x540   : > { %9224 = vmatpush.bf16.msra.mxu3 %v12375_v29  ;;  %9237 = vmatpush.bf16.msra.mxu1 %v12379_v15  ;;  %v12514_v29 = vor.u32 %v12988_v44, %v12511_v2  ;;  %v12499_v15 = vld [vmem:[%s17834_s12 + $0x57c] sm:$0xf0]  ;;  %v1613_v57 = vpop.f32.mrf.mxu0 }
 0x541   : > { %v8274_v34 = vpop.f32.mrf.mxu2  ;;  %v8287_v19 = vpop.f32.mrf.mxu3  ;;  %1782 = vst.msk [vmem:[%s14179_s28 + $0x350] sm:$0xff] %vm669_vm3, %v1611_v1  ;;  %9988 = vmatmul.msk.f32.gmra.mxu0 %vm886_vm2, %v871_v59 }
 0x542   : > { %v17532_v60 = vadd.f32 %v8274_v34, %v17432_v23  ;;  %v17543_v51 = vadd.f32 %v8287_v19, %v17435_v25  ;;  %v12502_v23 = vor.u32 %v12985_v11, %v12499_v15  ;;  %v12982_v25 = vld [vmem:[%s17834_s12 + $0x55c] sm:$0xf] }
 0x543   : > { %9212 = vmatpush.bf16.msrb.mxu2 %v12359_v16  ;;  %v12487_v16 = vld [vmem:[%s17834_s12 + $0x564] sm:$0xf0] }
 0x544   : > { %9225 = vmatpush.bf16.msra.mxu3 %v12363_v13  ;;  %9238 = vmatpush.bf16.msra.mxu1 %v12367_v22  ;;  %v8302_v52 = vpop.f32.mrf.mxu1  ;;  %v12493_v13 = vld [vmem:[%s17834_s12 + $0x560] sm:$0xf]  ;;  %v12486_v22 = vor.u32 %v12983_v24, %v12485_v28  ;;  %v12490_v26 = vor.u32 %v12982_v25, %v12487_v16 }
 0x545   : > { %v12494_v54 = vor.u32 %v12984_v33, %v12493_v13 }
 0x546   : > { %12440 = vmatmul.msk.bf16.vlgmr.msrb.gmra.mxu2 %vm746_vm14, %v9060_v49 }
 0x547   : > { %9394 = vmatpush.bf16.msra.mxu2 %v12546_v7  ;;  %12441 = vmatmul.msk.bf16.vlgmr.msra.gmra.mxu3 %vm746_vm14, %v9060_v49  ;;  %v12473_v7 = vld [vmem:[%s17834_s12 + $0x540] sm:$0xf] }
 0x548   : > { %9407 = vmatpush.bf16.msrb.mxu3 %v12550_v50  ;;  %9420 = vmatpush.bf16.msrb.mxu1 %v12554_v36  ;;  %v872_v50 = vld [vmem:[%s13789_s2 + $0x3d0] sm:$0xff]  ;;  %v1614_v36 = vadd.f32 %v17472_v12, %v1613_v57  ;;  %v12474_v37 = vor.u32 %v12980_v39, %v12473_v7  ;;  %v1616_v3 = vpop.f32.mrf.mxu0 }
 0x549   : > { %12442 = vmatmul.msk.bf16.vlgmr.msra.gmra.mxu1 %vm746_vm14, %v9060_v49  ;;  %v12979_v49 = vld [vmem:[%s17834_s12 + $0x544] sm:$0xf]  ;;  %v8276_v42 = vpop.f32.mrf.mxu2  ;;  %9989 = vmatmul.msk.f32.gmra.mxu0 %vm886_vm2, %v872_v50  ;;  %v1617_v10 = vadd.f32 %v17472_v12, %v1616_v3 }
 0x54a   : > { %1783 = vst.msk [vmem:[%s14179_s28 + $0x358] sm:$0xff] %vm669_vm3, %v1614_v36  ;;  %v12478_v48 = vor.u32 %v12979_v49, %v12475_v53 }
 0x54b   : > { %9395 = vmatpush.bf16.msra.mxu2 %v12534_v32  ;;  %v8289_v32 = vpop.f32.mrf.mxu3  ;;  %1784 = vst.msk [vmem:[%s14179_s28 + $0x360] sm:$0xff] %vm669_vm3, %v1617_v10 }
 0x54c   : > { %9408 = vmatpush.bf16.msrb.mxu3 %v12538_v6  ;;  %9421 = vmatpush.bf16.msrb.mxu1 %v12542_v40  ;;  %v12482_v6 = vor.u32 %v12981_v0, %v12481_v55  ;;  %v9248_v40 = vpack.c.bf16 %v9247_v46, %v9247_v46 }
 0x54f   : > { %9396 = vmatpush.bf16.msra.mxu2 %v12522_v14 }
 0x550   : > { %9409 = vmatpush.bf16.msrb.mxu3 %v12526_v20  ;;  %9422 = vmatpush.bf16.msrb.mxu1 %v12530_v56  ;;  %v1619_v58 = vpop.f32.mrf.mxu0 }
 0x551   : > { %9990 = vmatmul.msk.f32.gmra.mxu0 %vm886_vm2, %v873_v27  ;;  %v1620_v17 = vadd.f32 %v17472_v12, %v1619_v58 }
 0x553   : > { %9397 = vmatpush.bf16.msra.mxu2 %v12510_v47  ;;  %1785 = vst.msk [vmem:[%s14179_s28 + $0x368] sm:$0xff] %vm669_vm3, %v1620_v17 }
 0x554   : > { %9410 = vmatpush.bf16.msrb.mxu3 %v12514_v29  ;;  %9423 = vmatpush.bf16.msrb.mxu1 %v12518_v18 }
 0x557   : > { %9398 = vmatpush.bf16.msra.mxu2 %v12498_v21 }
 0x558   : > { %9411 = vmatpush.bf16.msrb.mxu3 %v12502_v23  ;;  %9424 = vmatpush.bf16.msrb.mxu1 %v12506_v43  ;;  %v1622_v14 = vpop.f32.mrf.mxu0 }
 0x559   : > { %9991 = vmatmul.msk.f32.gmra.mxu0 %vm886_vm2, %v874_v30  ;;  %v1623_v56 = vadd.f32 %v17472_v12, %v1622_v14 }
 0x55b   : > { %9399 = vmatpush.bf16.msra.mxu2 %v12486_v22  ;;  %1786 = vst.msk [vmem:[%s14179_s28 + $0x370] sm:$0xff] %vm669_vm3, %v1623_v56 }
 0x55c   : > { %9412 = vmatpush.bf16.msrb.mxu3 %v12490_v26  ;;  %9425 = vmatpush.bf16.msrb.mxu1 %v12494_v54 }
 0x55f   : > { %9400 = vmatpush.bf16.msra.mxu2 %v12474_v37 }
 0x560   : > { %9413 = vmatpush.bf16.msrb.mxu3 %v12478_v48  ;;  %9426 = vmatpush.bf16.msrb.mxu1 %v12482_v6  ;;  %v1625_v8 = vpop.f32.mrf.mxu0 }
 0x561   : > { %9992 = vmatmul.msk.f32.gmra.mxu0 %vm886_vm2, %v875_v62 }
 0x562   : > { %12555 = vmatmul.msk.bf16.vlgmr.msra.gmra.mxu2 %vm746_vm14, %v9248_v40  ;;  %v8488_v63 = vpop.f32.mrf.mxu1 }
 0x563   : > { %12556 = vmatmul.msk.bf16.vlgmr.msrb.gmra.mxu3 %vm746_vm14, %v9248_v40  ;;  %12557 = vmatmul.msk.bf16.vlgmr.msrb.gmra.mxu1 %vm746_vm14, %v9248_v40  ;;  %v8494_v20 = vadd.f32 %v8488_v63, %v17497_v35  ;;  %v1626_v35 = vadd.f32 %v17472_v12, %v1625_v8 }
 0x565   : > { %1787 = vst.msk [vmem:[%s14179_s28 + $0x378] sm:$0xff] %vm669_vm3, %v1626_v35 }
 0x566   : > { %v8475_v45 = vpop.f32.mrf.mxu3 }
 0x567   : > { %v8493_v2 = vadd.f32 %v8475_v45, %v17543_v51 }
 0x568   : > { %v8462_v41 = vpop.f32.mrf.mxu2  ;;  %v1628_v29 = vpop.f32.mrf.mxu0 }
 0x569   : > { %v8492_v44 = vadd.f32 %v8462_v41, %v17532_v60  ;;  %9993 = vmatmul.msk.f32.gmra.mxu0 %vm886_vm2, %v876_v4  ;;  %v1629_v18 = vadd.f32 %v17472_v12, %v1628_v29 }
 0x56a   : > { %v8490_v5 = vpop.f32.mrf.mxu1 }
 0x56b   : > { %1788 = vst.msk [vmem:[%s14179_s28 + $0x380] sm:$0xff] %vm669_vm3, %v1629_v18 }
 0x56e   : > { %v8477_v38 = vpop.f32.mrf.mxu3 }
 0x570   : > { %v8464_v47 = vpop.f32.mrf.mxu2  ;;  %v1631_v19 = vpop.f32.mrf.mxu0 }
 0x571   : > { %v1632_v9 = vadd.f32 %v17472_v12, %v1631_v19 }
 0x572   : > { %v8676_v59 = vpop.f32.mrf.mxu1 }
 0x573   : > { %v17613_v1 = vadd.f32 %v8676_v59, %v8494_v20  ;;  %1789 = vst.msk [vmem:[%s14179_s28 + $0x388] sm:$0xff] %vm669_vm3, %v1632_v9 }
 0x576   : > { %v8663_v11 = vpop.f32.mrf.mxu3 }
 0x577   : > { %v17621_v15 = vadd.f32 %v8663_v11, %v8493_v2 }
 0x578   : > { %v8650_v34 = vpop.f32.mrf.mxu2 }
 0x579   : > { %v17619_v61 = vadd.f32 %v8650_v34, %v8492_v44 }
 0x57a   : > { %v8678_v60 = vpop.f32.mrf.mxu1 }
 0x580   : > { %v8652_v31 = vpop.f32.mrf.mxu2 }
 0x581   : > { %13318 = shalt.err (!%p13315_p3)
}
 0x582   : > { %s17853_s7 = smov 128   ;;  %s13478_s2 = smov 8   ;;  %v8665_v51 = vpop.f32.mrf.mxu3 }
 0x583   : > { %13010 = dma.vmem_to_hbm [thread:$0]  (%p13619_p5), %s9580_s26, 1024, %s9582_s11, %s17640_s22, %s17853_s7, %s17853_s7, %s13478_s2  }
 0x584   : > { %s9613_s29 = sshll.u32 %s16507_s20, 4  ;;  %s9615_s0 = sshll.u32 %s17631_s8, 4  ;;  %s9614_s29 = int_to_ptr.vmem [resolvable:$true] %s9613_s29  ;;  %s9616_s0 = int_to_ptr.hbm [resolvable:$true] %s9615_s0 }
 0x585   : > { %s13000_s5 = sshll.u32 %s13600_s1, 8  ;;  %s17661_s10 = scalar_lea.sflag [#allocation12], %s9531_s14 }
 0x586   : > { %s13333_s23 = sshra.s32 %s9616_s0, 4  ;;  %s13339_s26 = scalar_lea.hbm %s17840_s18, 8  ;;  %s13334_s23 = int_to_ptr.hbm [resolvable:$true] %s13333_s23 }
 0x587   : > { %s13335_s9 = scalar_lea.hbm %s13334_s23, 4  ;;  %p13340_p9 = scmp.lt.s32.totalorder %s13334_s23, %s17840_s18 }
 0x588   : > { %p13336_p4 = scmp.ne.s32.totalorder %s13334_s23, %s13335_s9  ;;  %p13341_p10 = scmp.lt.s32.totalorder %s13339_s26, %s13335_s9 }
 0x58a   : > { %p13337_p7 = pnand %p13336_p4, %p13619_p5  ;;  %p13342_p11 = por %p13341_p10, %p13340_p9 }
 0x58c   : > { %p13338_p8 = pneg %p13337_p7 }
 0x58e   : > { %p13343_p12 = pnand %p13342_p11, %p13338_p8 }
 0x590   : > { %13346 = shalt.err (!%p13343_p12)
}
 0x591   : > { %13012 = dma.vmem_to_hbm [thread:$0]  (%p13619_p5), %s9614_s29, 64, %s9616_s0, %s17661_s10   ;;  %v8864_v21 = vpop.f32.mrf.mxu1  ;;  %v1634_v52 = vpop.f32.mrf.mxu0 }
 0x592   : > { %s9561_s14 = scalar_lea.hbm %s17837_s15, %s13000_s5  ;;  %s9562_s23 = sshll.u32 %s13843_s25, 4  ;;  %v17679_v23 = vadd.f32 %v8864_v21, %v17613_v1  ;;  %v1635_v43 = vadd.f32 %v17472_v12, %v1634_v52  ;;  %s9563_s23 = int_to_ptr.vmem [resolvable:$true] %s9562_s23 }
 0x593   : > { %s9564_s9 = sshll.u32 %s9561_s14, 4  ;;  %s13002_s6 = sshll.u32 %s13600_s1, 4  ;;  %s9565_s9 = int_to_ptr.hbm [resolvable:$true] %s9564_s9 }
 0x594   : > { %s17938_s26 = sshll.u32 %s15826_s24, 4  ;;  %1790 = vst.msk [vmem:[%s14179_s28 + $0x390] sm:$0xff] %vm669_vm3, %v1635_v43  ;;  %s9595_s5 = scalar_lea.hbm %s17839_s17, %s13002_s6  ;;  %s17685_s26 = int_to_ptr.vmem [resolvable:$true] %s17938_s26 }
 0x595   : > { %s9527_s11 = scalar_lea.sflag [#allocation7], %s13822_s27  ;;  %s13361_s25 = sshra.s32 %s9565_s9, 4  ;;  %s13362_s25 = int_to_ptr.hbm [resolvable:$true] %s13361_s25 }
 0x596   : > { %s13363_s20 = scalar_lea.hbm %s13362_s25, 256  ;;  %s13367_s24 = scalar_lea.hbm %s17837_s15, 512 }
 0x597   : > { %p13364_p13 = scmp.ne.s32.totalorder %s13362_s25, %s13363_s20  ;;  %p13368_p2 = scmp.lt.s32.totalorder %s13362_s25, %s17837_s15 }
 0x598   : > { %p13369_p3 = scmp.lt.s32.totalorder %s13367_s24, %s13363_s20 }
 0x599   : > { %p13365_p0 = pnand %p13364_p13, %p13619_p5 }
 0x59a   : > { %p13370_p4 = por %p13369_p3, %p13368_p2 }
 0x59b   : > { %p13366_p1 = pneg %p13365_p0 }
 0x59d   : > { %p13371_p7 = pnand %p13370_p4, %p13366_p1 }
 0x59f   : > { %13374 = shalt.err (!%p13371_p7)
}
 0x5a0   : > { %s17939_s6 = smov 128   ;;  %v8838_v28 = vpop.f32.mrf.mxu2  ;;  %v8851_v24 = vpop.f32.mrf.mxu3  ;;  %s9598_s29 = sshll.u32 %s9595_s5, 4  ;;  %s9599_s29 = int_to_ptr.hbm [resolvable:$true] %s9598_s29 }
 0x5a1   : > { %13009 = dma.vmem_to_hbm [thread:$0]  (%p13619_p5), %s9563_s23, 4096, %s9565_s9, %s9527_s11, %s17939_s6, %s17939_s6, %s13478_s2   ;;  %v17707_v25 = vadd.f32 %v8838_v28, %v17619_v61  ;;  %v17710_v16 = vadd.f32 %v8851_v24, %v17621_v15 }
 0x5a2   : > { %s13389_s7 = sshra.s32 %s9599_s29, 4  ;;  %s13395_s23 = scalar_lea.hbm %s17839_s17, 32  ;;  %s13390_s7 = int_to_ptr.hbm [resolvable:$true] %s13389_s7 }
 0x5a3   : > { %s13391_s0 = scalar_lea.hbm %s13390_s7, 16  ;;  %p13396_p11 = scmp.lt.s32.totalorder %s13390_s7, %s17839_s17 }
 0x5a4   : > { %p13392_p8 = scmp.ne.s32.totalorder %s13390_s7, %s13391_s0  ;;  %p13397_p12 = scmp.lt.s32.totalorder %s13395_s23, %s13391_s0 }
 0x5a6   : > { %p13393_p9 = pnand %p13392_p8, %p13619_p5  ;;  %p13398_p13 = por %p13397_p12, %p13396_p11 }
 0x5a8   : > { %p13394_p10 = pneg %p13393_p9 }
 0x5aa   : > { %p13399_p0 = pnand %p13398_p13, %p13394_p10 }
 0x5ac   : > { %13402 = shalt.err (!%p13399_p0)
}
 0x5ad   : > { %13011 = dma.vmem_to_hbm [thread:$0]  (%p13619_p5), %s17685_s26, 256, %s9599_s29, %s17640_s22, %s17939_s6, %s17939_s6, %s13478_s2   ;;  %v8866_v13 = vpop.f32.mrf.mxu1  ;;  %v1637_v33 = vpop.f32.mrf.mxu0  ;;  %vm9511_vm0 = vcmask 1040384   ;;  %vm9513_vm1 = vcmask 1041408  }
 0x5ae   : > { %v1638_v57 = vadd.f32 %v17472_v12, %v1637_v33  ;;  %v8840_v22 = vpop.f32.mrf.mxu2  ;;  %v8853_v7 = vpop.f32.mrf.mxu3  ;;  %v9435_v56 = vld [vmem:[%s17835_s13] sm:$0x7]  ;;  %s13008_s26 = smul.u32 3, %s13600_s1  ;;  %s13423_s0 = scalar_lea.hbm %s17841_s19, 6 }
 0x5af   : > { %v9439_v44 = vperm.slane %v9435_v56, 2  ;;  %v9437_v1 = vperm.slane %v9435_v56, 0  ;;  %v9438_v61 = vperm.slane %v9435_v56, 1 }
 0x5b0   : > { %1791 = vst.msk [vmem:[%s14179_s28 + $0x398] sm:$0xff] %vm669_vm3, %v1638_v57  ;;  %s9625_s4 = scalar_lea.hbm %s17841_s19, %s13008_s26 }
 0x5b1   : > { %s9629_s24 = sshll.u32 %s9625_s4, 4  ;;  %s9630_s24 = int_to_ptr.hbm [resolvable:$true] %s9629_s24 }
 0x5b2   : > { %s13417_s14 = sshra.s32 %s9630_s24, 4  ;;  %s13418_s14 = int_to_ptr.hbm [resolvable:$true] %s13417_s14 }
 0x5b3   : > { %s13419_s6 = scalar_lea.hbm %s13418_s14, 3  ;;  %p13424_p4 = scmp.lt.s32.totalorder %s13418_s14, %s17841_s19 }
 0x5b4   : > { %p13420_p1 = scmp.ne.s32.totalorder %s13418_s14, %s13419_s6  ;;  %p13425_p7 = scmp.lt.s32.totalorder %s13423_s0, %s13419_s6 }
 0x5b5   : > { %v1640_v50 = vpop.f32.mrf.mxu0  ;;  %v9052_v26 = vpop.f32.mrf.mxu1 }
 0x5b6   : > { %v1641_v36 = vadd.f32 %v17472_v12, %v1640_v50  ;;  %v9026_v49 = vpop.f32.mrf.mxu2  ;;  %v9039_v53 = vpop.f32.mrf.mxu3  ;;  %v9058_v41 = vadd.f32 %v9052_v26, %v17679_v23  ;;  %p13421_p2 = pnand %p13420_p1, %p13619_p5  ;;  %p13426_p8 = por %p13425_p7, %p13424_p4 }
 0x5b7   : > { %v9056_v35 = vadd.f32 %v9026_v49, %v17707_v25  ;;  %v9057_v47 = vadd.f32 %v9039_v53, %v17710_v16 }
 0x5b8   : > { %1792 = vst.msk [vmem:[%s14179_s28 + $0x3a0] sm:$0xff] %vm669_vm3, %v1641_v36  ;;  %p13422_p3 = pneg %p13421_p2 }
 0x5ba   : > { %p13427_p9 = pnand %p13426_p8, %p13422_p3 }
 0x5bd   : > { %v1643_v54 = vpop.f32.mrf.mxu0  ;;  %v9054_v42 = vpop.f32.mrf.mxu1 }
 0x5be   : > { %v1644_v39 = vadd.f32 %v17472_v12, %v1643_v54  ;;  %v9028_v32 = vpop.f32.mrf.mxu2  ;;  %v9041_v37 = vpop.f32.mrf.mxu3 }
 0x5c0   : > { %1793 = vst.msk [vmem:[%s14179_s28 + $0x3a8] sm:$0xff] %vm669_vm3, %v1644_v39 }
 0x5c5   : > { %v1646_v55 = vpop.f32.mrf.mxu0 }
 0x5c6   : > { %v1647_v0 = vadd.f32 %v17472_v12, %v1646_v55  ;;  %v9240_v6 = vpop.f32.mrf.mxu1 }
 0x5c7   : > { %v9246_v45 = vadd.f32 %v9240_v6, %v9058_v41 }
 0x5c8   : > { %1794 = vst.msk [vmem:[%s14179_s28 + $0x3b0] sm:$0xff] %vm669_vm3, %v1647_v0 }
 0x5c9   : > { %v9214_v3 = vpop.f32.mrf.mxu2 }
 0x5ca   : > { %v9227_v10 = vpop.f32.mrf.mxu3  ;;  %v9244_v59 = vadd.f32 %v9214_v3, %v9056_v35 }
 0x5cb   : > { %v9245_v29 = vadd.f32 %v9227_v10, %v9057_v47 }
 0x5cd   : > { %v1649_v46 = vpop.f32.mrf.mxu0 }
 0x5ce   : > { %v1650_v48 = vadd.f32 %v17472_v12, %v1649_v46  ;;  %v9242_v30 = vpop.f32.mrf.mxu1 }
 0x5d0   : > { %1795 = vst.msk [vmem:[%s14179_s28 + $0x3b8] sm:$0xff] %vm669_vm3, %v1650_v48 }
 0x5d1   : > { %v9216_v63 = vpop.f32.mrf.mxu2 }
 0x5d2   : > { %v9229_v62 = vpop.f32.mrf.mxu3 }
 0x5d5   : > { %v1652_v40 = vpop.f32.mrf.mxu0 }
 0x5d6   : > { %v1653_v27 = vadd.f32 %v17472_v12, %v1652_v40 }
 0x5d8   : > { %1796 = vst.msk [vmem:[%s14179_s28 + $0x3c0] sm:$0xff] %vm669_vm3, %v1653_v27 }
 0x5dd   : > { %v1655_v58 = vpop.f32.mrf.mxu0 }
 0x5de   : > { %v1656_v17 = vadd.f32 %v17472_v12, %v1655_v58 }
 0x5e0   : > { %1797 = vst.msk [vmem:[%s14179_s28 + $0x3c8] sm:$0xff] %vm669_vm3, %v1656_v17  ;;  %v9428_v4 = vpop.f32.mrf.mxu1 }
 0x5e1   : > { %v9434_v8 = vadd.f32 %v9428_v4, %v9246_v45 }
 0x5e3   : > { %v17760_v38 = vadd.f32 %v9439_v44, %v9434_v8  ;;  %v9516_v8 = vlaneseq }
 0x5e5   : > { %v1658_v14 = vpop.f32.mrf.mxu0  ;;  %v12560_v18 = vmul.f32 -1.442695, %v17760_v38  ;;  %v9402_v34 = vpop.f32.mrf.mxu2  ;;  %vm9518_vm6 = vcmp.lt.s32.totalorder %v9516_v8, 320 }
 0x5e6   : > { %v1659_v20 = vadd.f32 %v17472_v12, %v1658_v14  ;;  %v9432_v11 = vadd.f32 %v9402_v34, %v9244_v59  ;;  %v9415_v15 = vpop.f32.mrf.mxu3 }
 0x5e7   : > { %13272 = vpow2.f32 %v12560_v18  ;;  %v9433_v60 = vadd.f32 %v9415_v15, %v9245_v29 }
 0x5e8   : > { %1798 = vst.msk [vmem:[%s14179_s28 + $0x3d0] sm:$0xff] %vm669_vm3, %v1659_v20  ;;  %v17763_v9 = vadd.f32 %v9437_v1, %v9432_v11  ;;  %v9430_v31 = vpop.f32.mrf.mxu1 }
 0x5e9   : > { %v17766_v21 = vadd.f32 %v9438_v61, %v9433_v60 }
 0x5ea   : > { %v12558_v52 = vmul.f32 -1.442695, %v17763_v9 }
 0x5eb   : > { %v12559_v23 = vmul.f32 -1.442695, %v17766_v21 }
 0x5ec   : > { %13274 = vpow2.f32 %v12558_v52 }
 0x5ed   : > { %v1661_v2 = vpop.f32.mrf.mxu0  ;;  %v13273_v43 = vpop.eup %13272  ;;  %13276 = vpow2.f32 %v12559_v23 }
 0x5ee   : > { %v1662_v5 = vadd.f32 %v17472_v12, %v1661_v2  ;;  %v9404_v28 = vpop.f32.mrf.mxu2  ;;  %v9457_v24 = vadd.f32 1.0, %v13273_v43  ;;  %v9417_v25 = vpop.f32.mrf.mxu3 }
 0x5f0   : > { %1799 = vst.msk [vmem:[%s14179_s28 + $0x3d8] sm:$0xff] %vm669_vm3, %v1662_v5  ;;  %13278 = vrcp.f32 %v9457_v24  ;;  %v9499_v42 = vand.u32 2147483648, %v9457_v24  ;;  %vm9493_vm7 = vweird.f32 %v9457_v24  ;;  %v9497_v46 = vand.u32 2147483647, %v9457_v24 }
 0x5f2   : > { %v13275_v33 = vpop.eup %13274  ;;  %vm9498_vm9 = vcmp.eq.f32.partialorder %v9497_v46, 8.507059e+37 }
 0x5f3   : > { %v13277_v57 = vpop.eup %13276  ;;  %v9455_v22 = vadd.f32 1.0, %v13275_v33 }
 0x5f4   : > { %v9456_v7 = vadd.f32 1.0, %v13277_v57 }
 0x5f5   : > { %v1664_v19 = vpop.f32.mrf.mxu0  ;;  %13280 = vrcp.f32 %v9455_v22  ;;  %v9469_v40 = vand.u32 2147483648, %v9455_v22  ;;  %v9467_v58 = vand.u32 2147483647, %v9455_v22  ;;  %vm9463_vm14 = vweird.f32 %v9455_v22 }
 0x5f6   : > { %v1665_v51 = vadd.f32 %v17472_v12, %v1664_v19  ;;  %v13279_v50 = vpop.eup %13278  ;;  %13282 = vrcp.f32 %v9456_v7  ;;  %v9484_v30 = vand.u32 2147483648, %v9456_v7  ;;  %v9482_v62 = vand.u32 2147483647, %v9456_v7 }
 0x5f7   : > { %v9489_v36 = vmul.f32 %v13279_v50, %v9457_v24  ;;  %vm9494_vm2 = vweird.f32 %v13279_v50  ;;  %vm9478_vm11 = vweird.f32 %v9456_v7  ;;  %v9470_v41 = vor.u32 1.1754944e-38, %v9469_v40 }
 0x5f8   : > { %1800 = vst.msk [vmem:[%s14179_s28 + $0x3e0] sm:$0xff] %vm669_vm3, %v1665_v51  ;;  %vm17778_vm4 = vmor %vm9493_vm7, %vm9494_vm2  ;;  %v9485_v45 = vor.u32 1.1754944e-38, %v9484_v30  ;;  %vm9468_vm13 = vcmp.eq.f32.partialorder %v9467_v58, 8.507059e+37  ;;  %vm9483_vm15 = vcmp.eq.f32.partialorder %v9482_v62, 8.507059e+37 }
 0x5f9   : > { %v9490_v39 = vsub.f32 1.0, %v9489_v36 }
 0x5fb   : > { %v13281_v49 = vpop.eup %13280  ;;  %v9491_v53 = vmul.f32 %v13279_v50, %v9490_v39 }
 0x5fc   : > { %v13283_v55 = vpop.eup %13282  ;;  %v9459_v0 = vmul.f32 %v13281_v49, %v9455_v22 }
 0x5fd   : > { %v1667_v16 = vpop.f32.mrf.mxu0  ;;  %v9492_v32 = vadd.f32 %v13279_v50, %v9491_v53  ;;  %v9474_v37 = vmul.f32 %v13283_v55, %v9456_v7  ;;  %vm9479_vm8 = vweird.f32 %v13283_v55 }
 0x5fe   : > { %v1668_v13 = vadd.f32 %v17472_v12, %v1667_v16  ;;  %v9460_v48 = vsub.f32 1.0, %v9459_v0  ;;  %vm9480_vm12 = vmor %vm9478_vm11, %vm9479_vm8 }
 0x5ff   : > { %v9475_v27 = vsub.f32 1.0, %v9474_v37  ;;  %v9496_v3 = vsel %vm17778_vm4, %v13279_v50, %v9492_v32 }
 0x600   : > { %1801 = vst.msk [vmem:[%s14179_s28 + $0x3e8] sm:$0xff] %vm669_vm3, %v1668_v13  ;;  %v9461_v10 = vmul.f32 %v13281_v49, %v9460_v48 }
 0x601   : > { %v9476_v17 = vmul.f32 %v13283_v55, %v9475_v27 }
 0x602   : > { %v9462_v63 = vadd.f32 %v13281_v49, %v9461_v10 }
 0x603   : > { %v9477_v20 = vadd.f32 %v13283_v55, %v9476_v17 }
 0x605   : > { %v1670_v26 = vpop.f32.mrf.mxu0  ;;  %v9481_v44 = vsel %vm9480_vm12, %v13283_v55, %v9477_v20 }
 0x606   : > { %v1671_v54 = vadd.f32 %v17472_v12, %v1670_v26  ;;  %v9500_v12 = vor.u32 1.1754944e-38, %v9499_v42  ;;  %v9486_v5 = vsel %vm9483_vm15, %v9485_v45, %v9481_v44 }
 0x607   : > { %v9504_v35 = vmul.f32 %v9486_v5, %v17766_v21 }
 0x608   : > { %1802 = vst.msk [vmem:[%s14179_s28 + $0x3f0] sm:$0xff] %vm669_vm3, %v1671_v54  ;;  %vm9464_vm3 = vweird.f32 %v13281_v49  ;;  %s13007_s28 = smul.u32 3, %s13822_s27  ;;  %v9501_v14 = vsel %vm9498_vm9, %v9500_v12, %v9496_v3 }
 0x609   : > { %vm9465_vm10 = vmor %vm9463_vm14, %vm9464_vm3  ;;  %v9505_v2 = vmul.f32 %v9501_v14, %v17760_v38  ;;  %v9509_v59 = vrot.slane %v9504_v35, 7 }
 0x60a   : > { %v9466_v56 = vsel %vm9465_vm10, %v13281_v49, %v9462_v63  ;;  %s652_s1 = scalar_lea.vmem [#allocation13], %s13007_s28 }
 0x60b   : > { %v9471_v4 = vsel %vm9468_vm13, %v9470_v41, %v9466_v56  ;;  %s9627_s8 = sshll.u32 %s652_s1, 4  ;;  %v9510_v1 = vrot.slane %v9505_v2, 6  ;;  %s9628_s8 = int_to_ptr.vmem [resolvable:$true] %s9627_s8 }
 0x60c   : > { %v9503_v47 = vmul.f32 %v9471_v4, %v17763_v9 }
 0x60e   : > { %v9512_v29 = vsel %vm9511_vm0, %v9503_v47, %v9509_v59 }
 0x60f   : > { %v9514_v38 = vsel %vm9513_vm1, %v9512_v29, %v9510_v1 }
 0x610   : > { %9520 = vst.msk [vmem:[%s652_s1] sm:$0x7] %vm9518_vm6, %v9514_v38 }
 0x611   : > { %13430 = shalt.err (!%p13427_p9)
}
 0x612   : > { %13013 = dma.vmem_to_hbm [thread:$0]  (%p13619_p5), %s9628_s8, 48, %s9630_s24, %s17661_s10  }
 0x613 PF: > { %s17942_s23 = sld [smem:[#allocation17_spill]]  ;;  %p13035_p10 = scmp.ge.s32.totalorder %s13473_s21, 2 }
 0x615   : > { %p13020_p11 = pnand %p13035_p10, %p13623_p6 }
 0x617   : > { %p13021_p12 = pneg %p13020_p11 }
 0x619   : > { %s9649_s5 = sand.u32 1, %s17942_s23  }
 0x61a   : > { %s9650_s2 = scalar_lea.sflag [#allocation7], %s9649_s5 }
 0x61b   : > { %13448 = dma.done.wait (%p13021_p12), %s9650_s2, 4096  }
 0x61c   : > { %13450 = vsyncadd (%p13021_p12), %s9650_s2, 4294963200  ;;  %s17944_s22 = sadd.s32 4294967294, %s13473_s21  }
 0x61d   : > { %s9659_s28 = sand.u32 1, %s17944_s22  }
 0x61e   : > { %s9660_s26 = scalar_lea.sflag [#allocation9], %s9659_s28 }
 0x61f   : > { %13452 = dma.done.wait (%p13021_p12), %s9660_s26, 1280  }
 0x620   : > { %13454 = vsyncadd (%p13021_p12), %s9660_s26, 4294966016  ;;  %s9680_s3 = scalar_lea.sflag [#allocation12], %s9659_s28 }
 0x621   : > { %13456 = dma.done.wait (%p13021_p12), %s9680_s3, 112  }
 0x622   : > { %13458 = vsyncadd (%p13021_p12), %s9680_s3, 4294967184  ;;  %s17945_s21 = sld [smem:[#allocation19_spill]]  ;;  %s17948_s0 = smov %s13465_s30 }
 0x623   : > { %s17946_s10 = sld [smem:[#allocation18_spill]] }
 0x624   : > { %s17947_s20 = sld [smem:[#allocation20_spill]] }
 0x628   : > { %p36_p5 = scmp.ge.s32.totalorder %s17945_s21, 4  }
 0x629   : > { %s17949_s30 = smov %s17946_s10 }
 0x62a   :  { %38 = sbr.rel (!%p36_p5) target bundleno = 21 (0x15), region = 312 }
 0x62f   :  { %9696 = vsyncpa [#allocation7], 1 }
 0x630   :  { %9698 = vsyncpa [#allocation7 + $0x1], 1 }
 0x631   :  { %9699 = vsyncpa [#allocation9], 1 }
 0x632   :  { %9701 = vsyncpa [#allocation9 + $0x1], 1 }
 0x633   :  { %9702 = vsyncpa [#allocation12], 1 }
 0x634   :  { %9704 = vsyncpa [#allocation12 + $0x1], 1 }

</bundles_post_ra>
